<compile_context>
chip_gen: v7x
topology: tpu7x:2x2x1
jax: 0.10.0
libtpu: 0.0.40
codegen_flags: <defaults>
</compile_context>

<pallas_src>
import jax
import jax.numpy as jnp
from jax import lax
from jax.experimental import pallas as pl
from jax.experimental.pallas import tpu as pltpu


# Column (sublane) offset where the image interior starts inside the padded VMEM
# scratch.  8 is sublane-aligned and leaves >=1 zero halo column on each side.
_COL_BASE = 8


def _fill_padded(xpad_ref, src, H, W):
    """Zero the halo scratch and drop the (H, W, Cin) image at an aligned offset."""
    xpad_ref[...] = jnp.zeros_like(xpad_ref)
    xpad_ref[1:H + 1, _COL_BASE:_COL_BASE + W, :] = src.astype(xpad_ref.dtype)


def _conv3x3(xpad_ref, w_ref, scale_ref, bias_ref, H, W):
    """3x3 'same' conv as ONE im2col matmul + folded BN + ReLU.

    xpad_ref : (H+2, W+16, Cin) f32 halo scratch (image at rows 1..H, cols 8..8+W)
    w_ref    : (9*Cin, Cout)    bf16 weights, row index = (dy*3+dx)*Cin + cin
    scale_ref/bias_ref : (1, Cout) f32 folded BN scale / bias(+conv bias)
    returns  : (H*W, Cout) f32 with ReLU applied
    """
    cin = xpad_ref.shape[-1]
    taps = []
    for dy in range(3):
        for dx in range(3):
            c0 = _COL_BASE - 1 + dx
            taps.append(xpad_ref[dy:dy + H, c0:c0 + W, :].reshape(H * W, cin))
    col = jnp.concatenate(taps, axis=-1).astype(jnp.bfloat16)   # (H*W, 9*Cin)
    y = jnp.dot(col, w_ref[...], preferred_element_type=jnp.float32)
    y = y * scale_ref[...] + bias_ref[...]
    return jnp.maximum(y, 0.0)


def _context_kernel(x_ref, wa_ref, sa_ref, ba_ref, wb_ref, sb_ref, bb_ref,
                    wc_ref, sc_ref, bc_ref, o_ref, xpad_a, xpad_h):
    _, H, W, C = x_ref.shape
    Ch = C // 2

    # Level 1: det_conv1 (+fused concat-ReLU) and det_context_conv1 (+own ReLU).
    _fill_padded(xpad_a, x_ref[0], H, W)
    ya = _conv3x3(xpad_a, wa_ref, sa_ref, ba_ref, H, W)          # (H*W, C + Ch)
    x1 = ya[:, :C]
    x_mid = ya[:, C:]                                            # (H*W, Ch)

    # Level 2: det_context_conv2 (+concat-ReLU) and det_context_conv3_1 (+own ReLU).
    _fill_padded(xpad_h, x_mid.reshape(H, W, Ch), H, W)
    yb = _conv3x3(xpad_h, wb_ref, sb_ref, bb_ref, H, W)          # (H*W, 2*Ch)
    x2 = yb[:, :Ch]
    x3_mid = yb[:, Ch:]

    # Level 3: det_context_conv3_2 (+concat-ReLU).  Reuses the half-width scratch.
    _fill_padded(xpad_h, x3_mid.reshape(H, W, Ch), H, W)
    x3 = _conv3x3(xpad_h, wc_ref, sc_ref, bc_ref, H, W)          # (H*W, Ch)

    out = jnp.concatenate([x1, x2, x3], axis=-1)                 # (H*W, 2*C)
    o_ref[...] = out.reshape(1, H, W, 2 * C).astype(o_ref.dtype)


def context_module_pallas(x_nhwc, packed):
    """x_nhwc: (N, H, W, C) f32.  Returns (N, H, W, 2C) = relu(cat(x1, x2, x3))."""
    N, H, W, C = x_nhwc.shape
    Ch = C // 2
    Ca = C + Ch
    wa, sa, ba, wb, sb, bb, wc, sc, bc = packed

    return pl.pallas_call(
        _context_kernel,
        out_shape=jax.ShapeDtypeStruct((N, H, W, 2 * C), x_nhwc.dtype),
        grid=(N,),
        in_specs=[
            pl.BlockSpec((1, H, W, C), lambda n: (n, 0, 0, 0)),      # x
            pl.BlockSpec((9 * C, Ca), lambda n: (0, 0)),             # merged W (lvl 1)
            pl.BlockSpec((1, Ca), lambda n: (0, 0)),                 # scale
            pl.BlockSpec((1, Ca), lambda n: (0, 0)),                 # bias
            pl.BlockSpec((9 * Ch, 2 * Ch), lambda n: (0, 0)),        # merged W (lvl 2)
            pl.BlockSpec((1, 2 * Ch), lambda n: (0, 0)),
            pl.BlockSpec((1, 2 * Ch), lambda n: (0, 0)),
            pl.BlockSpec((9 * Ch, Ch), lambda n: (0, 0)),            # W (lvl 3)
            pl.BlockSpec((1, Ch), lambda n: (0, 0)),
            pl.BlockSpec((1, Ch), lambda n: (0, 0)),
        ],
        out_specs=pl.BlockSpec((1, H, W, 2 * C), lambda n: (n, 0, 0, 0)),
        scratch_shapes=[
            pltpu.VMEM((H + 2, W + 16, C), jnp.float32),   # halo scratch, full width
            pltpu.VMEM((H + 2, W + 16, Ch), jnp.float32),  # halo scratch, half width
        ],
        compiler_params=pltpu.CompilerParams(
            dimension_semantics=("parallel",),
            vmem_limit_bytes=64 * 1024 * 1024,
        ),
    )(x_nhwc, wa, sa, ba, wb, sb, bb, wc, sc, bc)


@jax.jit
def context_module_forward(x_nchw, packed):
    """Reproduces ContextModule.forward.  Input/output are NCHW like PyTorch."""
    x = jnp.transpose(x_nchw, (0, 2, 3, 1))          # NCHW -> NHWC
    out = context_module_pallas(x, packed)           # (N, H, W, 2C)
    return jnp.transpose(out, (0, 3, 1, 2))          # NHWC -> NCHW


# ---------------------------------------------------------------------------
# Parameter construction (deterministic, mimics nn.Conv2d + eval nn.BatchNorm2d)
# ---------------------------------------------------------------------------
def _make_conv_bn_params(key, cin, cout):
    kw, kb, kg, kbeta = jax.random.split(key, 4)
    w = 0.05 * jax.random.normal(kw, (3, 3, cin, cout), jnp.float32)
    conv_b = 0.05 * jax.random.normal(kb, (cout,), jnp.float32)
    gamma = 1.0 + 0.05 * jax.random.normal(kg, (cout,), jnp.float32)
    beta = 0.05 * jax.random.normal(kbeta, (cout,), jnp.float32)
    running_mean = jnp.zeros((cout,), jnp.float32)
    running_var = jnp.ones((cout,), jnp.float32)
    eps = 1e-5
    s = gamma / jnp.sqrt(running_var + eps)
    eff_scale = s
    eff_bias = s * (conv_b - running_mean) + beta
    return w, eff_scale, eff_bias


def pack_params(p1, pc1, pc2, pc31, pc32):
    """Merge conv weights that share an input and reshape for the im2col matmul."""
    w1, s1, b1 = p1
    wq1, sq1, bq1 = pc1
    w2, s2, b2 = pc2
    w31, s31, b31 = pc31
    w32, s32, b32 = pc32

    def fold(w):  # (3,3,cin,cout) -> (9*cin, cout) bf16, row = (dy*3+dx)*cin + cin_idx
        return w.reshape(9 * w.shape[2], w.shape[3]).astype(jnp.bfloat16)

    wa = fold(jnp.concatenate([w1, wq1], axis=3))
    sa = jnp.concatenate([s1, sq1]).reshape(1, -1)
    ba = jnp.concatenate([b1, bq1]).reshape(1, -1)
    wb = fold(jnp.concatenate([w2, w31], axis=3))
    sb = jnp.concatenate([s2, s31]).reshape(1, -1)
    bb = jnp.concatenate([b2, b31]).reshape(1, -1)
    wc = fold(w32)
    sc = s32.reshape(1, -1)
    bc = b32.reshape(1, -1)
    return (wa, sa, ba, wb, sb, bb, wc, sc, bc)


# ---------------------------------------------------------------------------
# Pure-JAX reference (same bf16-operand / f32-accumulate precision) for checking
# ---------------------------------------------------------------------------
def _ref_conv_bn(x, w, scale, bias, relu):
    y = lax.conv_general_dilated(
        x.astype(jnp.bfloat16), w.astype(jnp.bfloat16),
        window_strides=(1, 1), padding="SAME",
        dimension_numbers=("NHWC", "HWIO", "NHWC"),
        preferred_element_type=jnp.float32)
    y = y * scale[None, None, None, :] + bias[None, None, None, :]
    return jnp.maximum(y, 0.0) if relu else y


def _ref_forward(x_nchw, raw_params):
    p1, pc1, pc2, pc31, pc32 = raw_params
    x = jnp.transpose(x_nchw, (0, 2, 3, 1))
    x1 = _ref_conv_bn(x, *p1, relu=False)
    x_ = _ref_conv_bn(x, *pc1, relu=True)
    x2 = _ref_conv_bn(x_, *pc2, relu=False)
    x3_ = _ref_conv_bn(x_, *pc31, relu=True)
    x3 = _ref_conv_bn(x3_, *pc32, relu=False)
    out = jnp.maximum(jnp.concatenate((x1, x2, x3), axis=-1), 0.0)
    return jnp.transpose(out, (0, 3, 1, 2))


if __name__ == "__main__":
    key = jax.random.PRNGKey(0)
    kx, k1, k2, k3, k4, k5 = jax.random.split(key, 6)

    N, C, H, W = 2, 32, 16, 16  # small in_channels=32 (PyTorch default 256)
    Ch = C // 2

    x = jax.random.normal(kx, (N, C, H, W), jnp.float32)

    raw_params = (
        _make_conv_bn_params(k1, C, C),    # det_conv1
        _make_conv_bn_params(k2, C, Ch),   # det_context_conv1
        _make_conv_bn_params(k3, Ch, Ch),  # det_context_conv2
        _make_conv_bn_params(k4, Ch, Ch),  # det_context_conv3_1
        _make_conv_bn_params(k5, Ch, Ch),  # det_context_conv3_2
    )
    packed = pack_params(*raw_params)

    out = jax.block_until_ready(context_module_forward(x, packed))
    ref = jax.block_until_ready(_ref_forward(x, raw_params))

    assert out.shape == (N, 2 * C, H, W), out.shape
    max_err = float(jnp.max(jnp.abs(out - ref)))
    assert jnp.allclose(out, ref, atol=2e-2, rtol=2e-2), max_err

    print("KERNEL_OK")
</pallas_src>

<mosaic_0001>
module attributes {stable_mosaic.version = 11 : i64} {
  func.func @_context_kernel(%arg0: i32, %arg1: memref<1x16x16x32xf32, #tpu.memory_space<vmem>>, %arg2: memref<288x48xbf16, #tpu.memory_space<vmem>>, %arg3: memref<1x48xf32, #tpu.memory_space<vmem>>, %arg4: memref<1x48xf32, #tpu.memory_space<vmem>>, %arg5: memref<144x32xbf16, #tpu.memory_space<vmem>>, %arg6: memref<1x32xf32, #tpu.memory_space<vmem>>, %arg7: memref<1x32xf32, #tpu.memory_space<vmem>>, %arg8: memref<144x16xbf16, #tpu.memory_space<vmem>>, %arg9: memref<1x16xf32, #tpu.memory_space<vmem>>, %arg10: memref<1x16xf32, #tpu.memory_space<vmem>>, %arg11: memref<1x16x16x64xf32, #tpu.memory_space<vmem>>, %arg12: memref<18x32x32xf32, #tpu.memory_space<vmem>>, %arg13: memref<18x32x16xf32, #tpu.memory_space<vmem>>) attributes {dimension_semantics = [#tpu.dimension_semantics<parallel>], iteration_bounds = array<i64: 2>, scalar_prefetch = 0 : i64, scratch_operands = 2 : i64, tpu.core_type = #tpu.core_type<tc>, window_params = [{transform_indices = @transform_0, window_bounds = array<i64: 1, 16, 16, 32>}, {pipeline_mode = #tpu.pipeline_mode<synchronous>, transform_indices = @transform_1, window_bounds = array<i64: 288, 48>}, {pipeline_mode = #tpu.pipeline_mode<synchronous>, transform_indices = @transform_2, window_bounds = array<i64: 1, 48>}, {pipeline_mode = #tpu.pipeline_mode<synchronous>, transform_indices = @transform_3, window_bounds = array<i64: 1, 48>}, {pipeline_mode = #tpu.pipeline_mode<synchronous>, transform_indices = @transform_4, window_bounds = array<i64: 144, 32>}, {pipeline_mode = #tpu.pipeline_mode<synchronous>, transform_indices = @transform_5, window_bounds = array<i64: 1, 32>}, {pipeline_mode = #tpu.pipeline_mode<synchronous>, transform_indices = @transform_6, window_bounds = array<i64: 1, 32>}, {pipeline_mode = #tpu.pipeline_mode<synchronous>, transform_indices = @transform_7, window_bounds = array<i64: 144, 16>}, {pipeline_mode = #tpu.pipeline_mode<synchronous>, transform_indices = @transform_8, window_bounds = array<i64: 1, 16>}, {pipeline_mode = #tpu.pipeline_mode<synchronous>, transform_indices = @transform_9, window_bounds = array<i64: 1, 16>}, {transform_indices = @transform_10, window_bounds = array<i64: 1, 16, 16, 64>}]} {
    %c0 = arith.constant 0 : index
    %c0_0 = arith.constant 0 : index
    %c0_1 = arith.constant 0 : index
    %c0_2 = arith.constant 0 : index
    %0 = vector.load %arg1[%c0, %c0_0, %c0_1, %c0_2] : memref<1x16x16x32xf32, #tpu.memory_space<vmem>>, vector<1x16x16x32xf32>
    %1 = vector.shape_cast %0 : vector<1x16x16x32xf32> to vector<16x16x32xf32>
    %cst = arith.constant 0.000000e+00 : f32
    %2 = vector.broadcast %cst : f32 to vector<18x32x32xf32>
    %c0_3 = arith.constant 0 : index
    %c0_4 = arith.constant 0 : index
    %c0_5 = arith.constant 0 : index
    %3 = vector.load %arg12[%c0_3, %c0_4, %c0_5] : memref<18x32x32xf32, #tpu.memory_space<vmem>>, vector<18x32x32xf32>
    tpu.vector_store %arg12[%c0_3, %c0_4, %c0_5], %2 {strides = array<i32>} : memref<18x32x32xf32, #tpu.memory_space<vmem>>, vector<18x32x32xf32>,
    %c1 = arith.constant 1 : index
    %c8 = arith.constant 8 : index
    %c0_6 = arith.constant 0 : index
    %4 = vector.load %arg12[%c1, %c8, %c0_6] : memref<18x32x32xf32, #tpu.memory_space<vmem>>, vector<16x16x32xf32>
    tpu.vector_store %arg12[%c1, %c8, %c0_6], %1 {strides = array<i32>} : memref<18x32x32xf32, #tpu.memory_space<vmem>>, vector<16x16x32xf32>,
    %c0_7 = arith.constant 0 : index
    %c7 = arith.constant 7 : index
    %c0_8 = arith.constant 0 : index
    %5 = vector.load %arg12[%c0_7, %c7, %c0_8] : memref<18x32x32xf32, #tpu.memory_space<vmem>>, vector<16x16x32xf32>
    %6 = vector.shape_cast %5 : vector<16x16x32xf32> to vector<256x32xf32>
    %c0_9 = arith.constant 0 : index
    %c8_10 = arith.constant 8 : index
    %c0_11 = arith.constant 0 : index
    %7 = vector.load %arg12[%c0_9, %c8_10, %c0_11] : memref<18x32x32xf32, #tpu.memory_space<vmem>>, vector<16x16x32xf32>
    %8 = vector.shape_cast %7 : vector<16x16x32xf32> to vector<256x32xf32>
    %c0_12 = arith.constant 0 : index
    %c9 = arith.constant 9 : index
    %c0_13 = arith.constant 0 : index
    %9 = vector.load %arg12[%c0_12, %c9, %c0_13] : memref<18x32x32xf32, #tpu.memory_space<vmem>>, vector<16x16x32xf32>
    %10 = vector.shape_cast %9 : vector<16x16x32xf32> to vector<256x32xf32>
    %c1_14 = arith.constant 1 : index
    %c7_15 = arith.constant 7 : index
    %c0_16 = arith.constant 0 : index
    %11 = vector.load %arg12[%c1_14, %c7_15, %c0_16] : memref<18x32x32xf32, #tpu.memory_space<vmem>>, vector<16x16x32xf32>
    %12 = vector.shape_cast %11 : vector<16x16x32xf32> to vector<256x32xf32>
    %c1_17 = arith.constant 1 : index
    %c8_18 = arith.constant 8 : index
    %c0_19 = arith.constant 0 : index
    %13 = vector.load %arg12[%c1_17, %c8_18, %c0_19] : memref<18x32x32xf32, #tpu.memory_space<vmem>>, vector<16x16x32xf32>
    %14 = vector.shape_cast %13 : vector<16x16x32xf32> to vector<256x32xf32>
    %c1_20 = arith.constant 1 : index
    %c9_21 = arith.constant 9 : index
    %c0_22 = arith.constant 0 : index
    %15 = vector.load %arg12[%c1_20, %c9_21, %c0_22] : memref<18x32x32xf32, #tpu.memory_space<vmem>>, vector<16x16x32xf32>
    %16 = vector.shape_cast %15 : vector<16x16x32xf32> to vector<256x32xf32>
    %c2 = arith.constant 2 : index
    %c7_23 = arith.constant 7 : index
    %c0_24 = arith.constant 0 : index
    %17 = vector.load %arg12[%c2, %c7_23, %c0_24] : memref<18x32x32xf32, #tpu.memory_space<vmem>>, vector<16x16x32xf32>
    %18 = vector.shape_cast %17 : vector<16x16x32xf32> to vector<256x32xf32>
    %c2_25 = arith.constant 2 : index
    %c8_26 = arith.constant 8 : index
    %c0_27 = arith.constant 0 : index
    %19 = vector.load %arg12[%c2_25, %c8_26, %c0_27] : memref<18x32x32xf32, #tpu.memory_space<vmem>>, vector<16x16x32xf32>
    %20 = vector.shape_cast %19 : vector<16x16x32xf32> to vector<256x32xf32>
    %c2_28 = arith.constant 2 : index
    %c9_29 = arith.constant 9 : index
    %c0_30 = arith.constant 0 : index
    %21 = vector.load %arg12[%c2_28, %c9_29, %c0_30] : memref<18x32x32xf32, #tpu.memory_space<vmem>>, vector<16x16x32xf32>
    %22 = vector.shape_cast %21 : vector<16x16x32xf32> to vector<256x32xf32>
    %23 = tpu.concatenate %6, %8, %10, %12, %14, %16, %18, %20, %22 in 1 : vector<256x32xf32>, vector<256x32xf32>, vector<256x32xf32>, vector<256x32xf32>, vector<256x32xf32>, vector<256x32xf32>, vector<256x32xf32>, vector<256x32xf32>, vector<256x32xf32> -> vector<256x288xf32>
    %24 = arith.truncf %23 : vector<256x288xf32> to vector<256x288xbf16>
    %c0_31 = arith.constant 0 : index
    %c0_32 = arith.constant 0 : index
    %25 = vector.load %arg2[%c0_31, %c0_32] : memref<288x48xbf16, #tpu.memory_space<vmem>>, vector<288x48xbf16>
    %cst_33 = arith.constant dense<0.000000e+00> : vector<256x48xf32>
    %26 = tpu.matmul %24, %25, %cst_33 {dimension_numbers = #tpu.dot_dimension_numbers<[1], [0], [0], [1], [0, 0, 1, 1], [], []>} : vector<256x288xbf16>, vector<288x48xbf16>, vector<256x48xf32> -> vector<256x48xf32>
    %c0_34 = arith.constant 0 : index
    %c0_35 = arith.constant 0 : index
    %27 = vector.load %arg3[%c0_34, %c0_35] : memref<1x48xf32, #tpu.memory_space<vmem>>, vector<1x48xf32>
    %28 = vector.broadcast %27 : vector<1x48xf32> to vector<256x48xf32>
    %29 = arith.mulf %26, %28 : vector<256x48xf32>
    %c0_36 = arith.constant 0 : index
    %c0_37 = arith.constant 0 : index
    %30 = vector.load %arg4[%c0_36, %c0_37] : memref<1x48xf32, #tpu.memory_space<vmem>>, vector<1x48xf32>
    %31 = vector.broadcast %30 : vector<1x48xf32> to vector<256x48xf32>
    %32 = arith.addf %29, %31 : vector<256x48xf32>
    %cst_38 = arith.constant 0.000000e+00 : f32
    %33 = vector.broadcast %cst_38 : f32 to vector<256x48xf32>
    %34 = arith.maximumf %32, %33 : vector<256x48xf32>
    %35 = vector.extract_strided_slice %34 {offsets = [0, 0], sizes = [256, 32], strides = [1, 1]} : vector<256x48xf32> to vector<256x32xf32>
    %36 = vector.extract_strided_slice %34 {offsets = [0, 32], sizes = [256, 16], strides = [1, 1]} : vector<256x48xf32> to vector<256x16xf32>
    %37 = vector.shape_cast %36 : vector<256x16xf32> to vector<16x16x16xf32>
    %cst_39 = arith.constant 0.000000e+00 : f32
    %38 = vector.broadcast %cst_39 : f32 to vector<18x32x16xf32>
    %c0_40 = arith.constant 0 : index
    %c0_41 = arith.constant 0 : index
    %c0_42 = arith.constant 0 : index
    %39 = vector.load %arg13[%c0_40, %c0_41, %c0_42] : memref<18x32x16xf32, #tpu.memory_space<vmem>>, vector<18x32x16xf32>
    tpu.vector_store %arg13[%c0_40, %c0_41, %c0_42], %38 {strides = array<i32>} : memref<18x32x16xf32, #tpu.memory_space<vmem>>, vector<18x32x16xf32>,
    %c1_43 = arith.constant 1 : index
    %c8_44 = arith.constant 8 : index
    %c0_45 = arith.constant 0 : index
    %40 = vector.load %arg13[%c1_43, %c8_44, %c0_45] : memref<18x32x16xf32, #tpu.memory_space<vmem>>, vector<16x16x16xf32>
    tpu.vector_store %arg13[%c1_43, %c8_44, %c0_45], %37 {strides = array<i32>} : memref<18x32x16xf32, #tpu.memory_space<vmem>>, vector<16x16x16xf32>,
    %c0_46 = arith.constant 0 : index
    %c7_47 = arith.constant 7 : index
    %c0_48 = arith.constant 0 : index
    %41 = vector.load %arg13[%c0_46, %c7_47, %c0_48] : memref<18x32x16xf32, #tpu.memory_space<vmem>>, vector<16x16x16xf32>
    %42 = vector.shape_cast %41 : vector<16x16x16xf32> to vector<256x16xf32>
    %c0_49 = arith.constant 0 : index
    %c8_50 = arith.constant 8 : index
    %c0_51 = arith.constant 0 : index
    %43 = vector.load %arg13[%c0_49, %c8_50, %c0_51] : memref<18x32x16xf32, #tpu.memory_space<vmem>>, vector<16x16x16xf32>
    %44 = vector.shape_cast %43 : vector<16x16x16xf32> to vector<256x16xf32>
    %c0_52 = arith.constant 0 : index
    %c9_53 = arith.constant 9 : index
    %c0_54 = arith.constant 0 : index
    %45 = vector.load %arg13[%c0_52, %c9_53, %c0_54] : memref<18x32x16xf32, #tpu.memory_space<vmem>>, vector<16x16x16xf32>
    %46 = vector.shape_cast %45 : vector<16x16x16xf32> to vector<256x16xf32>
    %c1_55 = arith.constant 1 : index
    %c7_56 = arith.constant 7 : index
    %c0_57 = arith.constant 0 : index
    %47 = vector.load %arg13[%c1_55, %c7_56, %c0_57] : memref<18x32x16xf32, #tpu.memory_space<vmem>>, vector<16x16x16xf32>
    %48 = vector.shape_cast %47 : vector<16x16x16xf32> to vector<256x16xf32>
    %c1_58 = arith.constant 1 : index
    %c8_59 = arith.constant 8 : index
    %c0_60 = arith.constant 0 : index
    %49 = vector.load %arg13[%c1_58, %c8_59, %c0_60] : memref<18x32x16xf32, #tpu.memory_space<vmem>>, vector<16x16x16xf32>
    %50 = vector.shape_cast %49 : vector<16x16x16xf32> to vector<256x16xf32>
    %c1_61 = arith.constant 1 : index
    %c9_62 = arith.constant 9 : index
    %c0_63 = arith.constant 0 : index
    %51 = vector.load %arg13[%c1_61, %c9_62, %c0_63] : memref<18x32x16xf32, #tpu.memory_space<vmem>>, vector<16x16x16xf32>
    %52 = vector.shape_cast %51 : vector<16x16x16xf32> to vector<256x16xf32>
    %c2_64 = arith.constant 2 : index
    %c7_65 = arith.constant 7 : index
    %c0_66 = arith.constant 0 : index
    %53 = vector.load %arg13[%c2_64, %c7_65, %c0_66] : memref<18x32x16xf32, #tpu.memory_space<vmem>>, vector<16x16x16xf32>
    %54 = vector.shape_cast %53 : vector<16x16x16xf32> to vector<256x16xf32>
    %c2_67 = arith.constant 2 : index
    %c8_68 = arith.constant 8 : index
    %c0_69 = arith.constant 0 : index
    %55 = vector.load %arg13[%c2_67, %c8_68, %c0_69] : memref<18x32x16xf32, #tpu.memory_space<vmem>>, vector<16x16x16xf32>
    %56 = vector.shape_cast %55 : vector<16x16x16xf32> to vector<256x16xf32>
    %c2_70 = arith.constant 2 : index
    %c9_71 = arith.constant 9 : index
    %c0_72 = arith.constant 0 : index
    %57 = vector.load %arg13[%c2_70, %c9_71, %c0_72] : memref<18x32x16xf32, #tpu.memory_space<vmem>>, vector<16x16x16xf32>
    %58 = vector.shape_cast %57 : vector<16x16x16xf32> to vector<256x16xf32>
    %59 = tpu.concatenate %42, %44, %46, %48, %50, %52, %54, %56, %58 in 1 : vector<256x16xf32>, vector<256x16xf32>, vector<256x16xf32>, vector<256x16xf32>, vector<256x16xf32>, vector<256x16xf32>, vector<256x16xf32>, vector<256x16xf32>, vector<256x16xf32> -> vector<256x144xf32>
    %60 = arith.truncf %59 : vector<256x144xf32> to vector<256x144xbf16>
    %c0_73 = arith.constant 0 : index
    %c0_74 = arith.constant 0 : index
    %61 = vector.load %arg5[%c0_73, %c0_74] : memref<144x32xbf16, #tpu.memory_space<vmem>>, vector<144x32xbf16>
    %cst_75 = arith.constant dense<0.000000e+00> : vector<256x32xf32>
    %62 = tpu.matmul %60, %61, %cst_75 {dimension_numbers = #tpu.dot_dimension_numbers<[1], [0], [0], [1], [0, 0, 1, 1], [], []>} : vector<256x144xbf16>, vector<144x32xbf16>, vector<256x32xf32> -> vector<256x32xf32>
    %c0_76 = arith.constant 0 : index
    %c0_77 = arith.constant 0 : index
    %63 = vector.load %arg6[%c0_76, %c0_77] : memref<1x32xf32, #tpu.memory_space<vmem>>, vector<1x32xf32>
    %64 = vector.broadcast %63 : vector<1x32xf32> to vector<256x32xf32>
    %65 = arith.mulf %62, %64 : vector<256x32xf32>
    %c0_78 = arith.constant 0 : index
    %c0_79 = arith.constant 0 : index
    %66 = vector.load %arg7[%c0_78, %c0_79] : memref<1x32xf32, #tpu.memory_space<vmem>>, vector<1x32xf32>
    %67 = vector.broadcast %66 : vector<1x32xf32> to vector<256x32xf32>
    %68 = arith.addf %65, %67 : vector<256x32xf32>
    %cst_80 = arith.constant 0.000000e+00 : f32
    %69 = vector.broadcast %cst_80 : f32 to vector<256x32xf32>
    %70 = arith.maximumf %68, %69 : vector<256x32xf32>
    %71 = vector.extract_strided_slice %70 {offsets = [0, 0], sizes = [256, 16], strides = [1, 1]} : vector<256x32xf32> to vector<256x16xf32>
    %72 = vector.extract_strided_slice %70 {offsets = [0, 16], sizes = [256, 16], strides = [1, 1]} : vector<256x32xf32> to vector<256x16xf32>
    %73 = vector.shape_cast %72 : vector<256x16xf32> to vector<16x16x16xf32>
    %cst_81 = arith.constant 0.000000e+00 : f32
    %74 = vector.broadcast %cst_81 : f32 to vector<18x32x16xf32>
    %c0_82 = arith.constant 0 : index
    %c0_83 = arith.constant 0 : index
    %c0_84 = arith.constant 0 : index
    %75 = vector.load %arg13[%c0_82, %c0_83, %c0_84] : memref<18x32x16xf32, #tpu.memory_space<vmem>>, vector<18x32x16xf32>
    tpu.vector_store %arg13[%c0_82, %c0_83, %c0_84], %74 {strides = array<i32>} : memref<18x32x16xf32, #tpu.memory_space<vmem>>, vector<18x32x16xf32>,
    %c1_85 = arith.constant 1 : index
    %c8_86 = arith.constant 8 : index
    %c0_87 = arith.constant 0 : index
    %76 = vector.load %arg13[%c1_85, %c8_86, %c0_87] : memref<18x32x16xf32, #tpu.memory_space<vmem>>, vector<16x16x16xf32>
    tpu.vector_store %arg13[%c1_85, %c8_86, %c0_87], %73 {strides = array<i32>} : memref<18x32x16xf32, #tpu.memory_space<vmem>>, vector<16x16x16xf32>,
    %c0_88 = arith.constant 0 : index
    %c7_89 = arith.constant 7 : index
    %c0_90 = arith.constant 0 : index
    %77 = vector.load %arg13[%c0_88, %c7_89, %c0_90] : memref<18x32x16xf32, #tpu.memory_space<vmem>>, vector<16x16x16xf32>
    %78 = vector.shape_cast %77 : vector<16x16x16xf32> to vector<256x16xf32>
    %c0_91 = arith.constant 0 : index
    %c8_92 = arith.constant 8 : index
    %c0_93 = arith.constant 0 : index
    %79 = vector.load %arg13[%c0_91, %c8_92, %c0_93] : memref<18x32x16xf32, #tpu.memory_space<vmem>>, vector<16x16x16xf32>
    %80 = vector.shape_cast %79 : vector<16x16x16xf32> to vector<256x16xf32>
    %c0_94 = arith.constant 0 : index
    %c9_95 = arith.constant 9 : index
    %c0_96 = arith.constant 0 : index
    %81 = vector.load %arg13[%c0_94, %c9_95, %c0_96] : memref<18x32x16xf32, #tpu.memory_space<vmem>>, vector<16x16x16xf32>
    %82 = vector.shape_cast %81 : vector<16x16x16xf32> to vector<256x16xf32>
    %c1_97 = arith.constant 1 : index
    %c7_98 = arith.constant 7 : index
    %c0_99 = arith.constant 0 : index
    %83 = vector.load %arg13[%c1_97, %c7_98, %c0_99] : memref<18x32x16xf32, #tpu.memory_space<vmem>>, vector<16x16x16xf32>
    %84 = vector.shape_cast %83 : vector<16x16x16xf32> to vector<256x16xf32>
    %c1_100 = arith.constant 1 : index
    %c8_101 = arith.constant 8 : index
    %c0_102 = arith.constant 0 : index
    %85 = vector.load %arg13[%c1_100, %c8_101, %c0_102] : memref<18x32x16xf32, #tpu.memory_space<vmem>>, vector<16x16x16xf32>
    %86 = vector.shape_cast %85 : vector<16x16x16xf32> to vector<256x16xf32>
    %c1_103 = arith.constant 1 : index
    %c9_104 = arith.constant 9 : index
    %c0_105 = arith.constant 0 : index
    %87 = vector.load %arg13[%c1_103, %c9_104, %c0_105] : memref<18x32x16xf32, #tpu.memory_space<vmem>>, vector<16x16x16xf32>
    %88 = vector.shape_cast %87 : vector<16x16x16xf32> to vector<256x16xf32>
    %c2_106 = arith.constant 2 : index
    %c7_107 = arith.constant 7 : index
    %c0_108 = arith.constant 0 : index
    %89 = vector.load %arg13[%c2_106, %c7_107, %c0_108] : memref<18x32x16xf32, #tpu.memory_space<vmem>>, vector<16x16x16xf32>
    %90 = vector.shape_cast %89 : vector<16x16x16xf32> to vector<256x16xf32>
    %c2_109 = arith.constant 2 : index
    %c8_110 = arith.constant 8 : index
    %c0_111 = arith.constant 0 : index
    %91 = vector.load %arg13[%c2_109, %c8_110, %c0_111] : memref<18x32x16xf32, #tpu.memory_space<vmem>>, vector<16x16x16xf32>
    %92 = vector.shape_cast %91 : vector<16x16x16xf32> to vector<256x16xf32>
    %c2_112 = arith.constant 2 : index
    %c9_113 = arith.constant 9 : index
    %c0_114 = arith.constant 0 : index
    %93 = vector.load %arg13[%c2_112, %c9_113, %c0_114] : memref<18x32x16xf32, #tpu.memory_space<vmem>>, vector<16x16x16xf32>
    %94 = vector.shape_cast %93 : vector<16x16x16xf32> to vector<256x16xf32>
    %95 = tpu.concatenate %78, %80, %82, %84, %86, %88, %90, %92, %94 in 1 : vector<256x16xf32>, vector<256x16xf32>, vector<256x16xf32>, vector<256x16xf32>, vector<256x16xf32>, vector<256x16xf32>, vector<256x16xf32>, vector<256x16xf32>, vector<256x16xf32> -> vector<256x144xf32>
    %96 = arith.truncf %95 : vector<256x144xf32> to vector<256x144xbf16>
    %c0_115 = arith.constant 0 : index
    %c0_116 = arith.constant 0 : index
    %97 = vector.load %arg8[%c0_115, %c0_116] : memref<144x16xbf16, #tpu.memory_space<vmem>>, vector<144x16xbf16>
    %cst_117 = arith.constant dense<0.000000e+00> : vector<256x16xf32>
    %98 = tpu.matmul %96, %97, %cst_117 {dimension_numbers = #tpu.dot_dimension_numbers<[1], [0], [0], [1], [0, 0, 1, 1], [], []>} : vector<256x144xbf16>, vector<144x16xbf16>, vector<256x16xf32> -> vector<256x16xf32>
    %c0_118 = arith.constant 0 : index
    %c0_119 = arith.constant 0 : index
    %99 = vector.load %arg9[%c0_118, %c0_119] : memref<1x16xf32, #tpu.memory_space<vmem>>, vector<1x16xf32>
    %100 = vector.broadcast %99 : vector<1x16xf32> to vector<256x16xf32>
    %101 = arith.mulf %98, %100 : vector<256x16xf32>
    %c0_120 = arith.constant 0 : index
    %c0_121 = arith.constant 0 : index
    %102 = vector.load %arg10[%c0_120, %c0_121] : memref<1x16xf32, #tpu.memory_space<vmem>>, vector<1x16xf32>
    %103 = vector.broadcast %102 : vector<1x16xf32> to vector<256x16xf32>
    %104 = arith.addf %101, %103 : vector<256x16xf32>
    %cst_122 = arith.constant 0.000000e+00 : f32
    %105 = vector.broadcast %cst_122 : f32 to vector<256x16xf32>
    %106 = arith.maximumf %104, %105 : vector<256x16xf32>
    %107 = tpu.concatenate %35, %71, %106 in 1 : vector<256x32xf32>, vector<256x16xf32>, vector<256x16xf32> -> vector<256x64xf32>
    %108 = vector.shape_cast %107 : vector<256x64xf32> to vector<1x16x16x64xf32>
    %c0_123 = arith.constant 0 : index
    %c0_124 = arith.constant 0 : index
    %c0_125 = arith.constant 0 : index
    %c0_126 = arith.constant 0 : index
    %109 = vector.load %arg11[%c0_123, %c0_124, %c0_125, %c0_126] : memref<1x16x16x64xf32, #tpu.memory_space<vmem>>, vector<1x16x16x64xf32>
    tpu.vector_store %arg11[%c0_123, %c0_124, %c0_125, %c0_126], %108 {strides = array<i32>} : memref<1x16x16x64xf32, #tpu.memory_space<vmem>>, vector<1x16x16x64xf32>,
    return
  }
  func.func @transform_0(%arg0: i32) -> (i32, i32, i32, i32) {
    %c0_i32 = arith.constant 0 : i32
    %c0_i32_0 = arith.constant 0 : i32
    %c0_i32_1 = arith.constant 0 : i32
    %c0_i32_2 = arith.constant 0 : i32
    return %arg0, %c0_i32, %c0_i32_0, %c0_i32_1 : i32, i32, i32, i32
  }
  func.func @transform_1(%arg0: i32) -> (i32, i32) {
    %c0_i32 = arith.constant 0 : i32
    %c0_i32_0 = arith.constant 0 : i32
    %c0_i32_1 = arith.constant 0 : i32
    return %c0_i32, %c0_i32_0 : i32, i32
  }
  func.func @transform_2(%arg0: i32) -> (i32, i32) {
    %c0_i32 = arith.constant 0 : i32
    %c0_i32_0 = arith.constant 0 : i32
    %c0_i32_1 = arith.constant 0 : i32
    return %c0_i32, %c0_i32_0 : i32, i32
  }
  func.func @transform_3(%arg0: i32) -> (i32, i32) {
    %c0_i32 = arith.constant 0 : i32
    %c0_i32_0 = arith.constant 0 : i32
    %c0_i32_1 = arith.constant 0 : i32
    return %c0_i32, %c0_i32_0 : i32, i32
  }
  func.func @transform_4(%arg0: i32) -> (i32, i32) {
    %c0_i32 = arith.constant 0 : i32
    %c0_i32_0 = arith.constant 0 : i32
    %c0_i32_1 = arith.constant 0 : i32
    return %c0_i32, %c0_i32_0 : i32, i32
  }
  func.func @transform_5(%arg0: i32) -> (i32, i32) {
    %c0_i32 = arith.constant 0 : i32
    %c0_i32_0 = arith.constant 0 : i32
    %c0_i32_1 = arith.constant 0 : i32
    return %c0_i32, %c0_i32_0 : i32, i32
  }
  func.func @transform_6(%arg0: i32) -> (i32, i32) {
    %c0_i32 = arith.constant 0 : i32
    %c0_i32_0 = arith.constant 0 : i32
    %c0_i32_1 = arith.constant 0 : i32
    return %c0_i32, %c0_i32_0 : i32, i32
  }
  func.func @transform_7(%arg0: i32) -> (i32, i32) {
    %c0_i32 = arith.constant 0 : i32
    %c0_i32_0 = arith.constant 0 : i32
    %c0_i32_1 = arith.constant 0 : i32
    return %c0_i32, %c0_i32_0 : i32, i32
  }
  func.func @transform_8(%arg0: i32) -> (i32, i32) {
    %c0_i32 = arith.constant 0 : i32
    %c0_i32_0 = arith.constant 0 : i32
    %c0_i32_1 = arith.constant 0 : i32
    return %c0_i32, %c0_i32_0 : i32, i32
  }
  func.func @transform_9(%arg0: i32) -> (i32, i32) {
    %c0_i32 = arith.constant 0 : i32
    %c0_i32_0 = arith.constant 0 : i32
    %c0_i32_1 = arith.constant 0 : i32
    return %c0_i32, %c0_i32_0 : i32, i32
  }
  func.func @transform_10(%arg0: i32) -> (i32, i32, i32, i32) {
    %c0_i32 = arith.constant 0 : i32
    %c0_i32_0 = arith.constant 0 : i32
    %c0_i32_1 = arith.constant 0 : i32
    %c0_i32_2 = arith.constant 0 : i32
    return %arg0, %c0_i32, %c0_i32_0, %c0_i32_1 : i32, i32, i32, i32
  }
}

</mosaic_0001>

<bundles_post_ra>
// kernel: context_module_forward.1
= control target key start
LH: loop header
LB: loop body
LE: loop exit
PB: predicated region body
PF: predicated region fallthrough
CT: control target
= control target key end

     0   :  { %s14447_s0 = inlined_call_operand.hbm [shape: f32[2,16,16,32], index: 0, kind: input, shape index: {}]   ;;  %s14448_s1 = inlined_call_operand.hbm [shape: bf16[288,48], index: 1, kind: input, shape index: {}]   ;;  %s14449_s2 = inlined_call_operand.hbm [shape: f32[1,48], index: 2, kind: input, shape index: {}]   ;;  %s14450_s3 = inlined_call_operand.hbm [shape: f32[1,48], index: 3, kind: input, shape index: {}]   ;;  %s14451_s4 = inlined_call_operand.hbm [shape: bf16[144,32], index: 4, kind: input, shape index: {}]   ;;  %s14452_s5 = inlined_call_operand.hbm [shape: f32[1,32], index: 5, kind: input, shape index: {}]   ;;  %s14453_s6 = inlined_call_operand.hbm [shape: f32[1,32], index: 6, kind: input, shape index: {}]   ;;  %s14454_s7 = inlined_call_operand.hbm [shape: bf16[144,16], index: 7, kind: input, shape index: {}]   ;;  %s14455_s8 = inlined_call_operand.hbm [shape: f32[1,16], index: 8, kind: input, shape index: {}]   ;;  %s14456_s9 = inlined_call_operand.hbm [shape: f32[1,16], index: 9, kind: input, shape index: {}]   ;;  %s14457_s10 = inlined_call_operand.hbm [shape: f32[2,16,16,64], index: 10, kind: output, shape index: {}]  }
   0x1   :  { %14662 = sst [smem:[#allocation101_spill]] %s14457_s10 }
   0x2   :  { %15 = vsyncpa [#allocation5], 0 }
   0x3   :  { %17 = vsyncpa [#allocation5 + $0x1], 0 }
   0x4   :  { %18 = vsyncpa [#allocation8], 0 }
   0x5   :  { %19 = vsyncpa [#allocation11], 0 }
   0x6   :  { %20 = vsyncpa [#allocation14], 0 }
   0x7   :  { %21 = vsyncpa [#allocation17], 0 }
   0x8   :  { %22 = vsyncpa [#allocation20], 0 }
   0x9   :  { %23 = vsyncpa [#allocation6], 0 }
   0xa   :  { %25 = vsyncpa [#allocation6 + $0x1], 0  ;;  %s9757_s13 = smov 0   ;;  %s9759_s14 = smov 0  }
   0xb   :  { %s9761_s15 = smov 0   ;;  %s9763_s16 = smov 0  }
   0xc LB: > { %s9676_s17 = smov [#allocation7]   ;;  %s9778_s19 = sadd.s32 4294967295, %s9674_s16   ;;  %s9674_s16 = sphi %s9763_s16, %s15075_s16   ;;  %s9670_s15 = sphi %s9761_s15, %s15074_s15   ;;  %s9666_s14 = sphi %s9759_s14, %s15073_s14   ;;  %s9662_s13 = sphi %s9757_s13, %s15072_s13  }
   0xd   : > { %s289_s18 = sshll.u32 %s9676_s17, 4  ;;  %p7185_p0 = scmp.ge.s32.totalorder %s9674_s16, 1  ;;  %s9783_s18 = int_to_ptr.vmem [resolvable:$true] %s289_s18 }
   0xe   : > { %p14462_p1 = scmp.eq.s32.totalorder %s9778_s19, 0  ;;  %p277_p2 = scmp.lt.s32.totalorder %s9674_s16, 3 }
   0xf   : > { %s9677_s21 = smov [#allocation10]   ;;  %s9678_s24 = smov [#allocation13]  }
  0x10   : > { %p9785_p3 = pnand %p7185_p0, %p277_p2  ;;  %s314_s22 = sshll.u32 %s9677_s21, 4  ;;  %s9798_s22 = int_to_ptr.vmem [resolvable:$true] %s314_s22 }
  0x11   : > { %s338_s25 = sshll.u32 %s9678_s24, 4  ;;  %s9306_s28 = scalar_lea.hbm %s14448_s1, 2304  ;;  %s9800_s25 = int_to_ptr.vmem [resolvable:$true] %s338_s25 }
  0x12   : > { %s14663_s20 = scalar_select %p9785_p3, 1, 0 }
  0x13   : > { %p7532_p5 = pneg %p9785_p3  ;;  %p9307_p7 = scmp.ne.s32.totalorder %s14448_s1, %s9306_s28 }
  0x14   : > { %14664 = sst [smem:[#allocation29_spill]] %s14663_s20  ;;  %p9313_p11 = scmp.lt.u32.totalorder %s9306_s28, %s14448_s1 }
  0x15   : > { %p9794_p6 = pnand %p7532_p5, %p14462_p1 }
  0x17   : > { %p9810_p8 = pneg %p9794_p6 }
  0x19   : > { %p9309_p9 = pnand %p9810_p8, %p9307_p7 }
  0x1b   : > { %p9310_p10 = pneg %p9309_p9 }
  0x1d   : > { %p9315_p12 = pnand %p9313_p11, %p9310_p10 }
  0x1f   : > { %9318 = shalt.err (!%p9315_p12)
}
  0x20   : > { %s9319_s21 = scalar_lea.vmem %s9783_s18, 2304  ;;  %p9327_p5 = scmp.lt.s32.totalorder %s9783_s18, %s9783_s18 }
  0x21   : > { %p9320_p13 = scmp.ne.s32.totalorder %s9783_s18, %s9319_s21  ;;  %p9328_p4 = scmp.lt.s32.totalorder %s9319_s21, %s9319_s21 }
  0x23   : > { %p9322_p0 = pnand %p9320_p13, %p9810_p8  ;;  %p9329_p7 = por %p9328_p4, %p9327_p5 }
  0x25   : > { %p9323_p2 = pneg %p9322_p0 }
  0x27   : > { %p9330_p9 = pnand %p9329_p7, %p9323_p2 }
  0x29   : > { %9333 = shalt.err (!%p9330_p9)
}
  0x2a   : > { %s14460_s24 = smov 64   ;;  %s14464_s26 = smov 4  }
  0x2b   : > { %7535 = dma.hbm_to_vmem [thread:$0]  (!%p9794_p6), %s14448_s1, 2304, %s9783_s18, [#allocation8], %s14460_s24, %s14460_s24, %s14464_s26  }
  0x2c   : > { %s9334_s12 = scalar_lea.hbm %s14450_s3, 16 }
  0x2d   : > { %p9335_p4 = scmp.ne.s32.totalorder %s14450_s3, %s9334_s12  ;;  %p9341_p12 = scmp.lt.u32.totalorder %s9334_s12, %s14450_s3 }
  0x2f   : > { %p9337_p10 = pnand %p9335_p4, %p9810_p8 }
  0x31   : > { %p9338_p11 = pneg %p9337_p10 }
  0x33   : > { %p9343_p13 = pnand %p9341_p12, %p9338_p11 }
  0x35   : > { %9346 = shalt.err (!%p9343_p13)
}
  0x36   : > { %s9347_s18 = scalar_lea.vmem %s9798_s22, 16  ;;  %s9354_s27 = scalar_lea.vmem %s9798_s22, 32 }
  0x37   : > { %p9348_p0 = scmp.ne.s32.totalorder %s9798_s22, %s9347_s18  ;;  %p9355_p7 = scmp.lt.s32.totalorder %s9798_s22, %s9798_s22 }
  0x38   : > { %p9356_p9 = scmp.lt.s32.totalorder %s9354_s27, %s9347_s18 }
  0x39   : > { %p9350_p2 = pnand %p9348_p0, %p9810_p8 }
  0x3a   : > { %p9357_p4 = por %p9356_p9, %p9355_p7 }
  0x3b   : > { %p9351_p5 = pneg %p9350_p2 }
  0x3d   : > { %p9358_p10 = pnand %p9357_p4, %p9351_p5 }
  0x3f   : > { %9361 = shalt.err (!%p9358_p10)
}
  0x40   : > { %7541 = dma.hbm_to_vmem [thread:$0]  (!%p9794_p6), %s14450_s3, 16, %s9798_s22, [#allocation11]  }
  0x41   : > { %s9362_s30 = scalar_lea.hbm %s14452_s5, 16 }
  0x42   : > { %p9363_p11 = scmp.ne.s32.totalorder %s14452_s5, %s9362_s30  ;;  %p9369_p0 = scmp.lt.u32.totalorder %s9362_s30, %s14452_s5 }
  0x44   : > { %p9365_p12 = pnand %p9363_p11, %p9810_p8 }
  0x46   : > { %p9366_p13 = pneg %p9365_p12 }
  0x48   : > { %p9371_p2 = pnand %p9369_p0, %p9366_p13 }
  0x4a   : > { %9374 = shalt.err (!%p9371_p2)
}
  0x4b   : > { %s9375_s22 = scalar_lea.vmem %s9800_s25, 16  ;;  %s9382_s27 = scalar_lea.vmem %s9800_s25, 32 }
  0x4c   : > { %p9376_p5 = scmp.ne.s32.totalorder %s9800_s25, %s9375_s22  ;;  %p9383_p4 = scmp.lt.s32.totalorder %s9800_s25, %s9800_s25 }
  0x4d   : > { %p9384_p10 = scmp.lt.s32.totalorder %s9382_s27, %s9375_s22 }
  0x4e   : > { %p9378_p7 = pnand %p9376_p5, %p9810_p8 }
  0x4f   : > { %p9385_p11 = por %p9384_p10, %p9383_p4 }
  0x50   : > { %p9379_p9 = pneg %p9378_p7 }
  0x52   : > { %p9386_p12 = pnand %p9385_p11, %p9379_p9 }
  0x54   : > { %9389 = shalt.err (!%p9386_p12)
}
  0x55   : > { %7547 = dma.hbm_to_vmem [thread:$0]  (!%p9794_p6), %s14452_s5, 16, %s9800_s25, [#allocation14]  }
  0x56   : > { %s9681_s28 = smov [#allocation16]   ;;  %s9682_s30 = smov [#allocation9]  }
  0x57   : > { %s359_s29 = sshll.u32 %s9681_s28, 4  ;;  %s303_s12 = sshll.u32 %s9682_s30, 4  ;;  %s360_s29 = int_to_ptr.vmem [resolvable:$true] %s359_s29  ;;  %s304_s12 = int_to_ptr.vmem [resolvable:$true] %s303_s12 }
  0x58   : > { %s9390_s18 = scalar_lea.hbm %s14454_s7, 1152 }
  0x59   : > { %p9391_p13 = scmp.ne.s32.totalorder %s14454_s7, %s9390_s18  ;;  %p9397_p5 = scmp.lt.u32.totalorder %s9390_s18, %s14454_s7 }
  0x5b   : > { %p9393_p0 = pnand %p9391_p13, %p9810_p8 }
  0x5d   : > { %p9394_p2 = pneg %p9393_p0 }
  0x5f   : > { %p9399_p7 = pnand %p9397_p5, %p9394_p2 }
  0x61   : > { %9402 = shalt.err (!%p9399_p7)
}
  0x62   : > { %s9403_s25 = scalar_lea.vmem %s360_s29, 1152  ;;  %p9411_p11 = scmp.lt.s32.totalorder %s360_s29, %s360_s29 }
  0x63   : > { %p9404_p9 = scmp.ne.s32.totalorder %s360_s29, %s9403_s25  ;;  %p9412_p12 = scmp.lt.s32.totalorder %s9403_s25, %s9403_s25 }
  0x65   : > { %p9406_p4 = pnand %p9404_p9, %p9810_p8  ;;  %p9413_p1 = por %p9412_p12, %p9411_p11 }
  0x67   : > { %p9407_p10 = pneg %p9406_p4 }
  0x69   : > { %p9414_p3 = pnand %p9413_p1, %p9407_p10 }
  0x6b   : > { %9417 = shalt.err (!%p9414_p3)
}
  0x6c   : > { %s14667_s20 = smov 64   ;;  %s9418_s21 = scalar_lea.hbm %s14449_s2, 16 }
  0x6d   : > { %7553 = dma.hbm_to_vmem [thread:$0]  (!%p9794_p6), %s14454_s7, 1152, %s360_s29, [#allocation17], %s14667_s20, %s14667_s20, %s14464_s26  }
  0x6e   : > { %p9419_p1 = scmp.ne.s32.totalorder %s14449_s2, %s9418_s21  ;;  %p9425_p0 = scmp.lt.u32.totalorder %s9418_s21, %s14449_s2 }
  0x70   : > { %p9421_p3 = pnand %p9419_p1, %p9810_p8 }
  0x72   : > { %p9422_p13 = pneg %p9421_p3 }
  0x74   : > { %p9427_p2 = pnand %p9425_p0, %p9422_p13 }
  0x76   : > { %9430 = shalt.err (!%p9427_p2)
}
  0x77   : > { %s9431_s25 = scalar_lea.vmem %s304_s12, 16  ;;  %s9438_s29 = scalar_lea.vmem %s304_s12, 32 }
  0x78   : > { %p9432_p5 = scmp.ne.s32.totalorder %s304_s12, %s9431_s25  ;;  %p9439_p4 = scmp.lt.s32.totalorder %s304_s12, %s304_s12 }
  0x79   : > { %p9440_p10 = scmp.lt.s32.totalorder %s9438_s29, %s9431_s25 }
  0x7a   : > { %p9434_p7 = pnand %p9432_p5, %p9810_p8 }
  0x7b   : > { %p9441_p11 = por %p9440_p10, %p9439_p4 }
  0x7c   : > { %p9435_p9 = pneg %p9434_p7 }
  0x7e   : > { %p9442_p12 = pnand %p9441_p11, %p9435_p9 }
  0x80   : > { %9445 = shalt.err (!%p9442_p12)
}
  0x81   : > { %7538 = dma.hbm_to_vmem [thread:$0]  (!%p9794_p6), %s14449_s2, 16, %s304_s12, [#allocation8]  }
  0x82   : > { %s9683_s30 = smov [#allocation12]   ;;  %s9684_s21 = smov [#allocation15]  }
  0x83   : > { %s324_s17 = sshll.u32 %s9683_s30, 4  ;;  %s349_s18 = sshll.u32 %s9684_s21, 4  ;;  %s325_s17 = int_to_ptr.vmem [resolvable:$true] %s324_s17  ;;  %s350_s18 = int_to_ptr.vmem [resolvable:$true] %s349_s18 }
  0x84   : > { %s9446_s10 = scalar_lea.hbm %s14451_s4, 1152 }
  0x85   : > { %p9447_p1 = scmp.ne.s32.totalorder %s14451_s4, %s9446_s10  ;;  %p9453_p0 = scmp.lt.u32.totalorder %s9446_s10, %s14451_s4 }
  0x87   : > { %p9449_p3 = pnand %p9447_p1, %p9810_p8 }
  0x89   : > { %p9450_p13 = pneg %p9449_p3 }
  0x8b   : > { %p9455_p2 = pnand %p9453_p0, %p9450_p13 }
  0x8d   : > { %9458 = shalt.err (!%p9455_p2)
}
  0x8e   : > { %s9459_s12 = scalar_lea.vmem %s325_s17, 1152  ;;  %p9467_p4 = scmp.lt.s32.totalorder %s325_s17, %s325_s17 }
  0x8f   : > { %p9460_p5 = scmp.ne.s32.totalorder %s325_s17, %s9459_s12  ;;  %p9468_p10 = scmp.lt.s32.totalorder %s9459_s12, %s9459_s12 }
  0x91   : > { %p9462_p7 = pnand %p9460_p5, %p9810_p8  ;;  %p9469_p11 = por %p9468_p10, %p9467_p4 }
  0x93   : > { %p9463_p9 = pneg %p9462_p7 }
  0x95   : > { %p9470_p12 = pnand %p9469_p11, %p9463_p9 }
  0x97   : > { %9473 = shalt.err (!%p9470_p12)
}
  0x98   : > { %s14668_s28 = smov 4   ;;  %s9474_s27 = scalar_lea.hbm %s14453_s6, 16 }
  0x99   : > { %7544 = dma.hbm_to_vmem [thread:$0]  (!%p9794_p6), %s14451_s4, 1152, %s325_s17, [#allocation11], %s14667_s20, %s14667_s20, %s14668_s28  }
  0x9a   : > { %p9475_p1 = scmp.ne.s32.totalorder %s14453_s6, %s9474_s27  ;;  %p9481_p0 = scmp.lt.u32.totalorder %s9474_s27, %s14453_s6 }
  0x9c   : > { %p9477_p3 = pnand %p9475_p1, %p9810_p8 }
  0x9e   : > { %p9478_p13 = pneg %p9477_p3 }
  0xa0   : > { %p9483_p2 = pnand %p9481_p0, %p9478_p13 }
  0xa2   : > { %9486 = shalt.err (!%p9483_p2)
}
  0xa3   : > { %s9487_s12 = scalar_lea.vmem %s350_s18, 16  ;;  %s9494_s20 = scalar_lea.vmem %s350_s18, 32 }
  0xa4   : > { %p9488_p5 = scmp.ne.s32.totalorder %s350_s18, %s9487_s12  ;;  %p9495_p4 = scmp.lt.s32.totalorder %s350_s18, %s350_s18 }
  0xa5   : > { %p9496_p10 = scmp.lt.s32.totalorder %s9494_s20, %s9487_s12 }
  0xa6   : > { %p9490_p7 = pnand %p9488_p5, %p9810_p8 }
  0xa7   : > { %p9497_p11 = por %p9496_p10, %p9495_p4 }
  0xa8   : > { %p9491_p9 = pneg %p9490_p7 }
  0xaa   : > { %p9498_p12 = pnand %p9497_p11, %p9491_p9 }
  0xac   : > { %9501 = shalt.err (!%p9498_p12)
}
  0xad   : > { %7550 = dma.hbm_to_vmem [thread:$0]  (!%p9794_p6), %s14453_s6, 16, %s350_s18, [#allocation14]  }
  0xae   : > { %s9685_s26 = smov [#allocation18]   ;;  %s9686_s21 = smov [#allocation19]  }
  0xaf   : > { %s373_s30 = sshll.u32 %s9685_s26, 4  ;;  %s384_s22 = sshll.u32 %s9686_s21, 4  ;;  %s374_s30 = int_to_ptr.vmem [resolvable:$true] %s373_s30  ;;  %s385_s22 = int_to_ptr.vmem [resolvable:$true] %s384_s22 }
  0xb0   : > { %s9502_s25 = scalar_lea.hbm %s14455_s8, 16 }
  0xb1   : > { %p9503_p1 = scmp.ne.s32.totalorder %s14455_s8, %s9502_s25  ;;  %p9509_p0 = scmp.lt.u32.totalorder %s9502_s25, %s14455_s8 }
  0xb3   : > { %p9505_p3 = pnand %p9503_p1, %p9810_p8 }
  0xb5   : > { %p9506_p13 = pneg %p9505_p3 }
  0xb7   : > { %p9511_p2 = pnand %p9509_p0, %p9506_p13 }
  0xb9   : > { %9514 = shalt.err (!%p9511_p2)
}
  0xba   : > { %s9515_s18 = scalar_lea.vmem %s374_s30, 16  ;;  %s9522_s17 = scalar_lea.vmem %s374_s30, 32 }
  0xbb   : > { %p9516_p5 = scmp.ne.s32.totalorder %s374_s30, %s9515_s18  ;;  %p9523_p4 = scmp.lt.s32.totalorder %s374_s30, %s374_s30 }
  0xbc   : > { %p9524_p10 = scmp.lt.s32.totalorder %s9522_s17, %s9515_s18 }
  0xbd   : > { %p9518_p7 = pnand %p9516_p5, %p9810_p8 }
  0xbe   : > { %p9525_p11 = por %p9524_p10, %p9523_p4 }
  0xbf   : > { %p9519_p9 = pneg %p9518_p7 }
  0xc1   : > { %p9526_p12 = pnand %p9525_p11, %p9519_p9 }
  0xc3   : > { %9529 = shalt.err (!%p9526_p12)
}
  0xc4   : > { %7556 = dma.hbm_to_vmem [thread:$0]  (!%p9794_p6), %s14455_s8, 16, %s374_s30, [#allocation17]  }
  0xc5   : > { %s9530_s10 = scalar_lea.hbm %s14456_s9, 16 }
  0xc6   : > { %p9531_p1 = scmp.ne.s32.totalorder %s14456_s9, %s9530_s10  ;;  %p9537_p0 = scmp.lt.u32.totalorder %s9530_s10, %s14456_s9 }
  0xc8   : > { %p9533_p3 = pnand %p9531_p1, %p9810_p8 }
  0xca   : > { %p9534_p13 = pneg %p9533_p3 }
  0xcc   : > { %p9539_p2 = pnand %p9537_p0, %p9534_p13 }
  0xce   : > { %9542 = shalt.err (!%p9539_p2)
}
  0xcf   : > { %s9543_s20 = scalar_lea.vmem %s385_s22, 16  ;;  %s9550_s30 = scalar_lea.vmem %s385_s22, 32 }
  0xd0   : > { %p9544_p5 = scmp.ne.s32.totalorder %s385_s22, %s9543_s20  ;;  %p9551_p4 = scmp.lt.s32.totalorder %s385_s22, %s385_s22 }
  0xd1   : > { %p9552_p10 = scmp.lt.s32.totalorder %s9550_s30, %s9543_s20 }
  0xd2   : > { %p9546_p7 = pnand %p9544_p5, %p9810_p8 }
  0xd3   : > { %p9553_p11 = por %p9552_p10, %p9551_p4 }
  0xd4   : > { %p9547_p9 = pneg %p9546_p7 }
  0xd6   : > { %p9554_p12 = pnand %p9553_p11, %p9547_p9 }
  0xd8   : > { %9557 = shalt.err (!%p9554_p12)
}
  0xd9   : > { %7559 = dma.hbm_to_vmem [thread:$0]  (!%p9794_p6), %s14456_s9, 16, %s385_s22, [#allocation20]  }
  0xda   : > { %s7184_s11 = sadd.s32 4294967294, %s9674_s16   ;;  %s9998_s23 = sadd.s32 1, %s9674_s16  }
  0xdb   : > { %s38_s28 = sadd.s32 1, %s9670_s15  ;;  %s35_s26 = ssub.s32 %s9674_s16, %s9998_s23 }
  0xdc   : > { %p45_p8 = scmp.ne.s32.totalorder %s9670_s15, %s9666_s14  ;;  %p36_p1 = scmp.eq.s32.totalorder %s35_s26, 0 }
  0xdd   : > { %p46_p3 = scmp.eq.s32.totalorder %s9674_s16, 0  ;;  %p51_p13 = scmp.ne.s32.totalorder %s9666_s14, %s9662_s13 }
  0xde   : > { %p264_p0 = scmp.eq.s32.totalorder %s9778_s19, 1  ;;  %p14669_p5 = scmp.eq.s32.totalorder %s9778_s19, 0 }
  0xdf   : > { %s10010_s21 = scalar_select %p36_p1, %s9670_s15, %s38_s28  }
  0xe0   : > { %p47_p2 = por %p46_p3, %p45_p8  ;;  %p10014_p7 = por %p14669_p5, %p51_p13 }
  0xe1   : > { %p10018_p6 = por %p264_p0, %p45_p8  ;;  %p270_p9 = scmp.eq.s32.totalorder %s7184_s11, 1 }
  0xe2   : > { %p7577_p4 = scmp.lt.s32.totalorder %s9674_s16, 2  ;;  %s395_s10 = sand.u32 1, %s9670_s15  }
  0xe3   : > { %s14671_s22 = scalar_select %p10018_p6, 1, 0 }
  0xe4   : > { %p10024_p10 = por %p270_p9, %p51_p13  ;;  %s7196_s29 = sshll.u32 %s395_s10, 8 }
  0xe5   : > { %s7306_s24 = sshll.u32 %s9674_s16, 12  ;;  %s399_s18 = scalar_lea.vmem [#allocation4], %s7196_s29 }
  0xe6   : > { %s14672_s25 = scalar_select %p10024_p10, 1, 0 }
  0xe7   : > { %s10032_s30 = scalar_lea.hbm %s14447_s0, %s7306_s24  ;;  %s406_s17 = sshll.u32 %s399_s18, 4  ;;  %s10038_s17 = int_to_ptr.vmem [resolvable:$true] %s406_s17 }
  0xe8   : > { %p10034_p11 = pnand %p7577_p4, %p47_p2  ;;  %s10040_s28 = scalar_lea.sflag [#allocation5], %s395_s10 }
  0xe9   : > { %s9558_s26 = scalar_lea.hbm %s10032_s30, 4096  ;;  %s9563_s12 = scalar_lea.hbm %s14447_s0, 8192 }
  0xea   : > { %p9559_p12 = scmp.ne.s32.totalorder %s10032_s30, %s9558_s26  ;;  %p9560_p8 = pneg %p10034_p11 }
  0xeb   : > { %p9564_p13 = scmp.lt.u32.totalorder %s10032_s30, %s14447_s0  ;;  %p9565_p0 = scmp.lt.u32.totalorder %s9563_s12, %s9558_s26 }
  0xec   : > { %p9561_p1 = pnand %p9560_p8, %p9559_p12  ;;  %p9567_p5 = scmp.lt.u32.totalorder %s9558_s26, %s10032_s30 }
  0xed   : > { %p9566_p2 = por %p9565_p0, %p9564_p13 }
  0xee   : > { %p9562_p3 = pneg %p9561_p1 }
  0xef   : > { %p9568_p9 = por %p9567_p5, %p9566_p2 }
  0xf1   : > { %p9569_p4 = pnand %p9568_p9, %p9562_p3 }
  0xf3   : > { %9572 = shalt.err (!%p9569_p4)
}
  0xf4   : > { %s9573_s10 = scalar_lea.vmem %s10038_s17, 4096  ;;  %s9687_s29 = smov [#allocation4]  }
  0xf5   : > { %p9574_p12 = scmp.ne.s32.totalorder %s10038_s17, %s9573_s10  ;;  %s9578_s24 = sshll.u32 %s9687_s29, 4  ;;  %s9579_s24 = int_to_ptr.vmem [resolvable:$false] %s9578_s24 }
  0xf6   : > { %s9580_s20 = scalar_lea.vmem %s9579_s24, 8192  ;;  %p9581_p6 = scmp.lt.s32.totalorder %s10038_s17, %s9579_s24 }
  0xf7   : > { %p9576_p1 = pnand %p9574_p12, %p9560_p8  ;;  %p9582_p13 = scmp.lt.s32.totalorder %s9580_s20, %s9573_s10 }
  0xf9   : > { %p9577_p10 = pneg %p9576_p1  ;;  %p9583_p0 = por %p9582_p13, %p9581_p6 }
  0xfb   : > { %p9584_p2 = pnand %p9583_p0, %p9577_p10 }
  0xfd   : > { %9587 = shalt.err (!%p9584_p2)
}
  0xfe   : > { %s9688_s26 = smov 128   ;;  %s9689_s12 = smov 8  }
  0xff   : > { %7563 = dma.hbm_to_vmem [thread:$0]  (!%p10034_p11), %s10032_s30, 4096, %s10038_s17, %s10040_s28, %s9688_s26, %s9688_s26, %s9689_s12  }
 0x100   : > { %s14674_s18 = sld [smem:[#allocation29_spill]] }
 0x106   : > { %p14675_p8 = scmp.ne.s32.totalorder %s14674_s18, 0 }
 0x108   : > { %418 = sbr.rel (%p14675_p8) target bundleno = 2234 (0x8ba), region = 60 }
 0x10f   : > { %s10071_s29 = sand.u32 1, %s9666_s14  }
 0x110   : > { %s7200_s10 = sshll.u32 %s10071_s29, 8  ;;  %s421_s24 = scalar_lea.sflag [#allocation5], %s10071_s29 }
 0x111   : > { %s10077_s20 = scalar_lea.vmem [#allocation4], %s7200_s10 }
 0x112   : > { %9633 = dma.done.wait (%p10014_p7), %s421_s24, 4096  }
 0x113   : > { %9635 = vsyncadd (%p10014_p7), %s421_s24, 4294963200  ;;  %p14676_p6 = scmp.eq.s32.totalorder %s9778_s19, 0 }
 0x115   : > { %9637 = dma.done.wait (%p14676_p6), [#allocation8], 2320   ;;  %p14677_p10 = pmov %p14676_p6 }
 0x116   : > { %p14678_p11 = pmov %p14676_p6 }
 0x117   : > { %9639 = vsyncadd (%p14677_p10), [#allocation8], 4294964976 }
 0x118   : > { %9641 = dma.done.wait (%p14678_p11), [#allocation11], 1168   ;;  %p14679_p3 = pmov %p14676_p6 }
 0x11a   : > { %9643 = vsyncadd (%p14679_p3), [#allocation11], 4294966128  ;;  %p14680_p5 = pmov %p14679_p3 }
 0x11b   : > { %p14681_p9 = pmov %p14679_p3 }
 0x11c   : > { %9645 = dma.done.wait (%p14680_p5), [#allocation14], 32  }
 0x11d   : > { %9647 = vsyncadd (%p14681_p9), [#allocation14], 4294967264  ;;  %p14682_p7 = pmov %p14679_p3 }
 0x11e   : > { %p14683_p4 = pmov %p14679_p3 }
 0x11f   : > { %9649 = dma.done.wait (%p14682_p7), [#allocation17], 1168  }
 0x120   : > { %9651 = vsyncadd (%p14683_p4), [#allocation17], 4294966128  ;;  %p14684_p12 = pmov %p14679_p3 }
 0x121   : > { %p14685_p1 = pmov %p14679_p3 }
 0x122   : > { %9653 = dma.done.wait (%p14684_p12), [#allocation20], 16  }
 0x123   : > { %9655 = vsyncadd (%p14685_p1), [#allocation20], 4294967280  ;;  %vm530_vm0 = vcmask 261120   ;;  %v14466_v0 = vmov 0.0   ;;  %v500_v1 = vld [vmem:[%s10077_s20 + $0x10] sm:$0xff]  ;;  %v501_v2 = vld [vmem:[%s10077_s20 + $0x18] sm:$0xff] }
 0x124   : > { %532 = vst.msk [vmem:[#allocation2 + $0x8] sm:$0xff] %vm530_vm0, %v14466_v0  ;;  %533 = vst.msk [vmem:[#allocation2 + $0x10] sm:$0xff] %vm530_vm0, %v14466_v0  ;;  %v498_v3 = vld [vmem:[%s10077_s20] sm:$0xff]  ;;  %v499_v6 = vld [vmem:[%s10077_s20 + $0x8] sm:$0xff]  ;;  %s9691_s27 = smov 32   ;;  %s9692_s30 = smov 64  }
 0x125   : > { %531 = vst.msk [vmem:[#allocation2] sm:$0xff] %vm530_vm0, %v14466_v0  ;;  %534 = vst.msk [vmem:[#allocation2 + $0x18] sm:$0xff] %vm530_vm0, %v14466_v0  ;;  %v502_v8 = vld [vmem:[%s10077_s20 + $0x20] sm:$0xff]  ;;  %v503_v9 = vld [vmem:[%s10077_s20 + $0x28] sm:$0xff]  ;;  %s9693_s17 = smov 96   ;;  %vm1725_vm1 = vcmask 523264  }
 0x126   : > { %535 = vst.msk [vmem:[#allocation2 + $0x20] sm:$0xff] %vm530_vm0, %v14466_v0  ;;  %536 = vst.msk [vmem:[#allocation2 + $0x28] sm:$0xff] %vm530_vm0, %v14466_v0  ;;  %v504_v10 = vld [vmem:[%s10077_s20 + $0x30] sm:$0xff]  ;;  %v505_v11 = vld [vmem:[%s10077_s20 + $0x38] sm:$0xff]  ;;  %vm1758_vm2 = vcmask 785408   ;;  %vm2559_vm3 = vcmask 130048  }
 0x127   : > { %537 = vst.msk [vmem:[#allocation2 + $0x30] sm:$0xff] %vm530_vm0, %v14466_v0  ;;  %538 = vst.msk [vmem:[#allocation2 + $0x38] sm:$0xff] %vm530_vm0, %v14466_v0  ;;  %v506_v12 = vld [vmem:[%s10077_s20 + $0x40] sm:$0xff]  ;;  %v507_v13 = vld [vmem:[%s10077_s20 + $0x48] sm:$0xff]  ;;  %s9694_s11 = smov 16   ;;  %s9696_s28 = smov 48  }
 0x128   : > { %539 = vst.msk [vmem:[#allocation2 + $0x40] sm:$0xff] %vm530_vm0, %v14466_v0  ;;  %540 = vst.msk [vmem:[#allocation2 + $0x48] sm:$0xff] %vm530_vm0, %v14466_v0  ;;  %v508_v14 = vld [vmem:[%s10077_s20 + $0x50] sm:$0xff]  ;;  %v509_v15 = vld [vmem:[%s10077_s20 + $0x58] sm:$0xff]  ;;  %s9697_s26 = smov 80   ;;  %s9698_s12 = smov 112  }
 0x129   : > { %541 = vst.msk [vmem:[#allocation2 + $0x50] sm:$0xff] %vm530_vm0, %v14466_v0  ;;  %542 = vst.msk [vmem:[#allocation2 + $0x58] sm:$0xff] %vm530_vm0, %v14466_v0  ;;  %v510_v16 = vld [vmem:[%s10077_s20 + $0x60] sm:$0xff]  ;;  %v511_v17 = vld [vmem:[%s10077_s20 + $0x68] sm:$0xff]  ;;  %vm4042_vm4 = vcmask 392192   ;;  %vm4107_vm5 = vcmask 654336  }
 0x12a   : > { %543 = vst.msk [vmem:[#allocation2 + $0x60] sm:$0xff] %vm530_vm0, %v14466_v0  ;;  %544 = vst.msk [vmem:[#allocation2 + $0x68] sm:$0xff] %vm530_vm0, %v14466_v0  ;;  %v512_v18 = vld [vmem:[%s10077_s20 + $0x70] sm:$0xff]  ;;  %v513_v19 = vld [vmem:[%s10077_s20 + $0x78] sm:$0xff]  ;;  %vm4172_vm6 = vcmask 916480   ;;  %s14129_s18 = scalar_lea.vmem [#allocation21], %s7200_s10 }
 0x12b   : > { %545 = vst.msk [vmem:[#allocation2 + $0x70] sm:$0xff] %vm530_vm0, %v14466_v0  ;;  %546 = vst.msk [vmem:[#allocation2 + $0x78] sm:$0xff] %vm530_vm0, %v14466_v0  ;;  %v668_v4 = vld [vmem:[#allocation2 + $0x8] sm:$0xff]  ;;  %v669_v5 = vld [vmem:[#allocation2 + $0x10] sm:$0xff]  ;;  %s7307_s10 = sshll.u32 %s9778_s19, 12  ;;  %s7025_s24 = sshll.u32 %s14129_s18, 4  ;;  %s14394_s24 = int_to_ptr.vmem [resolvable:$true] %s7025_s24 }
 0x12c   : > { %547 = vst.msk [vmem:[#allocation2 + $0x80] sm:$0xff] %vm530_vm0, %v14466_v0  ;;  %548 = vst.msk [vmem:[#allocation2 + $0x88] sm:$0xff] %vm530_vm0, %v14466_v0  ;;  %v7644_v7 = vpack.i.bf16 %v669_v5, %v668_v4  ;;  %v514_v20 = vld [vmem:[%s10077_s20 + $0x80] sm:$0xff]  ;;  %v515_v21 = vld [vmem:[%s10077_s20 + $0x88] sm:$0xff]  ;;  %s7012_s19 = scalar_lea.sflag [#allocation6], %s10071_s29  ;;  %p15069_p0 = scmp.ne.s32.totalorder %s14671_s22, 0 }
 0x12d   : > { %549 = vst.msk [vmem:[#allocation2 + $0x90] sm:$0xff] %vm530_vm0, %v14466_v0  ;;  %550 = vst.msk [vmem:[#allocation2 + $0x98] sm:$0xff] %vm530_vm0, %v14466_v0  ;;  %v516_v22 = vld [vmem:[%s10077_s20 + $0x90] sm:$0xff]  ;;  %v517_v23 = vld [vmem:[%s10077_s20 + $0x98] sm:$0xff] }
 0x12e   : > { %551 = vst.msk [vmem:[#allocation2 + $0xa0] sm:$0xff] %vm530_vm0, %v14466_v0  ;;  %552 = vst.msk [vmem:[#allocation2 + $0xa8] sm:$0xff] %vm530_vm0, %v14466_v0  ;;  %7645 = vrot.lane.b32.xlu0 %v7644_v7, %s9691_s27  ;;  %v518_v24 = vld [vmem:[%s10077_s20 + $0xa0] sm:$0xff]  ;;  %v519_v25 = vld [vmem:[%s10077_s20 + $0xa8] sm:$0xff] }
 0x12f   : > { %553 = vst.msk [vmem:[#allocation2 + $0xb0] sm:$0xff] %vm530_vm0, %v14466_v0  ;;  %554 = vst.msk [vmem:[#allocation2 + $0xb8] sm:$0xff] %vm530_vm0, %v14466_v0  ;;  %v520_v31 = vld [vmem:[%s10077_s20 + $0xb0] sm:$0xff]  ;;  %v521_v32 = vld [vmem:[%s10077_s20 + $0xb8] sm:$0xff] }
 0x130   : > { %555 = vst.msk [vmem:[#allocation2 + $0xc0] sm:$0xff] %vm530_vm0, %v14466_v0  ;;  %556 = vst.msk [vmem:[#allocation2 + $0xc8] sm:$0xff] %vm530_vm0, %v14466_v0  ;;  %v522_v48 = vld [vmem:[%s10077_s20 + $0xc0] sm:$0xff]  ;;  %v523_v49 = vld [vmem:[%s10077_s20 + $0xc8] sm:$0xff] }
 0x131   : > { %557 = vst.msk [vmem:[#allocation2 + $0xd0] sm:$0xff] %vm530_vm0, %v14466_v0  ;;  %558 = vst.msk [vmem:[#allocation2 + $0xd8] sm:$0xff] %vm530_vm0, %v14466_v0  ;;  %v524_v50 = vld [vmem:[%s10077_s20 + $0xd0] sm:$0xff]  ;;  %v525_v53 = vld [vmem:[%s10077_s20 + $0xd8] sm:$0xff] }
 0x132   : > { %559 = vst.msk [vmem:[#allocation2 + $0xe0] sm:$0xff] %vm530_vm0, %v14466_v0  ;;  %560 = vst.msk [vmem:[#allocation2 + $0xe8] sm:$0xff] %vm530_vm0, %v14466_v0  ;;  %v526_v54 = vld [vmem:[%s10077_s20 + $0xe0] sm:$0xff]  ;;  %v527_v55 = vld [vmem:[%s10077_s20 + $0xe8] sm:$0xff] }
 0x133   : > { %561 = vst.msk [vmem:[#allocation2 + $0xf0] sm:$0xff] %vm530_vm0, %v14466_v0  ;;  %562 = vst.msk [vmem:[#allocation2 + $0xf8] sm:$0xff] %vm530_vm0, %v14466_v0 }
 0x134   : > { %563 = vst.msk [vmem:[#allocation2 + $0x100] sm:$0xff] %vm530_vm0, %v14466_v0  ;;  %564 = vst.msk [vmem:[#allocation2 + $0x108] sm:$0xff] %vm530_vm0, %v14466_v0 }
 0x135   : > { %565 = vst.msk [vmem:[#allocation2 + $0x110] sm:$0xff] %vm530_vm0, %v14466_v0  ;;  %566 = vst.msk [vmem:[#allocation2 + $0x118] sm:$0xff] %vm530_vm0, %v14466_v0 }
 0x136   : > { %567 = vst.msk [vmem:[#allocation2 + $0x120] sm:$0xff] %vm530_vm0, %v14466_v0  ;;  %568 = vst.msk [vmem:[#allocation2 + $0x128] sm:$0xff] %vm530_vm0, %v14466_v0 }
 0x137   : > { %569 = vst.msk [vmem:[#allocation2 + $0x130] sm:$0xff] %vm530_vm0, %v14466_v0  ;;  %570 = vst.msk [vmem:[#allocation2 + $0x138] sm:$0xff] %vm530_vm0, %v14466_v0 }
 0x138   : > { %571 = vst.msk [vmem:[#allocation2 + $0x140] sm:$0xff] %vm530_vm0, %v14466_v0  ;;  %572 = vst.msk [vmem:[#allocation2 + $0x148] sm:$0xff] %vm530_vm0, %v14466_v0 }
 0x139   : > { %573 = vst.msk [vmem:[#allocation2 + $0x150] sm:$0xff] %vm530_vm0, %v14466_v0  ;;  %574 = vst.msk [vmem:[#allocation2 + $0x158] sm:$0xff] %vm530_vm0, %v14466_v0 }
 0x13a   : > { %575 = vst.msk [vmem:[#allocation2 + $0x160] sm:$0xff] %vm530_vm0, %v14466_v0  ;;  %576 = vst.msk [vmem:[#allocation2 + $0x168] sm:$0xff] %vm530_vm0, %v14466_v0 }
 0x13b   : > { %577 = vst.msk [vmem:[#allocation2 + $0x170] sm:$0xff] %vm530_vm0, %v14466_v0  ;;  %578 = vst.msk [vmem:[#allocation2 + $0x178] sm:$0xff] %vm530_vm0, %v14466_v0 }
 0x13c   : > { %579 = vst.msk [vmem:[#allocation2 + $0x180] sm:$0xff] %vm530_vm0, %v14466_v0  ;;  %580 = vst.msk [vmem:[#allocation2 + $0x188] sm:$0xff] %vm530_vm0, %v14466_v0 }
 0x13d   : > { %581 = vst.msk [vmem:[#allocation2 + $0x190] sm:$0xff] %vm530_vm0, %v14466_v0  ;;  %582 = vst.msk [vmem:[#allocation2 + $0x198] sm:$0xff] %vm530_vm0, %v14466_v0 }
 0x13e   : > { %583 = vst.msk [vmem:[#allocation2 + $0x1a0] sm:$0xff] %vm530_vm0, %v14466_v0  ;;  %584 = vst.msk [vmem:[#allocation2 + $0x1a8] sm:$0xff] %vm530_vm0, %v14466_v0 }
 0x13f   : > { %585 = vst.msk [vmem:[#allocation2 + $0x1b0] sm:$0xff] %vm530_vm0, %v14466_v0  ;;  %586 = vst.msk [vmem:[#allocation2 + $0x1b8] sm:$0xff] %vm530_vm0, %v14466_v0 }
 0x140   : > { %587 = vst.msk [vmem:[#allocation2 + $0x1c0] sm:$0xff] %vm530_vm0, %v14466_v0  ;;  %588 = vst.msk [vmem:[#allocation2 + $0x1c8] sm:$0xff] %vm530_vm0, %v14466_v0 }
 0x141   : > { %589 = vst.msk [vmem:[#allocation2 + $0x1d0] sm:$0xff] %vm530_vm0, %v14466_v0  ;;  %590 = vst.msk [vmem:[#allocation2 + $0x1d8] sm:$0xff] %vm530_vm0, %v14466_v0 }
 0x142   : > { %591 = vst.msk [vmem:[#allocation2 + $0x1e0] sm:$0xff] %vm530_vm0, %v14466_v0  ;;  %592 = vst.msk [vmem:[#allocation2 + $0x1e8] sm:$0xff] %vm530_vm0, %v14466_v0 }
 0x143   : > { %593 = vst.msk [vmem:[#allocation2 + $0x1f0] sm:$0xff] %vm530_vm0, %v14466_v0  ;;  %594 = vst.msk [vmem:[#allocation2 + $0x1f8] sm:$0xff] %vm530_vm0, %v14466_v0 }
 0x144   : > { %595 = vst.msk [vmem:[#allocation2 + $0x200] sm:$0xff] %vm530_vm0, %v14466_v0  ;;  %596 = vst.msk [vmem:[#allocation2 + $0x208] sm:$0xff] %vm530_vm0, %v14466_v0 }
 0x145   : > { %597 = vst.msk [vmem:[#allocation2 + $0x210] sm:$0xff] %vm530_vm0, %v14466_v0  ;;  %598 = vst.msk [vmem:[#allocation2 + $0x218] sm:$0xff] %vm530_vm0, %v14466_v0 }
 0x146   : > { %599 = vst.msk [vmem:[#allocation2 + $0x220] sm:$0xff] %vm530_vm0, %v14466_v0  ;;  %600 = vst.msk [vmem:[#allocation2 + $0x228] sm:$0xff] %vm530_vm0, %v14466_v0 }
 0x147   : > { %601 = vst.msk [vmem:[#allocation2 + $0x230] sm:$0xff] %vm530_vm0, %v14466_v0  ;;  %602 = vst.msk [vmem:[#allocation2 + $0x238] sm:$0xff] %vm530_vm0, %v14466_v0 }
 0x148   : > { %606 = vst.msk [vmem:[#allocation2 + $0x48] sm:$0xff] %vm530_vm0, %v500_v1  ;;  %607 = vst.msk [vmem:[#allocation2 + $0x50] sm:$0xff] %vm530_vm0, %v501_v2 }
 0x149   : > { %604 = vst.msk [vmem:[#allocation2 + $0x28] sm:$0xff] %vm530_vm0, %v498_v3  ;;  %605 = vst.msk [vmem:[#allocation2 + $0x30] sm:$0xff] %vm530_vm0, %v499_v6 }
 0x14a   : > { %608 = vst.msk [vmem:[#allocation2 + $0x68] sm:$0xff] %vm530_vm0, %v502_v8  ;;  %609 = vst.msk [vmem:[#allocation2 + $0x70] sm:$0xff] %vm530_vm0, %v503_v9 }
 0x14b   : > { %610 = vst.msk [vmem:[#allocation2 + $0x88] sm:$0xff] %vm530_vm0, %v504_v10  ;;  %611 = vst.msk [vmem:[#allocation2 + $0x90] sm:$0xff] %vm530_vm0, %v505_v11 }
 0x14c   : > { %612 = vst.msk [vmem:[#allocation2 + $0xa8] sm:$0xff] %vm530_vm0, %v506_v12  ;;  %613 = vst.msk [vmem:[#allocation2 + $0xb0] sm:$0xff] %vm530_vm0, %v507_v13 }
 0x14d   : > { %614 = vst.msk [vmem:[#allocation2 + $0xc8] sm:$0xff] %vm530_vm0, %v508_v14  ;;  %615 = vst.msk [vmem:[#allocation2 + $0xd0] sm:$0xff] %vm530_vm0, %v509_v15  ;;  %v700_v15 = vld [vmem:[#allocation2 + $0x9] sm:$0xff] }
 0x14e   : > { %616 = vst.msk [vmem:[#allocation2 + $0xe8] sm:$0xff] %vm530_vm0, %v510_v16  ;;  %617 = vst.msk [vmem:[#allocation2 + $0xf0] sm:$0xff] %vm530_vm0, %v511_v17  ;;  %v701_v16 = vld [vmem:[#allocation2 + $0x11] sm:$0xff] }
 0x14f   : > { %618 = vst.msk [vmem:[#allocation2 + $0x108] sm:$0xff] %vm530_vm0, %v512_v18  ;;  %619 = vst.msk [vmem:[#allocation2 + $0x110] sm:$0xff] %vm530_vm0, %v513_v19  ;;  %v672_v26 = vld [vmem:[#allocation2 + $0x48] sm:$0xff]  ;;  %v673_v27 = vld [vmem:[#allocation2 + $0x50] sm:$0xff]  ;;  %v7724_v18 = vpack.i.bf16 %v701_v16, %v700_v15 }
 0x150   : > { %620 = vst.msk [vmem:[#allocation2 + $0x128] sm:$0xff] %vm530_vm0, %v514_v20  ;;  %621 = vst.msk [vmem:[#allocation2 + $0x130] sm:$0xff] %vm530_vm0, %v515_v21  ;;  %v670_v28 = vld [vmem:[#allocation2 + $0x28] sm:$0xff]  ;;  %v10292_v29 = vpack.i.bf16 %v673_v27, %v672_v26  ;;  %v671_v30 = vld [vmem:[#allocation2 + $0x30] sm:$0xff] }
 0x151   : > { %622 = vst.msk [vmem:[#allocation2 + $0x148] sm:$0xff] %vm530_vm0, %v516_v22  ;;  %623 = vst.msk [vmem:[#allocation2 + $0x150] sm:$0xff] %vm530_vm0, %v517_v23  ;;  %v7649_v33 = vpack.i.bf16 %v671_v30, %v670_v28  ;;  %v674_v34 = vld [vmem:[#allocation2 + $0x68] sm:$0xff]  ;;  %v675_v35 = vld [vmem:[#allocation2 + $0x70] sm:$0xff] }
 0x152   : > { %624 = vst.msk [vmem:[#allocation2 + $0x168] sm:$0xff] %vm530_vm0, %v518_v24  ;;  %625 = vst.msk [vmem:[#allocation2 + $0x170] sm:$0xff] %vm530_vm0, %v519_v25  ;;  %v676_v36 = vld [vmem:[#allocation2 + $0x88] sm:$0xff]  ;;  %7655 = vrot.lane.b32.xlu1 %v10292_v29, %s9691_s27  ;;  %v10300_v37 = vpack.i.bf16 %v675_v35, %v674_v34  ;;  %v677_v38 = vld [vmem:[#allocation2 + $0x90] sm:$0xff] }
 0x153   : > { %626 = vst.msk [vmem:[#allocation2 + $0x188] sm:$0xff] %vm530_vm0, %v520_v31  ;;  %627 = vst.msk [vmem:[#allocation2 + $0x190] sm:$0xff] %vm530_vm0, %v521_v32  ;;  %7650 = vrot.lane.b32.xlu0 %v7649_v33, %s9691_s27  ;;  %v10303_v39 = vpack.i.bf16 %v677_v38, %v676_v36  ;;  %v678_v40 = vld [vmem:[#allocation2 + $0xa8] sm:$0xff]  ;;  %v679_v41 = vld [vmem:[#allocation2 + $0xb0] sm:$0xff] }
 0x154   : > { %v680_v42 = vld [vmem:[#allocation2 + $0xc8] sm:$0xff]  ;;  %v681_v43 = vld [vmem:[#allocation2 + $0xd0] sm:$0xff]  ;;  %v10307_v44 = vpack.i.bf16 %v679_v41, %v678_v40  ;;  %628 = vst.msk [vmem:[#allocation2 + $0x1a8] sm:$0xff] %vm530_vm0, %v522_v48  ;;  %629 = vst.msk [vmem:[#allocation2 + $0x1b0] sm:$0xff] %vm530_vm0, %v523_v49 }
 0x155   : > { %v682_v45 = vld [vmem:[#allocation2 + $0xe8] sm:$0xff]  ;;  %v683_v46 = vld [vmem:[#allocation2 + $0xf0] sm:$0xff]  ;;  %v10311_v47 = vpack.i.bf16 %v681_v43, %v680_v42  ;;  %630 = vst.msk [vmem:[#allocation2 + $0x1c8] sm:$0xff] %vm530_vm0, %v524_v50  ;;  %631 = vst.msk [vmem:[#allocation2 + $0x1d0] sm:$0xff] %vm530_vm0, %v525_v53 }
 0x156   : > { %7660 = vrot.lane.b32.xlu1 %v10300_v37, %s9691_s27  ;;  %v684_v51 = vld [vmem:[#allocation2 + $0x108] sm:$0xff]  ;;  %v685_v52 = vld [vmem:[#allocation2 + $0x110] sm:$0xff]  ;;  %v10325_v56 = vpack.i.bf16 %v683_v46, %v682_v45  ;;  %632 = vst.msk [vmem:[#allocation2 + $0x1e8] sm:$0xff] %vm530_vm0, %v526_v54  ;;  %633 = vst.msk [vmem:[#allocation2 + $0x1f0] sm:$0xff] %vm530_vm0, %v527_v55 }
 0x157   : > { %7665 = vrot.lane.b32.xlu0 %v10303_v39, %s9691_s27  ;;  %v10331_v57 = vpack.i.bf16 %v685_v52, %v684_v51  ;;  %v686_v58 = vld [vmem:[#allocation2 + $0x128] sm:$0xff]  ;;  %v687_v59 = vld [vmem:[#allocation2 + $0x130] sm:$0xff]  ;;  %v529_v31 = vld [vmem:[%s10077_s20 + $0xf8] sm:$0xff] }
 0x158   : > { %v688_v60 = vld [vmem:[#allocation2 + $0x148] sm:$0xff]  ;;  %v689_v61 = vld [vmem:[#allocation2 + $0x150] sm:$0xff]  ;;  %v10335_v62 = vpack.i.bf16 %v687_v59, %v686_v58  ;;  %635 = vst.msk [vmem:[#allocation2 + $0x210] sm:$0xff] %vm530_vm0, %v529_v31 }
 0x159   : > { %v10339_v63 = vpack.i.bf16 %v689_v61, %v688_v60  ;;  %v690_v1 = vld [vmem:[#allocation2 + $0x168] sm:$0xff]  ;;  %v691_v2 = vld [vmem:[#allocation2 + $0x170] sm:$0xff] }
 0x15a   : > { %7670 = vrot.lane.b32.xlu1 %v10307_v44, %s9691_s27  ;;  %v692_v3 = vld [vmem:[#allocation2 + $0x188] sm:$0xff]  ;;  %v693_v4 = vld [vmem:[#allocation2 + $0x190] sm:$0xff]  ;;  %v10343_v5 = vpack.i.bf16 %v691_v2, %v690_v1 }
 0x15b   : > { %7675 = vrot.lane.b32.xlu0 %v10311_v47, %s9691_s27  ;;  %v10347_v6 = vpack.i.bf16 %v693_v4, %v692_v3  ;;  %v694_v7 = vld [vmem:[#allocation2 + $0x1a8] sm:$0xff]  ;;  %v695_v8 = vld [vmem:[#allocation2 + $0x1b0] sm:$0xff] }
 0x15c   : > { %v696_v9 = vld [vmem:[#allocation2 + $0x1c8] sm:$0xff]  ;;  %v697_v10 = vld [vmem:[#allocation2 + $0x1d0] sm:$0xff]  ;;  %v10351_v11 = vpack.i.bf16 %v695_v8, %v694_v7 }
 0x15d   : > { %v10355_v12 = vpack.i.bf16 %v697_v10, %v696_v9  ;;  %v698_v13 = vld [vmem:[#allocation2 + $0x1e8] sm:$0xff]  ;;  %v699_v14 = vld [vmem:[#allocation2 + $0x1f0] sm:$0xff] }
 0x15e   : > { %7680 = vrot.lane.b32.xlu1 %v10325_v56, %s9691_s27  ;;  %v10359_v17 = vpack.i.bf16 %v699_v14, %v698_v13  ;;  %v702_v19 = vld [vmem:[#allocation2 + $0x29] sm:$0xff]  ;;  %v703_v20 = vld [vmem:[#allocation2 + $0x31] sm:$0xff] }
 0x15f   : > { %7685 = vrot.lane.b32.xlu0 %v10331_v57, %s9691_s27  ;;  %v704_v21 = vld [vmem:[#allocation2 + $0x49] sm:$0xff]  ;;  %v705_v22 = vld [vmem:[#allocation2 + $0x51] sm:$0xff]  ;;  %v10365_v23 = vpack.i.bf16 %v703_v20, %v702_v19 }
 0x160   : > { %v10368_v24 = vpack.i.bf16 %v705_v22, %v704_v21  ;;  %v706_v25 = vld [vmem:[#allocation2 + $0x69] sm:$0xff]  ;;  %v707_v26 = vld [vmem:[#allocation2 + $0x71] sm:$0xff] }
 0x161   : > { %v708_v27 = vld [vmem:[#allocation2 + $0x89] sm:$0xff]  ;;  %v709_v28 = vld [vmem:[#allocation2 + $0x91] sm:$0xff]  ;;  %v10376_v34 = vpack.i.bf16 %v707_v26, %v706_v25 }
 0x162   : > { %7690 = vrot.lane.b32.xlu1 %v10335_v62, %s9691_s27  ;;  %v528_v30 = vld [vmem:[%s10077_s20 + $0xf0] sm:$0xff]  ;;  %v10380_v38 = vpack.i.bf16 %v709_v28, %v708_v27  ;;  %v10422_v15 = vld [vmem:[#allocation2 + $0x27] sm:$0xff] }
 0x163   : > { %7695 = vrot.lane.b32.xlu0 %v10339_v63, %s9691_s27  ;;  %v710_v32 = vld [vmem:[#allocation2 + $0xa9] sm:$0xff]  ;;  %v711_v33 = vld [vmem:[#allocation2 + $0xb1] sm:$0xff]  ;;  %634 = vst.msk [vmem:[#allocation2 + $0x208] sm:$0xff] %vm530_vm0, %v528_v30 }
 0x164   : > { %v712_v35 = vld [vmem:[#allocation2 + $0xc9] sm:$0xff]  ;;  %v713_v36 = vld [vmem:[#allocation2 + $0xd1] sm:$0xff]  ;;  %v10384_v42 = vpack.i.bf16 %v711_v33, %v710_v32 }
 0x165   : > { %v714_v40 = vld [vmem:[#allocation2 + $0xe9] sm:$0xff]  ;;  %v715_v41 = vld [vmem:[#allocation2 + $0xf1] sm:$0xff]  ;;  %v10388_v43 = vpack.i.bf16 %v713_v36, %v712_v35 }
 0x166   : > { %7700 = vrot.lane.b32.xlu1 %v10343_v5, %s9691_s27  ;;  %v716_v45 = vld [vmem:[#allocation2 + $0x109] sm:$0xff]  ;;  %v717_v46 = vld [vmem:[#allocation2 + $0x111] sm:$0xff]  ;;  %v10392_v50 = vpack.i.bf16 %v715_v41, %v714_v40 }
 0x167   : > { %7705 = vrot.lane.b32.xlu0 %v10347_v6, %s9691_s27  ;;  %v718_v48 = vld [vmem:[#allocation2 + $0x129] sm:$0xff]  ;;  %v719_v49 = vld [vmem:[#allocation2 + $0x131] sm:$0xff]  ;;  %v10396_v53 = vpack.i.bf16 %v717_v46, %v716_v45 }
 0x168   : > { %v720_v51 = vld [vmem:[#allocation2 + $0x149] sm:$0xff]  ;;  %v721_v52 = vld [vmem:[#allocation2 + $0x151] sm:$0xff]  ;;  %v10400_v58 = vpack.i.bf16 %v719_v49, %v718_v48 }
 0x169   : > { %v722_v54 = vld [vmem:[#allocation2 + $0x169] sm:$0xff]  ;;  %v723_v55 = vld [vmem:[#allocation2 + $0x171] sm:$0xff]  ;;  %v10404_v61 = vpack.i.bf16 %v721_v52, %v720_v51 }
 0x16a   : > { %7710 = vrot.lane.b32.xlu1 %v10351_v11, %s9691_s27  ;;  %v724_v59 = vld [vmem:[#allocation2 + $0x189] sm:$0xff]  ;;  %v725_v60 = vld [vmem:[#allocation2 + $0x191] sm:$0xff]  ;;  %v10408_v3 = vpack.i.bf16 %v723_v55, %v722_v54 }
 0x16b   : > { %7715 = vrot.lane.b32.xlu0 %v10355_v12, %s9691_s27  ;;  %v726_v1 = vld [vmem:[#allocation2 + $0x1a9] sm:$0xff]  ;;  %v727_v2 = vld [vmem:[#allocation2 + $0x1b1] sm:$0xff]  ;;  %v10412_v7 = vpack.i.bf16 %v725_v60, %v724_v59 }
 0x16c   : > { %v728_v4 = vld [vmem:[#allocation2 + $0x1c9] sm:$0xff]  ;;  %v729_v8 = vld [vmem:[#allocation2 + $0x1d1] sm:$0xff]  ;;  %v10416_v13 = vpack.i.bf16 %v727_v2, %v726_v1 }
 0x16d   : > { %v730_v9 = vld [vmem:[#allocation2 + $0x1e9] sm:$0xff]  ;;  %v731_v10 = vld [vmem:[#allocation2 + $0x1f1] sm:$0xff]  ;;  %v10420_v14 = vpack.i.bf16 %v729_v8, %v728_v4 }
 0x16e   : > { %7720 = vrot.lane.b32.xlu1 %v10359_v17, %s9691_s27  ;;  %v10424_v16 = vld [vmem:[#allocation2 + $0x2f] sm:$0xff]  ;;  %v10432_v20 = vpack.i.bf16 %v731_v10, %v730_v9  ;;  %v10438_v22 = vld [vmem:[#allocation2 + $0x67] sm:$0xff] }
 0x16f   : > { %7725 = vrot.lane.b32.xlu0 %v7724_v18, %s9692_s30  ;;  %v10426_v18 = vld [vmem:[#allocation2 + $0x47] sm:$0xff]  ;;  %v10428_v19 = vld [vmem:[#allocation2 + $0x4f] sm:$0xff]  ;;  %v7804_v21 = vpack.i.bf16 %v10424_v16, %v10422_v15 }
 0x170   : > { %v10440_v25 = vld [vmem:[#allocation2 + $0x6f] sm:$0xff]  ;;  %v10446_v26 = vpack.i.bf16 %v10428_v19, %v10426_v18  ;;  %v10453_v28 = vld [vmem:[#allocation2 + $0x87] sm:$0xff] }
 0x171   : > { %v10451_v27 = vpack.i.bf16 %v10440_v25, %v10438_v22  ;;  %v10455_v30 = vld [vmem:[#allocation2 + $0x8f] sm:$0xff]  ;;  %v10457_v31 = vld [vmem:[#allocation2 + $0xa7] sm:$0xff] }
 0x172   : > { %7730 = vrot.lane.b32.xlu1 %v10365_v23, %s9692_s30  ;;  %14686 = vst [vmem:[#allocation30_spill] sm:$0xff] %v10457_v31  ;;  %v10459_v32 = vld [vmem:[#allocation2 + $0xaf] sm:$0xff]  ;;  %v10465_v33 = vpack.i.bf16 %v10455_v30, %v10453_v28  ;;  %v10473_v36 = vld [vmem:[#allocation2 + $0xc7] sm:$0xff] }
 0x173   : > { %7735 = vrot.lane.b32.xlu0 %v10368_v24, %s9692_s30  ;;  %v10471_v35 = vpack.i.bf16 %v10459_v32, %v10457_v31  ;;  %14687 = vst [vmem:[#allocation31_spill] sm:$0xff] %v10473_v36  ;;  %v10475_v40 = vld [vmem:[#allocation2 + $0xcf] sm:$0xff]  ;;  %v744_v41 = vld [vmem:[#allocation2 + $0xe7] sm:$0xff] }
 0x174   : > { %14688 = vst [vmem:[#allocation32_spill] sm:$0xff] %v10475_v40  ;;  %v745_v45 = vld [vmem:[#allocation2 + $0xef] sm:$0xff]  ;;  %v10481_v46 = vpack.i.bf16 %v10475_v40, %v10473_v36  ;;  %v746_v49 = vld [vmem:[#allocation2 + $0x107] sm:$0xff] }
 0x175   : > { %v10485_v48 = vpack.i.bf16 %v745_v45, %v744_v41  ;;  %v747_v51 = vld [vmem:[#allocation2 + $0x10f] sm:$0xff]  ;;  %v748_v52 = vld [vmem:[#allocation2 + $0x127] sm:$0xff] }
 0x176   : > { %7740 = vrot.lane.b32.xlu1 %v10376_v34, %s9692_s30  ;;  %v749_v54 = vld [vmem:[#allocation2 + $0x12f] sm:$0xff]  ;;  %v10489_v55 = vpack.i.bf16 %v747_v51, %v746_v49  ;;  %v750_v60 = vld [vmem:[#allocation2 + $0x147] sm:$0xff] }
 0x177   : > { %7745 = vrot.lane.b32.xlu0 %v10380_v38, %s9692_s30  ;;  %v10493_v59 = vpack.i.bf16 %v749_v54, %v748_v52  ;;  %v751_v1 = vld [vmem:[#allocation2 + $0x14f] sm:$0xff]  ;;  %v752_v2 = vld [vmem:[#allocation2 + $0x167] sm:$0xff] }
 0x178   : > { %v753_v4 = vld [vmem:[#allocation2 + $0x16f] sm:$0xff]  ;;  %v10497_v8 = vpack.i.bf16 %v751_v1, %v750_v60  ;;  %v754_v10 = vld [vmem:[#allocation2 + $0x187] sm:$0xff] }
 0x179   : > { %v10501_v9 = vpack.i.bf16 %v753_v4, %v752_v2  ;;  %v756_v41 = vld [vmem:[#allocation2 + $0x1a7] sm:$0xff]  ;;  %v757_v45 = vld [vmem:[#allocation2 + $0x1af] sm:$0xff] }
 0x17a   : > { %7750 = vrot.lane.b32.xlu1 %v10384_v42, %s9692_s30  ;;  %v10509_v51 = vpack.i.bf16 %v757_v45, %v756_v41  ;;  %v758_v52 = vld [vmem:[#allocation2 + $0x1c7] sm:$0xff]  ;;  %v759_v54 = vld [vmem:[#allocation2 + $0x1cf] sm:$0xff] }
 0x17b   : > { %7755 = vrot.lane.b32.xlu0 %v10388_v43, %s9692_s30  ;;  %v760_v60 = vld [vmem:[#allocation2 + $0x1e7] sm:$0xff]  ;;  %v761_v1 = vld [vmem:[#allocation2 + $0x1ef] sm:$0xff]  ;;  %v10513_v2 = vpack.i.bf16 %v759_v54, %v758_v52 }
 0x17c   : > { %v10517_v4 = vpack.i.bf16 %v761_v1, %v760_v60  ;;  %v9247_v45 = vld [vmem:[#allocation7 + $0x8] sm:$0xff]   ;;  %v9248_v52 = vld [vmem:[#allocation7 + $0x50] sm:$0xff]   ;;  %v9251_v1 = vld [vmem:[#allocation7 + $0x18] sm:$0xff]  }
 0x17d   : > { %v9249_v54 = vld [vmem:[#allocation7 + $0x10] sm:$0xff]  }
 0x17e   : > { %7760 = vrot.lane.b32.xlu1 %v10392_v50, %s9692_s30 }
 0x17f   : > { %7765 = vrot.lane.b32.xlu0 %v10396_v53, %s9692_s30 }
 0x182   : > { %7770 = vrot.lane.b32.xlu1 %v10400_v58, %s9692_s30 }
 0x183   : > { %7775 = vrot.lane.b32.xlu0 %v10404_v61, %s9692_s30 }
 0x186   : > { %7780 = vrot.lane.b32.xlu1 %v10408_v3, %s9692_s30 }
 0x187   : > { %7785 = vrot.lane.b32.xlu0 %v10412_v7, %s9692_s30 }
 0x18a   : > { %7790 = vrot.lane.b32.xlu1 %v10416_v13, %s9692_s30 }
 0x18b   : > { %7795 = vrot.lane.b32.xlu0 %v10420_v14, %s9692_s30 }
 0x18e   : > { %7800 = vrot.lane.b32.xlu1 %v10432_v20, %s9692_s30 }
 0x18f   : > { %7805 = vrot.lane.b32.xlu0 %v7804_v21, %s9693_s17  ;;  %v755_v21 = vld [vmem:[#allocation2 + $0x18f] sm:$0xff] }
 0x190   : > { %v10505_v49 = vpack.i.bf16 %v755_v21, %v754_v10  ;;  %v762_v10 = vld [vmem:[#allocation2 + $0x207] sm:$0xff]  ;;  %v763_v21 = vld [vmem:[#allocation2 + $0x20f] sm:$0xff] }
 0x191   : > { %v10521_v41 = vpack.i.bf16 %v763_v21, %v762_v10 }
 0x192   : > { %7810 = vrot.lane.b32.xlu1 %v10446_v26, %s9693_s17 }
 0x193   : > { %7815 = vrot.lane.b32.xlu0 %v10451_v27, %s9693_s17 }
 0x196   : > { %7820 = vrot.lane.b32.xlu1 %v10465_v33, %s9693_s17 }
 0x197   : > { %7825 = vrot.lane.b32.xlu0 %v10471_v35, %s9693_s17 }
 0x19a   : > { %7830 = vrot.lane.b32.xlu1 %v10481_v46, %s9693_s17 }
 0x19b   : > { %7835 = vrot.lane.b32.xlu0 %v10485_v48, %s9693_s17 }
 0x19e   : > { %7840 = vrot.lane.b32.xlu1 %v10489_v55, %s9693_s17 }
 0x19f   : > { %7845 = vrot.lane.b32.xlu0 %v10493_v59, %s9693_s17 }
 0x1a2   : > { %7850 = vrot.lane.b32.xlu1 %v10497_v8, %s9693_s17 }
 0x1a3   : > { %7855 = vrot.lane.b32.xlu0 %v10501_v9, %s9693_s17 }
 0x1a6   : > { %7860 = vrot.lane.b32.xlu1 %v10505_v49, %s9693_s17 }
 0x1a7   : > { %7865 = vrot.lane.b32.xlu0 %v10509_v51, %s9693_s17 }
 0x1aa   : > { %7870 = vrot.lane.b32.xlu1 %v10513_v2, %s9693_s17 }
 0x1ab   : > { %7875 = vrot.lane.b32.xlu0 %v10517_v4, %s9693_s17 }
 0x1ae   : > { %7880 = vrot.lane.b32.xlu1 %v10521_v41, %s9693_s17 }
 0x1af   : > { %7885 = vrot.lane.b32.xlu0 %v10365_v23, %s9691_s27  ;;  %v10545_v23 = vpop.permute.xlu0 %7645 }
 0x1b2   : > { %7890 = vrot.lane.b32.xlu1 %v10368_v24, %s9691_s27 }
 0x1b3   : > { %7895 = vrot.lane.b32.xlu0 %v10376_v34, %s9691_s27 }
 0x1b6   : > { %7900 = vrot.lane.b32.xlu1 %v10380_v38, %s9691_s27  ;;  %v9244_v38 = vld [vmem:[#allocation7 + $0x40] sm:$0xff]  }
 0x1b7   : > { %7905 = vrot.lane.b32.xlu0 %v10384_v42, %s9691_s27  ;;  %v9245_v42 = vld [vmem:[#allocation7] sm:$0xff]   ;;  %7308 = vmatprep.subr.bf16.mxu0 %v9244_v38 }
 0x1b8   : > { %7309 = vmatpush3.bf16.msra.mxu0 %v9245_v42  ;;  %v9253_v38 = vld [vmem:[#allocation7 + $0x20] sm:$0xff]  }
 0x1ba   : > { %7910 = vrot.lane.b32.xlu1 %v10388_v43, %s9691_s27  ;;  %v826_v43 = vld [vmem:[#allocation2 + $0x209] sm:$0xff] }
 0x1bb   : > { %7915 = vrot.lane.b32.xlu0 %v10392_v50, %s9691_s27  ;;  %v827_v50 = vld [vmem:[#allocation2 + $0x211] sm:$0xff] }
 0x1be   : > { %7920 = vrot.lane.b32.xlu1 %v10396_v53, %s9691_s27 }
 0x1bf   : > { %7925 = vrot.lane.b32.xlu0 %v10400_v58, %s9691_s27 }
 0x1c2   : > { %7930 = vrot.lane.b32.xlu1 %v10404_v61, %s9691_s27  ;;  %v7959_v61 = vpack.i.bf16 %v827_v50, %v826_v43  ;;  %v9255_v43 = vld [vmem:[#allocation7 + $0x28] sm:$0xff]  }
 0x1c3   : > { %7935 = vrot.lane.b32.xlu0 %v10408_v3, %s9691_s27  ;;  %v9246_v3 = vld [vmem:[#allocation7 + $0x48] sm:$0xff]  }
 0x1c4   : > { %v10551_v24 = vpop.permute.xlu1 %7655  ;;  %7310 = vmatprep.subr.bf16.mxu0 %v9246_v3  ;;  %v9258_v3 = vld [vmem:[#allocation7 + $0x30] sm:$0xff]  }
 0x1c5   : > { %v10553_v34 = vpop.permute.xlu0 %7650  ;;  %7311 = vmatpush3.bf16.msra.mxu0 %v9247_v45  ;;  %v9259_v45 = vld [vmem:[#allocation7 + $0x88] sm:$0xff]  }
 0x1c6   : > { %7940 = vrot.lane.b32.xlu1 %v10412_v7, %s9691_s27  ;;  %7312 = vmatprep.subr.bf16.mxu0 %v9248_v52  ;;  %v9260_v52 = vld [vmem:[#allocation7 + $0x78] sm:$0xff]  }
 0x1c7   : > { %7945 = vrot.lane.b32.xlu0 %v10416_v13, %s9691_s27 }
 0x1c8   : > { %v10559_v53 = vpop.permute.xlu1 %7660 }
 0x1c9   : > { %v10561_v58 = vpop.permute.xlu0 %7665  ;;  %7313 = vmatpush3.bf16.msra.mxu0 %v9249_v54  ;;  %v9261_v54 = vld [vmem:[#allocation7 + $0x38] sm:$0xff]  }
 0x1ca   : > { %7950 = vrot.lane.b32.xlu1 %v10420_v14, %s9691_s27 }
 0x1cb   : > { %7955 = vrot.lane.b32.xlu0 %v10432_v20, %s9691_s27  ;;  %v9250_v20 = vld [vmem:[#allocation7 + $0x58] sm:$0xff]  }
 0x1cc   : > { %v10567_v7 = vpop.permute.xlu1 %7670  ;;  %7314 = vmatprep.subr.bf16.mxu0 %v9250_v20 }
 0x1cd   : > { %v10569_v13 = vpop.permute.xlu0 %7675  ;;  %7315 = vmatpush3.bf16.msra.mxu0 %v9251_v1 }
 0x1ce   : > { %14689 = vst [vmem:[#allocation33_spill] sm:$0xff] %v10569_v13  ;;  %7960 = vrot.lane.b32.xlu1 %v7959_v61, %s9691_s27  ;;  %v9257_v61 = vld [vmem:[#allocation7 + $0x70] sm:$0xff]  }
 0x1cf   : > { %7965 = vrot.lane.b32.xlu0 %v10446_v26, %s9692_s30  ;;  %v9252_v26 = vld [vmem:[#allocation7 + $0x60] sm:$0xff]  }
 0x1d0   : > { %v10574_v14 = vpop.permute.xlu1 %7680  ;;  %7316 = vmatprep.subr.bf16.mxu0 %v9252_v26  ;;  %v895_v26 = vld [vmem:[#allocation2 + $0x69] sm:$0xff] }
 0x1d1   : > { %14690 = vst [vmem:[#allocation34_spill] sm:$0xff] %v10574_v14  ;;  %v10576_v60 = vpop.permute.xlu0 %7685  ;;  %7317 = vmatpush3.bf16.msra.mxu0 %v9253_v38  ;;  %v896_v38 = vld [vmem:[#allocation2 + $0x71] sm:$0xff]  ;;  %v764_v14 = vld [vmem:[#allocation2 + $0x28] sm:$0xff] }
 0x1d2   : > { %14691 = vst [vmem:[#allocation35_spill] sm:$0xff] %v10576_v60  ;;  %7970 = vrot.lane.b32.xlu1 %v10451_v27, %s9692_s30 }
 0x1d3   : > { %7975 = vrot.lane.b32.xlu0 %v10465_v33, %s9692_s30  ;;  %v9254_v33 = vld [vmem:[#allocation7 + $0x68] sm:$0xff]  }
 0x1d4   : > { %v10582_v10 = vpop.permute.xlu1 %7690  ;;  %7318 = vmatprep.subr.bf16.mxu0 %v9254_v33 }
 0x1d5   : > { %14692 = vst [vmem:[#allocation36_spill] sm:$0xff] %v10582_v10  ;;  %v10584_v21 = vpop.permute.xlu0 %7695  ;;  %7319 = vmatpush3.bf16.msra.mxu0 %v9255_v43  ;;  %v1892_v43 = vpack.c.bf16 %v896_v38, %v895_v26 }
 0x1d6   : > { %14693 = vst [vmem:[#allocation37_spill] sm:$0xff] %v10584_v21  ;;  %7980 = vrot.lane.b32.xlu1 %v10471_v35, %s9692_s30  ;;  %7320 = vmatprep.subr.bf16.mxu0 %v9257_v61 }
 0x1d7   : > { %7985 = vrot.lane.b32.xlu0 %v10481_v46, %s9692_s30  ;;  %v9256_v46 = vld [vmem:[#allocation7 + $0x80] sm:$0xff]  }
 0x1d8   : > { %v10590_v27 = vpop.permute.xlu1 %7700  ;;  %7438 = vmatprep.subr.bf16.mxu1 %v9256_v46 }
 0x1d9   : > { %14694 = vst [vmem:[#allocation38_spill] sm:$0xff] %v10590_v27  ;;  %v10592_v42 = vpop.permute.xlu0 %7705  ;;  %7439 = vmatpush3.bf16.msra.mxu1 %v9256_v46  ;;  %7321 = vmatpush3.bf16.msra.mxu0 %v9258_v3 }
 0x1da   : > { %14695 = vst [vmem:[#allocation39_spill] sm:$0xff] %v10592_v42  ;;  %7990 = vrot.lane.b32.xlu1 %v10485_v48, %s9692_s30  ;;  %7440 = vmatprep.subr.bf16.mxu1 %v9259_v45  ;;  %v913_v42 = vld [vmem:[#allocation2 + $0x189] sm:$0xff] }
 0x1db   : > { %7995 = vrot.lane.b32.xlu0 %v10489_v55, %s9692_s30  ;;  %7322 = vmatprep.subr.bf16.mxu0 %v9260_v52 }
 0x1dc   : > { %v10598_v35 = vpop.permute.xlu1 %7710 }
 0x1dd   : > { %14696 = vst [vmem:[#allocation40_spill] sm:$0xff] %v10598_v35  ;;  %v10600_v50 = vpop.permute.xlu0 %7715  ;;  %7441 = vmatpush3.bf16.msra.mxu1 %v9259_v45  ;;  %7323 = vmatpush3.bf16.msra.mxu0 %v9261_v54  ;;  %v897_v54 = vld [vmem:[#allocation2 + $0x89] sm:$0xff]  ;;  %v912_v35 = vld [vmem:[#allocation2 + $0x171] sm:$0xff] }
 0x1de   : > { %14697 = vst [vmem:[#allocation41_spill] sm:$0xff] %v10600_v50  ;;  %8000 = vrot.lane.b32.xlu1 %v10493_v59, %s9692_s30  ;;  %v893_v59 = vld [vmem:[#allocation2 + $0x49] sm:$0xff] }
 0x1df   : > { %8005 = vrot.lane.b32.xlu0 %v10497_v8, %s9692_s30  ;;  %v894_v8 = vld [vmem:[#allocation2 + $0x51] sm:$0xff]  ;;  %v909_v50 = vld [vmem:[#allocation2 + $0x149] sm:$0xff] }
 0x1e0   : > { %v10606_v48 = vpop.permute.xlu1 %7720  ;;  %v1889_v1 = vpack.c.bf16 %v894_v8, %v893_v59  ;;  %v898_v59 = vld [vmem:[#allocation2 + $0x91] sm:$0xff]  ;;  %v899_v8 = vld [vmem:[#allocation2 + $0xa9] sm:$0xff] }
 0x1e1   : > { %14698 = vst [vmem:[#allocation42_spill] sm:$0xff] %v10606_v48  ;;  %v10608_v55 = vpop.permute.xlu0 %7725 }
 0x1e2   : > { %8010 = vrot.lane.b32.xlu1 %v10501_v9, %s9692_s30  ;;  %7442 = vmatprep.mubr.msk.bf16.mxu1 %vm530_vm0, %v1889_v1  ;;  %v859_v9 = vld [vmem:[#allocation2 + $0x227] sm:$0xff]  ;;  %v900_v1 = vld [vmem:[#allocation2 + $0xb1] sm:$0xff] }
 0x1e3   : > { %8015 = vrot.lane.b32.xlu0 %v10505_v49, %s9692_s30  ;;  %v860_v49 = vld [vmem:[#allocation2 + $0x22f] sm:$0xff]  ;;  %7443 = vmatmul.mubr.msk.bf16.vlgmr.msra.gmra.mrb[0].mxu1 %vm530_vm0, %v1892_v43 }
 0x1e4   : > { %v10614_v20 = vpop.permute.xlu1 %7730  ;;  %v8039_v3 = vpack.i.bf16 %v860_v49, %v859_v9  ;;  %v890_v9 = vld [vmem:[#allocation2 + $0x210] sm:$0xff] }
 0x1e5   : > { %v10616_v33 = vpop.permute.xlu0 %7735 }
 0x1e6   : > { %8020 = vrot.lane.b32.xlu1 %v10509_v51, %s9692_s30 }
 0x1e7   : > { %8025 = vrot.lane.b32.xlu0 %v10513_v2, %s9692_s30 }
 0x1e8   : > { %v10624_v46 = vpop.permute.xlu1 %7740 }
 0x1e9   : > { %v10626_v61 = vpop.permute.xlu0 %7745 }
 0x1ea   : > { %8030 = vrot.lane.b32.xlu1 %v10517_v4, %s9692_s30 }
 0x1eb   : > { %8035 = vrot.lane.b32.xlu0 %v10521_v41, %s9692_s30 }
 0x1ec   : > { %v10632_v51 = vpop.permute.xlu1 %7750 }
 0x1ed   : > { %v10634_v45 = vpop.permute.xlu0 %7755 }
 0x1ee   : > { %14699 = vst [vmem:[#allocation43_spill] sm:$0xff] %v10634_v45  ;;  %8040 = vrot.lane.b32.xlu1 %v8039_v3, %s9692_s30  ;;  %v902_v3 = vld [vmem:[#allocation2 + $0xd1] sm:$0xff] }
 0x1ef   : > { %8045 = vrot.lane.b32.xlu0 %v10292_v29, %s9693_s17  ;;  %v1895_v29 = vpack.c.bf16 %v898_v59, %v897_v54 }
 0x1f0   : > { %v10639_v2 = vpop.permute.xlu1 %7760 }
 0x1f1   : > { %14700 = vst [vmem:[#allocation44_spill] sm:$0xff] %v10639_v2  ;;  %v10641_v52 = vpop.permute.xlu0 %7765  ;;  %7446 = vmatprep.mubr.msk.bf16.mxu1 %vm530_vm0, %v1895_v29  ;;  %v903_v29 = vld [vmem:[#allocation2 + $0xe9] sm:$0xff]  ;;  %v7652_v2 = vunpack.i.l.bf16 %v10553_v34 }
 0x1f2   : > { %14701 = vst [vmem:[#allocation45_spill] sm:$0xff] %v10641_v52  ;;  %8050 = vrot.lane.b32.xlu1 %v10300_v37, %s9693_s17  ;;  %v1898_v37 = vpack.c.bf16 %v900_v1, %v899_v8  ;;  %v924_v52 = vld [vmem:[#allocation2 + $0x231] sm:$0xff] }
 0x1f3   : > { %8055 = vrot.lane.b32.xlu0 %v10303_v39, %s9693_s17 }
 0x1f4   : > { %v10647_v4 = vpop.permute.xlu1 %7770  ;;  %7447 = vmatmul.mubr.msk.bf16.gmra.mrb[4].mxu1 %vm530_vm0, %v1898_v37 }
 0x1f5   : > { %14702 = vst [vmem:[#allocation46_spill] sm:$0xff] %v10647_v4  ;;  %v10649_v41 = vpop.permute.xlu0 %7775 }
 0x1f6   : > { %14703 = vst [vmem:[#allocation47_spill] sm:$0xff] %v10649_v41  ;;  %8060 = vrot.lane.b32.xlu1 %v10307_v44, %s9693_s17 }
 0x1f7   : > { %8065 = vrot.lane.b32.xlu0 %v10311_v47, %s9693_s17 }
 0x1f8   : > { %v10655_v26 = vpop.permute.xlu1 %7780 }
 0x1f9   : > { %14704 = vst [vmem:[#allocation48_spill] sm:$0xff] %v10655_v26  ;;  %v10657_v38 = vpop.permute.xlu0 %7785  ;;  %v916_v26 = vld [vmem:[#allocation2 + $0x1b1] sm:$0xff] }
 0x1fa   : > { %14705 = vst [vmem:[#allocation49_spill] sm:$0xff] %v10657_v38  ;;  %8070 = vrot.lane.b32.xlu1 %v10325_v56, %s9693_s17 }
 0x1fb   : > { %8075 = vrot.lane.b32.xlu0 %v10331_v57, %s9693_s17  ;;  %v889_v57 = vld [vmem:[#allocation2 + $0x208] sm:$0xff] }
 0x1fc   : > { %v10665_v39 = vpop.permute.xlu1 %7790  ;;  %v8114_v54 = vpack.i.bf16 %v890_v9, %v889_v57 }
 0x1fd   : > { %14706 = vst [vmem:[#allocation50_spill] sm:$0xff] %v10665_v39  ;;  %v10667_v44 = vpop.permute.xlu0 %7795  ;;  %v911_v39 = vld [vmem:[#allocation2 + $0x169] sm:$0xff] }
 0x1fe   : > { %14707 = vst [vmem:[#allocation51_spill] sm:$0xff] %v10667_v44  ;;  %8080 = vrot.lane.b32.xlu1 %v10335_v62, %s9693_s17  ;;  %v891_v62 = vld [vmem:[#allocation2 + $0x228] sm:$0xff] }
 0x1ff   : > { %8085 = vrot.lane.b32.xlu0 %v10339_v63, %s9693_s17  ;;  %v901_v63 = vld [vmem:[#allocation2 + $0xc9] sm:$0xff] }
 0x200   : > { %v10673_v47 = vpop.permute.xlu1 %7800  ;;  %v1901_v59 = vpack.c.bf16 %v902_v3, %v901_v63 }
 0x201   : > { %14708 = vst [vmem:[#allocation52_spill] sm:$0xff] %v10673_v47  ;;  %v10675_v43 = vpop.permute.xlu0 %7805 }
 0x202   : > { %8090 = vrot.lane.b32.xlu1 %v10343_v5, %s9693_s17  ;;  %v892_v5 = vld [vmem:[#allocation2 + $0x230] sm:$0xff]  ;;  %7450 = vmatprep.mubr.msk.bf16.mxu1 %vm530_vm0, %v1901_v59 }
 0x203   : > { %8095 = vrot.lane.b32.xlu0 %v10347_v6, %s9693_s17  ;;  %v904_v6 = vld [vmem:[#allocation2 + $0xf1] sm:$0xff] }
 0x204   : > { %v10681_v56 = vpop.permute.xlu1 %7810  ;;  %v1904_v1 = vpack.c.bf16 %v904_v6, %v903_v29  ;;  %v907_v29 = vld [vmem:[#allocation2 + $0x129] sm:$0xff]  ;;  %v908_v6 = vld [vmem:[#allocation2 + $0x131] sm:$0xff] }
 0x205   : > { %v10683_v49 = vpop.permute.xlu0 %7815 }
 0x206   : > { %8100 = vrot.lane.b32.xlu1 %v10351_v11, %s9693_s17  ;;  %v8119_v11 = vpack.i.bf16 %v892_v5, %v891_v62  ;;  %7451 = vmatmul.mubr.msk.bf16.gmra.mrb[8].mxu1 %vm530_vm0, %v1904_v1  ;;  %v906_v62 = vld [vmem:[#allocation2 + $0x111] sm:$0xff]  ;;  %v1910_v1 = vpack.c.bf16 %v908_v6, %v907_v29 }
 0x207   : > { %8105 = vrot.lane.b32.xlu0 %v10355_v12, %s9693_s17  ;;  %v910_v29 = vld [vmem:[#allocation2 + $0x151] sm:$0xff] }
 0x208   : > { %v10689_v8 = vpop.permute.xlu1 %7820  ;;  %v1913_v6 = vpack.c.bf16 %v910_v29, %v909_v50 }
 0x209   : > { %v10691_v37 = vpop.permute.xlu0 %7825 }
 0x20a   : > { %8110 = vrot.lane.b32.xlu1 %v10359_v17, %s9693_s17  ;;  %v905_v17 = vld [vmem:[#allocation2 + $0x109] sm:$0xff] }
 0x20b   : > { %8115 = vrot.lane.b32.xlu0 %v8114_v54, %s9693_s17  ;;  %v1907_v5 = vpack.c.bf16 %v906_v62, %v905_v17 }
 0x20c   : > { %v10698_v12 = vpop.permute.xlu1 %7830 }
 0x20d   : > { %v10700_v57 = vpop.permute.xlu0 %7835  ;;  %7454 = vmatprep.mubr.msk.bf16.mxu1 %vm530_vm0, %v1907_v5 }
 0x20e   : > { %14709 = vst [vmem:[#allocation53_spill] sm:$0xff] %v10700_v57  ;;  %8120 = vrot.lane.b32.xlu1 %v8119_v11, %s9693_s17  ;;  %7455 = vmatmul.mubr.msk.bf16.gmra.mrb[12].mxu1 %vm530_vm0, %v1910_v1  ;;  %v1916_v1 = vpack.c.bf16 %v912_v35, %v911_v39  ;;  %v914_v35 = vld [vmem:[#allocation2 + $0x191] sm:$0xff] }
 0x20f   : > { %7458 = vmatprep.mubr.msk.bf16.mxu1 %vm530_vm0, %v1913_v6  ;;  %v1919_v39 = vpack.c.bf16 %v914_v35, %v913_v42 }
 0x210   : > { %v10703_v9 = vpop.permute.xlu1 %7840 }
 0x211   : > { %14710 = vst [vmem:[#allocation54_spill] sm:$0xff] %v10703_v9  ;;  %v10705_v63 = vpop.permute.xlu0 %7845  ;;  %v7728_v9 = vunpack.i.h.bf16 %v10608_v55 }
 0x212   : > { %14711 = vst [vmem:[#allocation55_spill] sm:$0xff] %v10705_v63  ;;  %v923_v63 = vld [vmem:[#allocation2 + $0x229] sm:$0xff] }
 0x214   : > { %v10707_v3 = vpop.permute.xlu1 %7850 }
 0x215   : > { %14712 = vst [vmem:[#allocation56_spill] sm:$0xff] %v10707_v3  ;;  %v10709_v59 = vpop.permute.xlu0 %7855  ;;  %v920_v3 = vld [vmem:[#allocation2 + $0x1f1] sm:$0xff] }
 0x216   : > { %14713 = vst [vmem:[#allocation57_spill] sm:$0xff] %v10709_v59  ;;  %7459 = vmatmul.mubr.msk.bf16.gmra.mrb[16].mxu1 %vm530_vm0, %v1916_v1 }
 0x217   : > { %7462 = vmatprep.mubr.msk.bf16.mxu1 %vm530_vm0, %v1919_v39 }
 0x218   : > { %v10711_v54 = vpop.permute.xlu1 %7860 }
 0x219   : > { %14714 = vst [vmem:[#allocation58_spill] sm:$0xff] %v10711_v54  ;;  %v10713_v0 = vpop.permute.xlu0 %7865  ;;  %v915_v54 = vld [vmem:[#allocation2 + $0x1a9] sm:$0xff] }
 0x21a   : > { %14715 = vst [vmem:[#allocation59_spill] sm:$0xff] %v10713_v0  ;;  %v1922_v1 = vpack.c.bf16 %v916_v26, %v915_v54  ;;  %v918_v26 = vld [vmem:[#allocation2 + $0x1d1] sm:$0xff] }
 0x21c   : > { %v10717_v11 = vpop.permute.xlu1 %7870 }
 0x21d   : > { %14716 = vst [vmem:[#allocation60_spill] sm:$0xff] %v10717_v11  ;;  %v10719_v47 = vpop.permute.xlu0 %7875 }
 0x21e   : > { %14717 = vst [vmem:[#allocation61_spill] sm:$0xff] %v10719_v47  ;;  %7463 = vmatmul.mubr.msk.bf16.gmra.mrb[20].mxu1 %vm530_vm0, %v1922_v1 }
 0x220   : > { %v10721_v48 = vpop.permute.xlu1 %7880 }
 0x221   : > { %14718 = vst [vmem:[#allocation62_spill] sm:$0xff] %v10721_v48  ;;  %v10723_v44 = vpop.permute.xlu0 %7885 }
 0x224   : > { %v10725_v17 = vpop.permute.xlu1 %7890 }
 0x225   : > { %v10727_v62 = vpop.permute.xlu0 %7895 }
 0x228   : > { %v10729_v5 = vpop.permute.xlu1 %7900 }
 0x229   : > { %v10731_v0 = vpop.permute.xlu0 %7905 }
 0x22c   : > { %v10735_v48 = vpop.permute.xlu1 %7910 }
 0x22d   : > { %v10737_v47 = vpop.permute.xlu0 %7915 }
 0x230   : > { %v10739_v11 = vpop.permute.xlu1 %7920 }
 0x231   : > { %14719 = vst [vmem:[#allocation63_spill] sm:$0xff] %v10739_v11  ;;  %v10741_v38 = vpop.permute.xlu0 %7925 }
 0x232   : > { %14720 = vst [vmem:[#allocation64_spill] sm:$0xff] %v10741_v38  ;;  %v7648_v38 = vunpack.i.h.bf16 %v10545_v23 }
 0x234   : > { %v10743_v50 = vpop.permute.xlu1 %7930 }
 0x235   : > { %14721 = vst [vmem:[#allocation65_spill] sm:$0xff] %v10743_v50  ;;  %v10745_v29 = vpop.permute.xlu0 %7935  ;;  %v921_v50 = vld [vmem:[#allocation2 + $0x209] sm:$0xff] }
 0x236   : > { %14722 = vst [vmem:[#allocation66_spill] sm:$0xff] %v10745_v29 }
 0x238   : > { %v10747_v6 = vpop.permute.xlu1 %7940 }
 0x239   : > { %14723 = vst [vmem:[#allocation67_spill] sm:$0xff] %v10747_v6  ;;  %v10749_v27 = vpop.permute.xlu0 %7945  ;;  %v917_v6 = vld [vmem:[#allocation2 + $0x1c9] sm:$0xff] }
 0x23a   : > { %14724 = vst [vmem:[#allocation68_spill] sm:$0xff] %v10749_v27  ;;  %v1925_v54 = vpack.c.bf16 %v918_v26, %v917_v6  ;;  %v919_v27 = vld [vmem:[#allocation2 + $0x1e9] sm:$0xff] }
 0x23b   : > { %v1928_v1 = vpack.c.bf16 %v920_v3, %v919_v27  ;;  %v922_v27 = vld [vmem:[#allocation2 + $0x211] sm:$0xff] }
 0x23c   : > { %v10753_v59 = vpop.permute.xlu1 %7950  ;;  %7466 = vmatprep.mubr.msk.bf16.mxu1 %vm530_vm0, %v1925_v54  ;;  %v1931_v3 = vpack.c.bf16 %v922_v27, %v921_v50  ;;  %v7727_v50 = vunpack.i.l.bf16 %v10608_v55  ;;  %v7807_v27 = vunpack.i.l.bf16 %v10675_v43  ;;  %v7653_v55 = vunpack.i.h.bf16 %v10553_v34 }
 0x23d   : > { %14725 = vst [vmem:[#allocation69_spill] sm:$0xff] %v10753_v59  ;;  %v10755_v41 = vpop.permute.xlu0 %7955  ;;  %7467 = vmatmul.mubr.msk.bf16.gmra.mrb[24].mxu1 %vm530_vm0, %v1928_v1  ;;  %v1934_v1 = vpack.c.bf16 %v924_v52, %v923_v63  ;;  %v7808_v52 = vunpack.i.h.bf16 %v10675_v43  ;;  %v7888_v63 = vunpack.i.h.bf16 %v10723_v44 }
 0x23e   : > { %14726 = vst [vmem:[#allocation70_spill] sm:$0xff] %v10755_v41  ;;  %7470 = vmatprep.mubr.msk.bf16.mxu1 %vm530_vm0, %v1931_v3  ;;  %v7887_v3 = vunpack.i.l.bf16 %v10723_v44 }
 0x240   : > { %v10757_v21 = vpop.permute.xlu1 %7960 }
 0x241   : > { %14727 = vst [vmem:[#allocation71_spill] sm:$0xff] %v10757_v21  ;;  %v10759_v29 = vpop.permute.xlu0 %7965 }
 0x242   : > { %v7968_v36 = vunpack.i.h.bf16 %v10759_v29  ;;  %v7967_v43 = vunpack.i.l.bf16 %v10759_v29  ;;  %v1791_v29 = vsel %vm530_vm0, %v764_v14, %v7887_v3 }
 0x244   : > { %v10761_v42 = vpop.permute.xlu1 %7970 }
 0x245   : > { %v10763_v35 = vpop.permute.xlu0 %7975  ;;  %7471 = vmatmul.mubr.msk.bf16.gmra.mrb[28].mxu1 %vm530_vm0, %v1934_v1 }
 0x248   : > { %v10765_v39 = vpop.permute.xlu1 %7980 }
 0x249   : > { %v10767_v4 = vpop.permute.xlu0 %7985 }
 0x24c   : > { %v10771_v21 = vpop.permute.xlu1 %7990 }
 0x24d   : > { %v10773_v41 = vpop.permute.xlu0 %7995 }
 0x250   : > { %v10775_v59 = vpop.permute.xlu1 %8000 }
 0x251   : > { %14728 = vst [vmem:[#allocation72_spill] sm:$0xff] %v10775_v59  ;;  %v10777_v10 = vpop.permute.xlu0 %8005  ;;  %v7892_v59 = vunpack.i.l.bf16 %v10725_v17 }
 0x252   : > { %14729 = vst [vmem:[#allocation73_spill] sm:$0xff] %v10777_v10  ;;  %v7647_v10 = vunpack.i.l.bf16 %v10545_v23 }
 0x254   : > { %v10779_v6 = vpop.permute.xlu1 %8010 }
 0x255   : > { %14730 = vst [vmem:[#allocation74_spill] sm:$0xff] %v10779_v6  ;;  %v10781_v26 = vpop.permute.xlu0 %8015  ;;  %v636_v6 = vld [vmem:[#allocation2 + $0x7] sm:$0xff] }
 0x256   : > { %14731 = vst [vmem:[#allocation75_spill] sm:$0xff] %v10781_v26  ;;  %v637_v26 = vld [vmem:[#allocation2 + $0xf] sm:$0xff]  ;;  %v1693_v1 = vsel %vm530_vm0, %v636_v6, %v7647_v10  ;;  %v7732_v10 = vunpack.i.l.bf16 %v10614_v20 }
 0x257   : > { %v1726_v40 = vsel %vm1725_vm1, %v1693_v1, %v7727_v50  ;;  %v7973_v1 = vunpack.i.h.bf16 %v10761_v42 }
 0x258   : > { %v10783_v54 = vpop.permute.xlu1 %8020  ;;  %v1759_v34 = vsel %vm1758_vm2, %v1726_v40, %v7807_v27  ;;  %v7812_v40 = vunpack.i.l.bf16 %v10681_v56 }
 0x259   : > { %14732 = vst [vmem:[#allocation76_spill] sm:$0xff] %v10783_v54  ;;  %v10785_v60 = vpop.permute.xlu0 %8025 }
 0x25a   : > { %14733 = vst [vmem:[#allocation77_spill] sm:$0xff] %v10785_v60  ;;  %v1694_v60 = vsel %vm530_vm0, %v637_v26, %v7648_v38  ;;  %v7893_v38 = vunpack.i.h.bf16 %v10725_v17  ;;  %v767_v26 = vld [vmem:[#allocation2 + $0x50] sm:$0xff]  ;;  %v1823_v17 = vsel %vm1725_vm1, %v1791_v29, %v7967_v43  ;;  %v7897_v43 = vunpack.i.l.bf16 %v10727_v62 }
 0x25b   : > { %v1727_v44 = vsel %vm1725_vm1, %v1694_v60, %v7728_v9  ;;  %v766_v9 = vld [vmem:[#allocation2 + $0x48] sm:$0xff]  ;;  %v769_v29 = vld [vmem:[#allocation2 + $0x70] sm:$0xff] }
 0x25c   : > { %v10794_v54 = vpop.permute.xlu1 %8030  ;;  %v1760_v60 = vsel %vm1758_vm2, %v1727_v44, %v7808_v52  ;;  %v1794_v14 = vsel %vm530_vm0, %v767_v26, %v7893_v38  ;;  %v768_v26 = vld [vmem:[#allocation2 + $0x68] sm:$0xff] }
 0x25d   : > { %14734 = vst [vmem:[#allocation78_spill] sm:$0xff] %v10794_v54  ;;  %v10799_v23 = vpop.permute.xlu0 %8035  ;;  %v765_v54 = vld [vmem:[#allocation2 + $0x30] sm:$0xff]  ;;  %v1887_v3 = vpack.c.bf16 %v1760_v60, %v1759_v34  ;;  %v1826_v38 = vsel %vm1725_vm1, %v1794_v14, %v7973_v1  ;;  %v1696_v1 = vsel %vm530_vm0, %v10424_v16, %v7653_v55  ;;  %v7658_v55 = vunpack.i.h.bf16 %v10551_v24 }
 0x25e   : > { %14735 = vst [vmem:[#allocation79_spill] sm:$0xff] %v10799_v23  ;;  %v7733_v23 = vunpack.i.h.bf16 %v10614_v20  ;;  %v1792_v50 = vsel %vm530_vm0, %v765_v54, %v7888_v63  ;;  %v7972_v20 = vunpack.i.l.bf16 %v10761_v42  ;;  %v1793_v42 = vsel %vm530_vm0, %v766_v9, %v7892_v59 }
 0x25f   : > { %v1824_v27 = vsel %vm1725_vm1, %v1792_v50, %v7968_v36 }
 0x260   : > { %v10812_v6 = vpop.permute.xlu1 %8040  ;;  %v1825_v36 = vsel %vm1725_vm1, %v1793_v42, %v7972_v20  ;;  %v7817_v42 = vunpack.i.l.bf16 %v10683_v49 }
 0x261   : > { %14736 = vst [vmem:[#allocation80_spill] sm:$0xff] %v10812_v6  ;;  %v8046_v11 = vpop.permute.xlu0 %8045  ;;  %v7813_v6 = vunpack.i.h.bf16 %v10681_v56  ;;  %v7898_v56 = vunpack.i.h.bf16 %v10727_v62  ;;  %v1695_v62 = vsel %vm530_vm0, %v10422_v15, %v7652_v2 }
 0x262   : > { %v8048_v57 = vunpack.i.h.bf16 %v8046_v11  ;;  %v8047_v45 = vunpack.i.l.bf16 %v8046_v11 }
 0x263   : > { %v1796_v20 = vsel %vm530_vm0, %v769_v29, %v7898_v56  ;;  %v7983_v56 = vunpack.i.h.bf16 %v10765_v39 }
 0x264   : > { %v8051_v54 = vpop.permute.xlu1 %8050  ;;  %v1855_v52 = vsel %vm1758_vm2, %v1823_v17, %v8047_v45  ;;  %v1856_v63 = vsel %vm1758_vm2, %v1824_v27, %v8048_v57  ;;  %v7978_v45 = vunpack.i.h.bf16 %v10763_v35  ;;  %v7977_v57 = vunpack.i.l.bf16 %v10763_v35 }
 0x265   : > { %v8053_v44 = vunpack.i.h.bf16 %v8051_v54  ;;  %v8052_v11 = vunpack.i.l.bf16 %v8051_v54  ;;  %v8056_v13 = vpop.permute.xlu0 %8055  ;;  %v1888_v31 = vpack.c.bf16 %v1856_v63, %v1855_v52  ;;  %v1795_v17 = vsel %vm530_vm0, %v768_v26, %v7897_v43 }
 0x266   : > { %v8058_v50 = vunpack.i.h.bf16 %v8056_v13  ;;  %v8057_v60 = vunpack.i.l.bf16 %v8056_v13  ;;  %v1729_v35 = vsel %vm1725_vm1, %v1696_v1, %v7733_v23  ;;  %v1827_v14 = vsel %vm1725_vm1, %v1795_v17, %v7977_v57 }
 0x267   : > { %2159 = vmatprep.mubr.bf16.mxu0 %v1888_v31  ;;  %v1857_v59 = vsel %vm1758_vm2, %v1825_v36, %v8052_v11  ;;  %v1858_v34 = vsel %vm1758_vm2, %v1826_v38, %v8053_v44  ;;  %v1728_v31 = vsel %vm1725_vm1, %v1695_v62, %v7732_v10  ;;  %v1762_v13 = vsel %vm1758_vm2, %v1729_v35, %v7813_v6  ;;  %v770_v44 = vld [vmem:[#allocation2 + $0x88] sm:$0xff]  ;;  %v771_v11 = vld [vmem:[#allocation2 + $0x90] sm:$0xff] }
 0x268   : > { %2160 = vmatmul.mubr.bf16.vlgmr.msra.gmra.mrb[0].mxu0 %v1887_v3  ;;  %v1891_v9 = vpack.c.bf16 %v1858_v34, %v1857_v59  ;;  %v1761_v27 = vsel %vm1758_vm2, %v1728_v31, %v7812_v40  ;;  %v1828_v15 = vsel %vm1725_vm1, %v1796_v20, %v7978_v45  ;;  %v1859_v2 = vsel %vm1758_vm2, %v1827_v14, %v8057_v60  ;;  %v8061_v52 = vpop.permute.xlu1 %8060  ;;  %v773_v14 = vld [vmem:[#allocation2 + $0xb0] sm:$0xff] }
 0x269   : > { %v1860_v16 = vsel %vm1758_vm2, %v1828_v15, %v8058_v50  ;;  %v7657_v54 = vunpack.i.l.bf16 %v10551_v24  ;;  %v7738_v10 = vunpack.i.h.bf16 %v10616_v33  ;;  %v7737_v23 = vunpack.i.l.bf16 %v10616_v33  ;;  %v8066_v1 = vpop.permute.xlu0 %8065 }
 0x26a   : > { %2167 = vmatprep.mubr.bf16.mxu0 %v1891_v9  ;;  %v7818_v40 = vunpack.i.h.bf16 %v10683_v49  ;;  %v7903_v6 = vunpack.i.h.bf16 %v10729_v5  ;;  %v7902_v63 = vunpack.i.l.bf16 %v10729_v5  ;;  %v1890_v3 = vpack.c.bf16 %v1762_v13, %v1761_v27  ;;  %v772_v13 = vld [vmem:[#allocation2 + $0xa8] sm:$0xff] }
 0x26b   : > { %v7982_v24 = vunpack.i.l.bf16 %v10765_v39  ;;  %v1894_v43 = vpack.c.bf16 %v1860_v16, %v1859_v2  ;;  %v8063_v36 = vunpack.i.h.bf16 %v8061_v52  ;;  %v8062_v38 = vunpack.i.l.bf16 %v8061_v52 }
 0x26c   : > { %v1697_v33 = vsel %vm530_vm0, %v10426_v18, %v7657_v54  ;;  %v1698_v26 = vsel %vm530_vm0, %v10428_v19, %v7658_v55  ;;  %v1798_v5 = vsel %vm530_vm0, %v771_v11, %v7903_v6  ;;  %v1797_v49 = vsel %vm530_vm0, %v770_v44, %v7902_v63  ;;  %v8071_v11 = vpop.permute.xlu1 %8070 }
 0x26d   : > { %v1730_v29 = vsel %vm1725_vm1, %v1697_v33, %v7737_v23  ;;  %v1731_v45 = vsel %vm1725_vm1, %v1698_v26, %v7738_v10  ;;  %v1829_v59 = vsel %vm1725_vm1, %v1797_v49, %v7982_v24  ;;  %v1830_v18 = vsel %vm1725_vm1, %v1798_v5, %v7983_v56  ;;  %v774_v33 = vld [vmem:[#allocation2 + $0xc8] sm:$0xff]  ;;  %v775_v26 = vld [vmem:[#allocation2 + $0xd0] sm:$0xff] }
 0x26e   : > { %v1763_v39 = vsel %vm1758_vm2, %v1730_v29, %v7817_v42  ;;  %v1764_v57 = vsel %vm1758_vm2, %v1731_v45, %v7818_v40  ;;  %v1861_v34 = vsel %vm1758_vm2, %v1829_v59, %v8062_v38  ;;  %v1862_v19 = vsel %vm1758_vm2, %v1830_v18, %v8063_v36 }
 0x26f   : > { %v7663_v50 = vunpack.i.h.bf16 %v10559_v53  ;;  %v7662_v60 = vunpack.i.l.bf16 %v10559_v53  ;;  %v7743_v9 = vunpack.i.h.bf16 %v10624_v46  ;;  %v7742_v62 = vunpack.i.l.bf16 %v10624_v46 }
 0x270   : > { %2168 = vmatmul.mubr.bf16.gmra.mrb[4].mxu0 %v1890_v3  ;;  %v7823_v20 = vunpack.i.h.bf16 %v10689_v8  ;;  %v7908_v17 = vunpack.i.h.bf16 %v10731_v0  ;;  %v7907_v31 = vunpack.i.l.bf16 %v10731_v0  ;;  %v1893_v35 = vpack.c.bf16 %v1764_v57, %v1763_v39 }
 0x271   : > { %2175 = vmatprep.mubr.bf16.mxu0 %v1894_v43  ;;  %v7822_v27 = vunpack.i.l.bf16 %v10689_v8  ;;  %v7988_v15 = vunpack.i.h.bf16 %v10767_v4  ;;  %v7987_v53 = vunpack.i.l.bf16 %v10767_v4  ;;  %v1897_v2 = vpack.c.bf16 %v1862_v19, %v1861_v34 }
 0x272   : > { %v8068_v16 = vunpack.i.h.bf16 %v8066_v1  ;;  %v8067_v55 = vunpack.i.l.bf16 %v8066_v1  ;;  %v1700_v46 = vsel %vm530_vm0, %v10440_v25, %v7663_v50  ;;  %v1699_v54 = vsel %vm530_vm0, %v10438_v22, %v7662_v60  ;;  %v8076_v1 = vpop.permute.xlu0 %8075 }
 0x273   : > { %v1800_v0 = vsel %vm530_vm0, %v773_v14, %v7908_v17  ;;  %v1799_v8 = vsel %vm530_vm0, %v772_v13, %v7907_v31  ;;  %v1732_v10 = vsel %vm1725_vm1, %v1699_v54, %v7742_v62  ;;  %v1733_v23 = vsel %vm1725_vm1, %v1700_v46, %v7743_v9  ;;  %v776_v13 = vld [vmem:[#allocation2 + $0xe8] sm:$0xff]  ;;  %v777_v14 = vld [vmem:[#allocation2 + $0xf0] sm:$0xff] }
 0x274   : > { %v1765_v4 = vsel %vm1758_vm2, %v1732_v10, %v7822_v27  ;;  %v1766_v52 = vsel %vm1758_vm2, %v1733_v23, %v7823_v20  ;;  %v1831_v40 = vsel %vm1725_vm1, %v1799_v8, %v7987_v53  ;;  %v1832_v25 = vsel %vm1725_vm1, %v1800_v0, %v7988_v15 }
 0x275   : > { %v1863_v6 = vsel %vm1758_vm2, %v1831_v40, %v8067_v55  ;;  %v1864_v22 = vsel %vm1758_vm2, %v1832_v25, %v8068_v16  ;;  %v7668_v63 = vunpack.i.h.bf16 %v10561_v58  ;;  %v7667_v3 = vunpack.i.l.bf16 %v10561_v58  ;;  %v14737_v55 = vld [vmem:[#allocation30_spill] sm:$0xff] }
 0x276   : > { %v7748_v42 = vunpack.i.h.bf16 %v10626_v61  ;;  %v7747_v44 = vunpack.i.l.bf16 %v10626_v61  ;;  %v7828_v56 = vunpack.i.h.bf16 %v10691_v37  ;;  %v7913_v24 = vunpack.i.h.bf16 %v10735_v48 }
 0x277   : > { %v7912_v43 = vunpack.i.l.bf16 %v10735_v48  ;;  %v1896_v36 = vpack.c.bf16 %v1766_v52, %v1765_v4  ;;  %v7827_v38 = vunpack.i.l.bf16 %v10691_v37  ;;  %v7993_v5 = vunpack.i.h.bf16 %v10771_v21  ;;  %v14738_v52 = vld [vmem:[#allocation33_spill] sm:$0xff] }
 0x278   : > { %2176 = vmatmul.mubr.bf16.gmra.mrb[8].mxu0 %v1893_v35  ;;  %v7992_v58 = vunpack.i.l.bf16 %v10771_v21  ;;  %v1900_v49 = vpack.c.bf16 %v1864_v22, %v1863_v6  ;;  %v8073_v29 = vunpack.i.h.bf16 %v8071_v11  ;;  %v8072_v45 = vunpack.i.l.bf16 %v8071_v11  ;;  %v14739_v6 = vld [vmem:[#allocation43_spill] sm:$0xff] }
 0x279   : > { %2183 = vmatprep.mubr.bf16.mxu0 %v1897_v2  ;;  %v1702_v61 = vsel %vm530_vm0, %v10455_v30, %v7668_v63  ;;  %v1701_v39 = vsel %vm530_vm0, %v10453_v28, %v7667_v3  ;;  %v1802_v48 = vsel %vm530_vm0, %v775_v26, %v7913_v24  ;;  %v1801_v37 = vsel %vm530_vm0, %v774_v33, %v7912_v43  ;;  %v8081_v3 = vpop.permute.xlu1 %8080  ;;  %v14741_v11 = vld [vmem:[#allocation63_spill] sm:$0xff]  ;;  %v14742_v26 = vld [vmem:[#allocation72_spill] sm:$0xff] }
 0x27a   : > { %v1734_v57 = vsel %vm1725_vm1, %v1701_v39, %v7747_v44  ;;  %v1735_v59 = vsel %vm1725_vm1, %v1702_v61, %v7748_v42  ;;  %v1833_v34 = vsel %vm1725_vm1, %v1801_v37, %v7992_v58  ;;  %v1834_v30 = vsel %vm1725_vm1, %v1802_v48, %v7993_v5  ;;  %v14740_v42 = vld [vmem:[#allocation53_spill] sm:$0xff]  ;;  %v779_v33 = vld [vmem:[#allocation2 + $0x110] sm:$0xff]  ;;  %v14743_v61 = vld [vmem:[#allocation32_spill] sm:$0xff] }
 0x27b   : > { %v1767_v21 = vsel %vm1758_vm2, %v1734_v57, %v7827_v38  ;;  %v1768_v18 = vsel %vm1758_vm2, %v1735_v59, %v7828_v56  ;;  %v1865_v19 = vsel %vm1758_vm2, %v1833_v34, %v8072_v45  ;;  %v1866_v28 = vsel %vm1758_vm2, %v1834_v30, %v8073_v29  ;;  %v778_v38 = vld [vmem:[#allocation2 + $0x108] sm:$0xff]  ;;  %v14744_v48 = vld [vmem:[#allocation31_spill] sm:$0xff] }
 0x27c   : > { %v7673_v50 = vunpack.i.h.bf16 %v10567_v7  ;;  %v7672_v60 = vunpack.i.l.bf16 %v10567_v7  ;;  %v7753_v9 = vunpack.i.h.bf16 %v10632_v51  ;;  %v7752_v62 = vunpack.i.l.bf16 %v10632_v51 }
 0x27d   : > { %v7833_v20 = vunpack.i.h.bf16 %v10698_v12  ;;  %v7918_v17 = vunpack.i.h.bf16 %v10737_v47  ;;  %v7917_v31 = vunpack.i.l.bf16 %v10737_v47  ;;  %v1899_v35 = vpack.c.bf16 %v1768_v18, %v1767_v21 }
 0x27e   : > { %v7832_v27 = vunpack.i.l.bf16 %v10698_v12  ;;  %v7998_v15 = vunpack.i.h.bf16 %v10773_v41  ;;  %v7997_v7 = vunpack.i.l.bf16 %v10773_v41  ;;  %v1903_v53 = vpack.c.bf16 %v1866_v28, %v1865_v19 }
 0x27f   : > { %v8078_v2 = vunpack.i.h.bf16 %v8076_v1  ;;  %v8077_v16 = vunpack.i.l.bf16 %v8076_v1  ;;  %v1704_v51 = vsel %vm530_vm0, %v10459_v32, %v7673_v50  ;;  %v1703_v46 = vsel %vm530_vm0, %v14737_v55, %v7672_v60  ;;  %v14749_v55 = vld [vmem:[#allocation73_spill] sm:$0xff] }
 0x280   : > { %2184 = vmatmul.mubr.bf16.gmra.mrb[12].mxu0 %v1896_v36  ;;  %v1804_v47 = vsel %vm530_vm0, %v777_v14, %v7918_v17  ;;  %v1803_v12 = vsel %vm530_vm0, %v776_v13, %v7917_v31  ;;  %v1736_v54 = vsel %vm1725_vm1, %v1703_v46, %v7752_v62  ;;  %v1737_v0 = vsel %vm1725_vm1, %v1704_v51, %v7753_v9  ;;  %v14745_v9 = vld [vmem:[#allocation34_spill] sm:$0xff]  ;;  %v14748_v14 = vld [vmem:[#allocation64_spill] sm:$0xff] }
 0x281   : > { %2191 = vmatprep.mubr.bf16.mxu0 %v1900_v49  ;;  %v1769_v41 = vsel %vm1758_vm2, %v1736_v54, %v7832_v27  ;;  %v1770_v8 = vsel %vm1758_vm2, %v1737_v0, %v7833_v20  ;;  %v1835_v10 = vsel %vm1725_vm1, %v1803_v12, %v7997_v7  ;;  %v1836_v32 = vsel %vm1725_vm1, %v1804_v47, %v7998_v15  ;;  %v14746_v20 = vld [vmem:[#allocation44_spill] sm:$0xff]  ;;  %v14747_v27 = vld [vmem:[#allocation54_spill] sm:$0xff] }
 0x282   : > { %v1867_v23 = vsel %vm1758_vm2, %v1835_v10, %v8077_v16  ;;  %v1868_v4 = vsel %vm1758_vm2, %v1836_v32, %v8078_v2  ;;  %v7678_v40 = vunpack.i.h.bf16 %v14738_v52  ;;  %v7677_v25 = vunpack.i.l.bf16 %v14738_v52  ;;  %v780_v16 = vld [vmem:[#allocation2 + $0x128] sm:$0xff]  ;;  %v781_v51 = vld [vmem:[#allocation2 + $0x130] sm:$0xff] }
 0x283   : > { %v7758_v22 = vunpack.i.h.bf16 %v14739_v6  ;;  %v7757_v63 = vunpack.i.l.bf16 %v14739_v6  ;;  %v7838_v44 = vunpack.i.h.bf16 %v14740_v42  ;;  %v7923_v56 = vunpack.i.h.bf16 %v14741_v11  ;;  %v9281_v10 = vld [vmem:[#allocation2 + $0xe7] sm:$0xff] }
 0x284   : > { %v7922_v24 = vunpack.i.l.bf16 %v14741_v11  ;;  %v1902_v43 = vpack.c.bf16 %v1770_v8, %v1769_v41  ;;  %v7837_v36 = vunpack.i.l.bf16 %v14740_v42  ;;  %v8003_v5 = vunpack.i.h.bf16 %v14742_v26  ;;  %v9280_v41 = vld [vmem:[#allocation2 + $0xef] sm:$0xff] }
 0x285   : > { %v8002_v58 = vunpack.i.l.bf16 %v14742_v26  ;;  %v1906_v49 = vpack.c.bf16 %v1868_v4, %v1867_v23  ;;  %v8083_v29 = vunpack.i.h.bf16 %v8081_v3  ;;  %v8082_v45 = vunpack.i.l.bf16 %v8081_v3 }
 0x286   : > { %v1706_v39 = vsel %vm530_vm0, %v14743_v61, %v7678_v40  ;;  %v1705_v37 = vsel %vm530_vm0, %v14744_v48, %v7677_v25  ;;  %v1806_v57 = vsel %vm530_vm0, %v779_v33, %v7923_v56  ;;  %v1805_v59 = vsel %vm530_vm0, %v778_v38, %v7922_v24  ;;  %v14751_v24 = vld [vmem:[#allocation45_spill] sm:$0xff]  ;;  %v8091_v38 = vpop.permute.xlu1 %8090  ;;  %v14752_v33 = vld [vmem:[#allocation55_spill] sm:$0xff]  ;;  %v14754_v48 = vld [vmem:[#allocation74_spill] sm:$0xff] }
 0x287   : > { %v1738_v21 = vsel %vm1725_vm1, %v1705_v37, %v7757_v63  ;;  %v1739_v18 = vsel %vm1725_vm1, %v1706_v39, %v7758_v22  ;;  %v1837_v19 = vsel %vm1725_vm1, %v1805_v59, %v8002_v58  ;;  %v1838_v28 = vsel %vm1725_vm1, %v1806_v57, %v8003_v5  ;;  %v14753_v5 = vld [vmem:[#allocation65_spill] sm:$0xff]  ;;  %v783_v39 = vld [vmem:[#allocation2 + $0x150] sm:$0xff] }
 0x288   : > { %2192 = vmatmul.mubr.bf16.gmra.mrb[16].mxu0 %v1899_v35  ;;  %v1771_v34 = vsel %vm1758_vm2, %v1738_v21, %v7837_v36  ;;  %v1772_v30 = vsel %vm1758_vm2, %v1739_v18, %v7838_v44  ;;  %v1869_v50 = vsel %vm1758_vm2, %v1837_v19, %v8082_v45  ;;  %v1870_v60 = vsel %vm1758_vm2, %v1838_v28, %v8083_v29  ;;  %v8086_v35 = vpop.permute.xlu0 %8085  ;;  %v14750_v44 = vld [vmem:[#allocation35_spill] sm:$0xff]  ;;  %v782_v61 = vld [vmem:[#allocation2 + $0x148] sm:$0xff] }
 0x289   : > { %2199 = vmatprep.mubr.bf16.mxu0 %v1903_v53  ;;  %v7683_v62 = vunpack.i.h.bf16 %v14745_v9  ;;  %v7682_v1 = vunpack.i.l.bf16 %v14745_v9  ;;  %v7763_v17 = vunpack.i.h.bf16 %v14746_v20  ;;  %v7762_v31 = vunpack.i.l.bf16 %v14746_v20  ;;  %v9283_v19 = vld [vmem:[#allocation2 + $0x107] sm:$0xff] }
 0x28a   : > { %v7843_v13 = vunpack.i.h.bf16 %v14747_v27  ;;  %v7928_v15 = vunpack.i.h.bf16 %v14748_v14  ;;  %v7927_v7 = vunpack.i.l.bf16 %v14748_v14  ;;  %v1905_v53 = vpack.c.bf16 %v1772_v30, %v1771_v34  ;;  %v9282_v34 = vld [vmem:[#allocation2 + $0x10f] sm:$0xff] }
 0x28b   : > { %v7842_v2 = vunpack.i.l.bf16 %v14747_v27  ;;  %v8008_v46 = vunpack.i.h.bf16 %v14749_v55  ;;  %v8007_v47 = vunpack.i.l.bf16 %v14749_v55  ;;  %v1909_v12 = vpack.c.bf16 %v1870_v60, %v1869_v50 }
 0x28c   : > { %v8088_v54 = vunpack.i.h.bf16 %v8086_v35  ;;  %v8087_v0 = vunpack.i.l.bf16 %v8086_v35  ;;  %v1708_v8 = vsel %vm530_vm0, %v9280_v41, %v7683_v62  ;;  %v1707_v32 = vsel %vm530_vm0, %v9281_v10, %v7682_v1  ;;  %v784_v41 = vld [vmem:[#allocation2 + $0x168] sm:$0xff]  ;;  %v14759_v10 = vld [vmem:[#allocation75_spill] sm:$0xff] }
 0x28d   : > { %v1808_v23 = vsel %vm530_vm0, %v781_v51, %v7928_v15  ;;  %v1807_v4 = vsel %vm530_vm0, %v780_v16, %v7927_v7  ;;  %v1740_v52 = vsel %vm1725_vm1, %v1707_v32, %v7762_v31  ;;  %v1741_v40 = vsel %vm1725_vm1, %v1708_v8, %v7763_v17  ;;  %v14756_v7 = vld [vmem:[#allocation46_spill] sm:$0xff]  ;;  %v8096_v16 = vpop.permute.xlu0 %8095  ;;  %v14757_v51 = vld [vmem:[#allocation56_spill] sm:$0xff] }
 0x28e   : > { %v1773_v25 = vsel %vm1758_vm2, %v1740_v52, %v7842_v2  ;;  %v1774_v6 = vsel %vm1758_vm2, %v1741_v40, %v7843_v13  ;;  %v1839_v22 = vsel %vm1725_vm1, %v1807_v4, %v8007_v47  ;;  %v1840_v63 = vsel %vm1725_vm1, %v1808_v23, %v8008_v46  ;;  %v14755_v13 = vld [vmem:[#allocation36_spill] sm:$0xff]  ;;  %v14758_v46 = vld [vmem:[#allocation66_spill] sm:$0xff] }
 0x28f   : > { %v1871_v3 = vsel %vm1758_vm2, %v1839_v22, %v8087_v0  ;;  %v1872_v42 = vsel %vm1758_vm2, %v1840_v63, %v8088_v54  ;;  %v7688_v11 = vunpack.i.h.bf16 %v14750_v44  ;;  %v7687_v56 = vunpack.i.l.bf16 %v14750_v44  ;;  %v785_v8 = vld [vmem:[#allocation2 + $0x170] sm:$0xff]  ;;  %v9285_v22 = vld [vmem:[#allocation2 + $0x127] sm:$0xff] }
 0x290   : > { %2200 = vmatmul.mubr.bf16.gmra.mrb[20].mxu0 %v1902_v43  ;;  %v7768_v43 = vunpack.i.h.bf16 %v14751_v24  ;;  %v7767_v36 = vunpack.i.l.bf16 %v14751_v24  ;;  %v7848_v26 = vunpack.i.h.bf16 %v14752_v33  ;;  %v7933_v58 = vunpack.i.h.bf16 %v14753_v5 }
 0x291   : > { %2207 = vmatprep.mubr.bf16.mxu0 %v1906_v49  ;;  %v7932_v49 = vunpack.i.l.bf16 %v14753_v5  ;;  %v1908_v29 = vpack.c.bf16 %v1774_v6, %v1773_v25  ;;  %v7847_v45 = vunpack.i.l.bf16 %v14752_v33  ;;  %v8013_v37 = vunpack.i.h.bf16 %v14754_v48  ;;  %v9284_v25 = vld [vmem:[#allocation2 + $0x12f] sm:$0xff] }
 0x292   : > { %v8012_v57 = vunpack.i.l.bf16 %v14754_v48  ;;  %v1912_v59 = vpack.c.bf16 %v1872_v42, %v1871_v3  ;;  %v8093_v21 = vunpack.i.h.bf16 %v8091_v38  ;;  %v8092_v18 = vunpack.i.l.bf16 %v8091_v38  ;;  %v14760_v38 = vld [vmem:[#allocation37_spill] sm:$0xff] }
 0x293   : > { %v1710_v30 = vsel %vm530_vm0, %v9282_v34, %v7688_v11  ;;  %v1709_v28 = vsel %vm530_vm0, %v9283_v19, %v7687_v56  ;;  %v1810_v50 = vsel %vm530_vm0, %v783_v39, %v7933_v58  ;;  %v1809_v60 = vsel %vm530_vm0, %v782_v61, %v7932_v49  ;;  %v14761_v49 = vld [vmem:[#allocation47_spill] sm:$0xff]  ;;  %v8101_v61 = vpop.permute.xlu1 %8100  ;;  %v14762_v39 = vld [vmem:[#allocation57_spill] sm:$0xff]  ;;  %v14764_v19 = vld [vmem:[#allocation76_spill] sm:$0xff] }
 0x294   : > { %v1742_v9 = vsel %vm1725_vm1, %v1709_v28, %v7767_v36  ;;  %v1743_v62 = vsel %vm1725_vm1, %v1710_v30, %v7768_v43  ;;  %v1841_v17 = vsel %vm1725_vm1, %v1809_v60, %v8012_v57  ;;  %v1842_v31 = vsel %vm1725_vm1, %v1810_v50, %v8013_v37  ;;  %v14763_v37 = vld [vmem:[#allocation67_spill] sm:$0xff]  ;;  %v786_v34 = vld [vmem:[#allocation2 + $0x188] sm:$0xff] }
 0x295   : > { %v1775_v1 = vsel %vm1758_vm2, %v1742_v9, %v7847_v45  ;;  %v1776_v20 = vsel %vm1758_vm2, %v1743_v62, %v7848_v26  ;;  %v1873_v35 = vsel %vm1758_vm2, %v1841_v17, %v8092_v18  ;;  %v1874_v27 = vsel %vm1758_vm2, %v1842_v31, %v8093_v21  ;;  %v787_v30 = vld [vmem:[#allocation2 + $0x190] sm:$0xff]  ;;  %v9286_v9 = vld [vmem:[#allocation2 + $0x147] sm:$0xff] }
 0x296   : > { %v7693_v14 = vunpack.i.h.bf16 %v14755_v13  ;;  %v7692_v15 = vunpack.i.l.bf16 %v14755_v13  ;;  %v7772_v2 = vunpack.i.l.bf16 %v14756_v7  ;;  %v7853_v55 = vunpack.i.h.bf16 %v14757_v51  ;;  %v9287_v17 = vld [vmem:[#allocation2 + $0x14f] sm:$0xff] }
 0x297   : > { %v7938_v47 = vunpack.i.h.bf16 %v14758_v46  ;;  %v1911_v54 = vpack.c.bf16 %v1776_v20, %v1775_v1  ;;  %v7852_v0 = vunpack.i.l.bf16 %v14757_v51  ;;  %v8018_v32 = vunpack.i.h.bf16 %v14759_v10 }
 0x298   : > { %2208 = vmatmul.mubr.bf16.gmra.mrb[24].mxu0 %v1905_v53  ;;  %v7773_v53 = vunpack.i.h.bf16 %v14756_v7  ;;  %v8017_v23 = vunpack.i.l.bf16 %v14759_v10  ;;  %v1915_v4 = vpack.c.bf16 %v1874_v27, %v1873_v35  ;;  %v8098_v52 = vunpack.i.h.bf16 %v8096_v16  ;;  %v14768_v10 = vld [vmem:[#allocation58_spill] sm:$0xff] }
 0x299   : > { %2215 = vmatprep.mubr.bf16.mxu0 %v1909_v12  ;;  %v7937_v12 = vunpack.i.l.bf16 %v14758_v46  ;;  %v8097_v40 = vunpack.i.l.bf16 %v8096_v16  ;;  %v1712_v6 = vsel %vm530_vm0, %v9284_v25, %v7693_v14  ;;  %v1711_v63 = vsel %vm530_vm0, %v9285_v22, %v7692_v15  ;;  %v14766_v46 = vld [vmem:[#allocation38_spill] sm:$0xff] }
 0x29a   : > { %v1812_v3 = vsel %vm530_vm0, %v785_v8, %v7938_v47  ;;  %v1744_v44 = vsel %vm1725_vm1, %v1711_v63, %v7772_v2  ;;  %v1745_v11 = vsel %vm1725_vm1, %v1712_v6, %v7773_v53  ;;  %v7697_v33 = vunpack.i.l.bf16 %v14760_v38  ;;  %v8106_v8 = vpop.permute.xlu0 %8105  ;;  %v788_v6 = vld [vmem:[#allocation2 + $0x1a8] sm:$0xff]  ;;  %v789_v22 = vld [vmem:[#allocation2 + $0x1b0] sm:$0xff] }
 0x29b   : > { %v1811_v42 = vsel %vm530_vm0, %v784_v41, %v7937_v12  ;;  %v1777_v56 = vsel %vm1758_vm2, %v1744_v44, %v7852_v0  ;;  %v1778_v24 = vsel %vm1758_vm2, %v1745_v11, %v7853_v55  ;;  %v1844_v36 = vsel %vm1725_vm1, %v1812_v3, %v8018_v32  ;;  %v14770_v63 = vld [vmem:[#allocation77_spill] sm:$0xff] }
 0x29c   : > { %v1843_v43 = vsel %vm1725_vm1, %v1811_v42, %v8017_v23  ;;  %v1876_v5 = vsel %vm1758_vm2, %v1844_v36, %v8098_v52  ;;  %v7698_v58 = vunpack.i.h.bf16 %v14760_v38  ;;  %v7777_v45 = vunpack.i.l.bf16 %v14761_v49  ;;  %v14769_v23 = vld [vmem:[#allocation68_spill] sm:$0xff]  ;;  %v9289_v36 = vld [vmem:[#allocation2 + $0x167] sm:$0xff] }
 0x29d   : > { %v1875_v26 = vsel %vm1758_vm2, %v1843_v43, %v8097_v40  ;;  %v7857_v48 = vunpack.i.l.bf16 %v14762_v39  ;;  %v7943_v57 = vunpack.i.h.bf16 %v14763_v37  ;;  %v1914_v21 = vpack.c.bf16 %v1778_v24, %v1777_v56  ;;  %v9288_v24 = vld [vmem:[#allocation2 + $0x16f] sm:$0xff] }
 0x29e   : > { %v7858_v18 = vunpack.i.h.bf16 %v14762_v39  ;;  %v8023_v28 = vunpack.i.h.bf16 %v14764_v19  ;;  %v8022_v50 = vunpack.i.l.bf16 %v14764_v19  ;;  %v1918_v60 = vpack.c.bf16 %v1876_v5, %v1875_v26 }
 0x29f   : > { %v1713_v62 = vsel %vm530_vm0, %v9286_v9, %v7697_v33  ;;  %v8103_v1 = vunpack.i.h.bf16 %v8101_v61  ;;  %v8102_v20 = vunpack.i.l.bf16 %v8101_v61  ;;  %v1714_v31 = vsel %vm530_vm0, %v9287_v17, %v7698_v58 }
 0x2a0   : > { %2216 = vmatmul.mubr.bf16.gmra.mrb[28].mxu0 %v1908_v29  ;;  %v7778_v29 = vunpack.i.h.bf16 %v14761_v49  ;;  %v1746_v35 = vsel %vm1725_vm1, %v1713_v62, %v7777_v45  ;;  %v1814_v27 = vsel %vm530_vm0, %v787_v30, %v7943_v57  ;;  %v14765_v55 = vmov 0.0   ;;  %v14771_v30 = vld [vmem:[#allocation39_spill] sm:$0xff]  ;;  %v8111_v62 = vpop.permute.xlu1 %8110 }
 0x2a1   : > { %2223 = vmatprep.mubr.bf16.mxu0 %v1912_v59  ;;  %v7942_v59 = vunpack.i.l.bf16 %v14763_v37  ;;  %v11054_v15 = vsel %vm1758_vm2, %v1746_v35, %v7857_v48  ;;  %v1846_v2 = vsel %vm1725_vm1, %v1814_v27, %v8023_v28  ;;  %2561 = vst.msk [vmem:[#allocation3 + $0x8] sm:$0xff] %vm2559_vm3, %v14765_v55  ;;  %2562 = vst.msk [vmem:[#allocation3 + $0x10] sm:$0xff] %vm2559_vm3, %v14765_v55  ;;  %v7703_v47 = vunpack.i.h.bf16 %v14766_v46  ;;  %v14774_v35 = vld [vmem:[#allocation69_spill] sm:$0xff] }
 0x2a2   : > { %v1747_v14 = vsel %vm1725_vm1, %v1714_v31, %v7778_v29  ;;  %v11065_v51 = vsel %vm1758_vm2, %v1846_v2, %v8103_v1  ;;  %2560 = vst.msk [vmem:[#allocation3] sm:$0xff] %vm2559_vm3, %v14765_v55  ;;  %2563 = vst.msk [vmem:[#allocation3 + $0x18] sm:$0xff] %vm2559_vm3, %v14765_v55  ;;  %v7702_v12 = vunpack.i.l.bf16 %v14766_v46  ;;  %v7863_v32 = vunpack.i.h.bf16 %v14768_v10  ;;  %v790_v31 = vld [vmem:[#allocation2 + $0x1c8] sm:$0xff] }
 0x2a3   : > { %v1813_v13 = vsel %vm530_vm0, %v786_v34, %v7942_v59  ;;  %v11057_v7 = vsel %vm1758_vm2, %v1747_v14, %v7858_v18  ;;  %2564 = vst.msk [vmem:[#allocation3 + $0x20] sm:$0xff] %vm2559_vm3, %v14765_v55  ;;  %2565 = vst.msk [vmem:[#allocation3 + $0x28] sm:$0xff] %vm2559_vm3, %v14765_v55  ;;  %v7947_v52 = vunpack.i.l.bf16 %v14769_v23  ;;  %v7862_v25 = vunpack.i.l.bf16 %v14768_v10  ;;  %v9291_v10 = vld [vmem:[#allocation2 + $0x187] sm:$0xff] }
 0x2a4   : > { %v1845_v53 = vsel %vm1725_vm1, %v1813_v13, %v8022_v50  ;;  %2566 = vst.msk [vmem:[#allocation3 + $0x30] sm:$0xff] %vm2559_vm3, %v14765_v55  ;;  %2567 = vst.msk [vmem:[#allocation3 + $0x38] sm:$0xff] %vm2559_vm3, %v14765_v55  ;;  %v1917_v40 = vpack.c.bf16 %v11057_v7, %v11054_v15  ;;  %v8028_v3 = vunpack.i.h.bf16 %v14770_v63  ;;  %v8027_v42 = vunpack.i.l.bf16 %v14770_v63  ;;  %v14772_v50 = vld [vmem:[#allocation49_spill] sm:$0xff]  ;;  %v791_v7 = vld [vmem:[#allocation2 + $0x1d0] sm:$0xff] }
 0x2a5   : > { %v11062_v16 = vsel %vm1758_vm2, %v1845_v53, %v8102_v20  ;;  %2568 = vst.msk [vmem:[#allocation3 + $0x40] sm:$0xff] %vm2559_vm3, %v14765_v55  ;;  %2569 = vst.msk [vmem:[#allocation3 + $0x48] sm:$0xff] %vm2559_vm3, %v14765_v55  ;;  %v8108_v11 = vunpack.i.h.bf16 %v8106_v8  ;;  %v8107_v56 = vunpack.i.l.bf16 %v8106_v8  ;;  %v1716_v43 = vsel %vm530_vm0, %v9288_v24, %v7703_v47  ;;  %v14773_v20 = vld [vmem:[#allocation59_spill] sm:$0xff]  ;;  %v14775_v53 = vld [vmem:[#allocation78_spill] sm:$0xff] }
 0x2a6   : > { %2570 = vst.msk [vmem:[#allocation3 + $0x50] sm:$0xff] %vm2559_vm3, %v14765_v55  ;;  %2571 = vst.msk [vmem:[#allocation3 + $0x58] sm:$0xff] %vm2559_vm3, %v14765_v55  ;;  %v1921_v44 = vpack.c.bf16 %v11065_v51, %v11062_v16  ;;  %v1715_v38 = vsel %vm530_vm0, %v9289_v36, %v7702_v12  ;;  %v1815_v26 = vsel %vm530_vm0, %v788_v6, %v7947_v52  ;;  %v7708_v19 = vunpack.i.h.bf16 %v14771_v30  ;;  %v14777_v24 = vld [vmem:[#allocation50_spill] sm:$0xff] }
 0x2a7   : > { %2572 = vst.msk [vmem:[#allocation3 + $0x60] sm:$0xff] %vm2559_vm3, %v14765_v55  ;;  %2573 = vst.msk [vmem:[#allocation3 + $0x68] sm:$0xff] %vm2559_vm3, %v14765_v55  ;;  %v1847_v61 = vsel %vm1725_vm1, %v1815_v26, %v8027_v42  ;;  %v7707_v28 = vunpack.i.l.bf16 %v14771_v30  ;;  %v7787_v9 = vunpack.i.l.bf16 %v14772_v50  ;;  %v7868_v17 = vunpack.i.h.bf16 %v14773_v20 }
 0x2a8   : > { %2224 = vmatmul.mubr.bf16.gmra.mrb[32].mxu0 %v1911_v54  ;;  %2574 = vst.msk [vmem:[#allocation3 + $0x70] sm:$0xff] %vm2559_vm3, %v14765_v55  ;;  %2575 = vst.msk [vmem:[#allocation3 + $0x78] sm:$0xff] %vm2559_vm3, %v14765_v55  ;;  %v14767_v54 = vld [vmem:[#allocation48_spill] sm:$0xff]  ;;  %v2825_v37 = vld [vmem:[#allocation3 + $0x8] sm:$0xff]  ;;  %v1879_v59 = vsel %vm1758_vm2, %v1847_v61, %v8107_v56  ;;  %v7953_v27 = vunpack.i.h.bf16 %v14774_v35  ;;  %v7952_v13 = vunpack.i.l.bf16 %v14774_v35  ;;  %v7867_v15 = vunpack.i.l.bf16 %v14773_v20 }
 0x2a9   : > { %2231 = vmatprep.mubr.bf16.mxu0 %v1915_v4  ;;  %2576 = vst.msk [vmem:[#allocation3 + $0x80] sm:$0xff] %vm2559_vm3, %v14765_v55  ;;  %2577 = vst.msk [vmem:[#allocation3 + $0x88] sm:$0xff] %vm2559_vm3, %v14765_v55  ;;  %v7783_v0 = vunpack.i.h.bf16 %v14767_v54  ;;  %v7782_v41 = vunpack.i.l.bf16 %v14767_v54  ;;  %v7948_v4 = vunpack.i.h.bf16 %v14769_v23  ;;  %v2826_v57 = vld [vmem:[#allocation3 + $0x10] sm:$0xff]  ;;  %v8033_v2 = vunpack.i.h.bf16 %v14775_v53 }
 0x2aa   : > { %2578 = vst.msk [vmem:[#allocation3 + $0x90] sm:$0xff] %vm2559_vm3, %v14765_v55  ;;  %2579 = vst.msk [vmem:[#allocation3 + $0x98] sm:$0xff] %vm2559_vm3, %v14765_v55  ;;  %v8124_v34 = vpack.i.bf16 %v2826_v57, %v2825_v37  ;;  %v8032_v16 = vunpack.i.l.bf16 %v14775_v53  ;;  %v2857_v46 = vld [vmem:[#allocation3 + $0x9] sm:$0xff]  ;;  %v2858_v47 = vld [vmem:[#allocation3 + $0x11] sm:$0xff]  ;;  %v8113_v12 = vunpack.i.h.bf16 %v8111_v62  ;;  %v8112_v54 = vunpack.i.l.bf16 %v8111_v62 }
 0x2ab   : > { %2580 = vst.msk [vmem:[#allocation3 + $0xa0] sm:$0xff] %vm2559_vm3, %v14765_v55  ;;  %2581 = vst.msk [vmem:[#allocation3 + $0xa8] sm:$0xff] %vm2559_vm3, %v14765_v55  ;;  %v1816_v33 = vsel %vm530_vm0, %v789_v22, %v7948_v4  ;;  %v1748_v5 = vsel %vm1725_vm1, %v1715_v38, %v7782_v41  ;;  %v1749_v58 = vsel %vm1725_vm1, %v1716_v43, %v7783_v0  ;;  %v9290_v41 = vld [vmem:[#allocation2 + $0x18f] sm:$0xff]  ;;  %v7793_v43 = vunpack.i.h.bf16 %v14777_v24  ;;  %v8116_v38 = vpop.permute.xlu0 %8115  ;;  %v14781_v53 = vld [vmem:[#allocation41_spill] sm:$0xff] }
 0x2ac   : > { %2582 = vst.msk [vmem:[#allocation3 + $0xb0] sm:$0xff] %vm2559_vm3, %v14765_v55  ;;  %2583 = vst.msk [vmem:[#allocation3 + $0xb8] sm:$0xff] %vm2559_vm3, %v14765_v55  ;;  %v1781_v29 = vsel %vm1758_vm2, %v1748_v5, %v7862_v25  ;;  %v1782_v45 = vsel %vm1758_vm2, %v1749_v58, %v7863_v32  ;;  %v1848_v39 = vsel %vm1725_vm1, %v1816_v33, %v8028_v3  ;;  %8125 = vrot.lane.b32.xlu0 %v8124_v34, %s9694_s11  ;;  %v14778_v33 = vld [vmem:[#allocation60_spill] sm:$0xff]  ;;  %v14779_v5 = vld [vmem:[#allocation70_spill] sm:$0xff] }
 0x2ad   : > { %2584 = vst.msk [vmem:[#allocation3 + $0xc0] sm:$0xff] %vm2559_vm3, %v14765_v55  ;;  %2585 = vst.msk [vmem:[#allocation3 + $0xc8] sm:$0xff] %vm2559_vm3, %v14765_v55  ;;  %v1920_v14 = vpack.c.bf16 %v1782_v45, %v1781_v29  ;;  %v8129_v0 = vpack.i.bf16 %v2858_v47, %v2857_v46  ;;  %v1718_v8 = vsel %vm530_vm0, %v9290_v41, %v7708_v19  ;;  %v7792_v36 = vunpack.i.l.bf16 %v14777_v24  ;;  %v793_v37 = vld [vmem:[#allocation2 + $0x1f0] sm:$0xff]  ;;  %v9295_v24 = vld [vmem:[#allocation2 + $0x1c7] sm:$0xff] }
 0x2ae   : > { %2586 = vst.msk [vmem:[#allocation3 + $0xd0] sm:$0xff] %vm2559_vm3, %v14765_v55  ;;  %2587 = vst.msk [vmem:[#allocation3 + $0xd8] sm:$0xff] %vm2559_vm3, %v14765_v55  ;;  %v1717_v32 = vsel %vm530_vm0, %v9291_v10, %v7707_v28  ;;  %v1818_v23 = vsel %vm530_vm0, %v791_v7, %v7953_v27  ;;  %v1817_v4 = vsel %vm530_vm0, %v790_v31, %v7952_v13  ;;  %v7873_v26 = vunpack.i.h.bf16 %v14778_v33  ;;  %v14780_v57 = vld [vmem:[#allocation79_spill] sm:$0xff] }
 0x2af   : > { %2588 = vst.msk [vmem:[#allocation3 + $0xe0] sm:$0xff] %vm2559_vm3, %v14765_v55  ;;  %2589 = vst.msk [vmem:[#allocation3 + $0xe8] sm:$0xff] %vm2559_vm3, %v14765_v55  ;;  %v1750_v52 = vsel %vm1725_vm1, %v1717_v32, %v7787_v9  ;;  %v1849_v22 = vsel %vm1725_vm1, %v1817_v4, %v8032_v16  ;;  %v1850_v63 = vsel %vm1725_vm1, %v1818_v23, %v8033_v2  ;;  %v7958_v58 = vunpack.i.h.bf16 %v14779_v5  ;;  %v9292_v28 = vld [vmem:[#allocation2 + $0x1af] sm:$0xff] }
 0x2b0   : > { %2232 = vmatmul.mubr.bf16.gmra.mrb[36].mxu0 %v1914_v21  ;;  %2590 = vst.msk [vmem:[#allocation3 + $0xf0] sm:$0xff] %vm2559_vm3, %v14765_v55  ;;  %2591 = vst.msk [vmem:[#allocation3 + $0xf8] sm:$0xff] %vm2559_vm3, %v14765_v55  ;;  %v1880_v21 = vsel %vm1758_vm2, %v1848_v39, %v8108_v11  ;;  %8130 = vrot.lane.b32.xlu0 %v8129_v0, %s9691_s27  ;;  %v1783_v25 = vsel %vm1758_vm2, %v1750_v52, %v7867_v15  ;;  %v7957_v29 = vunpack.i.l.bf16 %v14779_v5  ;;  %v792_v39 = vld [vmem:[#allocation2 + $0x1e8] sm:$0xff] }
 0x2b1   : > { %2239 = vmatprep.mubr.bf16.mxu0 %v1918_v60  ;;  %2592 = vst.msk [vmem:[#allocation3 + $0x100] sm:$0xff] %vm2559_vm3, %v14765_v55  ;;  %2593 = vst.msk [vmem:[#allocation3 + $0x108] sm:$0xff] %vm2559_vm3, %v14765_v55  ;;  %v7788_v60 = vunpack.i.h.bf16 %v14772_v50  ;;  %v1924_v51 = vpack.c.bf16 %v1880_v21, %v1879_v59  ;;  %v1881_v3 = vsel %vm1758_vm2, %v1849_v22, %v8112_v54  ;;  %v7872_v61 = vunpack.i.l.bf16 %v14778_v33  ;;  %v14783_v0 = vld [vmem:[#allocation61_spill] sm:$0xff] }
 0x2b2   : > { %2594 = vst.msk [vmem:[#allocation3 + $0x110] sm:$0xff] %vm2559_vm3, %v14765_v55  ;;  %2595 = vst.msk [vmem:[#allocation3 + $0x118] sm:$0xff] %vm2559_vm3, %v14765_v55  ;;  %v1882_v42 = vsel %vm1758_vm2, %v1850_v63, %v8113_v12  ;;  %v8038_v59 = vunpack.i.h.bf16 %v14780_v57  ;;  %v8037_v21 = vunpack.i.l.bf16 %v14780_v57  ;;  %v8118_v30 = vunpack.i.h.bf16 %v8116_v38  ;;  %v8121_v12 = vpop.permute.xlu1 %8120  ;;  %v9297_v33 = vld [vmem:[#allocation2 + $0x208] sm:$0xff] }
 0x2b3   : > { %2596 = vst.msk [vmem:[#allocation3 + $0x120] sm:$0xff] %vm2559_vm3, %v14765_v55  ;;  %2597 = vst.msk [vmem:[#allocation3 + $0x128] sm:$0xff] %vm2559_vm3, %v14765_v55  ;;  %v1927_v34 = vpack.c.bf16 %v1882_v42, %v1881_v3  ;;  %v8117_v19 = vunpack.i.l.bf16 %v8116_v38  ;;  %v1820_v62 = vsel %vm530_vm0, %v793_v37, %v7958_v58  ;;  %v1819_v20 = vsel %vm530_vm0, %v792_v39, %v7957_v29 }
 0x2b4   : > { %2598 = vst.msk [vmem:[#allocation3 + $0x130] sm:$0xff] %vm2559_vm3, %v14765_v55  ;;  %2599 = vst.msk [vmem:[#allocation3 + $0x138] sm:$0xff] %vm2559_vm3, %v14765_v55  ;;  %v1851_v13 = vsel %vm1725_vm1, %v1819_v20, %v8037_v21  ;;  %v7718_v2 = vunpack.i.h.bf16 %v14781_v53  ;;  %v7717_v16 = vunpack.i.l.bf16 %v14781_v53  ;;  %v7878_v41 = vunpack.i.h.bf16 %v14783_v0 }
 0x2b5   : > { %2600 = vst.msk [vmem:[#allocation3 + $0x140] sm:$0xff] %vm2559_vm3, %v14765_v55  ;;  %2601 = vst.msk [vmem:[#allocation3 + $0x148] sm:$0xff] %vm2559_vm3, %v14765_v55  ;;  %v1883_v15 = vsel %vm1758_vm2, %v1851_v13, %v8117_v19  ;;  %v7877_v52 = vunpack.i.l.bf16 %v14783_v0  ;;  %v8123_v3 = vunpack.i.h.bf16 %v8121_v12  ;;  %v8122_v42 = vunpack.i.l.bf16 %v8121_v12 }
 0x2b6   : > { %2602 = vst.msk [vmem:[#allocation3 + $0x150] sm:$0xff] %vm2559_vm3, %v14765_v55  ;;  %2603 = vst.msk [vmem:[#allocation3 + $0x158] sm:$0xff] %vm2559_vm3, %v14765_v55  ;;  %v11231_v49 = vpop.f32.mrb[0].mxu1 }
 0x2b7   : > { %2604 = vst.msk [vmem:[#allocation3 + $0x160] sm:$0xff] %vm2559_vm3, %v14765_v55  ;;  %2605 = vst.msk [vmem:[#allocation3 + $0x168] sm:$0xff] %vm2559_vm3, %v14765_v55  ;;  %v11237_v48 = vpop.f32.mrb[1].mxu1 }
 0x2b8   : > { %2606 = vst.msk [vmem:[#allocation3 + $0x170] sm:$0xff] %vm2559_vm3, %v14765_v55  ;;  %2607 = vst.msk [vmem:[#allocation3 + $0x178] sm:$0xff] %vm2559_vm3, %v14765_v55  ;;  %2240 = vmatmul.mubr.bf16.gmra.mrb[40].mxu0 %v1917_v40  ;;  %v11241_v18 = vpop.f32.mrb[2].mxu1  ;;  %v1751_v40 = vsel %vm1725_vm1, %v1718_v8, %v7788_v60  ;;  %v9293_v60 = vld [vmem:[#allocation2 + $0x1a7] sm:$0xff]  ;;  %v14784_v8 = vld [vmem:[#allocation71_spill] sm:$0xff] }
 0x2b9   : > { %2608 = vst.msk [vmem:[#allocation3 + $0x180] sm:$0xff] %vm2559_vm3, %v14765_v55  ;;  %2609 = vst.msk [vmem:[#allocation3 + $0x188] sm:$0xff] %vm2559_vm3, %v14765_v55  ;;  %2247 = vmatprep.mubr.bf16.mxu0 %v1921_v44  ;;  %v11247_v1 = vpop.f32.mrb[3].mxu1  ;;  %v1784_v6 = vsel %vm1758_vm2, %v1751_v40, %v7868_v17  ;;  %v14776_v44 = vld [vmem:[#allocation40_spill] sm:$0xff]  ;;  %v7963_v10 = vunpack.i.h.bf16 %v14784_v8  ;;  %v7962_v32 = vunpack.i.l.bf16 %v14784_v8 }
 0x2ba   : > { %2610 = vst.msk [vmem:[#allocation3 + $0x190] sm:$0xff] %vm2559_vm3, %v14765_v55  ;;  %2611 = vst.msk [vmem:[#allocation3 + $0x198] sm:$0xff] %vm2559_vm3, %v14765_v55  ;;  %v7713_v11 = vunpack.i.h.bf16 %v14776_v44  ;;  %v7712_v56 = vunpack.i.l.bf16 %v14776_v44  ;;  %v1923_v45 = vpack.c.bf16 %v1784_v6, %v1783_v25  ;;  %v14785_v40 = vld [vmem:[#allocation80_spill] sm:$0xff] }
 0x2bb   : > { %2612 = vst.msk [vmem:[#allocation3 + $0x1a0] sm:$0xff] %vm2559_vm3, %v14765_v55  ;;  %2613 = vst.msk [vmem:[#allocation3 + $0x1a8] sm:$0xff] %vm2559_vm3, %v14765_v55  ;;  %v8043_v25 = vunpack.i.h.bf16 %v14785_v40  ;;  %v8042_v6 = vunpack.i.l.bf16 %v14785_v40 }
 0x2bc   : > { %2614 = vst.msk [vmem:[#allocation3 + $0x1b0] sm:$0xff] %vm2559_vm3, %v14765_v55  ;;  %2615 = vst.msk [vmem:[#allocation3 + $0x1b8] sm:$0xff] %vm2559_vm3, %v14765_v55  ;;  %v1720_v50 = vsel %vm530_vm0, %v9292_v28, %v7713_v11  ;;  %v1719_v9 = vsel %vm530_vm0, %v9293_v60, %v7712_v56  ;;  %v9294_v11 = vld [vmem:[#allocation2 + $0x1cf] sm:$0xff] }
 0x2bd   : > { %2616 = vst.msk [vmem:[#allocation3 + $0x1c0] sm:$0xff] %vm2559_vm3, %v14765_v55  ;;  %2617 = vst.msk [vmem:[#allocation3 + $0x1c8] sm:$0xff] %vm2559_vm3, %v14765_v55  ;;  %v1752_v17 = vsel %vm1725_vm1, %v1719_v9, %v7792_v36  ;;  %v1753_v31 = vsel %vm1725_vm1, %v1720_v50, %v7793_v43  ;;  %v1722_v56 = vsel %vm530_vm0, %v9294_v11, %v7718_v2  ;;  %v9296_v36 = vld [vmem:[#allocation2 + $0x210] sm:$0xff] }
 0x2be   : > { %2618 = vst.msk [vmem:[#allocation3 + $0x1d0] sm:$0xff] %vm2559_vm3, %v14765_v55  ;;  %2619 = vst.msk [vmem:[#allocation3 + $0x1d8] sm:$0xff] %vm2559_vm3, %v14765_v55  ;;  %v1785_v35 = vsel %vm1758_vm2, %v1752_v17, %v7872_v61  ;;  %v1786_v27 = vsel %vm1758_vm2, %v1753_v31, %v7873_v26  ;;  %v1721_v43 = vsel %vm530_vm0, %v9295_v24, %v7717_v16  ;;  %v14788_v60 = vld [vmem:[#allocation62_spill] sm:$0xff] }
 0x2bf   : > { %2620 = vst.msk [vmem:[#allocation3 + $0x1e0] sm:$0xff] %vm2559_vm3, %v14765_v55  ;;  %2621 = vst.msk [vmem:[#allocation3 + $0x1e8] sm:$0xff] %vm2559_vm3, %v14765_v55  ;;  %v1926_v23 = vpack.c.bf16 %v1786_v27, %v1785_v35  ;;  %v1822_v38 = vsel %vm530_vm0, %v9296_v36, %v7963_v10  ;;  %v1821_v26 = vsel %vm530_vm0, %v9297_v33, %v7962_v32  ;;  %v7883_v9 = vunpack.i.h.bf16 %v14788_v60  ;;  %v9298_v17 = vld [vmem:[#allocation2 + $0x1ef] sm:$0xff]  ;;  %v9299_v35 = vld [vmem:[#allocation2 + $0x1e7] sm:$0xff] }
 0x2c0   : > { %2622 = vst.msk [vmem:[#allocation3 + $0x1f0] sm:$0xff] %vm2559_vm3, %v14765_v55  ;;  %2623 = vst.msk [vmem:[#allocation3 + $0x1f8] sm:$0xff] %vm2559_vm3, %v14765_v55  ;;  %2248 = vmatmul.mubr.bf16.gmra.mrb[44].mxu0 %v1920_v14  ;;  %v1852_v14 = vsel %vm1725_vm1, %v1820_v62, %v8038_v59  ;;  %v1853_v61 = vsel %vm1725_vm1, %v1821_v26, %v8042_v6  ;;  %v1854_v39 = vsel %vm1725_vm1, %v1822_v38, %v8043_v25  ;;  %v14786_v59 = vld [vmem:[#allocation42_spill] sm:$0xff] }
 0x2c1   : > { %2624 = vst.msk [vmem:[#allocation3 + $0x200] sm:$0xff] %vm2559_vm3, %v14765_v55  ;;  %2625 = vst.msk [vmem:[#allocation3 + $0x208] sm:$0xff] %vm2559_vm3, %v14765_v55  ;;  %2255 = vmatprep.mubr.bf16.mxu0 %v1924_v51  ;;  %v1884_v7 = vsel %vm1758_vm2, %v1852_v14, %v8118_v30  ;;  %v14782_v51 = vld [vmem:[#allocation51_spill] sm:$0xff]  ;;  %v1885_v37 = vsel %vm1758_vm2, %v1853_v61, %v8122_v42  ;;  %v1886_v57 = vsel %vm1758_vm2, %v1854_v39, %v8123_v3  ;;  %v14787_v30 = vld [vmem:[#allocation52_spill] sm:$0xff] }
 0x2c2   : > { %2626 = vst.msk [vmem:[#allocation3 + $0x210] sm:$0xff] %vm2559_vm3, %v14765_v55  ;;  %2627 = vst.msk [vmem:[#allocation3 + $0x218] sm:$0xff] %vm2559_vm3, %v14765_v55  ;;  %v7798_v46 = vunpack.i.h.bf16 %v14782_v51  ;;  %v7797_v47 = vunpack.i.l.bf16 %v14782_v51  ;;  %v1930_v22 = vpack.c.bf16 %v1884_v7, %v1883_v15  ;;  %v7723_v21 = vunpack.i.h.bf16 %v14786_v59  ;;  %v11383_v38 = vld [vmem:[#allocation3 + $0x7] sm:$0xff]  ;;  %v11385_v33 = vld [vmem:[#allocation3 + $0xf] sm:$0xff] }
 0x2c3   : > { %2628 = vst.msk [vmem:[#allocation3 + $0x220] sm:$0xff] %vm2559_vm3, %v14765_v55  ;;  %2629 = vst.msk [vmem:[#allocation3 + $0x228] sm:$0xff] %vm2559_vm3, %v14765_v55  ;;  %v7803_v19 = vunpack.i.h.bf16 %v14787_v30  ;;  %v7802_v28 = vunpack.i.l.bf16 %v14787_v30  ;;  %v7882_v62 = vunpack.i.l.bf16 %v14788_v60  ;;  %v1933_v20 = vpack.c.bf16 %v1886_v57, %v1885_v37  ;;  %v11396_v57 = vld [vmem:[#allocation10] ss:$0 sm:$0xff] }
 0x2c4   : > { %2630 = vst.msk [vmem:[#allocation3 + $0x230] sm:$0xff] %vm2559_vm3, %v14765_v55  ;;  %2631 = vst.msk [vmem:[#allocation3 + $0x238] sm:$0xff] %vm2559_vm3, %v14765_v55  ;;  %v1754_v5 = vsel %vm1725_vm1, %v1721_v43, %v7797_v47  ;;  %v1755_v58 = vsel %vm1725_vm1, %v1722_v56, %v7798_v46  ;;  %v1724_v31 = vsel %vm530_vm0, %v9298_v17, %v7723_v21 }
 0x2c5   : > { %4631 = vst.msk [vmem:[#allocation3 + $0x18] sm:$0xff] %vm2559_vm3, %v14765_v55  ;;  %v1787_v29 = vsel %vm1758_vm2, %v1754_v5, %v7877_v52  ;;  %v1757_v14 = vsel %vm1725_vm1, %v1724_v31, %v7803_v19  ;;  %4628 = vst.msk [vmem:[#allocation3] sm:$0xff] %vm2559_vm3, %v14765_v55 }
 0x2c6   : > { %v1790_v7 = vsel %vm1758_vm2, %v1757_v14, %v7883_v9  ;;  %4629 = vst.msk [vmem:[#allocation3 + $0x8] sm:$0xff] %vm2559_vm3, %v14765_v55  ;;  %4630 = vst.msk [vmem:[#allocation3 + $0x10] sm:$0xff] %vm2559_vm3, %v14765_v55 }
 0x2c7   : > { %v11297_v54 = vpop.f32.mrb[4].mxu1 }
 0x2c8   : > { %2256 = vmatmul.mubr.bf16.gmra.mrb[48].mxu0 %v1923_v45  ;;  %v11302_v4 = vpop.f32.mrb[5].mxu1  ;;  %v1788_v45 = vsel %vm1758_vm2, %v1755_v58, %v7878_v41 }
 0x2c9   : > { %2263 = vmatprep.mubr.bf16.mxu0 %v1927_v34  ;;  %v11307_v63 = vpop.f32.mrb[6].mxu1  ;;  %v7722_v34 = vunpack.i.l.bf16 %v14786_v59  ;;  %v1929_v50 = vpack.c.bf16 %v1788_v45, %v1787_v29  ;;  %v11393_v45 = vld [vmem:[#allocation9] ss:$0 sm:$0xff] }
 0x2ca   : > { %v11309_v44 = vpop.f32.mrb[7].mxu1 }
 0x2cb   : > { %v1723_v27 = vsel %vm530_vm0, %v9299_v35, %v7722_v34 }
 0x2cc   : > { %v1756_v13 = vsel %vm1725_vm1, %v1723_v27, %v7802_v28 }
 0x2cd   : > { %v1789_v15 = vsel %vm1758_vm2, %v1756_v13, %v7882_v62 }
 0x2ce   : > { %v1932_v2 = vpack.c.bf16 %v1790_v7, %v1789_v15 }
 0x2d0   : > { %2264 = vmatmul.mubr.bf16.gmra.mrb[52].mxu0 %v1926_v23 }
 0x2d1   : > { %2271 = vmatprep.mubr.bf16.mxu0 %v1930_v22 }
 0x2d8   : > { %2272 = vmatmul.mubr.bf16.gmra.mrb[56].mxu0 %v1929_v50 }
 0x2d9   : > { %2279 = vmatprep.mubr.bf16.mxu0 %v1933_v20  ;;  %v11335_v53 = vpop.f32.mrb[8].mxu1 }
 0x2da   : > { %v11337_v16 = vpop.f32.mrb[9].mxu1 }
 0x2db   : > { %v11339_v51 = vpop.f32.mrb[10].mxu1 }
 0x2dc   : > { %v11341_v46 = vpop.f32.mrb[11].mxu1 }
 0x2e0   : > { %2280 = vmatmul.mubr.bf16.gmra.mrb[60].mxu0 %v1932_v2 }
 0x2e1   : > { %v11343_v47 = vpop.f32.mrb[12].mxu1 }
 0x2e2   : > { %v11345_v12 = vpop.f32.mrb[13].mxu1 }
 0x2e3   : > { %v11347_v0 = vpop.f32.mrb[14].mxu1 }
 0x2e4   : > { %v11349_v41 = vpop.f32.mrb[15].mxu1 }
 0x2e9   : > { %v11351_v8 = vpop.f32.mrb[16].mxu1 }
 0x2ea   : > { %v11353_v10 = vpop.f32.mrb[17].mxu1 }
 0x2eb   : > { %v11355_v32 = vpop.f32.mrb[18].mxu1 }
 0x2ec   : > { %v11357_v23 = vpop.f32.mrb[19].mxu1 }
 0x2f1   : > { %v11359_v52 = vpop.f32.mrb[20].mxu1 }
 0x2f2   : > { %v11361_v40 = vpop.f32.mrb[21].mxu1 }
 0x2f3   : > { %v11363_v25 = vpop.f32.mrb[22].mxu1 }
 0x2f4   : > { %v11365_v6 = vpop.f32.mrb[23].mxu1 }
 0x310   : > { %v11367_v22 = vpop.f32.mrb[24].mxu1 }
 0x311   : > { %v11369_v3 = vpop.f32.mrb[25].mxu1 }
 0x312   : > { %v11371_v42 = vpop.f32.mrb[26].mxu1 }
 0x313   : > { %v11373_v11 = vpop.f32.mrb[27].mxu1 }
 0x318   : > { %v11375_v56 = vpop.f32.mrb[28].mxu1 }
 0x319   : > { %v11377_v24 = vpop.f32.mrb[29].mxu1 }
 0x31a   : > { %v11379_v43 = vpop.f32.mrb[30].mxu1 }
 0x31b   : > { %v11381_v36 = vpop.f32.mrb[31].mxu1 }
 0x33b   : > { %v7324_v26 = vpop.f32.mrb[0].mxu0 }
 0x33c   : > { %v7325_v5 = vpop.f32.mrb[1].mxu0 }
 0x33d   : > { %v7326_v58 = vadd.f32 %v7325_v5, %v7324_v26  ;;  %v7327_v29 = vpop.f32.mrb[2].mxu0 }
 0x33e   : > { %v7328_v61 = vpop.f32.mrb[3].mxu0 }
 0x33f   : > { %v2323_v39 = vadd.f32 %v7326_v58, %v11237_v48  ;;  %v7329_v37 = vadd.f32 %v7328_v61, %v7327_v29 }
 0x341   : > { %v2456_v59 = vmul.f32 %v11393_v45, %v2323_v39  ;;  %v2326_v21 = vadd.f32 %v7329_v37, %v11247_v1 }
 0x343   : > { %v11401_v34 = vadd.f32 %v11396_v57, %v2456_v59  ;;  %v2457_v30 = vmul.f32 %v11393_v45, %v2326_v21  ;;  %v7330_v19 = vpop.f32.mrb[4].mxu0 }
 0x344   : > { %v7331_v28 = vpop.f32.mrb[5].mxu0 }
 0x345   : > { %14789 = vst [vmem:[#allocation30_spill] sm:$0xff] %v11401_v34  ;;  %v14550_v50 = vmax.f32 %v11401_v34, 0.0  ;;  %v7332_v60 = vadd.f32 %v7331_v28, %v7330_v19  ;;  %v7333_v9 = vpop.f32.mrb[6].mxu0  ;;  %v11406_v48 = vadd.f32 %v11396_v57, %v2457_v30 }
 0x346   : > { %v7334_v62 = vpop.f32.mrb[7].mxu0 }
 0x347   : > { %14790 = vst [vmem:[#allocation33_spill] sm:$0xff] %v11406_v48  ;;  %v2331_v20 = vadd.f32 %v11231_v49, %v7332_v60  ;;  %v7335_v17 = vadd.f32 %v7334_v62, %v7333_v9  ;;  %2664 = vrot.lane.b32.xlu0 %v14550_v50, %s9693_s17  ;;  %v14549_v1 = vmax.f32 %v11406_v48, 0.0 }
 0x349   : > { %v2458_v31 = vmul.f32 %v11393_v45, %v2331_v20  ;;  %v2334_v35 = vadd.f32 %v11241_v18, %v7335_v17  ;;  %2666 = vrot.lane.b32.xlu1 %v14549_v1, %s9693_s17 }
 0x34b   : > { %v11419_v27 = vadd.f32 %v11396_v57, %v2458_v31  ;;  %v2459_v49 = vmul.f32 %v11393_v45, %v2334_v35  ;;  %v7336_v13 = vpop.f32.mrb[8].mxu0 }
 0x34c   : > { %v7337_v14 = vpop.f32.mrb[9].mxu0 }
 0x34d   : > { %14791 = vst [vmem:[#allocation43_spill] sm:$0xff] %v11419_v27  ;;  %v14548_v15 = vmax.f32 %v11419_v27, 0.0  ;;  %v11424_v7 = vadd.f32 %v11396_v57, %v2459_v49  ;;  %v7338_v2 = vadd.f32 %v7337_v14, %v7336_v13  ;;  %v7339_v26 = vpop.f32.mrb[10].mxu0 }
 0x34e   : > { %v7340_v5 = vpop.f32.mrb[11].mxu0 }
 0x34f   : > { %14792 = vst [vmem:[#allocation53_spill] sm:$0xff] %v11424_v7  ;;  %v14547_v18 = vmax.f32 %v11424_v7, 0.0  ;;  %v7341_v58 = vadd.f32 %v7340_v5, %v7339_v26  ;;  %v2339_v29 = vadd.f32 %v7338_v2, %v11302_v4  ;;  %2668 = vrot.lane.b32.xlu0 %v14548_v15, %s9693_s17 }
 0x351   : > { %v2460_v61 = vmul.f32 %v11393_v45, %v2339_v29  ;;  %v2342_v39 = vadd.f32 %v7341_v58, %v11309_v44  ;;  %2670 = vrot.lane.b32.xlu1 %v14547_v18, %s9693_s17 }
 0x353   : > { %v11437_v37 = vadd.f32 %v11396_v57, %v2460_v61  ;;  %v2461_v59 = vmul.f32 %v11393_v45, %v2342_v39  ;;  %v7342_v21 = vpop.f32.mrb[12].mxu0 }
 0x354   : > { %v7343_v30 = vpop.f32.mrb[13].mxu0 }
 0x355   : > { %14793 = vst [vmem:[#allocation63_spill] sm:$0xff] %v11437_v37  ;;  %v14546_v4 = vmax.f32 %v11437_v37, 0.0  ;;  %v11442_v19 = vadd.f32 %v11396_v57, %v2461_v59  ;;  %v7344_v28 = vadd.f32 %v7343_v30, %v7342_v21  ;;  %v7345_v60 = vpop.f32.mrb[14].mxu0 }
 0x356   : > { %v7346_v9 = vpop.f32.mrb[15].mxu0 }
 0x357   : > { %14794 = vst [vmem:[#allocation72_spill] sm:$0xff] %v11442_v19  ;;  %v14545_v44 = vmax.f32 %v11442_v19, 0.0  ;;  %v2347_v62 = vadd.f32 %v11297_v54, %v7344_v28  ;;  %v7347_v20 = vadd.f32 %v7346_v9, %v7345_v60  ;;  %2672 = vrot.lane.b32.xlu0 %v14546_v4, %s9693_s17 }
 0x359   : > { %v2462_v17 = vmul.f32 %v11393_v45, %v2347_v62  ;;  %v2350_v31 = vadd.f32 %v11307_v63, %v7347_v20  ;;  %2674 = vrot.lane.b32.xlu1 %v14545_v44, %s9693_s17 }
 0x35b   : > { %v11455_v35 = vadd.f32 %v11396_v57, %v2462_v17  ;;  %v2463_v49 = vmul.f32 %v11393_v45, %v2350_v31  ;;  %v7348_v13 = vpop.f32.mrb[16].mxu0 }
 0x35c   : > { %v7349_v54 = vpop.f32.mrb[17].mxu0 }
 0x35d   : > { %14795 = vst [vmem:[#allocation32_spill] sm:$0xff] %v11455_v35  ;;  %v14544_v14 = vmax.f32 %v11455_v35, 0.0  ;;  %v11460_v2 = vadd.f32 %v11396_v57, %v2463_v49  ;;  %v7350_v26 = vadd.f32 %v7349_v54, %v7348_v13  ;;  %v7351_v5 = vpop.f32.mrb[18].mxu0 }
 0x35e   : > { %v7352_v58 = vpop.f32.mrb[19].mxu0 }
 0x35f   : > { %14796 = vst [vmem:[#allocation31_spill] sm:$0xff] %v11460_v2  ;;  %v14543_v63 = vmax.f32 %v11460_v2, 0.0  ;;  %v7353_v29 = vadd.f32 %v7352_v58, %v7351_v5  ;;  %v2355_v61 = vadd.f32 %v7350_v26, %v11337_v16  ;;  %2676 = vrot.lane.b32.xlu0 %v14544_v14, %s9693_s17 }
 0x361   : > { %v2464_v39 = vmul.f32 %v11393_v45, %v2355_v61  ;;  %v2358_v59 = vadd.f32 %v7353_v29, %v11341_v46  ;;  %2678 = vrot.lane.b32.xlu1 %v14543_v63, %s9693_s17 }
 0x363   : > { %v11473_v21 = vadd.f32 %v11396_v57, %v2464_v39  ;;  %v2465_v30 = vmul.f32 %v11393_v45, %v2358_v59  ;;  %v7354_v28 = vpop.f32.mrb[20].mxu0 }
 0x364   : > { %v7355_v60 = vpop.f32.mrb[21].mxu0 }
 0x365   : > { %14797 = vst [vmem:[#allocation34_spill] sm:$0xff] %v11473_v21  ;;  %v14542_v16 = vmax.f32 %v11473_v21, 0.0  ;;  %v11478_v9 = vadd.f32 %v11396_v57, %v2465_v30  ;;  %v7356_v62 = vadd.f32 %v7355_v60, %v7354_v28  ;;  %v7357_v20 = vpop.f32.mrb[22].mxu0 }
 0x366   : > { %v7358_v17 = vpop.f32.mrb[23].mxu0 }
 0x367   : > { %14798 = vst [vmem:[#allocation44_spill] sm:$0xff] %v11478_v9  ;;  %v14541_v46 = vmax.f32 %v11478_v9, 0.0  ;;  %v2363_v31 = vadd.f32 %v11335_v53, %v7356_v62  ;;  %v7359_v49 = vadd.f32 %v7358_v17, %v7357_v20  ;;  %2680 = vrot.lane.b32.xlu0 %v14542_v16, %s9693_s17 }
 0x369   : > { %v2466_v13 = vmul.f32 %v11393_v45, %v2363_v31  ;;  %v2366_v54 = vadd.f32 %v11339_v51, %v7359_v49  ;;  %2682 = vrot.lane.b32.xlu1 %v14541_v46, %s9693_s17 }
 0x36b   : > { %v11491_v26 = vadd.f32 %v11396_v57, %v2466_v13  ;;  %v2467_v5 = vmul.f32 %v11393_v45, %v2366_v54  ;;  %v7360_v58 = vpop.f32.mrb[24].mxu0 }
 0x36c   : > { %v7361_v53 = vpop.f32.mrb[25].mxu0 }
 0x36d   : > { %14799 = vst [vmem:[#allocation54_spill] sm:$0xff] %v11491_v26  ;;  %v14540_v29 = vmax.f32 %v11491_v26, 0.0  ;;  %v11496_v61 = vadd.f32 %v11396_v57, %v2467_v5  ;;  %v7362_v39 = vadd.f32 %v7361_v53, %v7360_v58  ;;  %v7363_v59 = vpop.f32.mrb[26].mxu0 }
 0x36e   : > { %v7364_v30 = vpop.f32.mrb[27].mxu0 }
 0x36f   : > { %14800 = vst [vmem:[#allocation64_spill] sm:$0xff] %v11496_v61  ;;  %v14535_v51 = vmax.f32 %v11496_v61, 0.0  ;;  %v7365_v28 = vadd.f32 %v7364_v30, %v7363_v59  ;;  %v2371_v60 = vadd.f32 %v7362_v39, %v11345_v12  ;;  %2684 = vrot.lane.b32.xlu0 %v14540_v29, %s9693_s17 }
 0x371   : > { %v2468_v62 = vmul.f32 %v11393_v45, %v2371_v60  ;;  %v2374_v20 = vadd.f32 %v7365_v28, %v11349_v41  ;;  %2686 = vrot.lane.b32.xlu1 %v14535_v51, %s9693_s17 }
 0x373   : > { %v11509_v17 = vadd.f32 %v11396_v57, %v2468_v62  ;;  %v2469_v31 = vmul.f32 %v11393_v45, %v2374_v20  ;;  %v7366_v49 = vpop.f32.mrb[28].mxu0 }
 0x374   : > { %v7367_v13 = vpop.f32.mrb[29].mxu0 }
 0x375   : > { %14801 = vst [vmem:[#allocation73_spill] sm:$0xff] %v11509_v17  ;;  %v14534_v12 = vmax.f32 %v11509_v17, 0.0  ;;  %v11514_v54 = vadd.f32 %v11396_v57, %v2469_v31  ;;  %v7368_v5 = vadd.f32 %v7367_v13, %v7366_v49  ;;  %v7369_v58 = vpop.f32.mrb[30].mxu0 }
 0x376   : > { %v7370_v53 = vpop.f32.mrb[31].mxu0 }
 0x377   : > { %14802 = vst [vmem:[#allocation35_spill] sm:$0xff] %v11514_v54  ;;  %v14533_v41 = vmax.f32 %v11514_v54, 0.0  ;;  %v2379_v39 = vadd.f32 %v11343_v47, %v7368_v5  ;;  %v7371_v59 = vadd.f32 %v7370_v53, %v7369_v58  ;;  %2688 = vrot.lane.b32.xlu0 %v14534_v12, %s9693_s17  ;;  %v9264_v12 = vld [vmem:[#allocation12 + $0x10] sm:$0xff]  }
 0x379   : > { %v2470_v30 = vmul.f32 %v11393_v45, %v2379_v39  ;;  %v2382_v28 = vadd.f32 %v11347_v0, %v7371_v59  ;;  %2690 = vrot.lane.b32.xlu1 %v14533_v41, %s9693_s17 }
 0x37b   : > { %v11527_v60 = vadd.f32 %v11396_v57, %v2470_v30  ;;  %v2471_v62 = vmul.f32 %v11393_v45, %v2382_v28  ;;  %v7372_v20 = vpop.f32.mrb[32].mxu0 }
 0x37c   : > { %v7373_v47 = vpop.f32.mrb[33].mxu0 }
 0x37d   : > { %14803 = vst [vmem:[#allocation45_spill] sm:$0xff] %v11527_v60  ;;  %v14530_v31 = vmax.f32 %v11527_v60, 0.0  ;;  %v11532_v49 = vadd.f32 %v11396_v57, %v2471_v62  ;;  %v7374_v13 = vadd.f32 %v7373_v47, %v7372_v20  ;;  %v7375_v5 = vpop.f32.mrb[34].mxu0 }
 0x37e   : > { %v7376_v58 = vpop.f32.mrb[35].mxu0 }
 0x37f   : > { %14804 = vst [vmem:[#allocation55_spill] sm:$0xff] %v11532_v49  ;;  %v14519_v0 = vmax.f32 %v11532_v49, 0.0  ;;  %v7377_v53 = vadd.f32 %v7376_v58, %v7375_v5  ;;  %v2387_v39 = vadd.f32 %v7374_v13, %v11353_v10  ;;  %2692 = vrot.lane.b32.xlu0 %v14530_v31, %s9693_s17  ;;  %v14551_v31 = vmov 0  }
 0x380   : > { %4357 = vmatprep.subr.bf16.mxu1 %v14551_v31  ;;  %6420 = vmatprep.subr.bf16.mxu0 %v14551_v31 }
 0x381   : > { %v2472_v59 = vmul.f32 %v11393_v45, %v2387_v39  ;;  %v2390_v30 = vadd.f32 %v7377_v53, %v11357_v23  ;;  %2694 = vrot.lane.b32.xlu1 %v14519_v0, %s9693_s17 }
 0x383   : > { %v11545_v28 = vadd.f32 %v11396_v57, %v2472_v59  ;;  %v2473_v62 = vmul.f32 %v11393_v45, %v2390_v30  ;;  %v7378_v20 = vpop.f32.mrb[36].mxu0 }
 0x384   : > { %v7379_v47 = vpop.f32.mrb[37].mxu0 }
 0x385   : > { %14805 = vst [vmem:[#allocation65_spill] sm:$0xff] %v11545_v28  ;;  %v14520_v10 = vmax.f32 %v11545_v28, 0.0  ;;  %v11550_v13 = vadd.f32 %v11396_v57, %v2473_v62  ;;  %v7380_v5 = vadd.f32 %v7379_v47, %v7378_v20  ;;  %v7381_v58 = vpop.f32.mrb[38].mxu0 }
 0x386   : > { %v7382_v39 = vpop.f32.mrb[39].mxu0 }
 0x387   : > { %14806 = vst [vmem:[#allocation74_spill] sm:$0xff] %v11550_v13  ;;  %v14521_v23 = vmax.f32 %v11550_v13, 0.0  ;;  %v2395_v53 = vadd.f32 %v11351_v8, %v7380_v5  ;;  %v7383_v0 = vadd.f32 %v7382_v39, %v7381_v58  ;;  %2696 = vrot.lane.b32.xlu0 %v14520_v10, %s9693_s17 }
 0x389   : > { %v2474_v59 = vmul.f32 %v11393_v45, %v2395_v53  ;;  %v2398_v30 = vadd.f32 %v11355_v32, %v7383_v0  ;;  %2698 = vrot.lane.b32.xlu1 %v14521_v23, %s9693_s17 }
 0x38b   : > { %v11563_v62 = vadd.f32 %v11396_v57, %v2474_v59  ;;  %v2475_v20 = vmul.f32 %v11393_v45, %v2398_v30  ;;  %v7384_v47 = vpop.f32.mrb[40].mxu0 }
 0x38c   : > { %v7385_v8 = vpop.f32.mrb[41].mxu0 }
 0x38d   : > { %14807 = vst [vmem:[#allocation36_spill] sm:$0xff] %v11563_v62  ;;  %v14522_v5 = vmax.f32 %v11563_v62, 0.0  ;;  %v11568_v58 = vadd.f32 %v11396_v57, %v2475_v20  ;;  %v7386_v39 = vadd.f32 %v7385_v8, %v7384_v47  ;;  %v7387_v53 = vpop.f32.mrb[42].mxu0 }
 0x38e   : > { %v7388_v10 = vpop.f32.mrb[43].mxu0 }
 0x38f   : > { %14808 = vst [vmem:[#allocation46_spill] sm:$0xff] %v11568_v58  ;;  %v14523_v32 = vmax.f32 %v11568_v58, 0.0  ;;  %v7389_v0 = vadd.f32 %v7388_v10, %v7387_v53  ;;  %v2403_v23 = vadd.f32 %v7386_v39, %v11361_v40  ;;  %2700 = vrot.lane.b32.xlu0 %v14522_v5, %s9693_s17 }
 0x391   : > { %v2476_v59 = vmul.f32 %v11393_v45, %v2403_v23  ;;  %v2406_v30 = vadd.f32 %v7389_v0, %v11365_v6  ;;  %2702 = vrot.lane.b32.xlu1 %v14523_v32, %s9693_s17 }
 0x393   : > { %v11581_v20 = vadd.f32 %v11396_v57, %v2476_v59  ;;  %v2477_v47 = vmul.f32 %v11393_v45, %v2406_v30  ;;  %v7390_v10 = vpop.f32.mrb[44].mxu0 }
 0x394   : > { %v7391_v8 = vpop.f32.mrb[45].mxu0 }
 0x395   : > { %14809 = vst [vmem:[#allocation56_spill] sm:$0xff] %v11581_v20  ;;  %v14524_v40 = vmax.f32 %v11581_v20, 0.0  ;;  %v11586_v39 = vadd.f32 %v11396_v57, %v2477_v47  ;;  %v7392_v53 = vadd.f32 %v7391_v8, %v7390_v10  ;;  %v7393_v23 = vpop.f32.mrb[46].mxu0 }
 0x396   : > { %v7394_v5 = vpop.f32.mrb[47].mxu0 }
 0x397   : > { %14810 = vst [vmem:[#allocation66_spill] sm:$0xff] %v11586_v39  ;;  %v14525_v6 = vmax.f32 %v11586_v39, 0.0  ;;  %v2411_v0 = vadd.f32 %v11359_v52, %v7392_v53  ;;  %v7395_v32 = vadd.f32 %v7394_v5, %v7393_v23  ;;  %2704 = vrot.lane.b32.xlu0 %v14524_v40, %s9693_s17 }
 0x399   : > { %v2478_v59 = vmul.f32 %v11393_v45, %v2411_v0  ;;  %v2414_v30 = vadd.f32 %v11363_v25, %v7395_v32  ;;  %2706 = vrot.lane.b32.xlu1 %v14525_v6, %s9693_s17 }
 0x39b   : > { %v11599_v47 = vadd.f32 %v11396_v57, %v2478_v59  ;;  %v2479_v10 = vmul.f32 %v11393_v45, %v2414_v30  ;;  %v7396_v8 = vpop.f32.mrb[48].mxu0 }
 0x39c   : > { %v7397_v52 = vpop.f32.mrb[49].mxu0 }
 0x39d   : > { %14811 = vst [vmem:[#allocation75_spill] sm:$0xff] %v11599_v47  ;;  %v14526_v5 = vmax.f32 %v11599_v47, 0.0  ;;  %v11604_v53 = vadd.f32 %v11396_v57, %v2479_v10  ;;  %v7398_v23 = vadd.f32 %v7397_v52, %v7396_v8  ;;  %v7399_v0 = vpop.f32.mrb[50].mxu0 }
 0x39e   : > { %v7400_v40 = vpop.f32.mrb[51].mxu0 }
 0x39f   : > { %14812 = vst [vmem:[#allocation37_spill] sm:$0xff] %v11604_v53  ;;  %v14527_v25 = vmax.f32 %v11604_v53, 0.0  ;;  %v7401_v32 = vadd.f32 %v7400_v40, %v7399_v0  ;;  %v2419_v6 = vadd.f32 %v7398_v23, %v11369_v3  ;;  %2708 = vrot.lane.b32.xlu0 %v14526_v5, %s9693_s17 }
 0x3a1   : > { %v2480_v59 = vmul.f32 %v11393_v45, %v2419_v6  ;;  %v2422_v30 = vadd.f32 %v7401_v32, %v11373_v11  ;;  %2710 = vrot.lane.b32.xlu1 %v14527_v25, %s9693_s17 }
 0x3a3   : > { %v11617_v10 = vadd.f32 %v11396_v57, %v2480_v59  ;;  %v2481_v8 = vmul.f32 %v11393_v45, %v2422_v30  ;;  %v7402_v40 = vpop.f32.mrb[52].mxu0 }
 0x3a4   : > { %v7403_v52 = vpop.f32.mrb[53].mxu0 }
 0x3a5   : > { %14813 = vst [vmem:[#allocation47_spill] sm:$0xff] %v11617_v10  ;;  %v14528_v3 = vmax.f32 %v11617_v10, 0.0  ;;  %v11622_v23 = vadd.f32 %v11396_v57, %v2481_v8  ;;  %v7404_v0 = vadd.f32 %v7403_v52, %v7402_v40  ;;  %v7405_v6 = vpop.f32.mrb[54].mxu0 }
 0x3a6   : > { %v7406_v5 = vpop.f32.mrb[55].mxu0 }
 0x3a7   : > { %14814 = vst [vmem:[#allocation57_spill] sm:$0xff] %v11622_v23  ;;  %v14529_v11 = vmax.f32 %v11622_v23, 0.0  ;;  %v2427_v32 = vadd.f32 %v11367_v22, %v7404_v0  ;;  %v7407_v25 = vadd.f32 %v7406_v5, %v7405_v6  ;;  %2712 = vrot.lane.b32.xlu0 %v14528_v3, %s9693_s17  ;;  %v11642_v3 = vpop.permute.xlu0 %8125 }
 0x3a9   : > { %v2482_v59 = vmul.f32 %v11393_v45, %v2427_v32  ;;  %v2430_v30 = vadd.f32 %v11371_v42, %v7407_v25  ;;  %2714 = vrot.lane.b32.xlu1 %v14529_v11, %s9693_s17 }
 0x3ab   : > { %v11635_v8 = vadd.f32 %v11396_v57, %v2482_v59  ;;  %v2483_v40 = vmul.f32 %v11393_v45, %v2430_v30  ;;  %v7408_v52 = vpop.f32.mrb[56].mxu0  ;;  %v9262_v30 = vld [vmem:[#allocation12] sm:$0xff]  }
 0x3ac   : > { %v7409_v22 = vpop.f32.mrb[57].mxu0  ;;  %4358 = vmatpush1.bf16.msra.mxu1 %v9262_v30 }
 0x3ad   : > { %14815 = vst [vmem:[#allocation67_spill] sm:$0xff] %v11635_v8  ;;  %v14531_v5 = vmax.f32 %v11635_v8, 0.0  ;;  %v11640_v0 = vadd.f32 %v11396_v57, %v2483_v40  ;;  %v7410_v6 = vadd.f32 %v7409_v22, %v7408_v52  ;;  %v7411_v32 = vpop.f32.mrb[58].mxu0  ;;  %4359 = vmatprep.subr.bf16.mxu1 %v14551_v31 }
 0x3ae   : > { %v7412_v42 = vpop.f32.mrb[59].mxu0 }
 0x3af   : > { %14816 = vst [vmem:[#allocation76_spill] sm:$0xff] %v11640_v0  ;;  %v14532_v25 = vmax.f32 %v11640_v0, 0.0  ;;  %v7413_v11 = vadd.f32 %v7412_v42, %v7411_v32  ;;  %v2435_v59 = vadd.f32 %v7410_v6, %v11377_v24  ;;  %2716 = vrot.lane.b32.xlu0 %v14531_v5, %s9693_s17  ;;  %v11661_v32 = vpop.permute.xlu0 %8130  ;;  %v9263_v42 = vld [vmem:[#allocation12 + $0x8] sm:$0xff]  }
 0x3b0   : > { %4360 = vmatpush1.bf16.msra.mxu1 %v9263_v42  ;;  %v9265_v42 = vld [vmem:[#allocation12 + $0x18] sm:$0xff]  }
 0x3b1   : > { %v2484_v40 = vmul.f32 %v11393_v45, %v2435_v59  ;;  %v2438_v52 = vadd.f32 %v7413_v11, %v11381_v36  ;;  %2718 = vrot.lane.b32.xlu1 %v14532_v25, %s9693_s17  ;;  %4361 = vmatprep.subr.bf16.mxu1 %v14551_v31 }
 0x3b3   : > { %v11658_v24 = vadd.f32 %v11396_v57, %v2484_v40  ;;  %v2485_v22 = vmul.f32 %v11393_v45, %v2438_v52  ;;  %v7414_v6 = vpop.f32.mrb[60].mxu0 }
 0x3b4   : > { %v7415_v5 = vpop.f32.mrb[61].mxu0  ;;  %4362 = vmatpush1.bf16.msra.mxu1 %v9264_v12 }
 0x3b5   : > { %14817 = vst [vmem:[#allocation38_spill] sm:$0xff] %v11658_v24  ;;  %v14539_v59 = vmax.f32 %v11658_v24, 0.0  ;;  %v11665_v36 = vadd.f32 %v11396_v57, %v2485_v22  ;;  %v7416_v11 = vadd.f32 %v7415_v5, %v7414_v6  ;;  %v7417_v25 = vpop.f32.mrb[62].mxu0  ;;  %4363 = vmatprep.subr.bf16.mxu1 %v14551_v31 }
 0x3b6   : > { %v7418_v30 = vpop.f32.mrb[63].mxu0 }
 0x3b7   : > { %14818 = vst [vmem:[#allocation48_spill] sm:$0xff] %v11665_v36  ;;  %v14538_v40 = vmax.f32 %v11665_v36, 0.0  ;;  %v2443_v52 = vadd.f32 %v11375_v56, %v7416_v11  ;;  %v7419_v41 = vadd.f32 %v7418_v30, %v7417_v25  ;;  %2720 = vrot.lane.b32.xlu0 %v14539_v59, %s9693_s17 }
 0x3b8   : > { %4364 = vmatpush1.bf16.msra.mxu1 %v9265_v42 }
 0x3b9   : > { %v2486_v51 = vmul.f32 %v11393_v45, %v2443_v52  ;;  %v2446_v22 = vadd.f32 %v11379_v43, %v7419_v41  ;;  %v2665_v5 = vpop.permute.xlu0 %2664  ;;  %2722 = vrot.lane.b32.xlu1 %v14538_v40, %s9693_s17  ;;  %4365 = vmatprep.subr.bf16.mxu1 %v14551_v31 }
 0x3ba   : > { %2761 = vst.msk [vmem:[#allocation3 + $0x28] sm:$0xff] %vm2559_vm3, %v2665_v5 }
 0x3bb   : > { %v11681_v56 = vadd.f32 %v11396_v57, %v2486_v51  ;;  %v2487_v25 = vmul.f32 %v11393_v45, %v2446_v22  ;;  %v2667_v6 = vpop.permute.xlu1 %2666  ;;  %v9266_v51 = vld [vmem:[#allocation12 + $0x20] sm:$0xff]  }
 0x3bc   : > { %2762 = vst.msk [vmem:[#allocation3 + $0x30] sm:$0xff] %vm2559_vm3, %v2667_v6  ;;  %4366 = vmatpush1.bf16.msra.mxu1 %v9266_v51  ;;  %v9267_v51 = vld [vmem:[#allocation12 + $0x28] sm:$0xff]  }
 0x3bd   : > { %14819 = vst [vmem:[#allocation58_spill] sm:$0xff] %v11681_v56  ;;  %v14537_v43 = vmax.f32 %v11681_v56, 0.0  ;;  %v11687_v41 = vadd.f32 %v11396_v57, %v2487_v25  ;;  %4367 = vmatprep.subr.bf16.mxu1 %v14551_v31 }
 0x3bf   : > { %14820 = vst [vmem:[#allocation68_spill] sm:$0xff] %v11687_v41  ;;  %v14536_v12 = vmax.f32 %v11687_v41, 0.0  ;;  %2724 = vrot.lane.b32.xlu0 %v14537_v43, %s9693_s17 }
 0x3c0   : > { %4368 = vmatpush1.bf16.msra.mxu1 %v9267_v51 }
 0x3c1   : > { %2726 = vrot.lane.b32.xlu1 %v14536_v12, %s9693_s17  ;;  %v2669_v45 = vpop.permute.xlu0 %2668  ;;  %v11697_v11 = vld [vmem:[#allocation3 + $0x27] sm:$0xff]  ;;  %4369 = vmatprep.subr.bf16.mxu1 %v14551_v31 }
 0x3c2   : > { %2763 = vst.msk [vmem:[#allocation3 + $0x48] sm:$0xff] %vm2559_vm3, %v2669_v45  ;;  %v2827_v57 = vld [vmem:[#allocation3 + $0x28] sm:$0xff]  ;;  %4632 = vst.msk [vmem:[#allocation3 + $0x20] sm:$0xff] %vm2559_vm3, %v14765_v55 }
 0x3c3   : > { %v2671_v30 = vpop.permute.xlu1 %2670  ;;  %v2828_v52 = vld [vmem:[#allocation3 + $0x30] sm:$0xff]  ;;  %v9268_v45 = vld [vmem:[#allocation12 + $0x30] sm:$0xff]  }
 0x3c4   : > { %v11703_v22 = vld [vmem:[#allocation3 + $0x2f] sm:$0xff]  ;;  %2764 = vst.msk [vmem:[#allocation3 + $0x50] sm:$0xff] %vm2559_vm3, %v2671_v30  ;;  %v8134_v25 = vpack.i.bf16 %v2828_v52, %v2827_v57  ;;  %4370 = vmatpush1.bf16.msra.mxu1 %v9268_v45 }
 0x3c5   : > { %v2859_v5 = vld [vmem:[#allocation3 + $0x29] sm:$0xff]  ;;  %v8144_v6 = vpack.i.bf16 %v11703_v22, %v11697_v11  ;;  %v2860_v42 = vld [vmem:[#allocation3 + $0x31] sm:$0xff]  ;;  %4371 = vmatprep.subr.bf16.mxu1 %v14551_v31 }
 0x3c6   : > { %4633 = vst.msk [vmem:[#allocation3 + $0x28] sm:$0xff] %vm2559_vm3, %v14765_v55  ;;  %4635 = vst.msk [vmem:[#allocation3 + $0x38] sm:$0xff] %vm2559_vm3, %v14765_v55  ;;  %8135 = vrot.lane.b32.xlu1 %v8134_v25, %s9694_s11  ;;  %v8139_v57 = vpack.i.bf16 %v2860_v42, %v2859_v5 }
 0x3c7   : > { %4634 = vst.msk [vmem:[#allocation3 + $0x30] sm:$0xff] %vm2559_vm3, %v14765_v55  ;;  %8145 = vrot.lane.b32.xlu0 %v8144_v6, %s9696_s28 }
 0x3c9   : > { %v2673_v30 = vpop.permute.xlu0 %2672  ;;  %v11717_v52 = vld [vmem:[#allocation3 + $0x47] sm:$0xff] }
 0x3ca   : > { %2765 = vst.msk [vmem:[#allocation3 + $0x68] sm:$0xff] %vm2559_vm3, %v2673_v30  ;;  %8140 = vrot.lane.b32.xlu1 %v8139_v57, %s9691_s27  ;;  %v2923_v12 = vld [vmem:[#allocation3 + $0x48] sm:$0xff]  ;;  %4636 = vst.msk [vmem:[#allocation3 + $0x40] sm:$0xff] %vm2559_vm3, %v14765_v55 }
 0x3cb   : > { %8150 = vrot.lane.b32.xlu0 %v8134_v25, %s9692_s30  ;;  %v2675_v43 = vpop.permute.xlu1 %2674  ;;  %v3050_v6 = vld [vmem:[#allocation3 + $0x49] sm:$0xff]  ;;  %v3051_v51 = vld [vmem:[#allocation3 + $0x51] sm:$0xff] }
 0x3cc   : > { %v11724_v40 = vld [vmem:[#allocation3 + $0x4f] sm:$0xff]  ;;  %2766 = vst.msk [vmem:[#allocation3 + $0x70] sm:$0xff] %vm2559_vm3, %v2675_v43  ;;  %v4206_v5 = vpack.c.bf16 %v3051_v51, %v3050_v6  ;;  %4639 = vst.msk [vmem:[#allocation3 + $0x58] sm:$0xff] %vm2559_vm3, %v14765_v55 }
 0x3cd   : > { %v8169_v42 = vpack.i.bf16 %v11724_v40, %v11717_v52  ;;  %v2924_v30 = vld [vmem:[#allocation3 + $0x50] sm:$0xff]  ;;  %4637 = vst.msk [vmem:[#allocation3 + $0x48] sm:$0xff] %vm2559_vm3, %v14765_v55 }
 0x3ce   : > { %v9269_v25 = vld [vmem:[#allocation12 + $0x38] sm:$0xff]   ;;  %4638 = vst.msk [vmem:[#allocation3 + $0x50] sm:$0xff] %vm2559_vm3, %v14765_v55  ;;  %7256 = vmatprep.mubr.msk.bf16.mxu1 %vm2559_vm3, %v4206_v5  ;;  %v9270_v43 = vld [vmem:[#allocation12 + $0x40] sm:$0xff]   ;;  %v8174_v45 = vpack.i.bf16 %v2924_v30, %v2923_v12  ;;  %v8179_v12 = vpack.i.bf16 %v3051_v51, %v3050_v6 }
 0x3cf   : > { %8155 = vrot.lane.b32.xlu0 %v8139_v57, %s9697_s26  ;;  %8170 = vrot.lane.b32.xlu1 %v8169_v42, %s9696_s28 }
 0x3d0   : > { %4372 = vmatpush1.bf16.msra.mxu1 %v9269_v25 }
 0x3d1   : > { %4373 = vmatprep.subr.bf16.mxu1 %v14551_v31  ;;  %v2677_v59 = vpop.permute.xlu0 %2676  ;;  %v11740_v29 = vld [vmem:[#allocation3 + $0x67] sm:$0xff] }
 0x3d2   : > { %2767 = vst.msk [vmem:[#allocation3 + $0x88] sm:$0xff] %vm2559_vm3, %v2677_v59  ;;  %4640 = vst.msk [vmem:[#allocation3 + $0x60] sm:$0xff] %vm2559_vm3, %v14765_v55  ;;  %v2831_v25 = vld [vmem:[#allocation3 + $0x68] sm:$0xff] }
 0x3d3   : > { %8160 = vrot.lane.b32.xlu0 %v8174_v45, %s9694_s11  ;;  %8175 = vrot.lane.b32.xlu1 %v8174_v45, %s9692_s30  ;;  %v2679_v57 = vpop.permute.xlu1 %2678  ;;  %v11747_v5 = vld [vmem:[#allocation3 + $0x6f] sm:$0xff] }
 0x3d4   : > { %v11749_v46 = vld [vmem:[#allocation3 + $0x69] sm:$0xff]  ;;  %4374 = vmatpush1.bf16.msra.mxu1 %v9270_v43  ;;  %2768 = vst.msk [vmem:[#allocation3 + $0x90] sm:$0xff] %vm2559_vm3, %v2679_v57  ;;  %v11752_v16 = vld [vmem:[#allocation3 + $0x71] sm:$0xff] }
 0x3d5   : > { %v2832_v30 = vld [vmem:[#allocation3 + $0x70] sm:$0xff]  ;;  %4641 = vst.msk [vmem:[#allocation3 + $0x68] sm:$0xff] %vm2559_vm3, %v14765_v55  ;;  %7474 = vmatprep.subr.bf16.mxu1 %v14551_v31  ;;  %4643 = vst.msk [vmem:[#allocation3 + $0x78] sm:$0xff] %vm2559_vm3, %v14765_v55 }
 0x3d6   : > { %4642 = vst.msk [vmem:[#allocation3 + $0x70] sm:$0xff] %vm2559_vm3, %v14765_v55 }
 0x3d7   : > { %8165 = vrot.lane.b32.xlu0 %v8179_v12, %s9691_s27  ;;  %8180 = vrot.lane.b32.xlu1 %v8179_v12, %s9697_s26  ;;  %v8204_v12 = vpack.i.bf16 %v11747_v5, %v11740_v29 }
 0x3d9   : > { %v2681_v59 = vpop.permute.xlu0 %2680  ;;  %v11763_v6 = vld [vmem:[#allocation3 + $0x87] sm:$0xff] }
 0x3da   : > { %14821 = vst [vmem:[#allocation77_spill] sm:$0xff] %v11763_v6  ;;  %2769 = vst.msk [vmem:[#allocation3 + $0xa8] sm:$0xff] %vm2559_vm3, %v2681_v59  ;;  %v2927_v57 = vld [vmem:[#allocation3 + $0x88] sm:$0xff] }
 0x3db   : > { %8185 = vrot.lane.b32.xlu0 %v8169_v42, %s9693_s17  ;;  %4644 = vst.msk [vmem:[#allocation3 + $0x80] sm:$0xff] %vm2559_vm3, %v14765_v55  ;;  %8190 = vrot.lane.b32.xlu1 %v8174_v45, %s9698_s12  ;;  %v2683_v51 = vpop.permute.xlu1 %2682  ;;  %v11770_v43 = vld [vmem:[#allocation3 + $0x8f] sm:$0xff]  ;;  %v8194_v42 = vpack.i.bf16 %v2832_v30, %v2831_v25 }
 0x3dc   : > { %14822 = vst [vmem:[#allocation39_spill] sm:$0xff] %v11770_v43  ;;  %v11772_v63 = vld [vmem:[#allocation3 + $0x89] sm:$0xff]  ;;  %2770 = vst.msk [vmem:[#allocation3 + $0xb0] sm:$0xff] %vm2559_vm3, %v2683_v51  ;;  %v11777_v14 = vld [vmem:[#allocation3 + $0x91] sm:$0xff]  ;;  %v8199_v51 = vpack.i.bf16 %v11752_v16, %v11749_v46 }
 0x3dd   : > { %v2928_v59 = vld [vmem:[#allocation3 + $0x90] sm:$0xff]  ;;  %4645 = vst.msk [vmem:[#allocation3 + $0x88] sm:$0xff] %vm2559_vm3, %v14765_v55  ;;  %4647 = vst.msk [vmem:[#allocation3 + $0x98] sm:$0xff] %vm2559_vm3, %v14765_v55 }
 0x3de   : > { %4646 = vst.msk [vmem:[#allocation3 + $0x90] sm:$0xff] %vm2559_vm3, %v14765_v55  ;;  %v8244_v56 = vpack.i.bf16 %v2928_v59, %v2927_v57  ;;  %v8249_v57 = vpack.i.bf16 %v11777_v14, %v11772_v63 }
 0x3df   : > { %8205 = vrot.lane.b32.xlu0 %v8204_v12, %s9696_s28  ;;  %8195 = vrot.lane.b32.xlu1 %v8194_v42, %s9694_s11 }
 0x3e1   : > { %v2685_v45 = vpop.permute.xlu0 %2684  ;;  %v11789_v44 = vld [vmem:[#allocation3 + $0xa7] sm:$0xff] }
 0x3e2   : > { %14823 = vst [vmem:[#allocation49_spill] sm:$0xff] %v11789_v44  ;;  %2771 = vst.msk [vmem:[#allocation3 + $0xc8] sm:$0xff] %vm2559_vm3, %v2685_v45  ;;  %v2835_v4 = vld [vmem:[#allocation3 + $0xa8] sm:$0xff] }
 0x3e3   : > { %8210 = vrot.lane.b32.xlu0 %v8194_v42, %s9692_s30  ;;  %4648 = vst.msk [vmem:[#allocation3 + $0xa0] sm:$0xff] %vm2559_vm3, %v14765_v55  ;;  %8200 = vrot.lane.b32.xlu1 %v8199_v51, %s9691_s27  ;;  %v2687_v25 = vpop.permute.xlu1 %2686  ;;  %v11796_v30 = vld [vmem:[#allocation3 + $0xaf] sm:$0xff] }
 0x3e4   : > { %14824 = vst [vmem:[#allocation59_spill] sm:$0xff] %v11796_v30  ;;  %v11798_v18 = vld [vmem:[#allocation3 + $0xa9] sm:$0xff]  ;;  %2772 = vst.msk [vmem:[#allocation3 + $0xd0] sm:$0xff] %vm2559_vm3, %v2687_v25  ;;  %v11801_v1 = vld [vmem:[#allocation3 + $0xb1] sm:$0xff]  ;;  %v8239_v25 = vpack.i.bf16 %v11770_v43, %v11763_v6 }
 0x3e5   : > { %v2836_v15 = vld [vmem:[#allocation3 + $0xb0] sm:$0xff]  ;;  %4649 = vst.msk [vmem:[#allocation3 + $0xa8] sm:$0xff] %vm2559_vm3, %v14765_v55  ;;  %4651 = vst.msk [vmem:[#allocation3 + $0xb8] sm:$0xff] %vm2559_vm3, %v14765_v55 }
 0x3e6   : > { %4650 = vst.msk [vmem:[#allocation3 + $0xb0] sm:$0xff] %vm2559_vm3, %v14765_v55  ;;  %v8264_v28 = vpack.i.bf16 %v2836_v15, %v2835_v4 }
 0x3e7   : > { %8215 = vrot.lane.b32.xlu0 %v8199_v51, %s9697_s26  ;;  %8225 = vrot.lane.b32.xlu1 %v8194_v42, %s9698_s12 }
 0x3e9   : > { %v2689_v45 = vpop.permute.xlu0 %2688  ;;  %v11813_v50 = vld [vmem:[#allocation3 + $0xc7] sm:$0xff] }
 0x3ea   : > { %v11815_v31 = vld [vmem:[#allocation3 + $0xc7] sm:$0xff]  ;;  %2773 = vst.msk [vmem:[#allocation3 + $0xe8] sm:$0xff] %vm2559_vm3, %v2689_v45 }
 0x3eb   : > { %14825 = vst [vmem:[#allocation69_spill] sm:$0xff] %v11815_v31  ;;  %8220 = vrot.lane.b32.xlu0 %v8204_v12, %s9693_s17  ;;  %4652 = vst.msk [vmem:[#allocation3 + $0xc0] sm:$0xff] %vm2559_vm3, %v14765_v55  ;;  %8240 = vrot.lane.b32.xlu1 %v8239_v25, %s9696_s28  ;;  %v2691_v51 = vpop.permute.xlu1 %2690  ;;  %v11822_v41 = vld [vmem:[#allocation3 + $0xcf] sm:$0xff] }
 0x3ec   : > { %v11824_v42 = vld [vmem:[#allocation3 + $0xc8] sm:$0xff]  ;;  %2774 = vst.msk [vmem:[#allocation3 + $0xf0] sm:$0xff] %vm2559_vm3, %v2691_v51  ;;  %v11833_v12 = vld [vmem:[#allocation3 + $0xd0] sm:$0xff] }
 0x3ed   : > { %v11827_v36 = vld [vmem:[#allocation3 + $0xc9] sm:$0xff]  ;;  %v11835_v0 = vld [vmem:[#allocation3 + $0xd1] sm:$0xff] }
 0x3ee   : > { %v11829_v24 = vld [vmem:[#allocation3 + $0xcf] sm:$0xff] }
 0x3ef   : > { %14826 = vst [vmem:[#allocation78_spill] sm:$0xff] %v11829_v24  ;;  %v11831_v45 = vld [vmem:[#allocation3 + $0xc9] sm:$0xff]  ;;  %v11837_v8 = vld [vmem:[#allocation3 + $0xd1] sm:$0xff]  ;;  %8230 = vrot.lane.b32.xlu0 %v8244_v56, %s9694_s11  ;;  %8245 = vrot.lane.b32.xlu1 %v8244_v56, %s9692_s30 }
 0x3f0   : > { %4653 = vst.msk [vmem:[#allocation3 + $0xc8] sm:$0xff] %vm2559_vm3, %v14765_v55  ;;  %4654 = vst.msk [vmem:[#allocation3 + $0xd0] sm:$0xff] %vm2559_vm3, %v14765_v55 }
 0x3f1   : > { %4655 = vst.msk [vmem:[#allocation3 + $0xd8] sm:$0xff] %vm2559_vm3, %v14765_v55  ;;  %v2693_v59 = vpop.permute.xlu0 %2692  ;;  %v11849_v51 = vld [vmem:[#allocation3 + $0xe7] sm:$0xff] }
 0x3f2   : > { %v11851_v23 = vld [vmem:[#allocation3 + $0xe7] sm:$0xff]  ;;  %2775 = vst.msk [vmem:[#allocation3 + $0x108] sm:$0xff] %vm2559_vm3, %v2693_v59 }
 0x3f3   : > { %14827 = vst [vmem:[#allocation40_spill] sm:$0xff] %v11851_v23  ;;  %8235 = vrot.lane.b32.xlu0 %v8249_v57, %s9691_s27  ;;  %4656 = vst.msk [vmem:[#allocation3 + $0xe0] sm:$0xff] %vm2559_vm3, %v14765_v55  ;;  %8250 = vrot.lane.b32.xlu1 %v8249_v57, %s9697_s26  ;;  %v2695_v10 = vpop.permute.xlu1 %2694  ;;  %v11858_v53 = vld [vmem:[#allocation3 + $0xef] sm:$0xff] }
 0x3f4   : > { %v11860_v47 = vld [vmem:[#allocation3 + $0xe8] sm:$0xff]  ;;  %2776 = vst.msk [vmem:[#allocation3 + $0x110] sm:$0xff] %vm2559_vm3, %v2695_v10  ;;  %v11869_v59 = vld [vmem:[#allocation3 + $0xf0] sm:$0xff]  ;;  %v8274_v10 = vpack.i.bf16 %v11796_v30, %v11789_v44 }
 0x3f5   : > { %v11863_v39 = vld [vmem:[#allocation3 + $0xe9] sm:$0xff]  ;;  %v11871_v62 = vld [vmem:[#allocation3 + $0xf1] sm:$0xff] }
 0x3f6   : > { %v11865_v20 = vld [vmem:[#allocation3 + $0xef] sm:$0xff] }
 0x3f7   : > { %14828 = vst [vmem:[#allocation50_spill] sm:$0xff] %v11865_v20  ;;  %v11867_v58 = vld [vmem:[#allocation3 + $0xe9] sm:$0xff]  ;;  %v11873_v13 = vld [vmem:[#allocation3 + $0xf1] sm:$0xff]  ;;  %8255 = vrot.lane.b32.xlu0 %v8239_v25, %s9693_s17  ;;  %8260 = vrot.lane.b32.xlu1 %v8244_v56, %s9698_s12 }
 0x3f8   : > { %14829 = vst [vmem:[#allocation60_spill] sm:$0xff] %v11867_v58  ;;  %14830 = vst [vmem:[#allocation70_spill] sm:$0xff] %v11873_v13 }
 0x3f9   : > { %4657 = vst.msk [vmem:[#allocation3 + $0xe8] sm:$0xff] %vm2559_vm3, %v14765_v55  ;;  %4658 = vst.msk [vmem:[#allocation3 + $0xf0] sm:$0xff] %vm2559_vm3, %v14765_v55  ;;  %v2697_v57 = vpop.permute.xlu0 %2696  ;;  %v11885_v49 = vld [vmem:[#allocation3 + $0x107] sm:$0xff] }
 0x3fa   : > { %4659 = vst.msk [vmem:[#allocation3 + $0xf8] sm:$0xff] %vm2559_vm3, %v14765_v55  ;;  %v11887_v60 = vld [vmem:[#allocation3 + $0x107] sm:$0xff]  ;;  %2777 = vst.msk [vmem:[#allocation3 + $0x128] sm:$0xff] %vm2559_vm3, %v2697_v57  ;;  %v8269_v57 = vpack.i.bf16 %v11801_v1, %v11798_v18 }
 0x3fb   : > { %14831 = vst [vmem:[#allocation79_spill] sm:$0xff] %v11887_v60  ;;  %8275 = vrot.lane.b32.xlu0 %v8274_v10, %s9696_s28  ;;  %4660 = vst.msk [vmem:[#allocation3 + $0x100] sm:$0xff] %vm2559_vm3, %v14765_v55  ;;  %8265 = vrot.lane.b32.xlu1 %v8264_v28, %s9694_s11  ;;  %v2699_v25 = vpop.permute.xlu1 %2698  ;;  %v11894_v56 = vld [vmem:[#allocation3 + $0x10f] sm:$0xff] }
 0x3fc   : > { %v11896_v54 = vld [vmem:[#allocation3 + $0x108] sm:$0xff]  ;;  %2778 = vst.msk [vmem:[#allocation3 + $0x130] sm:$0xff] %vm2559_vm3, %v2699_v25  ;;  %v11907_v61 = vld [vmem:[#allocation3 + $0x110] sm:$0xff] }
 0x3fd   : > { %v11899_v15 = vld [vmem:[#allocation3 + $0x109] sm:$0xff]  ;;  %v11909_v26 = vld [vmem:[#allocation3 + $0x111] sm:$0xff] }
 0x3fe   : > { %v11901_v4 = vld [vmem:[#allocation3 + $0x10f] sm:$0xff] }
 0x3ff   : > { %14832 = vst [vmem:[#allocation41_spill] sm:$0xff] %v11901_v4  ;;  %v11903_v17 = vld [vmem:[#allocation3 + $0x109] sm:$0xff]  ;;  %v11911_v9 = vld [vmem:[#allocation3 + $0x111] sm:$0xff]  ;;  %8280 = vrot.lane.b32.xlu0 %v8264_v28, %s9692_s30  ;;  %8270 = vrot.lane.b32.xlu1 %v8269_v57, %s9691_s27 }
 0x400   : > { %14833 = vst [vmem:[#allocation51_spill] sm:$0xff] %v11903_v17  ;;  %14834 = vst [vmem:[#allocation61_spill] sm:$0xff] %v11911_v9 }
 0x401   : > { %4661 = vst.msk [vmem:[#allocation3 + $0x108] sm:$0xff] %vm2559_vm3, %v14765_v55  ;;  %4662 = vst.msk [vmem:[#allocation3 + $0x110] sm:$0xff] %vm2559_vm3, %v14765_v55  ;;  %v2701_v25 = vpop.permute.xlu0 %2700  ;;  %v11921_v21 = vld [vmem:[#allocation3 + $0x127] sm:$0xff] }
 0x402   : > { %4663 = vst.msk [vmem:[#allocation3 + $0x118] sm:$0xff] %vm2559_vm3, %v14765_v55  ;;  %v11923_v2 = vld [vmem:[#allocation3 + $0x127] sm:$0xff]  ;;  %2779 = vst.msk [vmem:[#allocation3 + $0x148] sm:$0xff] %vm2559_vm3, %v2701_v25 }
 0x403   : > { %14835 = vst [vmem:[#allocation71_spill] sm:$0xff] %v11923_v2  ;;  %8285 = vrot.lane.b32.xlu0 %v8274_v10, %s9693_s17  ;;  %4664 = vst.msk [vmem:[#allocation3 + $0x120] sm:$0xff] %vm2559_vm3, %v14765_v55  ;;  %8290 = vrot.lane.b32.xlu1 %v8264_v28, %s9698_s12  ;;  %v2703_v35 = vpop.permute.xlu1 %2702  ;;  %v11930_v19 = vld [vmem:[#allocation3 + $0x12f] sm:$0xff]  ;;  %v8309_v10 = vpack.i.bf16 %v11822_v41, %v11813_v50  ;;  %v8314_v50 = vpack.i.bf16 %v11833_v12, %v11824_v42 }
 0x404   : > { %v11932_v37 = vld [vmem:[#allocation3 + $0x128] sm:$0xff]  ;;  %2780 = vst.msk [vmem:[#allocation3 + $0x150] sm:$0xff] %vm2559_vm3, %v2703_v35  ;;  %v11943_v25 = vld [vmem:[#allocation3 + $0x130] sm:$0xff]  ;;  %v8304_v42 = vpack.i.bf16 %v11835_v0, %v11827_v36 }
 0x405   : > { %v11935_v7 = vld [vmem:[#allocation3 + $0x129] sm:$0xff]  ;;  %v11945_v34 = vld [vmem:[#allocation3 + $0x131] sm:$0xff] }
 0x406   : > { %v11937_v27 = vld [vmem:[#allocation3 + $0x12f] sm:$0xff] }
 0x407   : > { %14836 = vst [vmem:[#allocation80_spill] sm:$0xff] %v11937_v27  ;;  %v11939_v48 = vld [vmem:[#allocation3 + $0x129] sm:$0xff]  ;;  %v11947_v28 = vld [vmem:[#allocation3 + $0x131] sm:$0xff]  ;;  %8295 = vrot.lane.b32.xlu0 %v8269_v57, %s9697_s26  ;;  %8310 = vrot.lane.b32.xlu1 %v8309_v10, %s9696_s28 }
 0x408   : > { %14837 = vst [vmem:[#allocation42_spill] sm:$0xff] %v11939_v48  ;;  %14838 = vst [vmem:[#allocation52_spill] sm:$0xff] %v11947_v28  ;;  %v8334_v28 = vpack.i.bf16 %v11869_v59, %v11860_v47 }
 0x409   : > { %4665 = vst.msk [vmem:[#allocation3 + $0x128] sm:$0xff] %vm2559_vm3, %v14765_v55  ;;  %4666 = vst.msk [vmem:[#allocation3 + $0x130] sm:$0xff] %vm2559_vm3, %v14765_v55  ;;  %v2705_v35 = vpop.permute.xlu0 %2704  ;;  %v11959_v41 = vld [vmem:[#allocation3 + $0x147] sm:$0xff] }
 0x40a   : > { %4667 = vst.msk [vmem:[#allocation3 + $0x138] sm:$0xff] %vm2559_vm3, %v14765_v55  ;;  %v11961_v27 = vld [vmem:[#allocation3 + $0x147] sm:$0xff]  ;;  %2781 = vst.msk [vmem:[#allocation3 + $0x168] sm:$0xff] %vm2559_vm3, %v2705_v35 }
 0x40b   : > { %14839 = vst [vmem:[#allocation62_spill] sm:$0xff] %v11961_v27  ;;  %8300 = vrot.lane.b32.xlu0 %v8314_v50, %s9694_s11  ;;  %4668 = vst.msk [vmem:[#allocation3 + $0x140] sm:$0xff] %vm2559_vm3, %v14765_v55  ;;  %8315 = vrot.lane.b32.xlu1 %v8314_v50, %s9692_s30  ;;  %v2707_v57 = vpop.permute.xlu1 %2706  ;;  %v11968_v2 = vld [vmem:[#allocation3 + $0x14f] sm:$0xff] }
 0x40c   : > { %v11970_v60 = vld [vmem:[#allocation3 + $0x148] sm:$0xff]  ;;  %2782 = vst.msk [vmem:[#allocation3 + $0x170] sm:$0xff] %vm2559_vm3, %v2707_v57  ;;  %v11981_v4 = vld [vmem:[#allocation3 + $0x150] sm:$0xff] }
 0x40d   : > { %v11975_v12 = vld [vmem:[#allocation3 + $0x149] sm:$0xff]  ;;  %v11983_v20 = vld [vmem:[#allocation3 + $0x151] sm:$0xff] }
 0x40e   : > { %v11977_v35 = vld [vmem:[#allocation3 + $0x14f] sm:$0xff] }
 0x40f   : > { %14840 = vst [vmem:[#allocation81_spill] sm:$0xff] %v11977_v35  ;;  %v11979_v27 = vld [vmem:[#allocation3 + $0x149] sm:$0xff]  ;;  %v11985_v23 = vld [vmem:[#allocation3 + $0x151] sm:$0xff]  ;;  %8305 = vrot.lane.b32.xlu0 %v8304_v42, %s9691_s27  ;;  %8320 = vrot.lane.b32.xlu1 %v8309_v10, %s9693_s17  ;;  %v8344_v10 = vpack.i.bf16 %v11858_v53, %v11849_v51  ;;  %v8339_v53 = vpack.i.bf16 %v11871_v62, %v11863_v39 }
 0x410   : > { %14841 = vst [vmem:[#allocation82_spill] sm:$0xff] %v11979_v27  ;;  %14842 = vst [vmem:[#allocation83_spill] sm:$0xff] %v11985_v23 }
 0x411   : > { %4669 = vst.msk [vmem:[#allocation3 + $0x148] sm:$0xff] %vm2559_vm3, %v14765_v55  ;;  %4670 = vst.msk [vmem:[#allocation3 + $0x150] sm:$0xff] %vm2559_vm3, %v14765_v55  ;;  %v2709_v0 = vpop.permute.xlu0 %2708  ;;  %v11995_v36 = vld [vmem:[#allocation3 + $0x167] sm:$0xff] }
 0x412   : > { %4671 = vst.msk [vmem:[#allocation3 + $0x158] sm:$0xff] %vm2559_vm3, %v14765_v55  ;;  %v11997_v57 = vld [vmem:[#allocation3 + $0x167] sm:$0xff]  ;;  %2783 = vst.msk [vmem:[#allocation3 + $0x188] sm:$0xff] %vm2559_vm3, %v2709_v0 }
 0x413   : > { %14843 = vst [vmem:[#allocation84_spill] sm:$0xff] %v11997_v57  ;;  %8325 = vrot.lane.b32.xlu0 %v8314_v50, %s9698_s12  ;;  %4672 = vst.msk [vmem:[#allocation3 + $0x160] sm:$0xff] %vm2559_vm3, %v14765_v55  ;;  %8330 = vrot.lane.b32.xlu1 %v8304_v42, %s9697_s26  ;;  %v2711_v35 = vpop.permute.xlu1 %2710  ;;  %v12004_v23 = vld [vmem:[#allocation3 + $0x16f] sm:$0xff] }
 0x414   : > { %v12006_v27 = vld [vmem:[#allocation3 + $0x168] sm:$0xff]  ;;  %2784 = vst.msk [vmem:[#allocation3 + $0x190] sm:$0xff] %vm2559_vm3, %v2711_v35  ;;  %v12019_v42 = vld [vmem:[#allocation3 + $0x170] sm:$0xff] }
 0x415   : > { %v12011_v57 = vld [vmem:[#allocation3 + $0x169] sm:$0xff]  ;;  %v12021_v48 = vld [vmem:[#allocation3 + $0x171] sm:$0xff] }
 0x416   : > { %v12013_v0 = vld [vmem:[#allocation3 + $0x16f] sm:$0xff] }
 0x417   : > { %14844 = vst [vmem:[#allocation85_spill] sm:$0xff] %v12013_v0  ;;  %v12015_v50 = vld [vmem:[#allocation3 + $0x169] sm:$0xff]  ;;  %v12023_v31 = vld [vmem:[#allocation3 + $0x171] sm:$0xff]  ;;  %8345 = vrot.lane.b32.xlu0 %v8344_v10, %s9696_s28  ;;  %8335 = vrot.lane.b32.xlu1 %v8334_v28, %s9694_s11 }
 0x418   : > { %14845 = vst [vmem:[#allocation86_spill] sm:$0xff] %v12015_v50  ;;  %14846 = vst [vmem:[#allocation87_spill] sm:$0xff] %v12023_v31 }
 0x419   : > { %4673 = vst.msk [vmem:[#allocation3 + $0x168] sm:$0xff] %vm2559_vm3, %v14765_v55  ;;  %4674 = vst.msk [vmem:[#allocation3 + $0x170] sm:$0xff] %vm2559_vm3, %v14765_v55  ;;  %v2713_v47 = vpop.permute.xlu0 %2712  ;;  %v12035_v51 = vld [vmem:[#allocation3 + $0x187] sm:$0xff] }
 0x41a   : > { %4675 = vst.msk [vmem:[#allocation3 + $0x178] sm:$0xff] %vm2559_vm3, %v14765_v55  ;;  %v12037_v59 = vld [vmem:[#allocation3 + $0x187] sm:$0xff]  ;;  %2785 = vst.msk [vmem:[#allocation3 + $0x1a8] sm:$0xff] %vm2559_vm3, %v2713_v47 }
 0x41b   : > { %14847 = vst [vmem:[#allocation88_spill] sm:$0xff] %v12037_v59  ;;  %8350 = vrot.lane.b32.xlu0 %v8334_v28, %s9692_s30  ;;  %4676 = vst.msk [vmem:[#allocation3 + $0x180] sm:$0xff] %vm2559_vm3, %v14765_v55  ;;  %8340 = vrot.lane.b32.xlu1 %v8339_v53, %s9691_s27  ;;  %v2715_v35 = vpop.permute.xlu1 %2714  ;;  %v12044_v0 = vld [vmem:[#allocation3 + $0x18f] sm:$0xff]  ;;  %v12064_v59 = vld [vmem:[#allocation3 + $0x227] sm:$0xff] }
 0x41c   : > { %v12046_v31 = vld [vmem:[#allocation3 + $0x188] sm:$0xff]  ;;  %v12048_v50 = vld [vmem:[#allocation3 + $0x190] sm:$0xff]  ;;  %2786 = vst.msk [vmem:[#allocation3 + $0x1b0] sm:$0xff] %vm2559_vm3, %v2715_v35  ;;  %14849 = vst [vmem:[#allocation90_spill] sm:$0xff] %v12064_v59 }
 0x41d   : > { %v12051_v62 = vld [vmem:[#allocation3 + $0x189] sm:$0xff]  ;;  %v12053_v39 = vld [vmem:[#allocation3 + $0x191] sm:$0xff]  ;;  %4696 = vst.msk [vmem:[#allocation3 + $0x220] sm:$0xff] %vm2559_vm3, %v14765_v55 }
 0x41e   : > { %v12055_v47 = vld [vmem:[#allocation3 + $0x18f] sm:$0xff]  ;;  %4679 = vst.msk [vmem:[#allocation3 + $0x198] sm:$0xff] %vm2559_vm3, %v14765_v55 }
 0x41f   : > { %14848 = vst [vmem:[#allocation89_spill] sm:$0xff] %v12055_v47  ;;  %4677 = vst.msk [vmem:[#allocation3 + $0x188] sm:$0xff] %vm2559_vm3, %v14765_v55  ;;  %8355 = vrot.lane.b32.xlu0 %v8344_v10, %s9693_s17  ;;  %8360 = vrot.lane.b32.xlu1 %v8334_v28, %s9698_s12  ;;  %v8379_v47 = vpack.i.bf16 %v11894_v56, %v11885_v49  ;;  %v8384_v49 = vpack.i.bf16 %v11907_v61, %v11896_v54 }
 0x420   : > { %4678 = vst.msk [vmem:[#allocation3 + $0x190] sm:$0xff] %vm2559_vm3, %v14765_v55  ;;  %v8374_v61 = vpack.i.bf16 %v11909_v26, %v11899_v15 }
 0x421   : > { %v2717_v35 = vpop.permute.xlu0 %2716  ;;  %v12071_v24 = vld [vmem:[#allocation3 + $0x1a7] sm:$0xff] }
 0x422   : > { %2787 = vst.msk [vmem:[#allocation3 + $0x1c8] sm:$0xff] %vm2559_vm3, %v2717_v35  ;;  %v2851_v9 = vld [vmem:[#allocation3 + $0x1a8] sm:$0xff]  ;;  %4680 = vst.msk [vmem:[#allocation3 + $0x1a0] sm:$0xff] %vm2559_vm3, %v14765_v55 }
 0x423   : > { %8365 = vrot.lane.b32.xlu0 %v8339_v53, %s9697_s26  ;;  %8380 = vrot.lane.b32.xlu1 %v8379_v47, %s9696_s28  ;;  %v2719_v28 = vpop.permute.xlu1 %2718  ;;  %v12078_v10 = vld [vmem:[#allocation3 + $0x1af] sm:$0xff] }
 0x424   : > { %v2852_v59 = vld [vmem:[#allocation3 + $0x1b0] sm:$0xff]  ;;  %2788 = vst.msk [vmem:[#allocation3 + $0x1d0] sm:$0xff] %vm2559_vm3, %v2719_v28 }
 0x425   : > { %v12080_v17 = vld [vmem:[#allocation3 + $0x1a9] sm:$0xff]  ;;  %v12085_v56 = vpack.i.bf16 %v2852_v59, %v2851_v9  ;;  %v12087_v53 = vld [vmem:[#allocation3 + $0x1b1] sm:$0xff] }
 0x426   : > { %4681 = vst.msk [vmem:[#allocation3 + $0x1a8] sm:$0xff] %vm2559_vm3, %v14765_v55  ;;  %4682 = vst.msk [vmem:[#allocation3 + $0x1b0] sm:$0xff] %vm2559_vm3, %v14765_v55 }
 0x427   : > { %4683 = vst.msk [vmem:[#allocation3 + $0x1b8] sm:$0xff] %vm2559_vm3, %v14765_v55  ;;  %8370 = vrot.lane.b32.xlu0 %v8384_v49, %s9694_s11  ;;  %8385 = vrot.lane.b32.xlu1 %v8384_v49, %s9692_s30 }
 0x429   : > { %v2721_v9 = vpop.permute.xlu0 %2720  ;;  %v12099_v54 = vld [vmem:[#allocation3 + $0x1c7] sm:$0xff] }
 0x42a   : > { %2789 = vst.msk [vmem:[#allocation3 + $0x1e8] sm:$0xff] %vm2559_vm3, %v2721_v9  ;;  %v2947_v59 = vld [vmem:[#allocation3 + $0x1c8] sm:$0xff]  ;;  %4684 = vst.msk [vmem:[#allocation3 + $0x1c0] sm:$0xff] %vm2559_vm3, %v14765_v55  ;;  %v8404_v9 = vpack.i.bf16 %v11943_v25, %v11932_v37  ;;  %v8409_v25 = vpack.i.bf16 %v11945_v34, %v11935_v7 }
 0x42b   : > { %8375 = vrot.lane.b32.xlu0 %v8374_v61, %s9691_s27  ;;  %8390 = vrot.lane.b32.xlu1 %v8379_v47, %s9693_s17  ;;  %v2723_v35 = vpop.permute.xlu1 %2722  ;;  %v12106_v28 = vld [vmem:[#allocation3 + $0x1cf] sm:$0xff]  ;;  %v8414_v47 = vpack.i.bf16 %v11930_v19, %v11921_v21 }
 0x42c   : > { %v2948_v30 = vld [vmem:[#allocation3 + $0x1d0] sm:$0xff]  ;;  %2790 = vst.msk [vmem:[#allocation3 + $0x1f0] sm:$0xff] %vm2559_vm3, %v2723_v35 }
 0x42d   : > { %v12108_v44 = vld [vmem:[#allocation3 + $0x1c9] sm:$0xff]  ;;  %v12111_v26 = vpack.i.bf16 %v2948_v30, %v2947_v59  ;;  %v12113_v15 = vld [vmem:[#allocation3 + $0x1d1] sm:$0xff] }
 0x42e   : > { %4685 = vst.msk [vmem:[#allocation3 + $0x1c8] sm:$0xff] %vm2559_vm3, %v14765_v55  ;;  %4686 = vst.msk [vmem:[#allocation3 + $0x1d0] sm:$0xff] %vm2559_vm3, %v14765_v55 }
 0x42f   : > { %4687 = vst.msk [vmem:[#allocation3 + $0x1d8] sm:$0xff] %vm2559_vm3, %v14765_v55  ;;  %8395 = vrot.lane.b32.xlu0 %v8384_v49, %s9698_s12  ;;  %8400 = vrot.lane.b32.xlu1 %v8374_v61, %s9697_s26 }
 0x431   : > { %v2725_v30 = vpop.permute.xlu0 %2724  ;;  %v12127_v59 = vld [vmem:[#allocation3 + $0x1e7] sm:$0xff] }
 0x432   : > { %14850 = vst [vmem:[#allocation91_spill] sm:$0xff] %v12127_v59  ;;  %2791 = vst.msk [vmem:[#allocation3 + $0x208] sm:$0xff] %vm2559_vm3, %v2725_v30  ;;  %v2855_v35 = vld [vmem:[#allocation3 + $0x1e8] sm:$0xff] }
 0x433   : > { %8415 = vrot.lane.b32.xlu0 %v8414_v47, %s9696_s28  ;;  %4688 = vst.msk [vmem:[#allocation3 + $0x1e0] sm:$0xff] %vm2559_vm3, %v14765_v55  ;;  %8405 = vrot.lane.b32.xlu1 %v8404_v9, %s9694_s11  ;;  %v2727_v49 = vpop.permute.xlu1 %2726  ;;  %v2856_v61 = vld [vmem:[#allocation3 + $0x1f0] sm:$0xff] }
 0x434   : > { %v12134_v13 = vld [vmem:[#allocation3 + $0x1ef] sm:$0xff]  ;;  %2792 = vst.msk [vmem:[#allocation3 + $0x210] sm:$0xff] %vm2559_vm3, %v2727_v49  ;;  %v12139_v37 = vpack.i.bf16 %v2856_v61, %v2855_v35 }
 0x435   : > { %14851 = vst [vmem:[#allocation92_spill] sm:$0xff] %v12134_v13  ;;  %v12136_v19 = vld [vmem:[#allocation3 + $0x1e9] sm:$0xff]  ;;  %v12141_v21 = vld [vmem:[#allocation3 + $0x1f1] sm:$0xff] }
 0x436   : > { %14852 = vst [vmem:[#allocation93_spill] sm:$0xff] %v12136_v19  ;;  %14853 = vst [vmem:[#allocation94_spill] sm:$0xff] %v12139_v37 }
 0x437   : > { %14854 = vst [vmem:[#allocation95_spill] sm:$0xff] %v12141_v21  ;;  %4689 = vst.msk [vmem:[#allocation3 + $0x1e8] sm:$0xff] %vm2559_vm3, %v14765_v55  ;;  %8420 = vrot.lane.b32.xlu0 %v8404_v9, %s9692_s30  ;;  %8410 = vrot.lane.b32.xlu1 %v8409_v25, %s9691_s27 }
 0x438   : > { %4690 = vst.msk [vmem:[#allocation3 + $0x1f0] sm:$0xff] %vm2559_vm3, %v14765_v55  ;;  %4691 = vst.msk [vmem:[#allocation3 + $0x1f8] sm:$0xff] %vm2559_vm3, %v14765_v55  ;;  %v12153_v30 = vpop.permute.xlu1 %8135 }
 0x439   : > { %v8146_v35 = vpop.permute.xlu0 %8145  ;;  %v12155_v49 = vld [vmem:[#allocation3 + $0x207] sm:$0xff] }
 0x43a   : > { %14855 = vst [vmem:[#allocation96_spill] sm:$0xff] %v12155_v49  ;;  %v2951_v61 = vld [vmem:[#allocation3 + $0x208] sm:$0xff]  ;;  %4692 = vst.msk [vmem:[#allocation3 + $0x200] sm:$0xff] %vm2559_vm3, %v14765_v55 }
 0x43b   : > { %8425 = vrot.lane.b32.xlu0 %v8414_v47, %s9693_s17  ;;  %8430 = vrot.lane.b32.xlu1 %v8404_v9, %s9698_s12  ;;  %v12161_v34 = vld [vmem:[#allocation3 + $0x20f] sm:$0xff]  ;;  %v8449_v47 = vpack.i.bf16 %v11968_v2, %v11959_v41  ;;  %v8128_v2 = vunpack.i.h.bf16 %v11642_v3  ;;  %v8127_v41 = vunpack.i.l.bf16 %v11642_v3 }
 0x43c   : > { %14856 = vst [vmem:[#allocation97_spill] sm:$0xff] %v12161_v34  ;;  %v2952_v7 = vld [vmem:[#allocation3 + $0x210] sm:$0xff]  ;;  %v12165_v21 = vpop.permute.xlu1 %8140  ;;  %v8147_v34 = vunpack.i.l.bf16 %v8146_v35 }
 0x43d   : > { %v12163_v58 = vld [vmem:[#allocation3 + $0x209] sm:$0xff]  ;;  %v8151_v19 = vpop.permute.xlu0 %8150  ;;  %v12167_v37 = vpack.i.bf16 %v2952_v7, %v2951_v61  ;;  %v12169_v13 = vld [vmem:[#allocation3 + $0x211] sm:$0xff]  ;;  %v8454_v61 = vpack.i.bf16 %v11981_v4, %v11970_v60  ;;  %v8133_v60 = vunpack.i.h.bf16 %v11661_v32  ;;  %v8132_v4 = vunpack.i.l.bf16 %v11661_v32 }
 0x43e   : > { %14857 = vst [vmem:[#allocation98_spill] sm:$0xff] %v12163_v58  ;;  %14859 = vst [vmem:[#allocation100_spill] sm:$0xff] %v12169_v13  ;;  %v3978_v3 = vsel %vm2559_vm3, %v11383_v38, %v8127_v41 }
 0x43f   : > { %14858 = vst [vmem:[#allocation99_spill] sm:$0xff] %v12167_v37  ;;  %4693 = vst.msk [vmem:[#allocation3 + $0x208] sm:$0xff] %vm2559_vm3, %v14765_v55  ;;  %8435 = vrot.lane.b32.xlu0 %v8409_v25, %s9697_s26  ;;  %8450 = vrot.lane.b32.xlu1 %v8449_v47, %s9696_s28  ;;  %v8444_v25 = vpack.i.bf16 %v11983_v20, %v11975_v12  ;;  %v8148_v37 = vunpack.i.h.bf16 %v8146_v35  ;;  %v8153_v20 = vunpack.i.h.bf16 %v8151_v19  ;;  %v8152_v12 = vunpack.i.l.bf16 %v8151_v19 }
 0x440   : > { %4694 = vst.msk [vmem:[#allocation3 + $0x210] sm:$0xff] %vm2559_vm3, %v14765_v55  ;;  %4695 = vst.msk [vmem:[#allocation3 + $0x218] sm:$0xff] %vm2559_vm3, %v14765_v55  ;;  %v3979_v55 = vsel %vm2559_vm3, %v11385_v33, %v8128_v2  ;;  %v4010_v32 = vsel %vm530_vm0, %v3978_v3, %v8132_v4  ;;  %v8484_v19 = vpack.i.bf16 %v12004_v23, %v11995_v36 }
 0x441   : > { %v8156_v9 = vpop.permute.xlu0 %8155  ;;  %v12183_v7 = vpop.permute.xlu1 %8170  ;;  %v4011_v33 = vsel %vm530_vm0, %v3979_v55, %v8133_v60  ;;  %v4043_v35 = vsel %vm4042_vm4, %v4010_v32, %v8147_v34 }
 0x442   : > { %v8158_v6 = vunpack.i.h.bf16 %v8156_v9  ;;  %v8157_v43 = vunpack.i.l.bf16 %v8156_v9  ;;  %v4044_v38 = vsel %vm4042_vm4, %v4011_v33, %v8148_v37  ;;  %v8474_v9 = vpack.i.bf16 %v12019_v42, %v12006_v27 }
 0x443   : > { %8440 = vrot.lane.b32.xlu0 %v8454_v61, %s9694_s11  ;;  %8455 = vrot.lane.b32.xlu1 %v8454_v61, %s9692_s30  ;;  %v4076_v2 = vsel %vm1725_vm1, %v4044_v38, %v8153_v20  ;;  %v8138_v38 = vunpack.i.h.bf16 %v12153_v30 }
 0x444   : > { %v4109_v37 = vsel %vm4107_vm5, %v4076_v2, %v8158_v6  ;;  %v8479_v6 = vpack.i.bf16 %v12021_v48, %v12011_v57  ;;  %v8143_v48 = vunpack.i.h.bf16 %v12165_v21  ;;  %v8142_v57 = vunpack.i.l.bf16 %v12165_v21 }
 0x445   : > { %v12189_v13 = vpop.permute.xlu0 %8160  ;;  %v12193_v58 = vpop.permute.xlu1 %8175 }
 0x446   : > { %v8177_v2 = vunpack.i.l.bf16 %v12193_v58 }
 0x447   : > { %8445 = vrot.lane.b32.xlu0 %v8444_v25, %s9691_s27  ;;  %8460 = vrot.lane.b32.xlu1 %v8449_v47, %s9693_s17 }
 0x449   : > { %v12203_v49 = vpop.permute.xlu0 %8165  ;;  %v12205_v59 = vpop.permute.xlu1 %8180 }
 0x44b   : > { %8465 = vrot.lane.b32.xlu0 %v8454_v61, %s9698_s12  ;;  %8470 = vrot.lane.b32.xlu1 %v8444_v25, %s9697_s26  ;;  %v4075_v61 = vsel %vm1725_vm1, %v4043_v35, %v8152_v12  ;;  %v4208_v12 = vpack.c.bf16 %v11752_v16, %v11749_v46  ;;  %v8137_v35 = vunpack.i.l.bf16 %v12153_v30  ;;  %v8173_v16 = vunpack.i.h.bf16 %v12183_v7 }
 0x44c   : > { %v4108_v25 = vsel %vm4107_vm5, %v4075_v61, %v8157_v43  ;;  %v8172_v46 = vunpack.i.l.bf16 %v12183_v7  ;;  %v8178_v61 = vunpack.i.h.bf16 %v12193_v58  ;;  %v8519_v30 = vpack.i.bf16 %v12044_v0, %v12035_v51 }
 0x44d   : > { %v8186_v47 = vpop.permute.xlu0 %8185  ;;  %v8191_v55 = vpop.permute.xlu1 %8190  ;;  %v3980_v21 = vsel %vm2559_vm3, %v11697_v11, %v8137_v35  ;;  %v8182_v7 = vunpack.i.l.bf16 %v12205_v59  ;;  %v8524_v11 = vpack.i.bf16 %v12048_v50, %v12046_v31 }
 0x44e   : > { %v8188_v41 = vunpack.i.h.bf16 %v8186_v47  ;;  %v8187_v60 = vunpack.i.l.bf16 %v8186_v47  ;;  %v8193_v4 = vunpack.i.h.bf16 %v8191_v55  ;;  %v8192_v34 = vunpack.i.l.bf16 %v8191_v55 }
 0x44f   : > { %8485 = vrot.lane.b32.xlu0 %v8484_v19, %s9696_s28  ;;  %8475 = vrot.lane.b32.xlu1 %v8474_v9, %s9694_s11 }
 0x450   : > { %v4140_v23 = vsel %vm1758_vm2, %v4108_v25, %v8187_v60  ;;  %v4141_v36 = vsel %vm1758_vm2, %v4109_v37, %v8188_v41  ;;  %v4012_v41 = vsel %vm530_vm0, %v3980_v21, %v8142_v57  ;;  %v8162_v57 = vunpack.i.l.bf16 %v12189_v13 }
 0x451   : > { %v4173_v27 = vsel %vm4172_vm6, %v4140_v23, %v8192_v34  ;;  %v4174_v42 = vsel %vm4172_vm6, %v4141_v36, %v8193_v4  ;;  %v12227_v3 = vpop.permute.xlu0 %8205  ;;  %v12229_v43 = vpop.permute.xlu1 %8195  ;;  %v4045_v51 = vsel %vm4042_vm4, %v4012_v41, %v8172_v46  ;;  %v8168_v46 = vunpack.i.h.bf16 %v12203_v49 }
 0x452   : > { %v4205_v20 = vpack.c.bf16 %v4174_v42, %v4173_v27  ;;  %v4077_v60 = vsel %vm1725_vm1, %v4045_v51, %v8177_v2  ;;  %v8208_v2 = vunpack.i.h.bf16 %v12227_v3 }
 0x453   : > { %8490 = vrot.lane.b32.xlu0 %v8474_v9, %s9692_s30  ;;  %8480 = vrot.lane.b32.xlu1 %v8479_v6, %s9691_s27  ;;  %v4110_v34 = vsel %vm4107_vm5, %v4077_v60, %v8182_v7 }
 0x454   : > { %4390 = vmatmul.mubr.bf16.vlgmr.msra.gmra.mrb[32].mxu1 %v4205_v20  ;;  %v8514_v20 = vpack.i.bf16 %v12053_v39, %v12051_v62 }
 0x455   : > { %v12237_v32 = vpop.permute.xlu0 %8210  ;;  %7257 = vmatprep.mubr.msk.bf16.mxu1 %vm2559_vm3, %v4208_v12  ;;  %v12240_v33 = vpop.permute.xlu1 %8200 }
 0x456   : > { %v8212_v21 = vunpack.i.l.bf16 %v12237_v32 }
 0x457   : > { %8495 = vrot.lane.b32.xlu0 %v8484_v19, %s9693_s17  ;;  %8500 = vrot.lane.b32.xlu1 %v8474_v9, %s9698_s12  ;;  %v3981_v19 = vsel %vm2559_vm3, %v11703_v22, %v8138_v38  ;;  %v8183_v9 = vunpack.i.h.bf16 %v12205_v59 }
 0x458   : > { %v4013_v58 = vsel %vm530_vm0, %v3981_v19, %v8143_v48  ;;  %v8163_v48 = vunpack.i.h.bf16 %v12189_v13  ;;  %v8213_v13 = vunpack.i.h.bf16 %v12237_v32 }
 0x459   : > { %v12250_v47 = vpop.permute.xlu0 %8215  ;;  %v8226_v55 = vpop.permute.xlu1 %8225  ;;  %v4046_v0 = vsel %vm4042_vm4, %v4013_v58, %v8173_v16  ;;  %v4210_v16 = vpack.c.bf16 %v11777_v14, %v11772_v63 }
 0x45a   : > { %v4078_v59 = vsel %vm1725_vm1, %v4046_v0, %v8178_v61  ;;  %v8228_v36 = vunpack.i.h.bf16 %v8226_v55  ;;  %v8227_v27 = vunpack.i.l.bf16 %v8226_v55  ;;  %v8167_v61 = vunpack.i.l.bf16 %v12203_v49 }
 0x45b   : > { %8505 = vrot.lane.b32.xlu0 %v8479_v6, %s9697_s26  ;;  %8520 = vrot.lane.b32.xlu1 %v8519_v30, %s9696_s28  ;;  %v4111_v23 = vsel %vm4107_vm5, %v4078_v59, %v8183_v9  ;;  %v8207_v55 = vunpack.i.l.bf16 %v12227_v3  ;;  %v3983_v63 = vsel %vm2559_vm3, %v11724_v40, %v8163_v48  ;;  %v3982_v49 = vsel %vm2559_vm3, %v11717_v52, %v8162_v57 }
 0x45c   : > { %v8217_v3 = vunpack.i.l.bf16 %v12250_v47  ;;  %v4014_v9 = vsel %vm530_vm0, %v3982_v49, %v8167_v61  ;;  %v4015_v7 = vsel %vm530_vm0, %v3983_v63, %v8168_v46  ;;  %v8554_v52 = vpack.i.bf16 %v12078_v10, %v12071_v24 }
 0x45d   : > { %v8221_v22 = vpop.permute.xlu0 %8220  ;;  %v12272_v25 = vpop.permute.xlu1 %8240  ;;  %v4047_v32 = vsel %vm4042_vm4, %v4014_v9, %v8207_v55  ;;  %v4048_v41 = vsel %vm4042_vm4, %v4015_v7, %v8208_v2  ;;  %v8203_v48 = vunpack.i.h.bf16 %v12240_v33  ;;  %v8202_v57 = vunpack.i.l.bf16 %v12240_v33 }
 0x45e   : > { %v8223_v37 = vunpack.i.h.bf16 %v8221_v22  ;;  %v8222_v4 = vunpack.i.l.bf16 %v8221_v22  ;;  %v4079_v58 = vsel %vm1725_vm1, %v4047_v32, %v8212_v21  ;;  %v8242_v46 = vunpack.i.l.bf16 %v12272_v25 }
 0x45f   : > { %8510 = vrot.lane.b32.xlu0 %v8524_v11, %s9694_s11  ;;  %8525 = vrot.lane.b32.xlu1 %v8524_v11, %s9692_s30 }
 0x460   : > { %v4142_v31 = vsel %vm1758_vm2, %v4110_v34, %v8222_v4  ;;  %v4143_v50 = vsel %vm1758_vm2, %v4111_v23, %v8223_v37 }
 0x461   : > { %v12280_v42 = vpop.permute.xlu0 %8230  ;;  %v4175_v6 = vsel %vm4172_vm6, %v4142_v31, %v8227_v27  ;;  %v4176_v12 = vsel %vm4172_vm6, %v4143_v50, %v8228_v36  ;;  %v12286_v38 = vpop.permute.xlu1 %8245  ;;  %v8549_v50 = vpack.i.bf16 %v12087_v53, %v12080_v17 }
 0x462   : > { %v4207_v35 = vpack.c.bf16 %v4176_v12, %v4175_v6  ;;  %v8198_v6 = vunpack.i.h.bf16 %v12229_v43  ;;  %v8197_v12 = vunpack.i.l.bf16 %v12229_v43  ;;  %v8248_v43 = vunpack.i.h.bf16 %v12286_v38 }
 0x463   : > { %8515 = vrot.lane.b32.xlu0 %v8514_v20, %s9691_s27  ;;  %8530 = vrot.lane.b32.xlu1 %v8519_v30, %s9693_s17  ;;  %v8218_v30 = vunpack.i.h.bf16 %v12250_v47  ;;  %v4080_v47 = vsel %vm1725_vm1, %v4048_v41, %v8213_v13  ;;  %v8247_v2 = vunpack.i.l.bf16 %v12286_v38 }
 0x464   : > { %4398 = vmatmul.mubr.bf16.gmra.mrb[36].mxu1 %v4207_v35  ;;  %v4212_v35 = vpack.c.bf16 %v11801_v1, %v11798_v18  ;;  %v3984_v18 = vsel %vm2559_vm3, %v11740_v29, %v8197_v12  ;;  %v3985_v33 = vsel %vm2559_vm3, %v11747_v5, %v8198_v6  ;;  %v8589_v5 = vpack.i.bf16 %v12106_v28, %v12099_v54 }
 0x465   : > { %v12298_v19 = vpop.permute.xlu0 %8235  ;;  %7258 = vmatprep.mubr.msk.bf16.mxu1 %vm2559_vm3, %v4210_v16  ;;  %v12303_v14 = vpop.permute.xlu1 %8250  ;;  %v4113_v60 = vsel %vm4107_vm5, %v4080_v47, %v8218_v30  ;;  %v8243_v16 = vunpack.i.h.bf16 %v12272_v25  ;;  %v4016_v13 = vsel %vm530_vm0, %v3984_v18, %v8202_v57  ;;  %v4017_v21 = vsel %vm530_vm0, %v3985_v33, %v8203_v48 }
 0x466   : > { %v8253_v55 = vunpack.i.h.bf16 %v12303_v14  ;;  %v8252_v25 = vunpack.i.l.bf16 %v12303_v14  ;;  %v4049_v29 = vsel %vm4042_vm4, %v4016_v13, %v8242_v46  ;;  %v14862_v13 = vld [vmem:[#allocation91_spill] sm:$0xff] }
 0x467   : > { %8535 = vrot.lane.b32.xlu0 %v8524_v11, %s9698_s12  ;;  %8540 = vrot.lane.b32.xlu1 %v8514_v20, %s9697_s26  ;;  %v4112_v11 = vsel %vm4107_vm5, %v4079_v58, %v8217_v3  ;;  %v4050_v38 = vsel %vm4042_vm4, %v4017_v21, %v8243_v16  ;;  %v4081_v49 = vsel %vm1725_vm1, %v4049_v29, %v8247_v2  ;;  %v14863_v21 = vld [vmem:[#allocation92_spill] sm:$0xff] }
 0x468   : > { %v4082_v14 = vsel %vm1725_vm1, %v4050_v38, %v8248_v43  ;;  %v4114_v7 = vsel %vm4107_vm5, %v4081_v49, %v8252_v25  ;;  %v8624_v38 = vpack.i.bf16 %v14863_v21, %v14862_v13 }
 0x469   : > { %v8256_v40 = vpop.permute.xlu0 %8255  ;;  %v8261_v0 = vpop.permute.xlu1 %8260  ;;  %v4115_v32 = vsel %vm4107_vm5, %v4082_v14, %v8253_v55 }
 0x46a   : > { %v8258_v51 = vunpack.i.h.bf16 %v8256_v40  ;;  %v8257_v22 = vunpack.i.l.bf16 %v8256_v40  ;;  %v8263_v59 = vunpack.i.h.bf16 %v8261_v0  ;;  %v8262_v37 = vunpack.i.l.bf16 %v8261_v0 }
 0x46b   : > { %8555 = vrot.lane.b32.xlu0 %v8554_v52, %s9696_s28  ;;  %8545 = vrot.lane.b32.xlu1 %v12085_v56, %s9694_s11 }
 0x46c   : > { %v4144_v4 = vsel %vm1758_vm2, %v4112_v11, %v8257_v22  ;;  %v4145_v34 = vsel %vm1758_vm2, %v4113_v60, %v8258_v51  ;;  %v4214_v11 = vpack.c.bf16 %v11837_v8, %v11831_v45  ;;  %v8237_v8 = vunpack.i.l.bf16 %v12298_v19 }
 0x46d   : > { %v12328_v23 = vpop.permute.xlu0 %8275  ;;  %v4177_v36 = vsel %vm4172_vm6, %v4144_v4, %v8262_v37  ;;  %v4178_v27 = vsel %vm4172_vm6, %v4145_v34, %v8263_v59  ;;  %v12332_v31 = vpop.permute.xlu1 %8265  ;;  %v8584_v59 = vpack.i.bf16 %v12113_v15, %v12108_v44  ;;  %v8233_v37 = vunpack.i.h.bf16 %v12280_v42 }
 0x46e   : > { %v4209_v20 = vpack.c.bf16 %v4178_v27, %v4177_v36  ;;  %v8232_v4 = vunpack.i.l.bf16 %v12280_v42  ;;  %v8238_v36 = vunpack.i.h.bf16 %v12298_v19  ;;  %v8278_v45 = vunpack.i.h.bf16 %v12328_v23  ;;  %v14860_v42 = vld [vmem:[#allocation39_spill] sm:$0xff] }
 0x46f   : > { %8560 = vrot.lane.b32.xlu0 %v12085_v56, %s9692_s30  ;;  %8550 = vrot.lane.b32.xlu1 %v8549_v50, %s9691_s27  ;;  %v8277_v27 = vunpack.i.l.bf16 %v12328_v23  ;;  %v3987_v12 = vsel %vm2559_vm3, %v14860_v42, %v8233_v37 }
 0x470   : > { %4406 = vmatmul.mubr.bf16.gmra.mrb[40].mxu1 %v4209_v20  ;;  %v4019_v23 = vsel %vm530_vm0, %v3987_v12, %v8238_v36 }
 0x471   : > { %v12347_v61 = vpop.permute.xlu0 %8280  ;;  %7259 = vmatprep.mubr.msk.bf16.mxu1 %vm2559_vm3, %v4212_v35  ;;  %v12352_v1 = vpop.permute.xlu1 %8270  ;;  %v14861_v35 = vld [vmem:[#allocation77_spill] sm:$0xff]  ;;  %v4052_v18 = vsel %vm4042_vm4, %v4019_v23, %v8278_v45 }
 0x472   : > { %v8282_v20 = vunpack.i.l.bf16 %v12347_v61  ;;  %v3986_v19 = vsel %vm2559_vm3, %v14861_v35, %v8232_v4  ;;  %v8273_v37 = vunpack.i.h.bf16 %v12352_v1  ;;  %v8272_v4 = vunpack.i.l.bf16 %v12352_v1  ;;  %v14870_v1 = vld [vmem:[#allocation59_spill] sm:$0xff]  ;;  %v14872_v23 = vld [vmem:[#allocation97_spill] sm:$0xff] }
 0x473   : > { %8565 = vrot.lane.b32.xlu0 %v8554_v52, %s9693_s17  ;;  %8570 = vrot.lane.b32.xlu1 %v12085_v56, %s9698_s12  ;;  %v4018_v46 = vsel %vm530_vm0, %v3986_v19, %v8237_v8 }
 0x475   : > { %v8286_v63 = vpop.permute.xlu0 %8285  ;;  %v8291_v30 = vpop.permute.xlu1 %8290 }
 0x476   : > { %v8288_v3 = vunpack.i.h.bf16 %v8286_v63  ;;  %v8287_v9 = vunpack.i.l.bf16 %v8286_v63  ;;  %v8293_v56 = vunpack.i.h.bf16 %v8291_v30  ;;  %v8292_v41 = vunpack.i.l.bf16 %v8291_v30 }
 0x477   : > { %8575 = vrot.lane.b32.xlu0 %v8549_v50, %s9697_s26  ;;  %8590 = vrot.lane.b32.xlu1 %v8589_v5, %s9696_s28  ;;  %v8283_v50 = vunpack.i.h.bf16 %v12347_v61  ;;  %v4051_v61 = vsel %vm4042_vm4, %v4018_v46, %v8277_v27  ;;  %v14871_v46 = vld [vmem:[#allocation96_spill] sm:$0xff] }
 0x478   : > { %v4146_v40 = vsel %vm1758_vm2, %v4114_v7, %v8287_v9  ;;  %v4147_v52 = vsel %vm1758_vm2, %v4115_v32, %v8288_v3  ;;  %v4083_v33 = vsel %vm1725_vm1, %v4051_v61, %v8282_v20  ;;  %v14864_v3 = vld [vmem:[#allocation94_spill] sm:$0xff]  ;;  %v14869_v20 = vld [vmem:[#allocation49_spill] sm:$0xff] }
 0x479   : > { %v8296_v58 = vpop.permute.xlu0 %8295  ;;  %v4179_v47 = vsel %vm4172_vm6, %v4146_v40, %v8292_v41  ;;  %v4180_v0 = vsel %vm4172_vm6, %v4147_v52, %v8293_v56  ;;  %v12379_v51 = vpop.permute.xlu1 %8310  ;;  %v4084_v55 = vsel %vm1725_vm1, %v4052_v18, %v8283_v50  ;;  %v14865_v40 = vld [vmem:[#allocation93_spill] sm:$0xff]  ;;  %v14866_v52 = vld [vmem:[#allocation95_spill] sm:$0xff] }
 0x47a   : > { %v4211_v22 = vpack.c.bf16 %v4180_v0, %v4179_v47  ;;  %v8298_v48 = vunpack.i.h.bf16 %v8296_v58  ;;  %v8297_v57 = vunpack.i.l.bf16 %v8296_v58  ;;  %v8619_v58 = vpack.i.bf16 %v14866_v52, %v14865_v40  ;;  %v14867_v47 = vld [vmem:[#allocation60_spill] sm:$0xff]  ;;  %v14868_v0 = vld [vmem:[#allocation70_spill] sm:$0xff] }
 0x47b   : > { %8580 = vrot.lane.b32.xlu0 %v12111_v26, %s9694_s11  ;;  %8595 = vrot.lane.b32.xlu1 %v12111_v26, %s9692_s30  ;;  %v8313_v36 = vunpack.i.h.bf16 %v12379_v51  ;;  %v8312_v8 = vunpack.i.l.bf16 %v12379_v51 }
 0x47c   : > { %4414 = vmatmul.mubr.bf16.gmra.mrb[44].mxu1 %v4211_v22  ;;  %v4116_v29 = vsel %vm4107_vm5, %v4083_v33, %v8297_v57  ;;  %v4117_v63 = vsel %vm4107_vm5, %v4084_v55, %v8298_v48  ;;  %v4216_v22 = vpack.c.bf16 %v14868_v0, %v14867_v47  ;;  %v14873_v47 = vld [vmem:[#allocation99_spill] sm:$0xff]  ;;  %v14875_v0 = vld [vmem:[#allocation61_spill] sm:$0xff] }
 0x47d   : > { %v12387_v60 = vpop.permute.xlu0 %8300  ;;  %7260 = vmatprep.mubr.msk.bf16.mxu1 %vm2559_vm3, %v4214_v11  ;;  %v12394_v34 = vpop.permute.xlu1 %8315  ;;  %v8268_v11 = vunpack.i.h.bf16 %v12332_v31 }
 0x47e   : > { %v8317_v27 = vunpack.i.l.bf16 %v12394_v34 }
 0x47f   : > { %8585 = vrot.lane.b32.xlu0 %v8584_v59, %s9691_s27  ;;  %8600 = vrot.lane.b32.xlu1 %v8589_v5, %s9693_s17  ;;  %v3989_v12 = vsel %vm2559_vm3, %v14870_v1, %v8268_v11  ;;  %v14876_v11 = vld [vmem:[#allocation90_spill] sm:$0xff] }
 0x480   : > { %v4021_v48 = vsel %vm530_vm0, %v3989_v12, %v8273_v37  ;;  %v3049_v37 = vld [vmem:[#allocation3 + $0x230] sm:$0xff] }
 0x481   : > { %v12404_v6 = vpop.permute.xlu0 %8305  ;;  %v8321_v16 = vpop.permute.xlu1 %8320 }
 0x482   : > { %v8323_v43 = vunpack.i.h.bf16 %v8321_v16  ;;  %v8322_v2 = vunpack.i.l.bf16 %v8321_v16  ;;  %v8308_v12 = vunpack.i.h.bf16 %v12404_v6 }
 0x483   : > { %8605 = vrot.lane.b32.xlu0 %v12111_v26, %s9698_s12  ;;  %8610 = vrot.lane.b32.xlu1 %v8584_v59, %s9697_s26  ;;  %v8267_v59 = vunpack.i.l.bf16 %v12332_v31  ;;  %v8318_v31 = vunpack.i.h.bf16 %v12394_v34  ;;  %v4054_v34 = vsel %vm4042_vm4, %v4021_v48, %v8313_v36  ;;  %v12486_v36 = vld [vmem:[#allocation3 + $0x231] sm:$0xff] }
 0x484   : > { %v4148_v14 = vsel %vm1758_vm2, %v4116_v29, %v8322_v2  ;;  %v4149_v30 = vsel %vm1758_vm2, %v4117_v63, %v8323_v43  ;;  %v8649_v43 = vpack.i.bf16 %v14872_v23, %v14871_v46  ;;  %v14878_v48 = vld [vmem:[#allocation78_spill] sm:$0xff]  ;;  %v14880_v23 = vld [vmem:[#allocation100_spill] sm:$0xff] }
 0x485   : > { %v8326_v25 = vpop.permute.xlu0 %8325  ;;  %v8331_v5 = vpop.permute.xlu1 %8330  ;;  %v3988_v42 = vsel %vm2559_vm3, %v14869_v20, %v8267_v59  ;;  %v4086_v61 = vsel %vm1725_vm1, %v4054_v34, %v8318_v31  ;;  %v14877_v31 = vmov 0.0   ;;  %v14879_v46 = vld [vmem:[#allocation98_spill] sm:$0xff] }
 0x486   : > { %v8328_v26 = vunpack.i.h.bf16 %v8326_v25  ;;  %v8327_v49 = vunpack.i.l.bf16 %v8326_v25  ;;  %v8333_v35 = vunpack.i.h.bf16 %v8331_v5  ;;  %v8332_v19 = vunpack.i.l.bf16 %v8331_v5  ;;  %4699 = vst.msk [vmem:[#allocation3 + $0x238] sm:$0xff] %vm2559_vm3, %v14877_v31 }
 0x487   : > { %8625 = vrot.lane.b32.xlu0 %v8624_v38, %s9696_s28  ;;  %8615 = vrot.lane.b32.xlu1 %v14864_v3, %s9694_s11  ;;  %v4020_v51 = vsel %vm530_vm0, %v3988_v42, %v8272_v4  ;;  %v12484_v4 = vld [vmem:[#allocation3 + $0x229] sm:$0xff]  ;;  %v8302_v42 = vunpack.i.l.bf16 %v12387_v60 }
 0x488   : > { %v4181_v9 = vsel %vm4172_vm6, %v4148_v14, %v8327_v49  ;;  %v4182_v7 = vsel %vm4172_vm6, %v4149_v30, %v8328_v26  ;;  %v4053_v57 = vsel %vm4042_vm4, %v4020_v51, %v8312_v8  ;;  %v3017_v49 = vld [vmem:[#allocation3 + $0x22f] sm:$0xff]  ;;  %v4236_v8 = vpack.c.bf16 %v12486_v36, %v12484_v4 }
 0x489   : > { %v12430_v32 = vpop.permute.xlu0 %8345  ;;  %v4213_v56 = vpack.c.bf16 %v4182_v7, %v4181_v9  ;;  %v12432_v41 = vpop.permute.xlu1 %8335  ;;  %v4085_v2 = vsel %vm1725_vm1, %v4053_v57, %v8317_v27  ;;  %v8669_v59 = vpack.i.bf16 %v3017_v49, %v14876_v11  ;;  %4698 = vst.msk [vmem:[#allocation3 + $0x230] sm:$0xff] %vm2559_vm3, %v14877_v31  ;;  %v8303_v27 = vunpack.i.h.bf16 %v12387_v60 }
 0x48a   : > { %v4118_v25 = vsel %vm4107_vm5, %v4085_v2, %v8332_v19  ;;  %v8348_v19 = vunpack.i.h.bf16 %v12430_v32  ;;  %v8347_v51 = vunpack.i.l.bf16 %v12430_v32  ;;  %v4892_v2 = vld [vmem:[#allocation3 + $0x8] sm:$0xff] }
 0x48b   : > { %8630 = vrot.lane.b32.xlu0 %v14864_v3, %s9692_s30  ;;  %4422 = vmatmul.mubr.bf16.gmra.mrb[48].mxu1 %v4213_v56  ;;  %v3048_v56 = vld [vmem:[#allocation3 + $0x228] sm:$0xff]  ;;  %v3991_v34 = vsel %vm2559_vm3, %v14878_v48, %v8303_v27  ;;  %v8337_v48 = vunpack.i.l.bf16 %v12432_v41 }
 0x48c   : > { %8620 = vrot.lane.b32.xlu1 %v8619_v58, %s9691_s27  ;;  %7261 = vmatprep.mubr.msk.bf16.mxu1 %vm2559_vm3, %v4216_v22  ;;  %4697 = vst.msk [vmem:[#allocation3 + $0x228] sm:$0xff] %vm2559_vm3, %v14877_v31  ;;  %v8679_v49 = vpack.i.bf16 %v3049_v37, %v3048_v56 }
 0x48d   : > { %v12448_v45 = vpop.permute.xlu0 %8350  ;;  %v12452_v50 = vpop.permute.xlu1 %8340 }
 0x48e   : > { %v8353_v57 = vunpack.i.h.bf16 %v12448_v45  ;;  %v8352_v60 = vunpack.i.l.bf16 %v12448_v45 }
 0x48f   : > { %8635 = vrot.lane.b32.xlu0 %v8624_v38, %s9693_s17  ;;  %v4119_v38 = vsel %vm4107_vm5, %v4086_v61, %v8333_v35  ;;  %v8307_v35 = vunpack.i.l.bf16 %v12404_v6  ;;  %v8674_v6 = vpack.i.bf16 %v14880_v23, %v14879_v46  ;;  %v4893_v61 = vld [vmem:[#allocation3 + $0x10] sm:$0xff] }
 0x490   : > { %8640 = vrot.lane.b32.xlu1 %v14864_v3, %s9698_s12 }
 0x491   : > { %v8356_v16 = vpop.permute.xlu0 %8355  ;;  %v8361_v18 = vpop.permute.xlu1 %8360 }
 0x492   : > { %v8358_v33 = vunpack.i.h.bf16 %v8356_v16  ;;  %v8357_v55 = vunpack.i.l.bf16 %v8356_v16  ;;  %v8363_v29 = vunpack.i.h.bf16 %v8361_v18  ;;  %v8362_v63 = vunpack.i.l.bf16 %v8361_v18  ;;  %v14881_v18 = vld [vmem:[#allocation69_spill] sm:$0xff] }
 0x493   : > { %8645 = vrot.lane.b32.xlu0 %v8619_v58, %s9697_s26  ;;  %v14874_v58 = vld [vmem:[#allocation51_spill] sm:$0xff] }
 0x494   : > { %8650 = vrot.lane.b32.xlu1 %v8649_v43, %s9696_s28  ;;  %v4150_v5 = vsel %vm1758_vm2, %v4118_v25, %v8357_v55  ;;  %v4151_v26 = vsel %vm1758_vm2, %v4119_v38, %v8358_v33  ;;  %v4218_v22 = vpack.c.bf16 %v14875_v0, %v14874_v58  ;;  %v3990_v33 = vsel %vm2559_vm3, %v14881_v18, %v8302_v42  ;;  %v4925_v18 = vld [vmem:[#allocation3 + $0x11] sm:$0xff] }
 0x495   : > { %v8366_v14 = vpop.permute.xlu0 %8365  ;;  %v4183_v30 = vsel %vm4172_vm6, %v4150_v5, %v8362_v63  ;;  %v4184_v3 = vsel %vm4172_vm6, %v4151_v26, %v8363_v29  ;;  %v12477_v9 = vpop.permute.xlu1 %8380  ;;  %v8684_v25 = vpack.i.bf16 %v4893_v61, %v4892_v2  ;;  %v4022_v38 = vsel %vm530_vm0, %v3990_v33, %v8307_v35  ;;  %v14883_v35 = vld [vmem:[#allocation52_spill] sm:$0xff]  ;;  %v4924_v61 = vld [vmem:[#allocation3 + $0x9] sm:$0xff] }
 0x496   : > { %v4215_v7 = vpack.c.bf16 %v4184_v3, %v4183_v30  ;;  %v8368_v32 = vunpack.i.h.bf16 %v8366_v14  ;;  %v8367_v55 = vunpack.i.l.bf16 %v8366_v14  ;;  %v4023_v29 = vsel %vm530_vm0, %v3991_v34, %v8308_v12  ;;  %v14882_v12 = vld [vmem:[#allocation42_spill] sm:$0xff] }
 0x497   : > { %8665 = vrot.lane.b32.xlu0 %v14873_v47, %s9698_s12  ;;  %v4055_v5 = vsel %vm4042_vm4, %v4022_v38, %v8347_v51  ;;  %v4056_v26 = vsel %vm4042_vm4, %v4023_v29, %v8348_v19  ;;  %v4220_v19 = vpack.c.bf16 %v14883_v35, %v14882_v12  ;;  %v8338_v51 = vunpack.i.h.bf16 %v12432_v41 }
 0x498   : > { %8655 = vrot.lane.b32.xlu1 %v14873_v47, %s9692_s30  ;;  %4430 = vmatmul.mubr.bf16.gmra.mrb[52].mxu1 %v4215_v7  ;;  %v4087_v30 = vsel %vm1725_vm1, %v4055_v5, %v8352_v60  ;;  %v4088_v14 = vsel %vm1725_vm1, %v4056_v26, %v8353_v57  ;;  %v8343_v34 = vunpack.i.h.bf16 %v12452_v50  ;;  %v8342_v57 = vunpack.i.l.bf16 %v12452_v50  ;;  %v14885_v50 = vld [vmem:[#allocation50_spill] sm:$0xff] }
 0x499   : > { %v12499_v20 = vpop.permute.xlu0 %8370  ;;  %7262 = vmatprep.mubr.msk.bf16.mxu1 %vm2559_vm3, %v4218_v22  ;;  %v12503_v1 = vpop.permute.xlu1 %8385  ;;  %v4120_v7 = vsel %vm4107_vm5, %v4087_v30, %v8367_v55  ;;  %v4121_v47 = vsel %vm4107_vm5, %v4088_v14, %v8368_v32  ;;  %v8383_v60 = vunpack.i.h.bf16 %v12477_v9  ;;  %v8689_v41 = vpack.i.bf16 %v4925_v18, %v4924_v61 }
 0x49a   : > { %v8388_v33 = vunpack.i.h.bf16 %v12503_v1  ;;  %v8387_v32 = vunpack.i.l.bf16 %v12503_v1  ;;  %v3993_v38 = vsel %vm2559_vm3, %v14885_v50, %v8338_v51  ;;  %v14887_v51 = vld [vmem:[#allocation83_spill] sm:$0xff]  ;;  %v14888_v50 = vld [vmem:[#allocation41_spill] sm:$0xff] }
 0x49b   : > { %8670 = vrot.lane.b32.xlu0 %v8669_v59, %s9693_s17 }
 0x49c   : > { %8660 = vrot.lane.b32.xlu1 %v8649_v43, %s9693_s17 }
 0x49d   : > { %v12515_v16 = vpop.permute.xlu0 %8375  ;;  %v8391_v43 = vpop.permute.xlu1 %8390 }
 0x49e   : > { %v8393_v63 = vunpack.i.h.bf16 %v8391_v43  ;;  %v8392_v45 = vunpack.i.l.bf16 %v8391_v43  ;;  %v14884_v43 = vld [vmem:[#allocation40_spill] sm:$0xff]  ;;  %v8378_v61 = vunpack.i.h.bf16 %v12515_v16  ;;  %v8377_v18 = vunpack.i.l.bf16 %v12515_v16 }
 0x49f   : > { %8685 = vrot.lane.b32.xlu0 %v8684_v25, %s9694_s11  ;;  %v3992_v25 = vsel %vm2559_vm3, %v14884_v43, %v8337_v48 }
 0x4a0   : > { %8675 = vrot.lane.b32.xlu1 %v8674_v6, %s9697_s26  ;;  %v4152_v11 = vsel %vm1758_vm2, %v4120_v7, %v8392_v45  ;;  %v4153_v59 = vsel %vm1758_vm2, %v4121_v47, %v8393_v63  ;;  %v8382_v6 = vunpack.i.l.bf16 %v12477_v9  ;;  %v4024_v9 = vsel %vm530_vm0, %v3992_v25, %v8342_v57 }
 0x4a1   : > { %v8396_v3 = vpop.permute.xlu0 %8395  ;;  %v8401_v58 = vpop.permute.xlu1 %8400  ;;  %v4025_v45 = vsel %vm530_vm0, %v3993_v38, %v8343_v34  ;;  %v8373_v57 = vunpack.i.h.bf16 %v12499_v20 }
 0x4a2   : > { %v8398_v0 = vunpack.i.h.bf16 %v8396_v3  ;;  %v8397_v22 = vunpack.i.l.bf16 %v8396_v3  ;;  %v8403_v29 = vunpack.i.h.bf16 %v8401_v58  ;;  %v8402_v63 = vunpack.i.l.bf16 %v8401_v58 }
 0x4a3   : > { %8690 = vrot.lane.b32.xlu0 %v8689_v41, %s9691_s27  ;;  %v4058_v5 = vsel %vm4042_vm4, %v4025_v45, %v8383_v60  ;;  %v4057_v1 = vsel %vm4042_vm4, %v4024_v9, %v8382_v6  ;;  %v8372_v60 = vunpack.i.l.bf16 %v12499_v20  ;;  %v3995_v38 = vsel %vm2559_vm3, %v14888_v50, %v8373_v57 }
 0x4a4   : > { %8680 = vrot.lane.b32.xlu1 %v8679_v49, %s9698_s12  ;;  %v4185_v56 = vsel %vm4172_vm6, %v4152_v11, %v8397_v22  ;;  %v4186_v37 = vsel %vm4172_vm6, %v4153_v59, %v8398_v0  ;;  %v4089_v49 = vsel %vm1725_vm1, %v4057_v1, %v8387_v32  ;;  %v4090_v30 = vsel %vm1725_vm1, %v4058_v5, %v8388_v33 }
 0x4a5   : > { %v12536_v31 = vpop.permute.xlu0 %8415  ;;  %v4217_v27 = vpack.c.bf16 %v4186_v37, %v4185_v56  ;;  %v12538_v42 = vpop.permute.xlu1 %8405  ;;  %v4122_v47 = vsel %vm4107_vm5, %v4089_v49, %v8402_v63  ;;  %v4123_v58 = vsel %vm4107_vm5, %v4090_v30, %v8403_v29  ;;  %v14889_v29 = vld [vmem:[#allocation79_spill] sm:$0xff]  ;;  %v4027_v16 = vsel %vm530_vm0, %v3995_v38, %v8378_v61 }
 0x4a6   : > { %v8418_v33 = vunpack.i.h.bf16 %v12536_v31  ;;  %v8417_v32 = vunpack.i.l.bf16 %v12536_v31  ;;  %v3994_v63 = vsel %vm2559_vm3, %v14889_v29, %v8372_v60  ;;  %v8408_v57 = vunpack.i.h.bf16 %v12538_v42  ;;  %v14892_v29 = vld [vmem:[#allocation71_spill] sm:$0xff] }
 0x4a7   : > { %4438 = vmatmul.mubr.bf16.gmra.mrb[56].mxu1 %v4217_v27  ;;  %v4026_v5 = vsel %vm530_vm0, %v3994_v63, %v8377_v18  ;;  %v8407_v60 = vunpack.i.l.bf16 %v12538_v42  ;;  %v14893_v42 = vld [vmem:[#allocation80_spill] sm:$0xff] }
 0x4a8   : > { %7263 = vmatprep.mubr.msk.bf16.mxu1 %vm2559_vm3, %v4220_v19  ;;  %v14886_v19 = vld [vmem:[#allocation82_spill] sm:$0xff]  ;;  %v4059_v31 = vsel %vm4042_vm4, %v4026_v5, %v8417_v32 }
 0x4a9   : > { %v8421_v2 = vpop.permute.xlu0 %8420  ;;  %v12551_v55 = vpop.permute.xlu1 %8410  ;;  %v4222_v48 = vpack.c.bf16 %v14887_v51, %v14886_v19  ;;  %v14890_v19 = vld [vmem:[#allocation86_spill] sm:$0xff]  ;;  %v14891_v51 = vld [vmem:[#allocation87_spill] sm:$0xff]  ;;  %v3996_v63 = vsel %vm2559_vm3, %v14892_v29, %v8407_v60 }
 0x4aa   : > { %v8423_v41 = vunpack.i.h.bf16 %v8421_v2  ;;  %v8422_v43 = vunpack.i.l.bf16 %v8421_v2  ;;  %v4060_v2 = vsel %vm4042_vm4, %v4027_v16, %v8418_v33  ;;  %v8413_v61 = vunpack.i.h.bf16 %v12551_v55  ;;  %v14895_v29 = vld [vmem:[#allocation62_spill] sm:$0xff] }
 0x4ab   : > { %v8412_v18 = vunpack.i.l.bf16 %v12551_v55 }
 0x4ac   : > { %v4091_v49 = vsel %vm1725_vm1, %v4059_v31, %v8422_v43  ;;  %v4092_v30 = vsel %vm1725_vm1, %v4060_v2, %v8423_v41 }
 0x4ad   : > { %v8426_v26 = vpop.permute.xlu0 %8425  ;;  %v8431_v14 = vpop.permute.xlu1 %8430  ;;  %v4028_v55 = vsel %vm530_vm0, %v3996_v63, %v8412_v18 }
 0x4ae   : > { %v8428_v3 = vunpack.i.h.bf16 %v8426_v26  ;;  %v8427_v7 = vunpack.i.l.bf16 %v8426_v26  ;;  %v8433_v0 = vunpack.i.h.bf16 %v8431_v14  ;;  %v8432_v22 = vunpack.i.l.bf16 %v8431_v14 }
 0x4b0   : > { %v4154_v11 = vsel %vm1758_vm2, %v4122_v47, %v8427_v7  ;;  %v4155_v59 = vsel %vm1758_vm2, %v4123_v58, %v8428_v3 }
 0x4b1   : > { %v8436_v56 = vpop.permute.xlu0 %8435  ;;  %v4187_v37 = vsel %vm4172_vm6, %v4154_v11, %v8432_v22  ;;  %v4188_v27 = vsel %vm4172_vm6, %v4155_v59, %v8433_v0  ;;  %v12570_v12 = vpop.permute.xlu1 %8450 }
 0x4b2   : > { %v4219_v35 = vpack.c.bf16 %v4188_v27, %v4187_v37  ;;  %v8438_v20 = vunpack.i.h.bf16 %v8436_v56  ;;  %v8437_v9 = vunpack.i.l.bf16 %v8436_v56  ;;  %v8453_v33 = vunpack.i.h.bf16 %v12570_v12 }
 0x4b3   : > { %v8452_v32 = vunpack.i.l.bf16 %v12570_v12 }
 0x4b4   : > { %4446 = vmatmul.mubr.bf16.gmra.mrb[60].mxu1 %v4219_v35  ;;  %v4124_v3 = vsel %vm4107_vm5, %v4091_v49, %v8437_v9  ;;  %v4125_v7 = vsel %vm4107_vm5, %v4092_v30, %v8438_v20  ;;  %v3997_v20 = vsel %vm2559_vm3, %v14893_v42, %v8408_v57 }
 0x4b5   : > { %v12574_v34 = vpop.permute.xlu0 %8440  ;;  %7264 = vmatprep.mubr.msk.bf16.mxu1 %vm2559_vm3, %v4222_v48  ;;  %v8456_v6 = vpop.permute.xlu1 %8455  ;;  %v4224_v48 = vpack.c.bf16 %v14891_v51, %v14890_v19  ;;  %v4029_v5 = vsel %vm530_vm0, %v3997_v20, %v8413_v61  ;;  %v4061_v12 = vsel %vm4042_vm4, %v4028_v55, %v8452_v32 }
 0x4b6   : > { %v8458_v43 = vunpack.i.h.bf16 %v8456_v6  ;;  %v8457_v50 = vunpack.i.l.bf16 %v8456_v6  ;;  %v4062_v16 = vsel %vm4042_vm4, %v4029_v5, %v8453_v33  ;;  %v8443_v51 = vunpack.i.h.bf16 %v12574_v34 }
 0x4b8   : > { %v4093_v6 = vsel %vm1725_vm1, %v4061_v12, %v8457_v50 }
 0x4b9   : > { %v12583_v25 = vpop.permute.xlu0 %8445  ;;  %v8461_v45 = vpop.permute.xlu1 %8460 }
 0x4ba   : > { %v8463_v1 = vunpack.i.h.bf16 %v8461_v45  ;;  %v8462_v26 = vunpack.i.l.bf16 %v8461_v45  ;;  %v8448_v60 = vunpack.i.h.bf16 %v12583_v25  ;;  %v8447_v61 = vunpack.i.l.bf16 %v12583_v25 }
 0x4bc   : > { %v4156_v22 = vsel %vm1758_vm2, %v4124_v3, %v8462_v26  ;;  %v4157_v11 = vsel %vm1758_vm2, %v4125_v7, %v8463_v1  ;;  %v4094_v26 = vsel %vm1725_vm1, %v4062_v16, %v8458_v43  ;;  %v14894_v43 = vld [vmem:[#allocation81_spill] sm:$0xff] }
 0x4bd   : > { %v8466_v14 = vpop.permute.xlu0 %8465  ;;  %v8471_v47 = vpop.permute.xlu1 %8470  ;;  %v3999_v50 = vsel %vm2559_vm3, %v14894_v43, %v8443_v51 }
 0x4be   : > { %v8468_v58 = vunpack.i.h.bf16 %v8466_v14  ;;  %v8467_v0 = vunpack.i.l.bf16 %v8466_v14  ;;  %v8473_v9 = vunpack.i.h.bf16 %v8471_v47  ;;  %v8472_v45 = vunpack.i.l.bf16 %v8471_v47 }
 0x4bf   : > { %v4031_v25 = vsel %vm530_vm0, %v3999_v50, %v8448_v60 }
 0x4c0   : > { %v4189_v59 = vsel %vm4172_vm6, %v4156_v22, %v8467_v0  ;;  %v4190_v56 = vsel %vm4172_vm6, %v4157_v11, %v8468_v58  ;;  %v4126_v30 = vsel %vm4107_vm5, %v4093_v6, %v8472_v45  ;;  %v4127_v14 = vsel %vm4107_vm5, %v4094_v26, %v8473_v9 }
 0x4c1   : > { %v12601_v37 = vpop.permute.xlu0 %8485  ;;  %v4221_v27 = vpack.c.bf16 %v4190_v56, %v4189_v59  ;;  %v12603_v35 = vpop.permute.xlu1 %8475 }
 0x4c2   : > { %v8488_v18 = vunpack.i.h.bf16 %v12601_v37  ;;  %v8487_v33 = vunpack.i.l.bf16 %v12601_v37 }
 0x4c3   : > { %4454 = vmatmul.mubr.bf16.gmra.mrb[64].mxu1 %v4221_v27  ;;  %v4226_v27 = vpack.c.bf16 %v12053_v39, %v12051_v62 }
 0x4c4   : > { %7265 = vmatprep.mubr.msk.bf16.mxu1 %vm2559_vm3, %v4224_v48  ;;  %v8442_v48 = vunpack.i.l.bf16 %v12574_v34 }
 0x4c5   : > { %v8491_v41 = vpop.permute.xlu0 %8490  ;;  %v12614_v38 = vpop.permute.xlu1 %8480 }
 0x4c6   : > { %v8493_v32 = vunpack.i.h.bf16 %v8491_v41  ;;  %v8492_v62 = vunpack.i.l.bf16 %v8491_v41  ;;  %v3998_v63 = vsel %vm2559_vm3, %v14895_v29, %v8442_v48  ;;  %v4064_v41 = vsel %vm4042_vm4, %v4031_v25, %v8488_v18 }
 0x4c7   : > { %v4030_v9 = vsel %vm530_vm0, %v3998_v63, %v8447_v61 }
 0x4c8   : > { %v4063_v37 = vsel %vm4042_vm4, %v4030_v9, %v8487_v33  ;;  %v4096_v16 = vsel %vm1725_vm1, %v4064_v41, %v8493_v32 }
 0x4c9   : > { %v8496_v1 = vpop.permute.xlu0 %8495  ;;  %v8501_v31 = vpop.permute.xlu1 %8500  ;;  %v4095_v5 = vsel %vm1725_vm1, %v4063_v37, %v8492_v62 }
 0x4ca   : > { %v8498_v2 = vunpack.i.h.bf16 %v8496_v1  ;;  %v8497_v49 = vunpack.i.l.bf16 %v8496_v1  ;;  %v8503_v3 = vunpack.i.h.bf16 %v8501_v31  ;;  %v8502_v7 = vunpack.i.l.bf16 %v8501_v31 }
 0x4cc   : > { %v4158_v47 = vsel %vm1758_vm2, %v4126_v30, %v8497_v49  ;;  %v4159_v58 = vsel %vm1758_vm2, %v4127_v14, %v8498_v2 }
 0x4cd   : > { %v8506_v0 = vpop.permute.xlu0 %8505  ;;  %v4191_v22 = vsel %vm4172_vm6, %v4158_v47, %v8502_v7  ;;  %v4192_v11 = vsel %vm4172_vm6, %v4159_v58, %v8503_v3  ;;  %v12632_v59 = vpop.permute.xlu1 %8520 }
 0x4ce   : > { %v4223_v56 = vpack.c.bf16 %v4192_v11, %v4191_v22  ;;  %v8508_v34 = vunpack.i.h.bf16 %v8506_v0  ;;  %v8507_v42 = vunpack.i.l.bf16 %v8506_v0  ;;  %v4228_v0 = vpack.c.bf16 %v12087_v53, %v12080_v17  ;;  %v14896_v17 = vld [vmem:[#allocation84_spill] sm:$0xff] }
 0x4cf   : > { %v8478_v22 = vunpack.i.h.bf16 %v12603_v35  ;;  %v8477_v11 = vunpack.i.l.bf16 %v12603_v35  ;;  %v8523_v51 = vunpack.i.h.bf16 %v12632_v59  ;;  %v8522_v48 = vunpack.i.l.bf16 %v12632_v59  ;;  %v14897_v35 = vld [vmem:[#allocation85_spill] sm:$0xff] }
 0x4d0   : > { %4462 = vmatmul.mubr.bf16.gmra.mrb[68].mxu1 %v4223_v56  ;;  %v4128_v1 = vsel %vm4107_vm5, %v4095_v5, %v8507_v42  ;;  %v4129_v6 = vsel %vm4107_vm5, %v4096_v16, %v8508_v34  ;;  %v8483_v56 = vunpack.i.h.bf16 %v12614_v38 }
 0x4d1   : > { %v12636_v19 = vpop.permute.xlu0 %8510  ;;  %7266 = vmatprep.mubr.msk.bf16.mxu1 %vm2559_vm3, %v4226_v27  ;;  %v8526_v57 = vpop.permute.xlu1 %8525  ;;  %v8482_v27 = vunpack.i.l.bf16 %v12614_v38  ;;  %v4000_v53 = vsel %vm2559_vm3, %v14896_v17, %v8477_v11  ;;  %v4001_v32 = vsel %vm2559_vm3, %v14897_v35, %v8478_v22 }
 0x4d2   : > { %v8528_v61 = vunpack.i.h.bf16 %v8526_v57  ;;  %v8527_v18 = vunpack.i.l.bf16 %v8526_v57  ;;  %v4033_v50 = vsel %vm530_vm0, %v4001_v32, %v8483_v56  ;;  %v14898_v56 = vld [vmem:[#allocation89_spill] sm:$0xff] }
 0x4d3   : > { %v4032_v38 = vsel %vm530_vm0, %v4000_v53, %v8482_v27  ;;  %v4066_v29 = vsel %vm4042_vm4, %v4033_v50, %v8523_v51  ;;  %v14899_v51 = vld [vmem:[#allocation88_spill] sm:$0xff] }
 0x4d4   : > { %v4065_v59 = vsel %vm4042_vm4, %v4032_v38, %v8522_v48  ;;  %v4098_v34 = vsel %vm1725_vm1, %v4066_v29, %v8528_v61 }
 0x4d5   : > { %v12645_v39 = vpop.permute.xlu0 %8515  ;;  %v8531_v20 = vpop.permute.xlu1 %8530  ;;  %v4097_v57 = vsel %vm1725_vm1, %v4065_v59, %v8527_v18 }
 0x4d6   : > { %v8533_v45 = vunpack.i.h.bf16 %v8531_v20  ;;  %v8532_v55 = vunpack.i.l.bf16 %v8531_v20 }
 0x4d8   : > { %v4160_v49 = vsel %vm1758_vm2, %v4128_v1, %v8532_v55  ;;  %v4161_v30 = vsel %vm1758_vm2, %v4129_v6, %v8533_v45 }
 0x4d9   : > { %v8536_v12 = vpop.permute.xlu0 %8535  ;;  %v8541_v26 = vpop.permute.xlu1 %8540 }
 0x4da   : > { %v8538_v31 = vunpack.i.h.bf16 %v8536_v12  ;;  %v8537_v2 = vunpack.i.l.bf16 %v8536_v12  ;;  %v8543_v62 = vunpack.i.h.bf16 %v8541_v26  ;;  %v8542_v43 = vunpack.i.l.bf16 %v8541_v26 }
 0x4dc   : > { %v4193_v14 = vsel %vm4172_vm6, %v4160_v49, %v8537_v2  ;;  %v4194_v3 = vsel %vm4172_vm6, %v4161_v30, %v8538_v31  ;;  %v4130_v25 = vsel %vm4107_vm5, %v4097_v57, %v8542_v43  ;;  %v4131_v45 = vsel %vm4107_vm5, %v4098_v34, %v8543_v62 }
 0x4dd   : > { %v12663_v7 = vpop.permute.xlu0 %8555  ;;  %v4225_v47 = vpack.c.bf16 %v4194_v3, %v4193_v14  ;;  %v12665_v58 = vpop.permute.xlu1 %8545  ;;  %v4230_v31 = vpack.c.bf16 %v12113_v15, %v12108_v44  ;;  %v8513_v49 = vunpack.i.h.bf16 %v12636_v19  ;;  %v8512_v30 = vunpack.i.l.bf16 %v12636_v19 }
 0x4de   : > { %v8518_v3 = vunpack.i.h.bf16 %v12645_v39  ;;  %v8557_v22 = vunpack.i.l.bf16 %v12663_v7 }
 0x4df   : > { %4470 = vmatmul.mubr.bf16.gmra.mrb[72].mxu1 %v4225_v47  ;;  %v8517_v47 = vunpack.i.l.bf16 %v12645_v39  ;;  %v4003_v27 = vsel %vm2559_vm3, %v14898_v56, %v8513_v49  ;;  %v4002_v48 = vsel %vm2559_vm3, %v14899_v51, %v8512_v30 }
 0x4e0   : > { %7267 = vmatprep.mubr.msk.bf16.mxu1 %vm2559_vm3, %v4228_v0  ;;  %v8558_v0 = vunpack.i.h.bf16 %v12663_v7  ;;  %v4035_v39 = vsel %vm530_vm0, %v4003_v27, %v8518_v3 }
 0x4e1   : > { %v8561_v60 = vpop.permute.xlu0 %8560  ;;  %v12676_v33 = vpop.permute.xlu1 %8550  ;;  %v4034_v17 = vsel %vm530_vm0, %v4002_v48, %v8517_v47 }
 0x4e2   : > { %v8563_v11 = vunpack.i.h.bf16 %v8561_v60  ;;  %v8562_v44 = vunpack.i.l.bf16 %v8561_v60  ;;  %v4067_v7 = vsel %vm4042_vm4, %v4034_v17, %v8557_v22  ;;  %v4068_v60 = vsel %vm4042_vm4, %v4035_v39, %v8558_v0 }
 0x4e4   : > { %v4099_v32 = vsel %vm1725_vm1, %v4067_v7, %v8562_v44  ;;  %v4100_v62 = vsel %vm1725_vm1, %v4068_v60, %v8563_v11 }
 0x4e5   : > { %v8566_v63 = vpop.permute.xlu0 %8565  ;;  %v8571_v42 = vpop.permute.xlu1 %8570 }
 0x4e6   : > { %v8568_v20 = vunpack.i.h.bf16 %v8566_v63  ;;  %v8567_v9 = vunpack.i.l.bf16 %v8566_v63  ;;  %v8573_v55 = vunpack.i.h.bf16 %v8571_v42  ;;  %v8572_v37 = vunpack.i.l.bf16 %v8571_v42 }
 0x4e8   : > { %v4162_v41 = vsel %vm1758_vm2, %v4130_v25, %v8567_v9  ;;  %v4163_v5 = vsel %vm1758_vm2, %v4131_v45, %v8568_v20 }
 0x4e9   : > { %v8576_v16 = vpop.permute.xlu0 %8575  ;;  %v4195_v12 = vsel %vm4172_vm6, %v4162_v41, %v8572_v37  ;;  %v4196_v1 = vsel %vm4172_vm6, %v4163_v5, %v8573_v55  ;;  %v12694_v6 = vpop.permute.xlu1 %8590  ;;  %v4232_v55 = vpack.c.bf16 %v14866_v52, %v14865_v40  ;;  %v8548_v37 = vunpack.i.h.bf16 %v12665_v58 }
 0x4ea   : > { %v4227_v26 = vpack.c.bf16 %v4196_v1, %v4195_v12  ;;  %v8578_v19 = vunpack.i.h.bf16 %v8576_v16  ;;  %v8577_v61 = vunpack.i.l.bf16 %v8576_v16  ;;  %v8547_v41 = vunpack.i.l.bf16 %v12665_v58 }
 0x4eb   : > { %v8553_v5 = vunpack.i.h.bf16 %v12676_v33  ;;  %v8552_v16 = vunpack.i.l.bf16 %v12676_v33  ;;  %v8593_v12 = vunpack.i.h.bf16 %v12694_v6  ;;  %v8592_v1 = vunpack.i.l.bf16 %v12694_v6 }
 0x4ec   : > { %4478 = vmatmul.mubr.bf16.gmra.mrb[76].mxu1 %v4227_v26  ;;  %v4132_v38 = vsel %vm4107_vm5, %v4099_v32, %v8577_v61  ;;  %v4133_v50 = vsel %vm4107_vm5, %v4100_v62, %v8578_v19  ;;  %v4004_v40 = vsel %vm2559_vm3, %v12071_v24, %v8547_v41  ;;  %v4005_v52 = vsel %vm2559_vm3, %v12078_v10, %v8548_v37 }
 0x4ed   : > { %v12698_v2 = vpop.permute.xlu0 %8580  ;;  %7268 = vmatprep.mubr.msk.bf16.mxu1 %vm2559_vm3, %v4230_v31  ;;  %v8596_v14 = vpop.permute.xlu1 %8595  ;;  %v4036_v33 = vsel %vm530_vm0, %v4004_v40, %v8552_v16  ;;  %v4037_v47 = vsel %vm530_vm0, %v4005_v52, %v8553_v5  ;;  %v4234_v62 = vpack.c.bf16 %v14880_v23, %v14879_v46 }
 0x4ee   : > { %v8598_v31 = vunpack.i.h.bf16 %v8596_v14  ;;  %v8597_v49 = vunpack.i.l.bf16 %v8596_v14  ;;  %v4070_v0 = vsel %vm4042_vm4, %v4037_v47, %v8593_v12  ;;  %v4069_v6 = vsel %vm4042_vm4, %v4036_v33, %v8592_v1 }
 0x4ef   : > { %v8582_v39 = vunpack.i.l.bf16 %v12698_v2  ;;  %v8583_v7 = vunpack.i.h.bf16 %v12698_v2 }
 0x4f0   : > { %v4101_v14 = vsel %vm1725_vm1, %v4069_v6, %v8597_v49  ;;  %v4102_v11 = vsel %vm1725_vm1, %v4070_v0, %v8598_v31 }
 0x4f1   : > { %v12707_v15 = vpop.permute.xlu0 %8585  ;;  %v8601_v18 = vpop.permute.xlu1 %8600  ;;  %v4006_v2 = vsel %vm2559_vm3, %v12099_v54, %v8582_v39  ;;  %v4007_v46 = vsel %vm2559_vm3, %v12106_v28, %v8583_v7 }
 0x4f2   : > { %v8603_v53 = vunpack.i.h.bf16 %v8601_v18  ;;  %v8602_v35 = vunpack.i.l.bf16 %v8601_v18  ;;  %v8587_v60 = vunpack.i.l.bf16 %v12707_v15 }
 0x4f4   : > { %v4164_v57 = vsel %vm1758_vm2, %v4132_v38, %v8602_v35  ;;  %v4165_v34 = vsel %vm1758_vm2, %v4133_v50, %v8603_v53  ;;  %v4038_v23 = vsel %vm530_vm0, %v4006_v2, %v8587_v60 }
 0x4f5   : > { %v8606_v43 = vpop.permute.xlu0 %8605  ;;  %v8611_v29 = vpop.permute.xlu1 %8610 }
 0x4f6   : > { %v8608_v59 = vunpack.i.h.bf16 %v8606_v43  ;;  %v8607_v63 = vunpack.i.l.bf16 %v8606_v43  ;;  %v8613_v58 = vunpack.i.h.bf16 %v8611_v29  ;;  %v8612_v3 = vunpack.i.l.bf16 %v8611_v29 }
 0x4f7   : > { %v8588_v43 = vunpack.i.h.bf16 %v12707_v15 }
 0x4f8   : > { %v4197_v42 = vsel %vm4172_vm6, %v4164_v57, %v8607_v63  ;;  %v4198_v20 = vsel %vm4172_vm6, %v4165_v34, %v8608_v59  ;;  %v4134_v10 = vsel %vm4107_vm5, %v4101_v14, %v8612_v3  ;;  %v4135_v27 = vsel %vm4107_vm5, %v4102_v11, %v8613_v58 }
 0x4f9   : > { %v12725_v9 = vpop.permute.xlu0 %8625  ;;  %v4229_v25 = vpack.c.bf16 %v4198_v20, %v4197_v42  ;;  %v12727_v45 = vpop.permute.xlu1 %8615  ;;  %v4039_v42 = vsel %vm530_vm0, %v4007_v46, %v8588_v43  ;;  %v12805_v43 = vld [vmem:[#allocation13] ss:$0 sm:$0xff] }
 0x4fa   : > { %v8627_v38 = vunpack.i.l.bf16 %v12725_v9  ;;  %v8618_v50 = vunpack.i.h.bf16 %v12727_v45  ;;  %v8628_v29 = vunpack.i.h.bf16 %v12725_v9  ;;  %v8617_v20 = vunpack.i.l.bf16 %v12727_v45 }
 0x4fb   : > { %4486 = vmatmul.mubr.bf16.gmra.mrb[80].mxu1 %v4229_v25 }
 0x4fc   : > { %7269 = vmatprep.mubr.msk.bf16.mxu1 %vm2559_vm3, %v4232_v55  ;;  %v4071_v9 = vsel %vm4042_vm4, %v4038_v23, %v8627_v38  ;;  %v4009_v25 = vsel %vm2559_vm3, %v14863_v21, %v8618_v50  ;;  %v4072_v54 = vsel %vm4042_vm4, %v4039_v42, %v8628_v29  ;;  %v12807_v50 = vld [vmem:[#allocation15] ss:$0 sm:$0xff] }
 0x4fd   : > { %v8631_v26 = vpop.permute.xlu0 %8630 }
 0x4fe   : > { %v12738_v30 = vpop.permute.xlu1 %8620  ;;  %v8633_v59 = vunpack.i.h.bf16 %v8631_v26  ;;  %v8632_v63 = vunpack.i.l.bf16 %v8631_v26 }
 0x4ff   : > { %v8623_v55 = vunpack.i.h.bf16 %v12738_v30  ;;  %v8622_v37 = vunpack.i.l.bf16 %v12738_v30  ;;  %v4008_v30 = vsel %vm2559_vm3, %v14862_v13, %v8617_v20 }
 0x500   : > { %v4103_v41 = vsel %vm1725_vm1, %v4071_v9, %v8632_v63  ;;  %v4104_v5 = vsel %vm1725_vm1, %v4072_v54, %v8633_v59 }
 0x501   : > { %v8636_v22 = vpop.permute.xlu0 %8635  ;;  %v4041_v3 = vsel %vm530_vm0, %v4009_v25, %v8623_v55  ;;  %v4040_v6 = vsel %vm530_vm0, %v4008_v30, %v8622_v37 }
 0x502   : > { %v8641_v44 = vpop.permute.xlu1 %8640  ;;  %v8638_v24 = vunpack.i.h.bf16 %v8636_v22  ;;  %v8637_v56 = vunpack.i.l.bf16 %v8636_v22 }
 0x503   : > { %v8643_v51 = vunpack.i.h.bf16 %v8641_v44  ;;  %v8642_v48 = vunpack.i.l.bf16 %v8641_v44 }
 0x504   : > { %v4166_v19 = vsel %vm1758_vm2, %v4134_v10, %v8637_v56  ;;  %v4167_v61 = vsel %vm1758_vm2, %v4135_v27, %v8638_v24 }
 0x505   : > { %v4199_v18 = vsel %vm4172_vm6, %v4166_v19, %v8642_v48  ;;  %v4200_v17 = vsel %vm4172_vm6, %v4167_v61, %v8643_v51  ;;  %v8646_v32 = vpop.permute.xlu0 %8645 }
 0x506   : > { %v8651_v53 = vpop.permute.xlu1 %8650  ;;  %v4231_v35 = vpack.c.bf16 %v4200_v17, %v4199_v18  ;;  %v8648_v15 = vunpack.i.h.bf16 %v8646_v32  ;;  %v8647_v34 = vunpack.i.l.bf16 %v8646_v32 }
 0x507   : > { %v8653_v16 = vunpack.i.h.bf16 %v8651_v53  ;;  %v8652_v12 = vunpack.i.l.bf16 %v8651_v53 }
 0x508   : > { %4494 = vmatmul.mubr.bf16.gmra.mrb[84].mxu1 %v4231_v35  ;;  %v4136_v45 = vsel %vm4107_vm5, %v4103_v41, %v8647_v34  ;;  %v4137_v26 = vsel %vm4107_vm5, %v4104_v5, %v8648_v15 }
 0x509   : > { %7270 = vmatprep.mubr.msk.bf16.mxu1 %vm2559_vm3, %v4234_v62  ;;  %v8666_v28 = vpop.permute.xlu0 %8665  ;;  %v4074_v22 = vsel %vm4042_vm4, %v4041_v3, %v8653_v16  ;;  %v4073_v24 = vsel %vm4042_vm4, %v4040_v6, %v8652_v12 }
 0x50a   : > { %v8656_v57 = vpop.permute.xlu1 %8655  ;;  %v8668_v52 = vunpack.i.h.bf16 %v8666_v28  ;;  %v8667_v58 = vunpack.i.l.bf16 %v8666_v28 }
 0x50b   : > { %v8658_v49 = vunpack.i.h.bf16 %v8656_v57  ;;  %v8657_v40 = vunpack.i.l.bf16 %v8656_v57 }
 0x50d   : > { %v8671_v33 = vpop.permute.xlu0 %8670  ;;  %v4105_v27 = vsel %vm1725_vm1, %v4073_v24, %v8657_v40  ;;  %v4106_v51 = vsel %vm1725_vm1, %v4074_v22, %v8658_v49 }
 0x50e   : > { %v8661_v1 = vpop.permute.xlu1 %8660  ;;  %v8673_v48 = vunpack.i.h.bf16 %v8671_v33  ;;  %v8672_v19 = vunpack.i.l.bf16 %v8671_v33 }
 0x50f   : > { %v8663_v31 = vunpack.i.h.bf16 %v8661_v1  ;;  %v8662_v21 = vunpack.i.l.bf16 %v8661_v1 }
 0x511   : > { %v4168_v47 = vsel %vm1758_vm2, %v4136_v45, %v8662_v21  ;;  %v4169_v0 = vsel %vm1758_vm2, %v4137_v26, %v8663_v31 }
 0x512   : > { %v8676_v14 = vpop.permute.xlu1 %8675  ;;  %v4201_v11 = vsel %vm4172_vm6, %v4168_v47, %v8667_v58  ;;  %v4202_v44 = vsel %vm4172_vm6, %v4169_v0, %v8668_v52 }
 0x513   : > { %v8678_v56 = vunpack.i.h.bf16 %v8676_v14  ;;  %v8677_v13 = vunpack.i.l.bf16 %v8676_v14  ;;  %v4233_v10 = vpack.c.bf16 %v4202_v44, %v4201_v11 }
 0x515   : > { %v4138_v61 = vsel %vm4107_vm5, %v4105_v27, %v8677_v13  ;;  %v4139_v18 = vsel %vm4107_vm5, %v4106_v51, %v8678_v56  ;;  %4502 = vmatmul.mubr.bf16.gmra.mrb[88].mxu1 %v4233_v10 }
 0x516   : > { %v8681_v17 = vpop.permute.xlu1 %8680  ;;  %7271 = vmatprep.mubr.msk.bf16.mxu1 %vm2559_vm3, %v4236_v8  ;;  %v4170_v35 = vsel %vm1758_vm2, %v4138_v61, %v8672_v19  ;;  %v4171_v7 = vsel %vm1758_vm2, %v4139_v18, %v8673_v48 }
 0x517   : > { %v8683_v39 = vunpack.i.h.bf16 %v8681_v17  ;;  %v8682_v53 = vunpack.i.l.bf16 %v8681_v17 }
 0x519   : > { %v4203_v60 = vsel %vm4172_vm6, %v4170_v35, %v8682_v53  ;;  %v4204_v32 = vsel %vm4172_vm6, %v4171_v7, %v8683_v39 }
 0x51a   : > { %v4235_v62 = vpack.c.bf16 %v4204_v32, %v4203_v60 }
 0x51d   : > { %4510 = vmatmul.mubr.bf16.gmra.mrb[92].mxu1 %v4235_v62 }
 0x527   : > { %v4391_v38 = vpop.f32.mrb[32].mxu1 }
 0x528   : > { %v4525_v4 = vmul.f32 %v12805_v43, %v4391_v38  ;;  %v4393_v36 = vpop.f32.mrb[33].mxu1 }
 0x529   : > { %v4394_v8 = vpop.f32.mrb[34].mxu1 }
 0x52a   : > { %v12811_v29 = vadd.f32 %v12807_v50, %v4525_v4  ;;  %v4526_v2 = vmul.f32 %v12805_v43, %v4394_v8  ;;  %v4396_v59 = vpop.f32.mrb[35].mxu1 }
 0x52c   : > { %v14629_v63 = vmax.f32 %v12811_v29, 0.0  ;;  %v12816_v57 = vadd.f32 %v12807_v50, %v4526_v2 }
 0x52e   : > { %14900 = vst [vmem:[#allocation39_spill] sm:$0xff] %v12816_v57  ;;  %v14626_v46 = vmax.f32 %v12816_v57, 0.0  ;;  %4732 = vrot.lane.b32.xlu0 %v14629_v63, %s9698_s12 }
 0x530   : > { %4734 = vrot.lane.b32.xlu1 %v14626_v46, %s9698_s12 }
 0x537   : > { %v4399_v23 = vpop.f32.mrb[36].mxu1 }
 0x538   : > { %v4527_v15 = vmul.f32 %v12805_v43, %v4399_v23  ;;  %v4401_v34 = vpop.f32.mrb[37].mxu1 }
 0x539   : > { %v4402_v42 = vpop.f32.mrb[38].mxu1 }
 0x53a   : > { %v12827_v20 = vadd.f32 %v12807_v50, %v4527_v15  ;;  %v4528_v9 = vmul.f32 %v12805_v43, %v4402_v42  ;;  %v4404_v25 = vpop.f32.mrb[39].mxu1 }
 0x53c   : > { %14901 = vst [vmem:[#allocation77_spill] sm:$0xff] %v12827_v20  ;;  %v14628_v54 = vmax.f32 %v12827_v20, 0.0  ;;  %v12832_v55 = vadd.f32 %v12807_v50, %v4528_v9 }
 0x53e   : > { %14902 = vst [vmem:[#allocation91_spill] sm:$0xff] %v12832_v55  ;;  %v14621_v37 = vmax.f32 %v12832_v55, 0.0  ;;  %4736 = vrot.lane.b32.xlu0 %v14628_v54, %s9698_s12 }
 0x540   : > { %4738 = vrot.lane.b32.xlu1 %v14621_v37, %s9698_s12 }
 0x543   : > { %v4407_v28 = vpop.f32.mrb[40].mxu1 }
 0x544   : > { %v4529_v41 = vmul.f32 %v12805_v43, %v4407_v28  ;;  %v4409_v5 = vpop.f32.mrb[41].mxu1 }
 0x545   : > { %v4410_v16 = vpop.f32.mrb[42].mxu1 }
 0x546   : > { %v12843_v12 = vadd.f32 %v12807_v50, %v4529_v41  ;;  %v4530_v1 = vmul.f32 %v12805_v43, %v4410_v16  ;;  %v4412_v45 = vpop.f32.mrb[43].mxu1 }
 0x548   : > { %14903 = vst [vmem:[#allocation92_spill] sm:$0xff] %v12843_v12  ;;  %v14627_v26 = vmax.f32 %v12843_v12, 0.0  ;;  %v12848_v31 = vadd.f32 %v12807_v50, %v4530_v1 }
 0x54a   : > { %14904 = vst [vmem:[#allocation94_spill] sm:$0xff] %v12848_v31  ;;  %v14618_v21 = vmax.f32 %v12848_v31, 0.0  ;;  %4740 = vrot.lane.b32.xlu0 %v14627_v26, %s9698_s12 }
 0x54c   : > { %4742 = vrot.lane.b32.xlu1 %v14618_v21, %s9698_s12 }
 0x54f   : > { %v4415_v49 = vpop.f32.mrb[44].mxu1 }
 0x550   : > { %v4531_v40 = vmul.f32 %v12805_v43, %v4415_v49  ;;  %v4417_v52 = vpop.f32.mrb[45].mxu1  ;;  %v12937_v49 = vpop.permute.xlu0 %8685 }
 0x551   : > { %v4418_v58 = vpop.f32.mrb[46].mxu1 }
 0x552   : > { %v12859_v30 = vadd.f32 %v12807_v50, %v4531_v40  ;;  %v4532_v3 = vmul.f32 %v12805_v43, %v4418_v58  ;;  %v4420_v33 = vpop.f32.mrb[47].mxu1 }
 0x554   : > { %14905 = vst [vmem:[#allocation93_spill] sm:$0xff] %v12859_v30  ;;  %v14625_v47 = vmax.f32 %v12859_v30, 0.0  ;;  %v12864_v0 = vadd.f32 %v12807_v50, %v4532_v3 }
 0x556   : > { %14906 = vst [vmem:[#allocation95_spill] sm:$0xff] %v12864_v0  ;;  %v14616_v6 = vmax.f32 %v12864_v0, 0.0  ;;  %4744 = vrot.lane.b32.xlu0 %v14625_v47, %s9698_s12  ;;  %v9278_v47 = vld [vmem:[#allocation16 + $0x38] sm:$0xff]  }
 0x558   : > { %4746 = vrot.lane.b32.xlu1 %v14616_v6, %s9698_s12  ;;  %v9275_v6 = vld [vmem:[#allocation16 + $0x20] sm:$0xff]  }
 0x55e   : > { %v4423_v22 = vpop.f32.mrb[48].mxu1 }
 0x55f   : > { %v4533_v14 = vmul.f32 %v12805_v43, %v4423_v22  ;;  %v4425_v11 = vpop.f32.mrb[49].mxu1 }
 0x560   : > { %v4426_v44 = vpop.f32.mrb[50].mxu1  ;;  %v12944_v11 = vpop.permute.xlu0 %8690 }
 0x561   : > { %v12875_v24 = vadd.f32 %v12807_v50, %v4533_v14  ;;  %v4534_v56 = vmul.f32 %v12805_v43, %v4426_v44  ;;  %v4428_v13 = vpop.f32.mrb[51].mxu1 }
 0x563   : > { %14907 = vst [vmem:[#allocation60_spill] sm:$0xff] %v12875_v24  ;;  %v14620_v10 = vmax.f32 %v12875_v24, 0.0  ;;  %v12880_v27 = vadd.f32 %v12807_v50, %v4534_v56 }
 0x565   : > { %14908 = vst [vmem:[#allocation70_spill] sm:$0xff] %v12880_v27  ;;  %v14614_v51 = vmax.f32 %v12880_v27, 0.0  ;;  %4748 = vrot.lane.b32.xlu0 %v14620_v10, %s9698_s12 }
 0x567   : > { %4750 = vrot.lane.b32.xlu1 %v14614_v51, %s9698_s12 }
 0x56b   : > { %v4431_v48 = vpop.f32.mrb[52].mxu1 }
 0x56c   : > { %v4535_v19 = vmul.f32 %v12805_v43, %v4431_v48  ;;  %v4433_v61 = vpop.f32.mrb[53].mxu1 }
 0x56d   : > { %v4434_v18 = vpop.f32.mrb[54].mxu1 }
 0x56e   : > { %v12891_v17 = vadd.f32 %v12807_v50, %v4535_v19  ;;  %v4536_v39 = vmul.f32 %v12805_v43, %v4434_v18  ;;  %v4436_v53 = vpop.f32.mrb[55].mxu1 }
 0x570   : > { %14909 = vst [vmem:[#allocation49_spill] sm:$0xff] %v12891_v17  ;;  %v14617_v35 = vmax.f32 %v12891_v17, 0.0  ;;  %v12896_v7 = vadd.f32 %v12807_v50, %v4536_v39 }
 0x572   : > { %14910 = vst [vmem:[#allocation59_spill] sm:$0xff] %v12896_v7  ;;  %v14611_v60 = vmax.f32 %v12896_v7, 0.0  ;;  %4752 = vrot.lane.b32.xlu0 %v14617_v35, %s9698_s12 }
 0x574   : > { %4754 = vrot.lane.b32.xlu1 %v14611_v60, %s9698_s12 }
 0x57a   : > { %v4439_v32 = vpop.f32.mrb[56].mxu1 }
 0x57b   : > { %v4537_v62 = vmul.f32 %v12805_v43, %v4439_v32  ;;  %v4441_v38 = vpop.f32.mrb[57].mxu1 }
 0x57c   : > { %v4442_v4 = vpop.f32.mrb[58].mxu1 }
 0x57d   : > { %v12907_v36 = vadd.f32 %v12807_v50, %v4537_v62  ;;  %v4538_v8 = vmul.f32 %v12805_v43, %v4442_v4  ;;  %v4444_v2 = vpop.f32.mrb[59].mxu1 }
 0x57f   : > { %14911 = vst [vmem:[#allocation96_spill] sm:$0xff] %v12907_v36  ;;  %v14615_v59 = vmax.f32 %v12907_v36, 0.0  ;;  %v12912_v23 = vadd.f32 %v12807_v50, %v4538_v8  ;;  %v8692_v36 = vunpack.i.l.bf16 %v12944_v11 }
 0x581   : > { %14912 = vst [vmem:[#allocation97_spill] sm:$0xff] %v12912_v23  ;;  %v14608_v15 = vmax.f32 %v12912_v23, 0.0  ;;  %4756 = vrot.lane.b32.xlu0 %v14615_v59, %s9698_s12 }
 0x583   : > { %4758 = vrot.lane.b32.xlu1 %v14608_v15, %s9698_s12 }
 0x587   : > { %v4447_v34 = vpop.f32.mrb[60].mxu1 }
 0x588   : > { %v4539_v42 = vmul.f32 %v12805_v43, %v4447_v34  ;;  %v4449_v9 = vpop.f32.mrb[61].mxu1 }
 0x589   : > { %v4450_v25 = vpop.f32.mrb[62].mxu1 }
 0x58a   : > { %v12923_v28 = vadd.f32 %v12807_v50, %v4539_v42  ;;  %v4540_v41 = vmul.f32 %v12805_v43, %v4450_v25  ;;  %v4452_v5 = vpop.f32.mrb[63].mxu1 }
 0x58c   : > { %14913 = vst [vmem:[#allocation99_spill] sm:$0xff] %v12923_v28  ;;  %v14613_v16 = vmax.f32 %v12923_v28, 0.0  ;;  %v12928_v1 = vadd.f32 %v12807_v50, %v4540_v41 }
 0x58e   : > { %14914 = vst [vmem:[#allocation51_spill] sm:$0xff] %v12928_v1  ;;  %v14605_v45 = vmax.f32 %v12928_v1, 0.0  ;;  %4760 = vrot.lane.b32.xlu0 %v14613_v16, %s9698_s12 }
 0x590   : > { %4762 = vrot.lane.b32.xlu1 %v14605_v45, %s9698_s12 }
 0x596   : > { %v4455_v40 = vpop.f32.mrb[64].mxu1 }
 0x597   : > { %v4541_v52 = vmul.f32 %v12805_v43, %v4455_v40  ;;  %v4457_v58 = vpop.f32.mrb[65].mxu1 }
 0x598   : > { %v4458_v3 = vpop.f32.mrb[66].mxu1 }
 0x599   : > { %v12941_v33 = vadd.f32 %v12807_v50, %v4541_v52  ;;  %v4542_v22 = vmul.f32 %v12805_v43, %v4458_v3  ;;  %v4460_v14 = vpop.f32.mrb[67].mxu1 }
 0x59b   : > { %14915 = vst [vmem:[#allocation61_spill] sm:$0xff] %v12941_v33  ;;  %v14610_v44 = vmax.f32 %v12941_v33, 0.0  ;;  %v12948_v56 = vadd.f32 %v12807_v50, %v4542_v22 }
 0x59d   : > { %14916 = vst [vmem:[#allocation90_spill] sm:$0xff] %v12948_v56  ;;  %v14602_v13 = vmax.f32 %v12948_v56, 0.0  ;;  %4764 = vrot.lane.b32.xlu0 %v14610_v44, %s9698_s12 }
 0x59f   : > { %4766 = vrot.lane.b32.xlu1 %v14602_v13, %s9698_s12 }
 0x5a0   : > { %v4733_v48 = vpop.permute.xlu0 %4732 }
 0x5a1   : > { %4828 = vst.msk [vmem:[#allocation3 + $0x28] sm:$0xff] %vm2559_vm3, %v4733_v48 }
 0x5a2   : > { %v4735_v19 = vpop.permute.xlu1 %4734 }
 0x5a3   : > { %4829 = vst.msk [vmem:[#allocation3 + $0x30] sm:$0xff] %vm2559_vm3, %v4735_v19  ;;  %v4463_v61 = vpop.f32.mrb[68].mxu1 }
 0x5a4   : > { %v4543_v18 = vmul.f32 %v12805_v43, %v4463_v61  ;;  %v4465_v39 = vpop.f32.mrb[69].mxu1 }
 0x5a5   : > { %v4466_v53 = vpop.f32.mrb[70].mxu1 }
 0x5a6   : > { %v12961_v32 = vadd.f32 %v12807_v50, %v4543_v18  ;;  %v4544_v62 = vmul.f32 %v12805_v43, %v4466_v53  ;;  %v4468_v38 = vpop.f32.mrb[71].mxu1 }
 0x5a8   : > { %14917 = vst [vmem:[#allocation78_spill] sm:$0xff] %v12961_v32  ;;  %v14606_v4 = vmax.f32 %v12961_v32, 0.0  ;;  %v12966_v8 = vadd.f32 %v12807_v50, %v4544_v62 }
 0x5aa   : > { %14918 = vst [vmem:[#allocation98_spill] sm:$0xff] %v12966_v8  ;;  %v14600_v2 = vmax.f32 %v12966_v8, 0.0  ;;  %4768 = vrot.lane.b32.xlu0 %v14606_v4, %s9698_s12 }
 0x5ac   : > { %4770 = vrot.lane.b32.xlu1 %v14600_v2, %s9698_s12 }
 0x5b0   : > { %v4737_v34 = vpop.permute.xlu0 %4736 }
 0x5b1   : > { %4830 = vst.msk [vmem:[#allocation3 + $0x48] sm:$0xff] %vm2559_vm3, %v4737_v34 }
 0x5b2   : > { %v4739_v42 = vpop.permute.xlu1 %4738  ;;  %v4471_v9 = vpop.f32.mrb[72].mxu1 }
 0x5b3   : > { %4831 = vst.msk [vmem:[#allocation3 + $0x50] sm:$0xff] %vm2559_vm3, %v4739_v42  ;;  %v4545_v25 = vmul.f32 %v12805_v43, %v4471_v9  ;;  %v4473_v41 = vpop.f32.mrb[73].mxu1 }
 0x5b4   : > { %v4474_v5 = vpop.f32.mrb[74].mxu1 }
 0x5b5   : > { %v12979_v40 = vadd.f32 %v12807_v50, %v4545_v25  ;;  %v4546_v52 = vmul.f32 %v12805_v43, %v4474_v5  ;;  %v4476_v58 = vpop.f32.mrb[75].mxu1 }
 0x5b7   : > { %14919 = vst [vmem:[#allocation100_spill] sm:$0xff] %v12979_v40  ;;  %v14603_v3 = vmax.f32 %v12979_v40, 0.0  ;;  %v12984_v22 = vadd.f32 %v12807_v50, %v4546_v52 }
 0x5b9   : > { %14920 = vst [vmem:[#allocation69_spill] sm:$0xff] %v12984_v22  ;;  %v14598_v14 = vmax.f32 %v12984_v22, 0.0  ;;  %4772 = vrot.lane.b32.xlu0 %v14603_v3, %s9698_s12 }
 0x5ba   : > { %v5116_v48 = vld [vmem:[#allocation3 + $0x49] sm:$0xff]  ;;  %v5117_v19 = vld [vmem:[#allocation3 + $0x51] sm:$0xff] }
 0x5bb   : > { %4774 = vrot.lane.b32.xlu1 %v14598_v14, %s9698_s12  ;;  %v6269_v61 = vpack.c.bf16 %v5117_v19, %v5116_v48  ;;  %v12993_v18 = vpack.i.bf16 %v5117_v19, %v5116_v48 }
 0x5bc   : > { %v4741_v39 = vpop.permute.xlu0 %4740 }
 0x5bd   : > { %4832 = vst.msk [vmem:[#allocation3 + $0x68] sm:$0xff] %vm2559_vm3, %v4741_v39  ;;  %7283 = vmatprep.mubr.msk.bf16.mxu0 %vm2559_vm3, %v6269_v61 }
 0x5be   : > { %v4743_v53 = vpop.permute.xlu1 %4742 }
 0x5bf   : > { %4833 = vst.msk [vmem:[#allocation3 + $0x70] sm:$0xff] %vm2559_vm3, %v4743_v53  ;;  %v4479_v62 = vpop.f32.mrb[76].mxu1 }
 0x5c0   : > { %v4547_v38 = vmul.f32 %v12805_v43, %v4479_v62  ;;  %v4481_v34 = vpop.f32.mrb[77].mxu1 }
 0x5c1   : > { %v4482_v42 = vpop.f32.mrb[78].mxu1 }
 0x5c2   : > { %v13000_v9 = vadd.f32 %v12807_v50, %v4547_v38  ;;  %v4548_v25 = vmul.f32 %v12805_v43, %v4482_v42  ;;  %v4484_v41 = vpop.f32.mrb[79].mxu1 }
 0x5c4   : > { %14921 = vst [vmem:[#allocation42_spill] sm:$0xff] %v13000_v9  ;;  %v14601_v5 = vmax.f32 %v13000_v9, 0.0  ;;  %v13005_v52 = vadd.f32 %v12807_v50, %v4548_v25 }
 0x5c6   : > { %14922 = vst [vmem:[#allocation52_spill] sm:$0xff] %v13005_v52  ;;  %v14599_v58 = vmax.f32 %v13005_v52, 0.0  ;;  %4776 = vrot.lane.b32.xlu0 %v14601_v5, %s9698_s12  ;;  %v13011_v48 = vld [vmem:[#allocation3 + $0x69] sm:$0xff]  ;;  %v13013_v19 = vld [vmem:[#allocation3 + $0x71] sm:$0xff] }
 0x5c8   : > { %v4745_v61 = vpop.permute.xlu0 %4744  ;;  %4778 = vrot.lane.b32.xlu1 %v14599_v58, %s9698_s12 }
 0x5c9   : > { %4834 = vst.msk [vmem:[#allocation3 + $0x88] sm:$0xff] %vm2559_vm3, %v4745_v61 }
 0x5ca   : > { %v4747_v53 = vpop.permute.xlu1 %4746 }
 0x5cb   : > { %4835 = vst.msk [vmem:[#allocation3 + $0x90] sm:$0xff] %vm2559_vm3, %v4747_v53 }
 0x5ce   : > { %v4487_v62 = vpop.f32.mrb[80].mxu1 }
 0x5cf   : > { %v4549_v38 = vmul.f32 %v12805_v43, %v4487_v62  ;;  %v4489_v34 = vpop.f32.mrb[81].mxu1 }
 0x5d0   : > { %v4490_v42 = vpop.f32.mrb[82].mxu1 }
 0x5d1   : > { %v13024_v25 = vadd.f32 %v12807_v50, %v4549_v38  ;;  %v4550_v41 = vmul.f32 %v12805_v43, %v4490_v42  ;;  %v4492_v14 = vpop.f32.mrb[83].mxu1 }
 0x5d2   : > { %v13027_v58 = vld [vmem:[#allocation3 + $0x89] sm:$0xff]  ;;  %v13029_v2 = vld [vmem:[#allocation3 + $0x91] sm:$0xff] }
 0x5d3   : > { %14923 = vst [vmem:[#allocation40_spill] sm:$0xff] %v13024_v25  ;;  %v14604_v61 = vmax.f32 %v13024_v25, 0.0  ;;  %v13033_v5 = vadd.f32 %v12807_v50, %v4550_v41 }
 0x5d5   : > { %14924 = vst [vmem:[#allocation50_spill] sm:$0xff] %v13033_v5  ;;  %v14607_v62 = vmax.f32 %v13033_v5, 0.0  ;;  %4780 = vrot.lane.b32.xlu0 %v14604_v61, %s9698_s12 }
 0x5d7   : > { %v4749_v38 = vpop.permute.xlu0 %4748  ;;  %4782 = vrot.lane.b32.xlu1 %v14607_v62, %s9698_s12 }
 0x5d8   : > { %4836 = vst.msk [vmem:[#allocation3 + $0xa8] sm:$0xff] %vm2559_vm3, %v4749_v38 }
 0x5d9   : > { %v4751_v14 = vpop.permute.xlu1 %4750 }
 0x5da   : > { %4837 = vst.msk [vmem:[#allocation3 + $0xb0] sm:$0xff] %vm2559_vm3, %v4751_v14 }
 0x5db   : > { %v4495_v34 = vpop.f32.mrb[84].mxu1 }
 0x5dc   : > { %v4551_v42 = vmul.f32 %v12805_v43, %v4495_v34  ;;  %v4497_v41 = vpop.f32.mrb[85].mxu1 }
 0x5dd   : > { %v4498_v13 = vpop.f32.mrb[86].mxu1  ;;  %v9272_v41 = vld [vmem:[#allocation16 + $0x8] sm:$0xff]  }
 0x5de   : > { %v13048_v3 = vadd.f32 %v12807_v50, %v4551_v42  ;;  %v4552_v61 = vmul.f32 %v12805_v43, %v4498_v13  ;;  %v4500_v45 = vpop.f32.mrb[87].mxu1  ;;  %v9271_v42 = vld [vmem:[#allocation16] sm:$0xff]  }
 0x5df   : > { %6421 = vmatpush1.bf16.msra.mxu0 %v9271_v42  ;;  %7483 = vmatpush1.bf16.msra.mxu1 %v9271_v42  ;;  %v13196_v54 = vld [vmem:[#allocation3 + $0xa7] sm:$0xff] }
 0x5e0   : > { %14925 = vst [vmem:[#allocation82_spill] sm:$0xff] %v13048_v3  ;;  %v14609_v4 = vmax.f32 %v13048_v3, 0.0  ;;  %v13053_v62 = vadd.f32 %v12807_v50, %v4552_v61  ;;  %v14927_v61 = vmov 0  }
 0x5e1   : > { %v13055_v38 = vld [vmem:[#allocation3 + $0xa9] sm:$0xff]  ;;  %v13061_v34 = vld [vmem:[#allocation3 + $0xb1] sm:$0xff]  ;;  %6422 = vmatprep.subr.bf16.mxu0 %v14927_v61  ;;  %7475 = vmatprep.subr.bf16.mxu1 %v14927_v61 }
 0x5e2   : > { %14926 = vst [vmem:[#allocation83_spill] sm:$0xff] %v13053_v62  ;;  %v14612_v14 = vmax.f32 %v13053_v62, 0.0  ;;  %4784 = vrot.lane.b32.xlu0 %v14609_v4, %s9698_s12  ;;  %v4903_v63 = vld [vmem:[#allocation3 + $0xb0] sm:$0xff] }
 0x5e3   : > { %6423 = vmatpush1.bf16.msra.mxu0 %v9272_v41  ;;  %7484 = vmatpush1.bf16.msra.mxu1 %v9272_v41 }
 0x5e4   : > { %v4753_v45 = vpop.permute.xlu0 %4752  ;;  %4786 = vrot.lane.b32.xlu1 %v14612_v14, %s9698_s12  ;;  %6424 = vmatprep.subr.bf16.mxu0 %v14927_v61  ;;  %v9273_v14 = vld [vmem:[#allocation16 + $0x10] sm:$0xff]  }
 0x5e5   : > { %4838 = vst.msk [vmem:[#allocation3 + $0xc8] sm:$0xff] %vm2559_vm3, %v4753_v45  ;;  %7476 = vmatprep.subr.bf16.mxu1 %v14927_v61 }
 0x5e6   : > { %v4755_v15 = vpop.permute.xlu1 %4754 }
 0x5e7   : > { %4839 = vst.msk [vmem:[#allocation3 + $0xd0] sm:$0xff] %vm2559_vm3, %v4755_v15  ;;  %6425 = vmatpush1.bf16.msra.mxu0 %v9273_v14  ;;  %7485 = vmatpush1.bf16.msra.mxu1 %v9273_v14 }
 0x5e8   : > { %v4503_v4 = vpop.f32.mrb[88].mxu1  ;;  %6426 = vmatprep.subr.bf16.mxu0 %v14927_v61  ;;  %7477 = vmatprep.subr.bf16.mxu1 %v14927_v61 }
 0x5e9   : > { %v4553_v44 = vmul.f32 %v12805_v43, %v4503_v4  ;;  %v4505_v60 = vpop.f32.mrb[89].mxu1 }
 0x5ea   : > { %v4506_v16 = vpop.f32.mrb[90].mxu1  ;;  %v9274_v60 = vld [vmem:[#allocation16 + $0x18] sm:$0xff]  }
 0x5eb   : > { %v13076_v45 = vadd.f32 %v12807_v50, %v4553_v44  ;;  %v4554_v42 = vmul.f32 %v12805_v43, %v4506_v16  ;;  %v4508_v51 = vpop.f32.mrb[91].mxu1  ;;  %6427 = vmatpush1.bf16.msra.mxu0 %v9274_v60  ;;  %7486 = vmatpush1.bf16.msra.mxu1 %v9274_v60  ;;  %v9276_v60 = vld [vmem:[#allocation16 + $0x28] sm:$0xff]  }
 0x5ec   : > { %6428 = vmatprep.subr.bf16.mxu0 %v14927_v61  ;;  %7478 = vmatprep.subr.bf16.mxu1 %v14927_v61  ;;  %v4904_v53 = vld [vmem:[#allocation3 + $0xc8] sm:$0xff] }
 0x5ed   : > { %14928 = vst [vmem:[#allocation41_spill] sm:$0xff] %v13076_v45  ;;  %v14619_v15 = vmax.f32 %v13076_v45, 0.0  ;;  %v13081_v59 = vadd.f32 %v12807_v50, %v4554_v42  ;;  %v13218_v39 = vld [vmem:[#allocation3 + $0xc7] sm:$0xff] }
 0x5ee   : > { %v13084_v4 = vld [vmem:[#allocation3 + $0xc9] sm:$0xff]  ;;  %v13086_v41 = vld [vmem:[#allocation3 + $0xd1] sm:$0xff]  ;;  %14932 = vst [vmem:[#allocation71_spill] sm:$0xff] %v13218_v39 }
 0x5ef   : > { %14929 = vst [vmem:[#allocation79_spill] sm:$0xff] %v13081_v59  ;;  %v14622_v44 = vmax.f32 %v13081_v59, 0.0  ;;  %4788 = vrot.lane.b32.xlu0 %v14619_v15, %s9698_s12  ;;  %6429 = vmatpush1.bf16.msra.mxu0 %v9275_v6 }
 0x5f0   : > { %v4511_v16 = vpop.f32.mrb[92].mxu1  ;;  %6430 = vmatprep.subr.bf16.mxu0 %v14927_v61  ;;  %7487 = vmatpush1.bf16.msra.mxu1 %v9275_v6  ;;  %v9277_v6 = vld [vmem:[#allocation16 + $0x30] sm:$0xff]  }
 0x5f1   : > { %v4555_v42 = vmul.f32 %v12805_v43, %v4511_v16  ;;  %4790 = vrot.lane.b32.xlu1 %v14622_v44, %s9698_s12  ;;  %v4513_v14 = vpop.f32.mrb[93].mxu1  ;;  %7479 = vmatprep.subr.bf16.mxu1 %v14927_v61 }
 0x5f2   : > { %v4514_v35 = vpop.f32.mrb[94].mxu1 }
 0x5f3   : > { %v13101_v21 = vadd.f32 %v12807_v50, %v4555_v42  ;;  %v4556_v15 = vmul.f32 %v12805_v43, %v4514_v35  ;;  %v4516_v10 = vpop.f32.mrb[95].mxu1  ;;  %v4757_v37 = vpop.permute.xlu0 %4756  ;;  %v13112_v42 = vld [vmem:[#allocation3 + $0x2f] sm:$0xff]  ;;  %6431 = vmatpush1.bf16.msra.mxu0 %v9276_v60 }
 0x5f4   : > { %4840 = vst.msk [vmem:[#allocation3 + $0xe8] sm:$0xff] %vm2559_vm3, %v4757_v37  ;;  %v13119_v37 = vld [vmem:[#allocation3 + $0x27] sm:$0xff]  ;;  %6432 = vmatprep.subr.bf16.mxu0 %v14927_v61  ;;  %7488 = vmatpush1.bf16.msra.mxu1 %v9276_v60 }
 0x5f5   : > { %14930 = vst [vmem:[#allocation86_spill] sm:$0xff] %v13101_v21  ;;  %v14623_v16 = vmax.f32 %v13101_v21, 0.0  ;;  %v13108_v14 = vadd.f32 %v12807_v50, %v4556_v15  ;;  %v4759_v44 = vpop.permute.xlu1 %4758  ;;  %v4895_v50 = vld [vmem:[#allocation3 + $0x30] sm:$0xff]  ;;  %v8704_v10 = vpack.i.bf16 %v13112_v42, %v13119_v37  ;;  %v4894_v35 = vld [vmem:[#allocation3 + $0x28] sm:$0xff]  ;;  %7480 = vmatprep.subr.bf16.mxu1 %v14927_v61 }
 0x5f6   : > { %4841 = vst.msk [vmem:[#allocation3 + $0xf0] sm:$0xff] %vm2559_vm3, %v4759_v44  ;;  %v8694_v15 = vpack.i.bf16 %v4895_v50, %v4894_v35  ;;  %v4926_v44 = vld [vmem:[#allocation3 + $0x29] sm:$0xff]  ;;  %v9279_v35 = vld [vmem:[#allocation16 + $0x40] sm:$0xff]  }
 0x5f7   : > { %14931 = vst [vmem:[#allocation87_spill] sm:$0xff] %v13108_v14  ;;  %v14624_v43 = vmax.f32 %v13108_v14, 0.0  ;;  %4792 = vrot.lane.b32.xlu0 %v14623_v16, %s9698_s12  ;;  %v4927_v16 = vld [vmem:[#allocation3 + $0x31] sm:$0xff]  ;;  %6433 = vmatpush1.bf16.msra.mxu0 %v9277_v6 }
 0x5f8   : > { %6434 = vmatprep.subr.bf16.mxu0 %v14927_v61  ;;  %7489 = vmatpush1.bf16.msra.mxu1 %v9277_v6  ;;  %v8699_v46 = vpack.i.bf16 %v4927_v16, %v4926_v44  ;;  %v13139_v16 = vld [vmem:[#allocation3 + $0x4f] sm:$0xff]  ;;  %v13142_v6 = vld [vmem:[#allocation3 + $0x47] sm:$0xff] }
 0x5f9   : > { %4794 = vrot.lane.b32.xlu1 %v14624_v43, %s9698_s12  ;;  %v4897_v43 = vld [vmem:[#allocation3 + $0x50] sm:$0xff]  ;;  %7481 = vmatprep.subr.bf16.mxu1 %v14927_v61 }
 0x5fb   : > { %8705 = vrot.lane.b32.xlu0 %v8704_v10, %s9696_s28  ;;  %v4896_v10 = vld [vmem:[#allocation3 + $0x48] sm:$0xff]  ;;  %6435 = vmatpush1.bf16.msra.mxu0 %v9278_v47 }
 0x5fc   : > { %v8719_v50 = vpack.i.bf16 %v4897_v43, %v4896_v10  ;;  %6436 = vmatprep.subr.bf16.mxu0 %v14927_v61  ;;  %7490 = vmatpush1.bf16.msra.mxu1 %v9278_v47  ;;  %v8729_v47 = vpack.i.bf16 %v13139_v16, %v13142_v6  ;;  %v4899_v43 = vld [vmem:[#allocation3 + $0x70] sm:$0xff]  ;;  %v4906_v59 = vld [vmem:[#allocation3 + $0xe8] sm:$0xff] }
 0x5fd   : > { %8695 = vrot.lane.b32.xlu1 %v8694_v15, %s9694_s11  ;;  %7482 = vmatprep.subr.bf16.mxu1 %v14927_v61  ;;  %v13155_v61 = vld [vmem:[#allocation3 + $0x67] sm:$0xff]  ;;  %v4939_v21 = vld [vmem:[#allocation3 + $0xf1] sm:$0xff] }
 0x5fe   : > { %v4938_v62 = vld [vmem:[#allocation3 + $0xe9] sm:$0xff] }
 0x5ff   : > { %8710 = vrot.lane.b32.xlu0 %v8694_v15, %s9692_s30  ;;  %6437 = vmatpush1.bf16.msra.mxu0 %v9279_v35 }
 0x600   : > { %v4761_v60 = vpop.permute.xlu0 %4760  ;;  %7491 = vmatpush1.bf16.msra.mxu1 %v9279_v35 }
 0x601   : > { %4842 = vst.msk [vmem:[#allocation3 + $0x108] sm:$0xff] %vm2559_vm3, %v4761_v60  ;;  %8700 = vrot.lane.b32.xlu1 %v8699_v46, %s9691_s27  ;;  %v4898_v60 = vld [vmem:[#allocation3 + $0x68] sm:$0xff] }
 0x602   : > { %v4763_v26 = vpop.permute.xlu1 %4762  ;;  %v8754_v10 = vpack.i.bf16 %v4899_v43, %v4898_v60  ;;  %v13178_v60 = vld [vmem:[#allocation3 + $0x87] sm:$0xff] }
 0x603   : > { %4843 = vst.msk [vmem:[#allocation3 + $0x110] sm:$0xff] %vm2559_vm3, %v4763_v26  ;;  %8720 = vrot.lane.b32.xlu0 %v8719_v50, %s9694_s11  ;;  %v13151_v26 = vld [vmem:[#allocation3 + $0x6f] sm:$0xff] }
 0x604   : > { %v8764_v44 = vpack.i.bf16 %v13151_v26, %v13155_v61 }
 0x605   : > { %8715 = vrot.lane.b32.xlu1 %v8699_v46, %s9697_s26 }
 0x607   : > { %8725 = vrot.lane.b32.xlu0 %v12993_v18, %s9691_s27 }
 0x609   : > { %8730 = vrot.lane.b32.xlu1 %v8729_v47, %s9696_s28 }
 0x60a   : > { %v4940_v52 = vld [vmem:[#allocation3 + $0x109] sm:$0xff] }
 0x60b   : > { %8735 = vrot.lane.b32.xlu0 %v8729_v47, %s9693_s17  ;;  %v4900_v47 = vld [vmem:[#allocation3 + $0x88] sm:$0xff] }
 0x60d   : > { %8740 = vrot.lane.b32.xlu1 %v8719_v50, %s9698_s12 }
 0x60f   : > { %8745 = vrot.lane.b32.xlu0 %v8719_v50, %s9692_s30  ;;  %v4765_v46 = vpop.permute.xlu0 %4764  ;;  %v8759_v50 = vpack.i.bf16 %v13013_v19, %v13011_v48 }
 0x610   : > { %4844 = vst.msk [vmem:[#allocation3 + $0x128] sm:$0xff] %vm2559_vm3, %v4765_v46 }
 0x611   : > { %8750 = vrot.lane.b32.xlu1 %v12993_v18, %s9697_s26  ;;  %v4767_v15 = vpop.permute.xlu1 %4766  ;;  %v4901_v18 = vld [vmem:[#allocation3 + $0x90] sm:$0xff] }
 0x612   : > { %4845 = vst.msk [vmem:[#allocation3 + $0x130] sm:$0xff] %vm2559_vm3, %v4767_v15  ;;  %v8789_v46 = vpack.i.bf16 %v4901_v18, %v4900_v47  ;;  %v13173_v15 = vld [vmem:[#allocation3 + $0x8f] sm:$0xff] }
 0x613   : > { %8765 = vrot.lane.b32.xlu0 %v8764_v44, %s9696_s28  ;;  %v13192_v47 = vld [vmem:[#allocation3 + $0xaf] sm:$0xff] }
 0x615   : > { %8755 = vrot.lane.b32.xlu1 %v8754_v10, %s9694_s11 }
 0x617   : > { %8770 = vrot.lane.b32.xlu0 %v8764_v44, %s9693_s17  ;;  %v8794_v44 = vpack.i.bf16 %v13029_v2, %v13027_v58 }
 0x619   : > { %8760 = vrot.lane.b32.xlu1 %v8759_v50, %s9691_s27  ;;  %v4942_v5 = vld [vmem:[#allocation3 + $0x129] sm:$0xff]  ;;  %v4943_v45 = vld [vmem:[#allocation3 + $0x131] sm:$0xff] }
 0x61b   : > { %8780 = vrot.lane.b32.xlu0 %v8754_v10, %s9692_s30 }
 0x61c   : > { %v4769_v35 = vpop.permute.xlu0 %4768 }
 0x61d   : > { %4846 = vst.msk [vmem:[#allocation3 + $0x148] sm:$0xff] %vm2559_vm3, %v4769_v35  ;;  %8775 = vrot.lane.b32.xlu1 %v8754_v10, %s9698_s12  ;;  %v8799_v10 = vpack.i.bf16 %v13173_v15, %v13178_v60 }
 0x61e   : > { %v4771_v43 = vpop.permute.xlu1 %4770 }
 0x61f   : > { %4847 = vst.msk [vmem:[#allocation3 + $0x150] sm:$0xff] %vm2559_vm3, %v4771_v43  ;;  %8790 = vrot.lane.b32.xlu0 %v8789_v46, %s9694_s11 }
 0x621   : > { %8785 = vrot.lane.b32.xlu1 %v8759_v50, %s9697_s26  ;;  %v4902_v50 = vld [vmem:[#allocation3 + $0xa8] sm:$0xff] }
 0x622   : > { %v8824_v13 = vpack.i.bf16 %v4903_v63, %v4902_v50  ;;  %v13213_v50 = vld [vmem:[#allocation3 + $0xcf] sm:$0xff] }
 0x623   : > { %8795 = vrot.lane.b32.xlu0 %v8794_v44, %s9691_s27 }
 0x625   : > { %8800 = vrot.lane.b32.xlu1 %v8799_v10, %s9696_s28 }
 0x626   : > { %v13184_v18 = vld [vmem:[#allocation3 + $0x149] sm:$0xff]  ;;  %v13186_v35 = vld [vmem:[#allocation3 + $0x151] sm:$0xff] }
 0x627   : > { %8805 = vrot.lane.b32.xlu0 %v8799_v10, %s9693_s17  ;;  %v8834_v10 = vpack.i.bf16 %v13192_v47, %v13196_v54 }
 0x629   : > { %8810 = vrot.lane.b32.xlu1 %v8789_v46, %s9698_s12 }
 0x62b   : > { %8815 = vrot.lane.b32.xlu0 %v8789_v46, %s9692_s30  ;;  %v4773_v43 = vpop.permute.xlu0 %4772  ;;  %v8829_v46 = vpack.i.bf16 %v13061_v34, %v13055_v38 }
 0x62c   : > { %4848 = vst.msk [vmem:[#allocation3 + $0x168] sm:$0xff] %vm2559_vm3, %v4773_v43 }
 0x62d   : > { %8820 = vrot.lane.b32.xlu1 %v8794_v44, %s9697_s26  ;;  %v4775_v51 = vpop.permute.xlu1 %4774  ;;  %v4905_v44 = vld [vmem:[#allocation3 + $0xd0] sm:$0xff] }
 0x62e   : > { %4849 = vst.msk [vmem:[#allocation3 + $0x170] sm:$0xff] %vm2559_vm3, %v4775_v51  ;;  %v8859_v51 = vpack.i.bf16 %v4905_v44, %v4904_v53  ;;  %v5063_v53 = vld [vmem:[#allocation3 + $0xef] sm:$0xff]  ;;  %v5062_v44 = vld [vmem:[#allocation3 + $0xe7] sm:$0xff] }
 0x62f   : > { %8835 = vrot.lane.b32.xlu0 %v8834_v10, %s9696_s28  ;;  %v8904_v14 = vpack.i.bf16 %v5063_v53, %v5062_v44  ;;  %v4911_v44 = vld [vmem:[#allocation3 + $0x130] sm:$0xff] }
 0x631   : > { %8825 = vrot.lane.b32.xlu1 %v8824_v13, %s9694_s11 }
 0x633   : > { %8840 = vrot.lane.b32.xlu0 %v8834_v10, %s9693_s17  ;;  %v8864_v10 = vpack.i.bf16 %v13086_v41, %v13084_v4 }
 0x635   : > { %8830 = vrot.lane.b32.xlu1 %v8829_v46, %s9691_s27  ;;  %v4915_v3 = vld [vmem:[#allocation3 + $0x170] sm:$0xff] }
 0x636   : > { %v4946_v25 = vld [vmem:[#allocation3 + $0x169] sm:$0xff]  ;;  %v4947_v8 = vld [vmem:[#allocation3 + $0x171] sm:$0xff] }
 0x637   : > { %8850 = vrot.lane.b32.xlu0 %v8824_v13, %s9692_s30 }
 0x638   : > { %v4777_v43 = vpop.permute.xlu0 %4776 }
 0x639   : > { %4850 = vst.msk [vmem:[#allocation3 + $0x188] sm:$0xff] %vm2559_vm3, %v4777_v43  ;;  %8845 = vrot.lane.b32.xlu1 %v8824_v13, %s9698_s12  ;;  %v8869_v13 = vpack.i.bf16 %v13213_v50, %v13218_v39  ;;  %v4907_v43 = vld [vmem:[#allocation3 + $0xf0] sm:$0xff] }
 0x63a   : > { %v4779_v63 = vpop.permute.xlu1 %4778 }
 0x63b   : > { %4851 = vst.msk [vmem:[#allocation3 + $0x190] sm:$0xff] %vm2559_vm3, %v4779_v63  ;;  %8860 = vrot.lane.b32.xlu0 %v8859_v51, %s9694_s11 }
 0x63d   : > { %8855 = vrot.lane.b32.xlu1 %v8829_v46, %s9697_s26 }
 0x63f   : > { %8865 = vrot.lane.b32.xlu0 %v8864_v10, %s9691_s27 }
 0x640   : > { %v4978_v9 = vld [vmem:[#allocation3 + $0x187] sm:$0xff] }
 0x641   : > { %8870 = vrot.lane.b32.xlu1 %v8869_v13, %s9696_s28 }
 0x642   : > { %v5011_v56 = vld [vmem:[#allocation3 + $0x190] sm:$0xff] }
 0x643   : > { %8875 = vrot.lane.b32.xlu0 %v8869_v13, %s9693_s17  ;;  %v8894_v13 = vpack.i.bf16 %v4907_v43, %v4906_v59 }
 0x645   : > { %8880 = vrot.lane.b32.xlu1 %v8859_v51, %s9698_s12 }
 0x647   : > { %8885 = vrot.lane.b32.xlu0 %v8859_v51, %s9692_s30  ;;  %v4781_v46 = vpop.permute.xlu0 %4780  ;;  %v8899_v51 = vpack.i.bf16 %v4939_v21, %v4938_v62  ;;  %v4910_v62 = vld [vmem:[#allocation3 + $0x128] sm:$0xff] }
 0x648   : > { %4852 = vst.msk [vmem:[#allocation3 + $0x1a8] sm:$0xff] %vm2559_vm3, %v4781_v46  ;;  %v13246_v43 = vpack.i.bf16 %v4911_v44, %v4910_v62  ;;  %v4914_v44 = vld [vmem:[#allocation3 + $0x168] sm:$0xff] }
 0x649   : > { %8890 = vrot.lane.b32.xlu1 %v8864_v10, %s9697_s26  ;;  %v4783_v63 = vpop.permute.xlu1 %4782  ;;  %v13258_v22 = vpack.i.bf16 %v4915_v3, %v4914_v44  ;;  %v13268_v3 = vpack.i.bf16 %v4947_v8, %v4946_v25  ;;  %v4979_v44 = vld [vmem:[#allocation3 + $0x18f] sm:$0xff] }
 0x64a   : > { %4853 = vst.msk [vmem:[#allocation3 + $0x1b0] sm:$0xff] %vm2559_vm3, %v4783_v63  ;;  %v4908_v63 = vld [vmem:[#allocation3 + $0x108] sm:$0xff] }
 0x64b   : > { %8905 = vrot.lane.b32.xlu0 %v8904_v14, %s9693_s17  ;;  %v5010_v8 = vld [vmem:[#allocation3 + $0x188] sm:$0xff] }
 0x64d   : > { %8895 = vrot.lane.b32.xlu1 %v8894_v13, %s9694_s11 }
 0x64f   : > { %8915 = vrot.lane.b32.xlu0 %v8904_v14, %s9696_s28  ;;  %v4909_v14 = vld [vmem:[#allocation3 + $0x110] sm:$0xff] }
 0x651   : > { %8900 = vrot.lane.b32.xlu1 %v8899_v51, %s9691_s27  ;;  %v13234_v46 = vld [vmem:[#allocation3 + $0x1a9] sm:$0xff]  ;;  %v13236_v10 = vld [vmem:[#allocation3 + $0x1b1] sm:$0xff] }
 0x652   : > { %v6291_v53 = vpack.c.bf16 %v13236_v10, %v13234_v46  ;;  %v13312_v27 = vpack.i.bf16 %v13236_v10, %v13234_v46  ;;  %v5075_v0 = vld [vmem:[#allocation3 + $0x1af] sm:$0xff]  ;;  %v5074_v46 = vld [vmem:[#allocation3 + $0x1a7] sm:$0xff] }
 0x653   : > { %8920 = vrot.lane.b32.xlu0 %v8894_v13, %s9692_s30  ;;  %v9094_v57 = vpack.i.bf16 %v5075_v0, %v5074_v46 }
 0x654   : > { %7294 = vmatprep.mubr.msk.bf16.mxu1 %vm2559_vm3, %v6291_v53  ;;  %v4785_v59 = vpop.permute.xlu0 %4784  ;;  %v8929_v53 = vpack.i.bf16 %v4909_v14, %v4908_v63  ;;  %v5064_v63 = vld [vmem:[#allocation3 + $0x107] sm:$0xff] }
 0x655   : > { %4854 = vst.msk [vmem:[#allocation3 + $0x1c8] sm:$0xff] %vm2559_vm3, %v4785_v59  ;;  %8910 = vrot.lane.b32.xlu1 %v8894_v13, %s9698_s12  ;;  %v4941_v59 = vld [vmem:[#allocation3 + $0x111] sm:$0xff]  ;;  %v13251_v13 = vpack.i.bf16 %v4943_v45, %v4942_v5  ;;  %v13274_v5 = vpack.i.bf16 %v4979_v44, %v4978_v9 }
 0x656   : > { %v4787_v21 = vpop.permute.xlu1 %4786 }
 0x657   : > { %4855 = vst.msk [vmem:[#allocation3 + $0x1d0] sm:$0xff] %vm2559_vm3, %v4787_v21  ;;  %8925 = vrot.lane.b32.xlu0 %v8899_v51, %s9697_s26  ;;  %v8934_v51 = vpack.i.bf16 %v4941_v59, %v4940_v52  ;;  %v5065_v21 = vld [vmem:[#allocation3 + $0x10f] sm:$0xff] }
 0x658   : > { %v8939_v52 = vpack.i.bf16 %v5065_v21, %v5064_v63  ;;  %v13280_v63 = vpack.i.bf16 %v5011_v56, %v5010_v8  ;;  %v4918_v56 = vld [vmem:[#allocation3 + $0x1a8] sm:$0xff] }
 0x659   : > { %8965 = vrot.lane.b32.xlu1 %v13246_v43, %s9694_s11 }
 0x65b   : > { %8930 = vrot.lane.b32.xlu0 %v8929_v53, %s9694_s11 }
 0x65d   : > { %8970 = vrot.lane.b32.xlu1 %v13251_v13, %s9691_s27 }
 0x65e   : > { %v13255_v62 = vld [vmem:[#allocation3 + $0x1c9] sm:$0xff]  ;;  %v13260_v14 = vld [vmem:[#allocation3 + $0x1d1] sm:$0xff] }
 0x65f   : > { %8935 = vrot.lane.b32.xlu0 %v8934_v51, %s9691_s27 }
 0x661   : > { %v4789_v45 = vpop.permute.xlu0 %4788  ;;  %9035 = vrot.lane.b32.xlu1 %v13258_v22, %s9694_s11 }
 0x662   : > { %4856 = vst.msk [vmem:[#allocation3 + $0x1e8] sm:$0xff] %vm2559_vm3, %v4789_v45  ;;  %v5042_v45 = vld [vmem:[#allocation3 + $0x189] sm:$0xff] }
 0x663   : > { %v4791_v59 = vpop.permute.xlu1 %4790  ;;  %8940 = vrot.lane.b32.xlu0 %v8939_v52, %s9693_s17 }
 0x664   : > { %4857 = vst.msk [vmem:[#allocation3 + $0x1f0] sm:$0xff] %vm2559_vm3, %v4791_v59  ;;  %v5043_v59 = vld [vmem:[#allocation3 + $0x191] sm:$0xff] }
 0x665   : > { %9040 = vrot.lane.b32.xlu1 %v13268_v3, %s9691_s27  ;;  %v13288_v44 = vpack.i.bf16 %v5043_v59, %v5042_v45  ;;  %v8688_v45 = vunpack.i.h.bf16 %v12937_v49  ;;  %v8687_v59 = vunpack.i.l.bf16 %v12937_v49  ;;  %v8693_v49 = vunpack.i.h.bf16 %v12944_v11 }
 0x667   : > { %8945 = vrot.lane.b32.xlu0 %v8929_v53, %s9698_s12 }
 0x669   : > { %v4793_v21 = vpop.permute.xlu0 %4792  ;;  %9070 = vrot.lane.b32.xlu1 %v13274_v5, %s9696_s28 }
 0x66a   : > { %4858 = vst.msk [vmem:[#allocation3 + $0x208] sm:$0xff] %vm2559_vm3, %v4793_v21  ;;  %v4919_v21 = vld [vmem:[#allocation3 + $0x1b0] sm:$0xff] }
 0x66b   : > { %8950 = vrot.lane.b32.xlu0 %v8939_v52, %s9696_s28  ;;  %v4795_v25 = vpop.permute.xlu1 %4794  ;;  %v5067_v52 = vld [vmem:[#allocation3 + $0x12f] sm:$0xff] }
 0x66c   : > { %4859 = vst.msk [vmem:[#allocation3 + $0x210] sm:$0xff] %vm2559_vm3, %v4795_v25  ;;  %v13295_v25 = vpack.i.bf16 %v4919_v21, %v4918_v56  ;;  %v4860_v21 = vld [vmem:[#allocation3 + $0x7] sm:$0xff]  ;;  %v4861_v56 = vld [vmem:[#allocation3 + $0xf] sm:$0xff] }
 0x66d   : > { %v8706_v40 = vpop.permute.xlu0 %8705  ;;  %9075 = vrot.lane.b32.xlu1 %v13280_v63, %s9692_s30  ;;  %v6045_v17 = vsel %vm2559_vm3, %v4861_v56, %v8688_v45 }
 0x66f   : > { %8955 = vrot.lane.b32.xlu0 %v8929_v53, %s9692_s30  ;;  %v13286_v9 = vpop.permute.xlu1 %8695  ;;  %v5066_v53 = vld [vmem:[#allocation3 + $0x127] sm:$0xff] }
 0x670   : > { %v8974_v7 = vpack.i.bf16 %v5067_v52, %v5066_v53  ;;  %v6044_v52 = vsel %vm2559_vm3, %v4860_v21, %v8687_v59  ;;  %v8708_v53 = vunpack.i.h.bf16 %v8706_v40  ;;  %v6077_v59 = vsel %vm530_vm0, %v6045_v17, %v8693_v49 }
 0x671   : > { %v8711_v1 = vpop.permute.xlu0 %8710  ;;  %9080 = vrot.lane.b32.xlu1 %v13288_v44, %s9697_s26  ;;  %v6076_v45 = vsel %vm530_vm0, %v6044_v52, %v8692_v36 }
 0x672   : > { %v8713_v24 = vunpack.i.h.bf16 %v8711_v1  ;;  %v8712_v55 = vunpack.i.l.bf16 %v8711_v1 }
 0x673   : > { %8960 = vrot.lane.b32.xlu0 %v8934_v51, %s9697_s26  ;;  %v13293_v8 = vpop.permute.xlu1 %8700  ;;  %v13297_v32 = vld [vmem:[#allocation3 + $0x209] sm:$0xff]  ;;  %v13299_v23 = vld [vmem:[#allocation3 + $0x211] sm:$0xff]  ;;  %v8707_v51 = vunpack.i.l.bf16 %v8706_v40  ;;  %v6109_v40 = vsel %vm4042_vm4, %v6077_v59, %v8708_v53 }
 0x675   : > { %v13303_v33 = vpop.permute.xlu0 %8720  ;;  %9085 = vrot.lane.b32.xlu1 %v13295_v25, %s9694_s11  ;;  %v6108_v21 = vsel %vm4042_vm4, %v6076_v45, %v8707_v51  ;;  %v8703_v45 = vunpack.i.h.bf16 %v13293_v8 }
 0x676   : > { %v6140_v1 = vsel %vm1725_vm1, %v6108_v21, %v8712_v55  ;;  %v4912_v21 = vld [vmem:[#allocation3 + $0x148] sm:$0xff] }
 0x677   : > { %8975 = vrot.lane.b32.xlu0 %v8974_v7, %s9693_s17  ;;  %v8716_v28 = vpop.permute.xlu1 %8715 }
 0x678   : > { %v8718_v10 = vunpack.i.h.bf16 %v8716_v28  ;;  %v8717_v30 = vunpack.i.l.bf16 %v8716_v28  ;;  %v6141_v28 = vsel %vm1725_vm1, %v6109_v40, %v8713_v24 }
 0x679   : > { %v13318_v31 = vpop.permute.xlu0 %8725  ;;  %9090 = vrot.lane.b32.xlu1 %v13312_v27, %s9691_s27 }
 0x67a   : > { %v6173_v39 = vsel %vm4107_vm5, %v6141_v28, %v8718_v10  ;;  %v6172_v0 = vsel %vm4107_vm5, %v6140_v1, %v8717_v30  ;;  %v4913_v10 = vld [vmem:[#allocation3 + $0x150] sm:$0xff] }
 0x67b   : > { %8980 = vrot.lane.b32.xlu0 %v13246_v43, %s9698_s12  ;;  %v8731_v11 = vpop.permute.xlu1 %8730 }
 0x67c   : > { %v8732_v40 = vunpack.i.l.bf16 %v8731_v11 }
 0x67d   : > { %v8736_v56 = vpop.permute.xlu0 %8735  ;;  %9095 = vrot.lane.b32.xlu1 %v9094_v57, %s9693_s17 }
 0x67e   : > { %v8738_v12 = vunpack.i.h.bf16 %v8736_v56  ;;  %v8737_v20 = vunpack.i.l.bf16 %v8736_v56  ;;  %v5082_v56 = vld [vmem:[#allocation3 + $0x227] sm:$0xff] }
 0x67f   : > { %8985 = vrot.lane.b32.xlu0 %v8974_v7, %s9696_s28  ;;  %v8741_v17 = vpop.permute.xlu1 %8740 }
 0x680   : > { %v6204_v36 = vsel %vm1758_vm2, %v6172_v0, %v8737_v20  ;;  %v6205_v51 = vsel %vm1758_vm2, %v6173_v39, %v8738_v12  ;;  %v8743_v49 = vunpack.i.h.bf16 %v8741_v17  ;;  %v8742_v52 = vunpack.i.l.bf16 %v8741_v17 }
 0x681   : > { %v8746_v53 = vpop.permute.xlu0 %8745  ;;  %9100 = vrot.lane.b32.xlu1 %v13295_v25, %s9698_s12  ;;  %v8698_v20 = vunpack.i.h.bf16 %v13286_v9  ;;  %v8697_v12 = vunpack.i.l.bf16 %v13286_v9  ;;  %v14933_v39 = vpack.c.bf16 %v13013_v19, %v13011_v48  ;;  %v5083_v9 = vld [vmem:[#allocation3 + $0x22f] sm:$0xff]  ;;  %v13359_v19 = vpack.i.bf16 %v4913_v10, %v4912_v21 }
 0x682   : > { %v6236_v55 = vsel %vm4172_vm6, %v6204_v36, %v8742_v52  ;;  %v6237_v24 = vsel %vm4172_vm6, %v6205_v51, %v8743_v49  ;;  %v8748_v1 = vunpack.i.h.bf16 %v8746_v53  ;;  %v8747_v28 = vunpack.i.l.bf16 %v8746_v53 }
 0x683   : > { %v6268_v46 = vpack.c.bf16 %v6237_v24, %v6236_v55  ;;  %8990 = vrot.lane.b32.xlu0 %v13246_v43, %s9692_s30  ;;  %v8751_v30 = vpop.permute.xlu1 %8750  ;;  %v8702_v43 = vunpack.i.l.bf16 %v13293_v8  ;;  %v6047_v8 = vsel %vm2559_vm3, %v13112_v42, %v8698_v20  ;;  %v9144_v36 = vpack.i.bf16 %v5083_v9, %v5082_v56  ;;  %v5069_v20 = vld [vmem:[#allocation3 + $0x14f] sm:$0xff]  ;;  %v5076_v9 = vld [vmem:[#allocation3 + $0x1c7] sm:$0xff] }
 0x684   : > { %v8753_v49 = vunpack.i.h.bf16 %v8751_v30 }
 0x685   : > { %v13342_v7 = vpop.permute.xlu0 %8765  ;;  %9105 = vrot.lane.b32.xlu1 %v9094_v57, %s9696_s28  ;;  %6453 = vmatmul.mubr.bf16.vlgmr.msra.gmra.mrb[64].mxu0 %v6268_v46  ;;  %v8733_v57 = vunpack.i.h.bf16 %v8731_v11  ;;  %v6079_v11 = vsel %vm530_vm0, %v6047_v8, %v8703_v45  ;;  %v8722_v8 = vunpack.i.l.bf16 %v13303_v33 }
 0x686   : > { %7284 = vmatprep.mubr.msk.bf16.mxu0 %vm2559_vm3, %v14933_v39 }
 0x687   : > { %8995 = vrot.lane.b32.xlu0 %v13251_v13, %s9697_s26  ;;  %v13355_v59 = vpop.permute.xlu1 %8755  ;;  %v6046_v13 = vsel %vm2559_vm3, %v13119_v37, %v8697_v12  ;;  %v6111_v42 = vsel %vm4042_vm4, %v6079_v11, %v8733_v57  ;;  %v8752_v37 = vunpack.i.l.bf16 %v8751_v30  ;;  %v5077_v57 = vld [vmem:[#allocation3 + $0x1cf] sm:$0xff] }
 0x688   : > { %v6078_v0 = vsel %vm530_vm0, %v6046_v13, %v8702_v43  ;;  %v6143_v53 = vsel %vm1725_vm1, %v6111_v42, %v8748_v1  ;;  %v5068_v43 = vld [vmem:[#allocation3 + $0x147] sm:$0xff]  ;;  %v8727_v42 = vunpack.i.l.bf16 %v13318_v31 }
 0x689   : > { %v8771_v48 = vpop.permute.xlu0 %8770  ;;  %9110 = vrot.lane.b32.xlu1 %v13295_v25, %s9692_s30  ;;  %v13373_v25 = vpack.i.bf16 %v13186_v35, %v13184_v18  ;;  %v6110_v51 = vsel %vm4042_vm4, %v6078_v0, %v8732_v40  ;;  %v6175_v10 = vsel %vm4107_vm5, %v6143_v53, %v8753_v49  ;;  %v9009_v21 = vpack.i.bf16 %v5069_v20, %v5068_v43 }
 0x68a   : > { %v6142_v52 = vsel %vm1725_vm1, %v6110_v51, %v8747_v28  ;;  %v8773_v55 = vunpack.i.h.bf16 %v8771_v48  ;;  %v8772_v24 = vunpack.i.l.bf16 %v8771_v48  ;;  %v8723_v48 = vunpack.i.h.bf16 %v13303_v33  ;;  %v5108_v33 = vld [vmem:[#allocation3 + $0x1c8] sm:$0xff] }
 0x68b   : > { %9000 = vrot.lane.b32.xlu0 %v13359_v19, %s9694_s11  ;;  %v13369_v17 = vpop.permute.xlu1 %8760  ;;  %v6174_v39 = vsel %vm4107_vm5, %v6142_v52, %v8752_v37  ;;  %v9154_v0 = vpack.i.bf16 %v5077_v57, %v5076_v9  ;;  %v8728_v51 = vunpack.i.h.bf16 %v13318_v31  ;;  %v8768_v49 = vunpack.i.h.bf16 %v13342_v7 }
 0x68c   : > { %v6207_v56 = vsel %vm1758_vm2, %v6175_v10, %v8773_v55  ;;  %v8767_v37 = vunpack.i.l.bf16 %v13342_v7  ;;  %v6049_v31 = vsel %vm2559_vm3, %v13139_v16, %v8723_v48  ;;  %v6048_v7 = vsel %vm2559_vm3, %v13142_v6, %v8722_v8 }
 0x68d   : > { %v8781_v46 = vpop.permute.xlu0 %8780  ;;  %9115 = vrot.lane.b32.xlu1 %v13312_v27, %s9697_s26  ;;  %v6206_v27 = vsel %vm1758_vm2, %v6174_v39, %v8772_v24  ;;  %v14934_v24 = vpack.c.bf16 %v13029_v2, %v13027_v58  ;;  %v6081_v2 = vsel %vm530_vm0, %v6049_v31, %v8728_v51 }
 0x68e   : > { %v8783_v53 = vunpack.i.h.bf16 %v8781_v46  ;;  %v8782_v55 = vunpack.i.l.bf16 %v8781_v46  ;;  %v6080_v46 = vsel %vm530_vm0, %v6048_v7, %v8727_v42 }
 0x68f   : > { %9005 = vrot.lane.b32.xlu0 %v13373_v25, %s9691_s27  ;;  %v8776_v12 = vpop.permute.xlu1 %8775  ;;  %v6112_v58 = vsel %vm4042_vm4, %v6080_v46, %v8767_v37  ;;  %v8757_v37 = vunpack.i.l.bf16 %v13355_v59 }
 0x690   : > { %v8778_v30 = vunpack.i.h.bf16 %v8776_v12  ;;  %v8777_v45 = vunpack.i.l.bf16 %v8776_v12  ;;  %v6144_v16 = vsel %vm1725_vm1, %v6112_v58, %v8782_v55 }
 0x691   : > { %v13385_v40 = vpop.permute.xlu0 %8790  ;;  %9145 = vrot.lane.b32.xlu1 %v9144_v36, %s9693_s17  ;;  %v5109_v36 = vld [vmem:[#allocation3 + $0x1d0] sm:$0xff]  ;;  %v6050_v46 = vsel %vm2559_vm3, %v13155_v61, %v8757_v37 }
 0x692   : > { %v6238_v1 = vsel %vm4172_vm6, %v6206_v27, %v8777_v45  ;;  %v6239_v28 = vsel %vm4172_vm6, %v6207_v56, %v8778_v30  ;;  %v13406_v20 = vpack.i.bf16 %v5109_v36, %v5108_v33  ;;  %v6113_v30 = vsel %vm4042_vm4, %v6081_v2, %v8768_v49  ;;  %v13442_v33 = vld [vmem:[#allocation3 + $0x16f] sm:$0xff] }
 0x693   : > { %9010 = vrot.lane.b32.xlu0 %v9009_v21, %s9693_s17  ;;  %v8786_v13 = vpop.permute.xlu1 %8785  ;;  %v6270_v11 = vpack.c.bf16 %v6239_v28, %v6238_v1  ;;  %v6145_v6 = vsel %vm1725_vm1, %v6113_v30, %v8783_v53  ;;  %v8758_v49 = vunpack.i.h.bf16 %v13355_v59  ;;  %v8762_v53 = vunpack.i.l.bf16 %v13369_v17  ;;  %v4955_v61 = vld [vmem:[#allocation3 + $0x1f1] sm:$0xff] }
 0x694   : > { %v8788_v12 = vunpack.i.h.bf16 %v8786_v13  ;;  %v8787_v39 = vunpack.i.l.bf16 %v8786_v13 }
 0x695   : > { %v13399_v52 = vpop.permute.xlu0 %8795  ;;  %9155 = vrot.lane.b32.xlu1 %v9154_v0, %s9693_s17  ;;  %6461 = vmatmul.mubr.bf16.gmra.mrb[68].mxu0 %v6270_v11  ;;  %v6082_v2 = vsel %vm530_vm0, %v6050_v46, %v8762_v53 }
 0x696   : > { %7285 = vmatprep.mubr.msk.bf16.mxu0 %vm2559_vm3, %v14934_v24  ;;  %v6177_v27 = vsel %vm4107_vm5, %v6145_v6, %v8788_v12  ;;  %v6176_v56 = vsel %vm4107_vm5, %v6144_v16, %v8787_v39  ;;  %v13452_v24 = vpack.i.bf16 %v13260_v14, %v13255_v62 }
 0x697   : > { %9015 = vrot.lane.b32.xlu0 %v13359_v19, %s9698_s12  ;;  %v8801_v10 = vpop.permute.xlu1 %8800 }
 0x698   : > { %v8803_v59 = vunpack.i.h.bf16 %v8801_v10  ;;  %v8802_v31 = vunpack.i.l.bf16 %v8801_v10  ;;  %v4922_v10 = vld [vmem:[#allocation3 + $0x1e8] sm:$0xff] }
 0x699   : > { %v8806_v45 = vpop.permute.xlu0 %8805  ;;  %9160 = vrot.lane.b32.xlu1 %v13406_v20, %s9698_s12 }
 0x69a   : > { %v8808_v43 = vunpack.i.h.bf16 %v8806_v45  ;;  %v8807_v57 = vunpack.i.l.bf16 %v8806_v45  ;;  %v6114_v16 = vsel %vm4042_vm4, %v6082_v2, %v8802_v31  ;;  %v8792_v31 = vunpack.i.l.bf16 %v13385_v40 }
 0x69b   : > { %9020 = vrot.lane.b32.xlu0 %v9009_v21, %s9696_s28  ;;  %v8811_v9 = vpop.permute.xlu1 %8810 }
 0x69c   : > { %v8813_v1 = vunpack.i.h.bf16 %v8811_v9  ;;  %v8812_v28 = vunpack.i.l.bf16 %v8811_v9  ;;  %v6208_v48 = vsel %vm1758_vm2, %v6176_v56, %v8807_v57  ;;  %v6209_v8 = vsel %vm1758_vm2, %v6177_v27, %v8808_v43  ;;  %v4954_v57 = vld [vmem:[#allocation3 + $0x1e9] sm:$0xff] }
 0x69d   : > { %v8816_v13 = vpop.permute.xlu0 %8815  ;;  %9165 = vrot.lane.b32.xlu1 %v9154_v0, %s9696_s28  ;;  %v14935_v0 = vpack.c.bf16 %v13061_v34, %v13055_v38  ;;  %v13454_v38 = vld [vmem:[#allocation3 + $0x167] sm:$0xff]  ;;  %v4923_v34 = vld [vmem:[#allocation3 + $0x1f0] sm:$0xff] }
 0x69e   : > { %v6240_v11 = vsel %vm4172_vm6, %v6208_v48, %v8812_v28  ;;  %v6241_v36 = vsel %vm4172_vm6, %v6209_v8, %v8813_v1  ;;  %v8818_v7 = vunpack.i.h.bf16 %v8816_v13  ;;  %v8817_v12 = vunpack.i.l.bf16 %v8816_v13 }
 0x69f   : > { %9025 = vrot.lane.b32.xlu0 %v13359_v19, %s9692_s30  ;;  %v8821_v51 = vpop.permute.xlu1 %8820  ;;  %v6272_v42 = vpack.c.bf16 %v6241_v36, %v6240_v11  ;;  %v8763_v19 = vunpack.i.h.bf16 %v13369_v17  ;;  %v13460_v17 = vpack.i.bf16 %v13442_v33, %v13454_v38  ;;  %v13472_v45 = vpack.i.bf16 %v4923_v34, %v4922_v10 }
 0x6a0   : > { %v8822_v43 = vunpack.i.l.bf16 %v8821_v51  ;;  %v6146_v27 = vsel %vm1725_vm1, %v6114_v16, %v8817_v12  ;;  %v13482_v8 = vpack.i.bf16 %v4955_v61, %v4954_v57 }
 0x6a1   : > { %v13432_v21 = vpop.permute.xlu0 %8835  ;;  %9170 = vrot.lane.b32.xlu1 %v13406_v20, %s9692_s30  ;;  %6469 = vmatmul.mubr.bf16.gmra.mrb[72].mxu0 %v6272_v42  ;;  %v5079_v42 = vld [vmem:[#allocation3 + $0x1ef] sm:$0xff] }
 0x6a2   : > { %7286 = vmatprep.mubr.msk.bf16.mxu0 %vm2559_vm3, %v14935_v0  ;;  %v6178_v13 = vsel %vm4107_vm5, %v6146_v27, %v8822_v43  ;;  %v8838_v46 = vunpack.i.h.bf16 %v13432_v21  ;;  %v8837_v10 = vunpack.i.l.bf16 %v13432_v21 }
 0x6a3   : > { %9030 = vrot.lane.b32.xlu0 %v13373_v25, %s9697_s26  ;;  %v13448_v55 = vpop.permute.xlu1 %8825  ;;  %v6051_v25 = vsel %vm2559_vm3, %v13151_v26, %v8758_v49  ;;  %v8823_v26 = vunpack.i.h.bf16 %v8821_v51 }
 0x6a4   : > { %v6083_v58 = vsel %vm530_vm0, %v6051_v25, %v8763_v19  ;;  %v8797_v25 = vunpack.i.l.bf16 %v13399_v52 }
 0x6a5   : > { %v8841_v39 = vpop.permute.xlu0 %8840  ;;  %9175 = vrot.lane.b32.xlu1 %v13452_v24, %s9697_s26  ;;  %v6115_v6 = vsel %vm4042_vm4, %v6083_v58, %v8803_v59  ;;  %v8793_v59 = vunpack.i.h.bf16 %v13385_v40 }
 0x6a6   : > { %v6147_v56 = vsel %vm1725_vm1, %v6115_v6, %v8818_v7  ;;  %v8843_v9 = vunpack.i.h.bf16 %v8841_v39  ;;  %v8842_v1 = vunpack.i.l.bf16 %v8841_v39  ;;  %v8798_v39 = vunpack.i.h.bf16 %v13399_v52 }
 0x6a7   : > { %9045 = vrot.lane.b32.xlu0 %v13460_v17, %s9693_s17  ;;  %v13470_v30 = vpop.permute.xlu1 %8830  ;;  %v6179_v11 = vsel %vm4107_vm5, %v6147_v56, %v8823_v26  ;;  %v6053_v16 = vsel %vm2559_vm3, %v13173_v15, %v8793_v59  ;;  %v6052_v52 = vsel %vm2559_vm3, %v13178_v60, %v8792_v31  ;;  %v8827_v59 = vunpack.i.l.bf16 %v13448_v55 }
 0x6a8   : > { %v6210_v37 = vsel %vm1758_vm2, %v6178_v13, %v8842_v1  ;;  %v6211_v0 = vsel %vm1758_vm2, %v6179_v11, %v8843_v9  ;;  %v6084_v43 = vsel %vm530_vm0, %v6052_v52, %v8797_v25  ;;  %v6085_v57 = vsel %vm530_vm0, %v6053_v16, %v8798_v39 }
 0x6a9   : > { %v8851_v28 = vpop.permute.xlu0 %8850  ;;  %9180 = vrot.lane.b32.xlu1 %v13472_v45, %s9694_s11 }
 0x6aa   : > { %v8853_v40 = vunpack.i.h.bf16 %v8851_v28  ;;  %v8852_v58 = vunpack.i.l.bf16 %v8851_v28 }
 0x6ab   : > { %9050 = vrot.lane.b32.xlu0 %v13280_v63, %s9694_s11  ;;  %v8846_v48 = vpop.permute.xlu1 %8845  ;;  %v5078_v63 = vld [vmem:[#allocation3 + $0x1e7] sm:$0xff] }
 0x6ac   : > { %v8848_v36 = vunpack.i.h.bf16 %v8846_v48  ;;  %v8847_v51 = vunpack.i.l.bf16 %v8846_v48  ;;  %v9189_v7 = vpack.i.bf16 %v5079_v42, %v5078_v63  ;;  %v5126_v42 = vld [vmem:[#allocation3 + $0xe9] sm:$0xff] }
 0x6ad   : > { %v13486_v49 = vpop.permute.xlu0 %8860  ;;  %9185 = vrot.lane.b32.xlu1 %v13482_v8, %s9691_s27 }
 0x6ae   : > { %v6242_v19 = vsel %vm4172_vm6, %v6210_v37, %v8847_v51  ;;  %v6243_v53 = vsel %vm4172_vm6, %v6211_v0, %v8848_v36  ;;  %v5127_v37 = vld [vmem:[#allocation3 + $0xf1] sm:$0xff] }
 0x6af   : > { %9055 = vrot.lane.b32.xlu0 %v13288_v44, %s9691_s27  ;;  %v8856_v34 = vpop.permute.xlu1 %8855  ;;  %v6274_v12 = vpack.c.bf16 %v6243_v53, %v6242_v19  ;;  %v14936_v44 = vpack.c.bf16 %v13086_v41, %v13084_v4  ;;  %v6116_v4 = vsel %vm4042_vm4, %v6084_v43, %v8837_v10  ;;  %v6117_v41 = vsel %vm4042_vm4, %v6085_v57, %v8838_v46  ;;  %v5113_v57 = vld [vmem:[#allocation3 + $0x210] sm:$0xff] }
 0x6b0   : > { %v8858_v6 = vunpack.i.h.bf16 %v8856_v34  ;;  %v8857_v21 = vunpack.i.l.bf16 %v8856_v34  ;;  %v6148_v15 = vsel %vm1725_vm1, %v6116_v4, %v8852_v58  ;;  %v6149_v60 = vsel %vm1725_vm1, %v6117_v41, %v8853_v40  ;;  %v5081_v40 = vld [vmem:[#allocation3 + $0x20f] sm:$0xff] }
 0x6b1   : > { %v13502_v2 = vpop.permute.xlu0 %8865  ;;  %9190 = vrot.lane.b32.xlu1 %v9189_v7, %s9693_s17  ;;  %6477 = vmatmul.mubr.bf16.gmra.mrb[76].mxu0 %v6274_v12  ;;  %v8828_v53 = vunpack.i.h.bf16 %v13448_v55  ;;  %v6279_v31 = vpack.c.bf16 %v5127_v37, %v5126_v42  ;;  %v8833_v34 = vunpack.i.h.bf16 %v13470_v30  ;;  %v5105_v42 = vld [vmem:[#allocation3 + $0x190] sm:$0xff] }
 0x6b2   : > { %7287 = vmatprep.mubr.msk.bf16.mxu0 %vm2559_vm3, %v14936_v44  ;;  %v6181_v9 = vsel %vm4107_vm5, %v6149_v60, %v8858_v6  ;;  %v6180_v1 = vsel %vm4107_vm5, %v6148_v15, %v8857_v21  ;;  %v5112_v60 = vld [vmem:[#allocation3 + $0x208] sm:$0xff] }
 0x6b3   : > { %9060 = vrot.lane.b32.xlu0 %v13258_v22, %s9698_s12  ;;  %v8871_v26 = vpop.permute.xlu1 %8870  ;;  %v6055_v10 = vsel %vm2559_vm3, %v13192_v47, %v8828_v53  ;;  %v5080_v47 = vld [vmem:[#allocation3 + $0x207] sm:$0xff] }
 0x6b4   : > { %v8873_v39 = vunpack.i.h.bf16 %v8871_v26  ;;  %v8872_v25 = vunpack.i.l.bf16 %v8871_v26  ;;  %v6087_v58 = vsel %vm530_vm0, %v6055_v10, %v8833_v34  ;;  %v9214_v43 = vpack.i.bf16 %v5081_v40, %v5080_v47  ;;  %v5114_v34 = vld [vmem:[#allocation3 + $0x228] sm:$0xff] }
 0x6b5   : > { %v8876_v61 = vpop.permute.xlu0 %8875  ;;  %9195 = vrot.lane.b32.xlu1 %v13472_v45, %s9698_s12 }
 0x6b6   : > { %v8878_v27 = vunpack.i.h.bf16 %v8876_v61  ;;  %v8877_v56 = vunpack.i.l.bf16 %v8876_v61  ;;  %v6119_v16 = vsel %vm4042_vm4, %v6087_v58, %v8873_v39  ;;  %v8867_v39 = vunpack.i.l.bf16 %v13502_v2  ;;  %v14938_v58 = vld [vmem:[#allocation71_spill] sm:$0xff] }
 0x6b7   : > { %9065 = vrot.lane.b32.xlu0 %v13460_v17, %s9696_s28  ;;  %v8881_v28 = vpop.permute.xlu1 %8880 }
 0x6b8   : > { %v8883_v48 = vunpack.i.h.bf16 %v8881_v28  ;;  %v8882_v13 = vunpack.i.l.bf16 %v8881_v28  ;;  %v6212_v11 = vsel %vm1758_vm2, %v6180_v1, %v8877_v56  ;;  %v6213_v36 = vsel %vm1758_vm2, %v6181_v9, %v8878_v27 }
 0x6b9   : > { %v8886_v51 = vpop.permute.xlu0 %8885  ;;  %9200 = vrot.lane.b32.xlu1 %v9189_v7, %s9696_s28  ;;  %v8832_v7 = vunpack.i.l.bf16 %v13470_v30  ;;  %v6054_v30 = vsel %vm2559_vm3, %v13196_v54, %v8827_v59 }
 0x6ba   : > { %v6244_v0 = vsel %vm4172_vm6, %v6212_v11, %v8882_v13  ;;  %v6245_v63 = vsel %vm4172_vm6, %v6213_v36, %v8883_v48  ;;  %v8887_v46 = vunpack.i.l.bf16 %v8886_v51  ;;  %v5128_v13 = vld [vmem:[#allocation3 + $0x109] sm:$0xff]  ;;  %v5129_v11 = vld [vmem:[#allocation3 + $0x111] sm:$0xff] }
 0x6bb   : > { %9120 = vrot.lane.b32.xlu0 %v13406_v20, %s9694_s11  ;;  %v8891_v17 = vpop.permute.xlu1 %8890  ;;  %v6276_v19 = vpack.c.bf16 %v6245_v63, %v6244_v0  ;;  %v8888_v20 = vunpack.i.h.bf16 %v8886_v51  ;;  %v6281_v0 = vpack.c.bf16 %v5129_v11, %v5128_v13  ;;  %v5104_v63 = vld [vmem:[#allocation3 + $0x188] sm:$0xff]  ;;  %v5131_v11 = vld [vmem:[#allocation3 + $0x131] sm:$0xff]  ;;  %s9588_s11 = scalar_lea.vmem %s14394_s24, 4096 }
 0x6bc   : > { %v8893_v52 = vunpack.i.h.bf16 %v8891_v17  ;;  %v8892_v6 = vunpack.i.l.bf16 %v8891_v17  ;;  %v5130_v13 = vld [vmem:[#allocation3 + $0x129] sm:$0xff]  ;;  %p9589_p13 = scmp.ne.s32.totalorder %s14394_s24, %s9588_s11 }
 0x6bd   : > { %v8906_v12 = vpop.permute.xlu0 %8905  ;;  %9205 = vrot.lane.b32.xlu1 %v13472_v45, %s9692_s30  ;;  %6485 = vmatmul.mubr.bf16.gmra.mrb[80].mxu0 %v6276_v19  ;;  %v6086_v45 = vsel %vm530_vm0, %v6054_v30, %v8832_v7  ;;  %v6151_v54 = vsel %vm1725_vm1, %v6119_v16, %v8888_v20  ;;  %v9149_v19 = vpack.i.bf16 %v5105_v42, %v5104_v63  ;;  %v5115_v7 = vld [vmem:[#allocation3 + $0x230] sm:$0xff] }
 0x6be   : > { %7288 = vmatprep.mubr.msk.bf16.mxu0 %vm2559_vm3, %v6279_v31  ;;  %v8908_v4 = vunpack.i.h.bf16 %v8906_v12  ;;  %v6183_v15 = vsel %vm4107_vm5, %v6151_v54, %v8893_v52  ;;  %v8862_v31 = vunpack.i.l.bf16 %v13486_v49  ;;  %v14939_v54 = vld [vmem:[#allocation77_spill] sm:$0xff]  ;;  %p9590_p2 = pnand %p9589_p13, %p15069_p0 }
 0x6bf   : > { %9125 = vrot.lane.b32.xlu0 %v13452_v24, %s9691_s27  ;;  %v13543_v55 = vpop.permute.xlu1 %8895  ;;  %v6118_v24 = vsel %vm4042_vm4, %v6086_v45, %v8872_v25  ;;  %v14937_v25 = vmax.f32 %v12811_v29, 0.0 }
 0x6c0   : > { %v6150_v21 = vsel %vm1725_vm1, %v6118_v24, %v8887_v46  ;;  %v6215_v48 = vsel %vm1758_vm2, %v6183_v15, %v8908_v4  ;;  %v9234_v46 = vpack.i.bf16 %v13299_v23, %v13297_v32  ;;  %v6056_v24 = vsel %vm2559_vm3, %v14938_v58, %v8862_v31  ;;  %p9591_p8 = pneg %p9590_p2 }
 0x6c1   : > { %v13551_v44 = vpop.permute.xlu0 %8915  ;;  %9210 = vrot.lane.b32.xlu1 %v13482_v8, %s9697_s26  ;;  %v8907_v8 = vunpack.i.l.bf16 %v8906_v12  ;;  %v6182_v61 = vsel %vm4107_vm5, %v6150_v21, %v8892_v6  ;;  %v8868_v12 = vunpack.i.h.bf16 %v13502_v2  ;;  %v9239_v2 = vpack.i.bf16 %v5115_v7, %v5114_v34 }
 0x6c2   : > { %v8918_v10 = vunpack.i.h.bf16 %v13551_v44  ;;  %v8917_v30 = vunpack.i.l.bf16 %v13551_v44  ;;  %v6088_v6 = vsel %vm530_vm0, %v6056_v24, %v8867_v39 }
 0x6c3   : > { %9130 = vrot.lane.b32.xlu0 %v13258_v22, %s9692_s30  ;;  %v13561_v26 = vpop.permute.xlu1 %8900  ;;  %v9219_v22 = vpack.i.bf16 %v5113_v57, %v5112_v60  ;;  %v6214_v28 = vsel %vm1758_vm2, %v6182_v61, %v8907_v8 }
 0x6c4   : > { %v6120_v4 = vsel %vm4042_vm4, %v6088_v6, %v8917_v30  ;;  %v8898_v30 = vunpack.i.h.bf16 %v13543_v55  ;;  %v8902_v58 = vunpack.i.l.bf16 %v13561_v26 }
 0x6c5   : > { %v13563_v41 = vpop.permute.xlu0 %8920  ;;  %9215 = vrot.lane.b32.xlu1 %v9214_v43, %s9693_s17 }
 0x6c6   : > { %v8922_v40 = vunpack.i.l.bf16 %v13563_v41 }
 0x6c7   : > { %9135 = vrot.lane.b32.xlu0 %v13268_v3, %s9697_s26  ;;  %v8911_v27 = vpop.permute.xlu1 %8910 }
 0x6c8   : > { %v8913_v56 = vunpack.i.h.bf16 %v8911_v27  ;;  %v8912_v9 = vunpack.i.l.bf16 %v8911_v27  ;;  %v6152_v8 = vsel %vm1725_vm1, %v6120_v4, %v8922_v40 }
 0x6c9   : > { %v8926_v1 = vpop.permute.xlu0 %8925  ;;  %9220 = vrot.lane.b32.xlu1 %v9219_v22, %s9698_s12 }
 0x6ca   : > { %v6246_v36 = vsel %vm4172_vm6, %v6214_v28, %v8912_v9  ;;  %v6247_v51 = vsel %vm4172_vm6, %v6215_v48, %v8913_v56  ;;  %v8928_v16 = vunpack.i.h.bf16 %v8926_v1  ;;  %v8927_v52 = vunpack.i.l.bf16 %v8926_v1  ;;  %v14941_v56 = vld [vmem:[#allocation92_spill] sm:$0xff] }
 0x6cb   : > { %9140 = vrot.lane.b32.xlu0 %v13274_v5, %s9693_s17  ;;  %v13577_v3 = vpop.permute.xlu1 %8965  ;;  %v6278_v37 = vpack.c.bf16 %v6247_v51, %v6246_v36  ;;  %v8863_v5 = vunpack.i.h.bf16 %v13486_v49  ;;  %v8923_v49 = vunpack.i.h.bf16 %v13563_v41  ;;  %v14942_v9 = vmax.f32 %v14941_v56, 0.0 }
 0x6cc   : > { %v6184_v15 = vsel %vm4107_vm5, %v6152_v8, %v8927_v52  ;;  %v14953_v52 = vld [vmem:[#allocation49_spill] sm:$0xff] }
 0x6cd   : > { %v13579_v17 = vpop.permute.xlu0 %8930  ;;  %9225 = vrot.lane.b32.xlu1 %v9214_v43, %s9696_s28  ;;  %6493 = vmatmul.mubr.bf16.gmra.mrb[84].mxu0 %v6278_v37  ;;  %v6057_v29 = vsel %vm2559_vm3, %v13213_v50, %v8863_v5  ;;  %v14940_v43 = vmax.f32 %v14939_v54, 0.0  ;;  %v14943_v37 = vld [vmem:[#allocation39_spill] sm:$0xff]  ;;  %v14945_v5 = vld [vmem:[#allocation93_spill] sm:$0xff]  ;;  %v14954_v6 = vmax.f32 %v14953_v52, 0.0 }
 0x6ce   : > { %7289 = vmatprep.mubr.msk.bf16.mxu0 %vm2559_vm3, %v6281_v0  ;;  %v6089_v44 = vsel %vm530_vm0, %v6057_v29, %v8868_v12  ;;  %v14944_v0 = vmax.f32 %v14943_v37, 0.0  ;;  %v14946_v31 = vmax.f32 %v14945_v5, 0.0  ;;  %v14947_v12 = vld [vmem:[#allocation91_spill] sm:$0xff]  ;;  %v8903_v29 = vunpack.i.h.bf16 %v13561_v26 }
 0x6cf   : > { %9150 = vrot.lane.b32.xlu0 %v9149_v19, %s9698_s12  ;;  %v13584_v53 = vpop.permute.xlu1 %8970  ;;  %v6121_v50 = vsel %vm4042_vm4, %v6089_v44, %v8918_v10  ;;  %v6283_v19 = vpack.c.bf16 %v5131_v11, %v5130_v13  ;;  %v14948_v39 = vmax.f32 %v14947_v12, 0.0  ;;  %v14957_v13 = vld [vmem:[#allocation96_spill] sm:$0xff] }
 0x6d0   : > { %v6153_v41 = vsel %vm1725_vm1, %v6121_v50, %v8923_v49  ;;  %v8897_v49 = vunpack.i.l.bf16 %v13543_v55  ;;  %v4874_v55 = vld [vmem:[#allocation3 + $0xe7] sm:$0xff]  ;;  %v14958_v11 = vmax.f32 %v14957_v13, 0.0 }
 0x6d1   : > { %v13586_v59 = vpop.permute.xlu0 %8935  ;;  %9230 = vrot.lane.b32.xlu1 %v9219_v22, %s9692_s30  ;;  %v6185_v60 = vsel %vm4107_vm5, %v6153_v41, %v8928_v16  ;;  %s15066_s30 = sld [smem:[#allocation101_spill]] }
 0x6d2   : > { %v6058_v26 = vsel %vm2559_vm3, %v4874_v55, %v8897_v49 }
 0x6d3   : > { %6691 = vrot.lane.b32.xlu0 %v14937_v25, %s9691_s27  ;;  %v13596_v20 = vpop.permute.xlu1 %9035  ;;  %v14949_v25 = vld [vmem:[#allocation60_spill] sm:$0xff] }
 0x6d4   : > { %v9038_v24 = vunpack.i.h.bf16 %v13596_v20  ;;  %v9037_v16 = vunpack.i.l.bf16 %v13596_v20  ;;  %v14955_v20 = vld [vmem:[#allocation95_spill] sm:$0xff] }
 0x6d5   : > { %v8941_v45 = vpop.permute.xlu0 %8940  ;;  %9235 = vrot.lane.b32.xlu1 %v9234_v46, %s9697_s26  ;;  %v14950_v46 = vmax.f32 %v14949_v25, 0.0 }
 0x6d6   : > { %v8943_v47 = vunpack.i.h.bf16 %v8941_v45  ;;  %v8942_v21 = vunpack.i.l.bf16 %v8941_v45  ;;  %v14951_v45 = vld [vmem:[#allocation94_spill] sm:$0xff]  ;;  %v6067_v56 = vsel %vm2559_vm3, %v13442_v33, %v9038_v24 }
 0x6d7   : > { %6695 = vrot.lane.b32.xlu0 %v14940_v43, %s9691_s27  ;;  %v13614_v57 = vpop.permute.xlu1 %9040  ;;  %s14392_s17 = scalar_lea.hbm %s15066_s30, %s7307_s10 }
 0x6d8   : > { %v6216_v28 = vsel %vm1758_vm2, %v6184_v15, %v8942_v21  ;;  %v6217_v48 = vsel %vm1758_vm2, %v6185_v60, %v8943_v47  ;;  %v4875_v47 = vld [vmem:[#allocation3 + $0xef] sm:$0xff]  ;;  %v9042_v21 = vunpack.i.l.bf16 %v13614_v57  ;;  %v6090_v15 = vsel %vm530_vm0, %v6058_v26, %v8902_v58 }
 0x6d9   : > { %v8946_v61 = vpop.permute.xlu0 %8945  ;;  %9240 = vrot.lane.b32.xlu1 %v9239_v2, %s9698_s12  ;;  %v14952_v2 = vmax.f32 %v14951_v45, 0.0  ;;  %v6059_v4 = vsel %vm2559_vm3, %v4875_v47, %v8898_v30  ;;  %v14963_v47 = vld [vmem:[#allocation59_spill] sm:$0xff] }
 0x6da   : > { %v8948_v27 = vunpack.i.h.bf16 %v8946_v61  ;;  %v8947_v22 = vunpack.i.l.bf16 %v8946_v61  ;;  %v14956_v61 = vmax.f32 %v14955_v20, 0.0  ;;  %v6091_v60 = vsel %vm530_vm0, %v6059_v4, %v8903_v29 }
 0x6db   : > { %6699 = vrot.lane.b32.xlu0 %v14942_v9, %s9691_s27  ;;  %v13626_v1 = vpop.permute.xlu1 %9070  ;;  %v6066_v9 = vsel %vm2559_vm3, %v13454_v38, %v9037_v16 }
 0x6dc   : > { %v6248_v36 = vsel %vm4172_vm6, %v6216_v28, %v8947_v22  ;;  %v6249_v51 = vsel %vm4172_vm6, %v6217_v48, %v8948_v27  ;;  %v9073_v33 = vunpack.i.h.bf16 %v13626_v1  ;;  %v9072_v38 = vunpack.i.l.bf16 %v13626_v1  ;;  %v14961_v1 = vld [vmem:[#allocation99_spill] sm:$0xff] }
 0x6dd   : > { %v8951_v42 = vpop.permute.xlu0 %8950  ;;  %6693 = vrot.lane.b32.xlu1 %v14944_v0, %s9691_s27  ;;  %v6280_v63 = vpack.c.bf16 %v6249_v51, %v6248_v36  ;;  %v9043_v51 = vunpack.i.h.bf16 %v13614_v57  ;;  %v14962_v49 = vmax.f32 %v14961_v1, 0.0  ;;  %v8932_v1 = vunpack.i.l.bf16 %v13579_v17 }
 0x6de   : > { %v8953_v54 = vunpack.i.h.bf16 %v8951_v42  ;;  %v8952_v43 = vunpack.i.l.bf16 %v8951_v42  ;;  %v6098_v42 = vsel %vm530_vm0, %v6066_v9, %v9042_v21  ;;  %v14964_v21 = vmax.f32 %v14963_v47, 0.0 }
 0x6df   : > { %6703 = vrot.lane.b32.xlu0 %v14946_v31, %s9691_s27  ;;  %v13638_v34 = vpop.permute.xlu1 %9075  ;;  %6501 = vmatmul.mubr.bf16.gmra.mrb[88].mxu0 %v6280_v63  ;;  %v14959_v31 = vld [vmem:[#allocation70_spill] sm:$0xff]  ;;  %v6099_v52 = vsel %vm530_vm0, %v6067_v56, %v9043_v51 }
 0x6e0   : > { %7290 = vmatprep.mubr.msk.bf16.mxu0 %vm2559_vm3, %v6283_v19  ;;  %v6122_v37 = vsel %vm4042_vm4, %v6090_v15, %v8952_v43  ;;  %v6123_v0 = vsel %vm4042_vm4, %v6091_v60, %v8953_v54  ;;  %v9077_v30 = vunpack.i.l.bf16 %v13638_v34  ;;  %v6130_v43 = vsel %vm4042_vm4, %v6098_v42, %v9072_v38  ;;  %v14970_v42 = vld [vmem:[#allocation78_spill] sm:$0xff] }
 0x6e1   : > { %v8956_v7 = vpop.permute.xlu0 %8955  ;;  %6697 = vrot.lane.b32.xlu1 %v14948_v39, %s9691_s27  ;;  %v6131_v4 = vsel %vm4042_vm4, %v6099_v52, %v9073_v33  ;;  %v14974_v38 = vpack.c.bf16 %v13260_v14, %v13255_v62  ;;  %v14981_v14 = vld [vmem:[#allocation98_spill] sm:$0xff] }
 0x6e2   : > { %v8958_v50 = vunpack.i.h.bf16 %v8956_v7  ;;  %v8957_v8 = vunpack.i.l.bf16 %v8956_v7  ;;  %v14960_v7 = vmax.f32 %v14959_v31, 0.0  ;;  %v4877_v52 = vld [vmem:[#allocation3 + $0x10f] sm:$0xff] }
 0x6e3   : > { %6707 = vrot.lane.b32.xlu0 %v14950_v46, %s9691_s27  ;;  %v13647_v10 = vpop.permute.xlu1 %9080  ;;  %v9078_v46 = vunpack.i.h.bf16 %v13638_v34 }
 0x6e4   : > { %v6154_v63 = vsel %vm1725_vm1, %v6122_v37, %v8957_v8  ;;  %v6155_v19 = vsel %vm1725_vm1, %v6123_v0, %v8958_v50  ;;  %v9083_v29 = vunpack.i.h.bf16 %v13647_v10  ;;  %v9082_v58 = vunpack.i.l.bf16 %v13647_v10  ;;  %v14965_v50 = vld [vmem:[#allocation61_spill] sm:$0xff]  ;;  %v14972_v0 = vld [vmem:[#allocation51_spill] sm:$0xff] }
 0x6e5   : > { %v8961_v40 = vpop.permute.xlu0 %8960  ;;  %6701 = vrot.lane.b32.xlu1 %v14952_v2, %s9691_s27  ;;  %v6162_v10 = vsel %vm1725_vm1, %v6130_v43, %v9077_v30  ;;  %v6163_v26 = vsel %vm1725_vm1, %v6131_v4, %v9078_v46  ;;  %v14966_v8 = vmax.f32 %v14965_v50, 0.0  ;;  %v14971_v37 = vmax.f32 %v14970_v42, 0.0 }
 0x6e6   : > { %v8963_v27 = vunpack.i.h.bf16 %v8961_v40  ;;  %v8962_v22 = vunpack.i.l.bf16 %v8961_v40  ;;  %v6194_v20 = vsel %vm4107_vm5, %v6162_v10, %v9082_v58  ;;  %v14973_v33 = vmax.f32 %v14972_v0, 0.0 }
 0x6e7   : > { %6711 = vrot.lane.b32.xlu0 %v14954_v6, %s9691_s27  ;;  %v13661_v44 = vpop.permute.xlu1 %9085  ;;  %v14982_v46 = vmax.f32 %v14981_v14, 0.0  ;;  %v8933_v30 = vunpack.i.h.bf16 %v13579_v17  ;;  %v14985_v17 = vld [vmem:[#allocation69_spill] sm:$0xff] }
 0x6e8   : > { %v6186_v57 = vsel %vm4107_vm5, %v6154_v63, %v8962_v22  ;;  %v6187_v12 = vsel %vm4107_vm5, %v6155_v19, %v8963_v27  ;;  %v14967_v27 = vpack.c.bf16 %v13186_v35, %v13184_v18  ;;  %v14975_v63 = vld [vmem:[#allocation100_spill] sm:$0xff] }
 0x6e9   : > { %v8976_v41 = vpop.permute.xlu0 %8975  ;;  %6705 = vrot.lane.b32.xlu1 %v14956_v61, %s9691_s27  ;;  %v6195_v61 = vsel %vm4107_vm5, %v6163_v26, %v9083_v29  ;;  %v14976_v19 = vmax.f32 %v14975_v63, 0.0 }
 0x6ea   : > { %v8978_v28 = vunpack.i.h.bf16 %v8976_v41  ;;  %v8977_v48 = vunpack.i.l.bf16 %v8976_v41 }
 0x6eb   : > { %6715 = vrot.lane.b32.xlu0 %v14958_v11, %s9691_s27  ;;  %v13678_v36 = vpop.permute.xlu1 %9090 }
 0x6ec   : > { %v6218_v45 = vsel %vm1758_vm2, %v6186_v57, %v8977_v48  ;;  %v6219_v2 = vsel %vm1758_vm2, %v6187_v12, %v8978_v28  ;;  %v14968_v28 = vld [vmem:[#allocation97_spill] sm:$0xff]  ;;  %v14979_v12 = vld [vmem:[#allocation42_spill] sm:$0xff] }
 0x6ed   : > { %v8981_v5 = vpop.permute.xlu0 %8980  ;;  %6709 = vrot.lane.b32.xlu1 %v14960_v7, %s9691_s27  ;;  %v14969_v48 = vmax.f32 %v14968_v28, 0.0  ;;  %v14977_v7 = vld [vmem:[#allocation90_spill] sm:$0xff] }
 0x6ee   : > { %v8983_v39 = vunpack.i.h.bf16 %v8981_v5  ;;  %v8982_v25 = vunpack.i.l.bf16 %v8981_v5  ;;  %v14978_v57 = vmax.f32 %v14977_v7, 0.0 }
 0x6ef   : > { %6719 = vrot.lane.b32.xlu0 %v14962_v49, %s9691_s27  ;;  %v9096_v40 = vpop.permute.xlu1 %9095  ;;  %v8938_v49 = vunpack.i.h.bf16 %v13586_v59 }
 0x6f0   : > { %v6250_v24 = vsel %vm4172_vm6, %v6218_v45, %v8982_v25  ;;  %v6251_v16 = vsel %vm4172_vm6, %v6219_v2, %v8983_v39  ;;  %v9098_v34 = vunpack.i.h.bf16 %v9096_v40  ;;  %v9097_v6 = vunpack.i.l.bf16 %v9096_v40  ;;  %v14983_v45 = vld [vmem:[#allocation40_spill] sm:$0xff] }
 0x6f1   : > { %v13705_v55 = vpop.permute.xlu0 %8985  ;;  %6713 = vrot.lane.b32.xlu1 %v14964_v21, %s9691_s27  ;;  %v6282_v54 = vpack.c.bf16 %v6251_v16, %v6250_v24  ;;  %v14980_v39 = vmax.f32 %v14979_v12, 0.0  ;;  %v8937_v40 = vunpack.i.l.bf16 %v13586_v59  ;;  %v14984_v2 = vmax.f32 %v14983_v45, 0.0  ;;  %v4876_v16 = vld [vmem:[#allocation3 + $0x107] sm:$0xff] }
 0x6f2   : > { %v6226_v22 = vsel %vm1758_vm2, %v6194_v20, %v9097_v6  ;;  %v6227_v56 = vsel %vm1758_vm2, %v6195_v61, %v9098_v34  ;;  %v8988_v58 = vunpack.i.h.bf16 %v13705_v55  ;;  %v8987_v24 = vunpack.i.l.bf16 %v13705_v55 }
 0x6f3   : > { %6723 = vrot.lane.b32.xlu0 %v14966_v8, %s9691_s27  ;;  %v9101_v41 = vpop.permute.xlu1 %9100  ;;  %6509 = vmatmul.mubr.bf16.gmra.mrb[92].mxu0 %v6282_v54  ;;  %v14986_v21 = vmax.f32 %v14985_v17, 0.0  ;;  %v6061_v59 = vsel %vm2559_vm3, %v4877_v52, %v8933_v30  ;;  %v6060_v54 = vsel %vm2559_vm3, %v4876_v16, %v8932_v1  ;;  %v14987_v8 = vld [vmem:[#allocation82_spill] sm:$0xff]  ;;  %v8968_v52 = vunpack.i.h.bf16 %v13577_v3 }
 0x6f4   : > { %v9103_v15 = vunpack.i.h.bf16 %v9101_v41  ;;  %v9102_v60 = vunpack.i.l.bf16 %v9101_v41  ;;  %7291 = vmatprep.mubr.msk.bf16.mxu0 %vm2559_vm3, %v14967_v27  ;;  %v6092_v10 = vsel %vm530_vm0, %v6060_v54, %v8937_v40  ;;  %v6093_v26 = vsel %vm530_vm0, %v6061_v59, %v8938_v49  ;;  %v14997_v40 = vld [vmem:[#allocation83_spill] sm:$0xff] }
 0x6f5   : > { %v8991_v9 = vpop.permute.xlu0 %8990  ;;  %6717 = vrot.lane.b32.xlu1 %v14969_v48, %s9691_s27  ;;  %v14988_v41 = vmax.f32 %v14987_v8, 0.0  ;;  %v6124_v61 = vsel %vm4042_vm4, %v6092_v10, %v8987_v24  ;;  %v14998_v45 = vmax.f32 %v14997_v40, 0.0  ;;  %v14999_v24 = vld [vmem:[#allocation79_spill] sm:$0xff]  ;;  %v8972_v17 = vunpack.i.l.bf16 %v13584_v53 }
 0x6f6   : > { %v6258_v13 = vsel %vm4172_vm6, %v6226_v22, %v9102_v60  ;;  %v6259_v11 = vsel %vm4172_vm6, %v6227_v56, %v9103_v15  ;;  %v8993_v34 = vunpack.i.h.bf16 %v8991_v9  ;;  %v8992_v6 = vunpack.i.l.bf16 %v8991_v9  ;;  %v14989_v56 = vld [vmem:[#allocation52_spill] sm:$0xff]  ;;  %v13840_v10 = vld [vmem:[#allocation3 + $0x1f1] sm:$0xff] }
 0x6f7   : > { %v6290_v51 = vpack.c.bf16 %v6259_v11, %v6258_v13  ;;  %6727 = vrot.lane.b32.xlu0 %v14971_v37, %s9691_s27  ;;  %v13733_v18 = vpop.permute.xlu1 %9105  ;;  %v6125_v15 = vsel %vm4042_vm4, %v6093_v26, %v8988_v58  ;;  %v14990_v9 = vmax.f32 %v14989_v56, 0.0  ;;  %v14991_v37 = vld [vmem:[#allocation41_spill] sm:$0xff]  ;;  %v15000_v16 = vmax.f32 %v14999_v24, 0.0  ;;  %v9300_v8 = vld [vmem:[#allocation3 + $0x12f] sm:$0xff] }
 0x6f8   : > { %v6156_v60 = vsel %vm1725_vm1, %v6124_v61, %v8992_v6  ;;  %v6157_v27 = vsel %vm1725_vm1, %v6125_v15, %v8993_v34  ;;  %v8967_v34 = vunpack.i.l.bf16 %v13577_v3  ;;  %v13828_v6 = vld [vmem:[#allocation3 + $0x189] sm:$0xff]  ;;  %v9087_v59 = vunpack.i.l.bf16 %v13661_v44 }
 0x6f9   : > { %v8996_v35 = vpop.permute.xlu0 %8995  ;;  %6721 = vrot.lane.b32.xlu1 %v14973_v33, %s9691_s27  ;;  %6541 = vmatmul.mubr.bf16.vlgmr.msra.gmra.mrb[96].mxu1 %v6290_v51  ;;  %v5134_v33 = vld [vmem:[#allocation3 + $0x169] sm:$0xff]  ;;  %v9093_v3 = vunpack.i.h.bf16 %v13678_v36  ;;  %v9092_v26 = vunpack.i.l.bf16 %v13678_v36 }
 0x6fa   : > { %7295 = vmatprep.mubr.msk.bf16.mxu1 %vm2559_vm3, %v14974_v38  ;;  %v8998_v43 = vunpack.i.h.bf16 %v8996_v35  ;;  %v8997_v4 = vunpack.i.l.bf16 %v8996_v35  ;;  %v14992_v35 = vmax.f32 %v14991_v37, 0.0  ;;  %v5135_v38 = vld [vmem:[#allocation3 + $0x171] sm:$0xff]  ;;  %v4886_v15 = vld [vmem:[#allocation3 + $0x1a7] sm:$0xff]  ;;  %v9108_v37 = vunpack.i.h.bf16 %v13733_v18 }
 0x6fb   : > { %6731 = vrot.lane.b32.xlu0 %v14976_v19, %s9691_s27  ;;  %v13745_v5 = vpop.permute.xlu1 %9110  ;;  %v6287_v14 = vpack.c.bf16 %v5135_v38, %v5134_v33 }
 0x6fc   : > { %v6188_v28 = vsel %vm4107_vm5, %v6156_v60, %v8997_v4  ;;  %v6189_v48 = vsel %vm4107_vm5, %v6157_v27, %v8998_v43  ;;  %v13836_v43 = vld [vmem:[#allocation3 + $0x191] sm:$0xff]  ;;  %v13838_v4 = vld [vmem:[#allocation3 + $0x1e9] sm:$0xff]  ;;  %v9113_v33 = vunpack.i.h.bf16 %v13745_v5  ;;  %v9112_v38 = vunpack.i.l.bf16 %v13745_v5 }
 0x6fd   : > { %v13747_v31 = vpop.permute.xlu0 %9000  ;;  %6725 = vrot.lane.b32.xlu1 %v14978_v57, %s9691_s27  ;;  %v14993_v57 = vld [vmem:[#allocation50_spill] sm:$0xff]  ;;  %v6289_v27 = vpack.c.bf16 %v13836_v43, %v13828_v6  ;;  %v6295_v36 = vpack.c.bf16 %v13840_v10, %v13838_v4 }
 0x6fe   : > { %v14994_v12 = vmax.f32 %v14993_v57, 0.0  ;;  %v4887_v60 = vld [vmem:[#allocation3 + $0x1af] sm:$0xff]  ;;  %v4888_v43 = vld [vmem:[#allocation3 + $0x1c7] sm:$0xff] }
 0x6ff   : > { %6735 = vrot.lane.b32.xlu0 %v14980_v39, %s9691_s27  ;;  %v13755_v25 = vpop.permute.xlu1 %9115 }
 0x700   : > { %v9117_v57 = vunpack.i.l.bf16 %v13755_v25 }
 0x701   : > { %v13757_v62 = vpop.permute.xlu0 %9005  ;;  %6729 = vrot.lane.b32.xlu1 %v14982_v46, %s9691_s27  ;;  %v14995_v46 = vld [vmem:[#allocation86_spill] sm:$0xff] }
 0x702   : > { %v14996_v30 = vmax.f32 %v14995_v46, 0.0 }
 0x703   : > { %6739 = vrot.lane.b32.xlu0 %v14984_v2, %s9691_s27  ;;  %v13769_v29 = vpop.permute.xlu1 %9145 }
 0x705   : > { %v9011_v47 = vpop.permute.xlu0 %9010  ;;  %6733 = vrot.lane.b32.xlu1 %v14986_v21, %s9691_s27  ;;  %v9088_v21 = vunpack.i.h.bf16 %v13661_v44  ;;  %v6063_v44 = vsel %vm2559_vm3, %v9300_v8, %v8968_v52 }
 0x706   : > { %v9013_v55 = vunpack.i.h.bf16 %v9011_v47  ;;  %v9012_v50 = vunpack.i.l.bf16 %v9011_v47  ;;  %v8973_v47 = vunpack.i.h.bf16 %v13584_v53  ;;  %v15001_v53 = vld [vmem:[#allocation87_spill] sm:$0xff] }
 0x707   : > { %6743 = vrot.lane.b32.xlu0 %v14988_v41, %s9691_s27  ;;  %v13783_v20 = vpop.permute.xlu1 %9155  ;;  %v9301_v41 = vld [vmem:[#allocation3 + $0x127] sm:$0xff] }
 0x708   : > { %v6220_v51 = vsel %vm1758_vm2, %v6188_v28, %v9012_v50  ;;  %v6221_v42 = vsel %vm1758_vm2, %v6189_v48, %v9013_v55  ;;  %v15002_v50 = vmax.f32 %v15001_v53, 0.0  ;;  %v6062_v61 = vsel %vm2559_vm3, %v9301_v41, %v8967_v34 }
 0x709   : > { %v9016_v22 = vpop.permute.xlu0 %9015  ;;  %6737 = vrot.lane.b32.xlu1 %v14990_v9, %s9691_s27  ;;  %v6095_v56 = vsel %vm530_vm0, %v6063_v44, %v8973_v47  ;;  %v6071_v9 = vsel %vm2559_vm3, %v4887_v60, %v9088_v21  ;;  %v6070_v28 = vsel %vm2559_vm3, %v4886_v15, %v9087_v59  ;;  %v4885_v21 = vld [vmem:[#allocation3 + $0x18f] sm:$0xff] }
 0x70a   : > { %v9018_v13 = vunpack.i.h.bf16 %v9016_v22  ;;  %v9017_v11 = vunpack.i.l.bf16 %v9016_v22  ;;  %v6094_v22 = vsel %vm530_vm0, %v6062_v61, %v8972_v17  ;;  %v4884_v17 = vld [vmem:[#allocation3 + $0x187] sm:$0xff] }
 0x70b   : > { %6747 = vrot.lane.b32.xlu0 %v14992_v35, %s9691_s27  ;;  %v13799_v0 = vpop.permute.xlu1 %9160  ;;  %v9107_v35 = vunpack.i.l.bf16 %v13733_v18 }
 0x70c   : > { %v6252_v63 = vsel %vm4172_vm6, %v6220_v51, %v9017_v11  ;;  %v6253_v19 = vsel %vm4172_vm6, %v6221_v42, %v9018_v13  ;;  %v13862_v13 = vsel %vm530_vm0, %v6070_v28, %v9092_v26  ;;  %v13865_v11 = vsel %vm530_vm0, %v6071_v9, %v9093_v3 }
 0x70d   : > { %v13803_v7 = vpop.permute.xlu0 %9020  ;;  %6741 = vrot.lane.b32.xlu1 %v14994_v12, %s9691_s27  ;;  %v6284_v39 = vpack.c.bf16 %v6253_v19, %v6252_v63  ;;  %v9118_v19 = vunpack.i.h.bf16 %v13755_v25  ;;  %v9163_v40 = vunpack.i.h.bf16 %v13799_v0  ;;  %v9162_v5 = vunpack.i.l.bf16 %v13799_v0 }
 0x70e   : > { %v9023_v51 = vunpack.i.h.bf16 %v13803_v7  ;;  %v9022_v42 = vunpack.i.l.bf16 %v13803_v7  ;;  %v9157_v7 = vunpack.i.l.bf16 %v13783_v20 }
 0x70f   : > { %6751 = vrot.lane.b32.xlu0 %v14996_v30, %s9691_s27  ;;  %v13811_v1 = vpop.permute.xlu1 %9165  ;;  %6517 = vmatmul.mubr.bf16.gmra.mrb[96].mxu0 %v6284_v39 }
 0x710   : > { %7292 = vmatprep.mubr.msk.bf16.mxu0 %vm2559_vm3, %v6287_v14  ;;  %v9158_v14 = vunpack.i.h.bf16 %v13783_v20  ;;  %v6127_v25 = vsel %vm4042_vm4, %v6095_v56, %v9023_v51  ;;  %v9168_v24 = vunpack.i.h.bf16 %v13811_v1 }
 0x711   : > { %v13814_v49 = vpop.permute.xlu0 %9025  ;;  %6745 = vrot.lane.b32.xlu1 %v14998_v45, %s9691_s27  ;;  %v6126_v45 = vsel %vm4042_vm4, %v6094_v22, %v9022_v42 }
 0x712   : > { %v9028_v12 = vunpack.i.h.bf16 %v13814_v49  ;;  %v9027_v39 = vunpack.i.l.bf16 %v13814_v49  ;;  %v9167_v49 = vunpack.i.l.bf16 %v13811_v1 }
 0x713   : > { %v13819_v2 = vpop.permute.xlu1 %9170 }
 0x714   : > { %v6158_v34 = vsel %vm1725_vm1, %v6126_v45, %v9027_v39  ;;  %v6159_v47 = vsel %vm1725_vm1, %v6127_v25, %v9028_v12  ;;  %v9173_v3 = vunpack.i.h.bf16 %v13819_v2  ;;  %v9172_v26 = vunpack.i.l.bf16 %v13819_v2 }
 0x715   : > { %v13821_v58 = vpop.permute.xlu0 %9030  ;;  %6749 = vrot.lane.b32.xlu1 %v15000_v16, %s9691_s27 }
 0x716   : > { %v9033_v16 = vunpack.i.h.bf16 %v13821_v58  ;;  %v9032_v20 = vunpack.i.l.bf16 %v13821_v58 }
 0x717   : > { %v13834_v54 = vpop.permute.xlu1 %9175 }
 0x718   : > { %v6190_v61 = vsel %vm4107_vm5, %v6158_v34, %v9032_v20  ;;  %v6191_v15 = vsel %vm4107_vm5, %v6159_v47, %v9033_v16  ;;  %v9178_v56 = vunpack.i.h.bf16 %v13834_v54  ;;  %v9177_v9 = vunpack.i.l.bf16 %v13834_v54 }
 0x719   : > { %v13844_v55 = vpop.permute.xlu0 %9045  ;;  %6753 = vrot.lane.b32.xlu1 %v15002_v50, %s9691_s27 }
 0x71a   : > { %v9048_v58 = vunpack.i.h.bf16 %v13844_v55  ;;  %v9047_v8 = vunpack.i.l.bf16 %v13844_v55 }
 0x71b   : > { %v13859_v48 = vpop.permute.xlu1 %9180 }
 0x71d   : > { %v9051_v63 = vpop.permute.xlu0 %9050 }
 0x71e   : > { %v9053_v46 = vunpack.i.h.bf16 %v9051_v63  ;;  %v9052_v30 = vunpack.i.l.bf16 %v9051_v63 }
 0x71f   : > { %v13879_v18 = vpop.permute.xlu1 %9185 }
 0x720   : > { %v6069_v53 = vsel %vm2559_vm3, %v4885_v21, %v9053_v46  ;;  %v6068_v1 = vsel %vm2559_vm3, %v4884_v17, %v9052_v30 }
 0x721   : > { %v9056_v52 = vpop.permute.xlu0 %9055 }
 0x722   : > { %v9058_v0 = vunpack.i.h.bf16 %v9056_v52  ;;  %v9057_v59 = vunpack.i.l.bf16 %v9056_v52  ;;  %v6134_v52 = vsel %vm4042_vm4, %v13862_v13, %v9167_v49 }
 0x723   : > { %v9191_v50 = vpop.permute.xlu1 %9190  ;;  %v6166_v17 = vsel %vm1725_vm1, %v6134_v52, %v9172_v26 }
 0x724   : > { %v6100_v44 = vsel %vm530_vm0, %v6068_v1, %v9057_v59  ;;  %v6101_v41 = vsel %vm530_vm0, %v6069_v53, %v9058_v0  ;;  %v9193_v25 = vunpack.i.h.bf16 %v9191_v50 }
 0x725   : > { %v6132_v60 = vsel %vm4042_vm4, %v6100_v44, %v9107_v35  ;;  %v6133_v2 = vsel %vm4042_vm4, %v6101_v41, %v9108_v37  ;;  %v9061_v22 = vpop.permute.xlu0 %9060  ;;  %v6222_v35 = vsel %vm1758_vm2, %v6190_v61, %v9047_v8  ;;  %v6223_v37 = vsel %vm1758_vm2, %v6191_v15, %v9048_v58 }
 0x726   : > { %v6164_v28 = vsel %vm1725_vm1, %v6132_v60, %v9112_v38  ;;  %v6165_v55 = vsel %vm1725_vm1, %v6133_v2, %v9113_v33  ;;  %v9063_v51 = vunpack.i.h.bf16 %v9061_v22  ;;  %v9062_v42 = vunpack.i.l.bf16 %v9061_v22 }
 0x727   : > { %v9196_v63 = vpop.permute.xlu1 %9195  ;;  %v6196_v12 = vsel %vm4107_vm5, %v6164_v28, %v9117_v57  ;;  %v6197_v39 = vsel %vm4107_vm5, %v6165_v55, %v9118_v19  ;;  %v9192_v19 = vunpack.i.l.bf16 %v9191_v50  ;;  %v15003_v15 = vpack.c.bf16 %v13299_v23, %v13297_v32 }
 0x728   : > { %v6228_v46 = vsel %vm1758_vm2, %v6196_v12, %v9157_v7  ;;  %v6229_v30 = vsel %vm1758_vm2, %v6197_v39, %v9158_v14  ;;  %v6254_v38 = vsel %vm4172_vm6, %v6222_v35, %v9062_v42  ;;  %v6255_v33 = vsel %vm4172_vm6, %v6223_v37, %v9063_v51  ;;  %v5146_v42 = vld [vmem:[#allocation3 + $0x229] sm:$0xff] }
 0x729   : > { %v13913_v54 = vpop.permute.xlu0 %9065  ;;  %v6260_v45 = vsel %vm4172_vm6, %v6228_v46, %v9162_v5  ;;  %v6261_v57 = vsel %vm4172_vm6, %v6229_v30, %v9163_v40  ;;  %v6286_v16 = vpack.c.bf16 %v6255_v33, %v6254_v38  ;;  %v6135_v14 = vsel %vm4042_vm4, %v13865_v11, %v9168_v24  ;;  %v9302_v46 = vld [vmem:[#allocation3 + $0x14f] sm:$0xff]  ;;  %v9303_v38 = vld [vmem:[#allocation3 + $0x147] sm:$0xff] }
 0x72a   : > { %v6292_v20 = vpack.c.bf16 %v6261_v57, %v6260_v45  ;;  %v9198_v7 = vunpack.i.h.bf16 %v9196_v63  ;;  %v9197_v34 = vunpack.i.l.bf16 %v9196_v63  ;;  %v6167_v21 = vsel %vm1725_vm1, %v6135_v14, %v9173_v3  ;;  %v5147_v63 = vld [vmem:[#allocation3 + $0x231] sm:$0xff] }
 0x72b   : > { %v9201_v47 = vpop.permute.xlu1 %9200  ;;  %6525 = vmatmul.mubr.bf16.gmra.mrb[100].mxu0 %v6286_v16  ;;  %v6198_v40 = vsel %vm4107_vm5, %v6166_v17, %v9177_v9  ;;  %v6199_v5 = vsel %vm4107_vm5, %v6167_v21, %v9178_v56  ;;  %v9003_v60 = vunpack.i.h.bf16 %v13747_v31  ;;  %v9002_v2 = vunpack.i.l.bf16 %v13747_v31 }
 0x72c   : > { %6549 = vmatmul.mubr.bf16.gmra.mrb[100].mxu1 %v6292_v20  ;;  %7293 = vmatprep.mubr.msk.bf16.mxu0 %vm2559_vm3, %v6289_v27  ;;  %v6230_v11 = vsel %vm1758_vm2, %v6198_v40, %v9192_v19  ;;  %v6231_v24 = vsel %vm1758_vm2, %v6199_v5, %v9193_v25  ;;  %v4889_v27 = vld [vmem:[#allocation3 + $0x1cf] sm:$0xff]  ;;  %v9203_v58 = vunpack.i.h.bf16 %v9201_v47  ;;  %v9202_v8 = vunpack.i.l.bf16 %v9201_v47 }
 0x72d   : > { %v9121_v13 = vpop.permute.xlu0 %9120  ;;  %7296 = vmatprep.mubr.msk.bf16.mxu1 %vm2559_vm3, %v6295_v36  ;;  %v6262_v3 = vsel %vm4172_vm6, %v6230_v11, %v9197_v34  ;;  %v6263_v26 = vsel %vm4172_vm6, %v6231_v24, %v9198_v7  ;;  %v9007_v9 = vunpack.i.l.bf16 %v13757_v62  ;;  %v6065_v30 = vsel %vm2559_vm3, %v9302_v46, %v9003_v60 }
 0x72e   : > { %v9123_v49 = vunpack.i.h.bf16 %v9121_v13  ;;  %v9122_v0 = vunpack.i.l.bf16 %v9121_v13  ;;  %v6294_v50 = vpack.c.bf16 %v6263_v26, %v6262_v3  ;;  %v6064_v33 = vsel %vm2559_vm3, %v9303_v38, %v9002_v2 }
 0x72f   : > { %v9206_v59 = vpop.permute.xlu1 %9205  ;;  %v6299_v45 = vpack.c.bf16 %v5147_v63, %v5146_v42  ;;  %v9008_v57 = vunpack.i.h.bf16 %v13757_v62  ;;  %v6096_v25 = vsel %vm530_vm0, %v6064_v33, %v9007_v9  ;;  %v9068_v19 = vunpack.i.h.bf16 %v13913_v54  ;;  %v9305_v42 = vld [vmem:[#allocation3 + $0x1e7] sm:$0xff] }
 0x730   : > { %v6073_v4 = vsel %vm2559_vm3, %v4889_v27, %v9123_v49  ;;  %v6072_v10 = vsel %vm2559_vm3, %v4888_v43, %v9122_v0  ;;  %v9208_v28 = vunpack.i.h.bf16 %v9206_v59  ;;  %v9207_v55 = vunpack.i.l.bf16 %v9206_v59 }
 0x731   : > { %v9126_v6 = vpop.permute.xlu0 %9125  ;;  %v9067_v16 = vunpack.i.l.bf16 %v13913_v54  ;;  %v6097_v24 = vsel %vm530_vm0, %v6065_v30, %v9008_v57  ;;  %v9183_v43 = vunpack.i.h.bf16 %v13859_v48  ;;  %v9182_v27 = vunpack.i.l.bf16 %v13859_v48 }
 0x732   : > { %v9128_v53 = vunpack.i.h.bf16 %v9126_v6  ;;  %v9127_v1 = vunpack.i.l.bf16 %v9126_v6  ;;  %v6129_v6 = vsel %vm4042_vm4, %v6097_v24, %v9068_v19  ;;  %v9148_v33 = vunpack.i.h.bf16 %v13769_v29 }
 0x733   : > { %v9211_v36 = vpop.permute.xlu1 %9210  ;;  %v6128_v26 = vsel %vm4042_vm4, %v6096_v25, %v9067_v16 }
 0x734   : > { %v6104_v44 = vsel %vm530_vm0, %v6072_v10, %v9127_v1  ;;  %v6105_v41 = vsel %vm530_vm0, %v6073_v4, %v9128_v53  ;;  %6557 = vmatmul.mubr.bf16.gmra.mrb[104].mxu1 %v6294_v50  ;;  %v9213_v12 = vunpack.i.h.bf16 %v9211_v36  ;;  %v9212_v39 = vunpack.i.l.bf16 %v9211_v36 }
 0x735   : > { %v9131_v61 = vpop.permute.xlu0 %9130  ;;  %7297 = vmatprep.mubr.msk.bf16.mxu1 %vm2559_vm3, %v15003_v15  ;;  %v6136_v22 = vsel %vm4042_vm4, %v6104_v44, %v9202_v8  ;;  %v6137_v56 = vsel %vm4042_vm4, %v6105_v41, %v9203_v58  ;;  %v9188_v8 = vunpack.i.h.bf16 %v13879_v18  ;;  %v9187_v44 = vunpack.i.l.bf16 %v13879_v18 }
 0x736   : > { %v6168_v23 = vsel %vm1725_vm1, %v6136_v22, %v9207_v55  ;;  %v6169_v32 = vsel %vm1725_vm1, %v6137_v56, %v9208_v28  ;;  %v9133_v47 = vunpack.i.h.bf16 %v9131_v61  ;;  %v9132_v17 = vunpack.i.l.bf16 %v9131_v61  ;;  %v9304_v55 = vld [vmem:[#allocation3 + $0x1ef] sm:$0xff] }
 0x737   : > { %v9216_v51 = vpop.permute.xlu1 %9215  ;;  %v6200_v52 = vsel %vm4107_vm5, %v6168_v23, %v9212_v39  ;;  %v6201_v14 = vsel %vm4107_vm5, %v6169_v32, %v9213_v12  ;;  %v6074_v18 = vsel %vm2559_vm3, %v9305_v42, %v9182_v27 }
 0x738   : > { %v9218_v35 = vunpack.i.h.bf16 %v9216_v51  ;;  %v9217_v37 = vunpack.i.l.bf16 %v9216_v51  ;;  %v6160_v53 = vsel %vm1725_vm1, %v6128_v26, %v9132_v17  ;;  %v6161_v1 = vsel %vm1725_vm1, %v6129_v6, %v9133_v47  ;;  %v14000_v17 = vld [vmem:[#allocation19] ss:$0 sm:$0xff] }
 0x739   : > { %v9136_v31 = vpop.permute.xlu0 %9135  ;;  %v6075_v51 = vsel %vm2559_vm3, %v9304_v55, %v9183_v43  ;;  %v6106_v63 = vsel %vm530_vm0, %v6074_v18, %v9187_v44 }
 0x73a   : > { %v6232_v21 = vsel %vm1758_vm2, %v6200_v52, %v9217_v37  ;;  %v6233_v40 = vsel %vm1758_vm2, %v6201_v14, %v9218_v35  ;;  %v9138_v5 = vunpack.i.h.bf16 %v9136_v31  ;;  %v9137_v13 = vunpack.i.l.bf16 %v9136_v31 }
 0x73b   : > { %v9221_v20 = vpop.permute.xlu1 %9220  ;;  %v6107_v12 = vsel %vm530_vm0, %v6075_v51, %v9188_v8 }
 0x73c   : > { %v9223_v7 = vunpack.i.h.bf16 %v9221_v20  ;;  %v9222_v34 = vunpack.i.l.bf16 %v9221_v20  ;;  %v6192_v4 = vsel %vm4107_vm5, %v6160_v53, %v9137_v13  ;;  %v6193_v10 = vsel %vm4107_vm5, %v6161_v1, %v9138_v5 }
 0x73d   : > { %v9141_v62 = vpop.permute.xlu0 %9140 }
 0x73e   : > { %v6264_v11 = vsel %vm4172_vm6, %v6232_v21, %v9222_v34  ;;  %v6265_v54 = vsel %vm4172_vm6, %v6233_v40, %v9223_v7  ;;  %v9143_v49 = vunpack.i.h.bf16 %v9141_v62  ;;  %v9142_v0 = vunpack.i.l.bf16 %v9141_v62  ;;  %v13998_v34 = vld [vmem:[#allocation18] ss:$0 sm:$0xff] }
 0x73f   : > { %v9226_v59 = vpop.permute.xlu1 %9225  ;;  %v6296_v3 = vpack.c.bf16 %v6265_v54, %v6264_v11 }
 0x740   : > { %v6224_v48 = vsel %vm1758_vm2, %v6192_v4, %v9142_v0  ;;  %v6225_v41 = vsel %vm1758_vm2, %v6193_v10, %v9143_v49  ;;  %v9228_v15 = vunpack.i.h.bf16 %v9226_v59  ;;  %v9227_v60 = vunpack.i.l.bf16 %v9226_v59 }
 0x741   : > { %v9151_v50 = vpop.permute.xlu0 %9150  ;;  %6565 = vmatmul.mubr.bf16.gmra.mrb[108].mxu1 %v6296_v3 }
 0x742   : > { %v9153_v36 = vunpack.i.h.bf16 %v9151_v50  ;;  %v9152_v58 = vunpack.i.l.bf16 %v9151_v50  ;;  %7298 = vmatprep.mubr.msk.bf16.mxu1 %vm2559_vm3, %v6299_v45  ;;  %v6138_v23 = vsel %vm4042_vm4, %v6106_v63, %v9227_v60  ;;  %v6139_v32 = vsel %vm4042_vm4, %v6107_v12, %v9228_v15 }
 0x743   : > { %v9231_v61 = vpop.permute.xlu1 %9230  ;;  %v9147_v45 = vunpack.i.l.bf16 %v13769_v29 }
 0x744   : > { %v6256_v2 = vsel %vm4172_vm6, %v6224_v48, %v9152_v58  ;;  %v6257_v22 = vsel %vm4172_vm6, %v6225_v41, %v9153_v36  ;;  %v9233_v56 = vunpack.i.h.bf16 %v9231_v61  ;;  %v9232_v9 = vunpack.i.l.bf16 %v9231_v61 }
 0x745   : > { %v6288_v28 = vpack.c.bf16 %v6257_v22, %v6256_v2  ;;  %v14014_v50 = vpop.permute.xlu0 %6691 }
 0x746   : > { %v6170_v31 = vsel %vm1725_vm1, %v6138_v23, %v9232_v9  ;;  %v6171_v46 = vsel %vm1725_vm1, %v6139_v32, %v9233_v56 }
 0x747   : > { %v9236_v39 = vpop.permute.xlu1 %9235  ;;  %6533 = vmatmul.mubr.bf16.gmra.mrb[104].mxu0 %v6288_v28 }
 0x748   : > { %v9238_v35 = vunpack.i.h.bf16 %v9236_v39  ;;  %v9237_v37 = vunpack.i.l.bf16 %v9236_v39 }
 0x749   : > { %v14021_v61 = vpop.permute.xlu0 %6695 }
 0x74a   : > { %v6202_v30 = vsel %vm4107_vm5, %v6170_v31, %v9237_v37  ;;  %v6203_v38 = vsel %vm4107_vm5, %v6171_v46, %v9238_v35 }
 0x74b   : > { %v9241_v57 = vpop.permute.xlu1 %9240  ;;  %v6234_v16 = vsel %vm1758_vm2, %v6202_v30, %v9147_v45  ;;  %v6235_v20 = vsel %vm1758_vm2, %v6203_v38, %v9148_v33 }
 0x74c   : > { %v9243_v25 = vunpack.i.h.bf16 %v9241_v57  ;;  %v9242_v19 = vunpack.i.l.bf16 %v9241_v57 }
 0x74d   : > { %v14028_v56 = vpop.permute.xlu0 %6699 }
 0x74e   : > { %v6266_v52 = vsel %vm4172_vm6, %v6234_v16, %v9242_v19  ;;  %v6267_v14 = vsel %vm4172_vm6, %v6235_v20, %v9243_v25 }
 0x74f   : > { %v6298_v7 = vpack.c.bf16 %v6267_v14, %v6266_v52  ;;  %v14016_v10 = vpop.permute.xlu1 %6693 }
 0x751   : > { %6573 = vmatmul.mubr.bf16.gmra.mrb[112].mxu1 %v6298_v7  ;;  %v14032_v55 = vpop.permute.xlu0 %6703 }
 0x753   : > { %v14024_v2 = vpop.permute.xlu1 %6697 }
 0x755   : > { %v14040_v37 = vpop.permute.xlu0 %6707 }
 0x757   : > { %v14030_v9 = vpop.permute.xlu1 %6701 }
 0x758   : > { %v6454_v47 = vpop.f32.mrb[64].mxu0 }
 0x759   : > { %v6588_v29 = vmul.f32 %v13998_v34, %v6454_v47  ;;  %v6456_v21 = vpop.f32.mrb[65].mxu0  ;;  %v14046_v38 = vpop.permute.xlu0 %6711 }
 0x75a   : > { %v6457_v40 = vpop.f32.mrb[66].mxu0 }
 0x75b   : > { %v6627_v62 = vadd.f32 %v14000_v17, %v6588_v29  ;;  %v6589_v5 = vmul.f32 %v13998_v34, %v6457_v40  ;;  %v6459_v13 = vpop.f32.mrb[67].mxu0  ;;  %v14035_v63 = vpop.permute.xlu1 %6705 }
 0x75d   : > { %v6659_v11 = vmax.f32 %v6627_v62, 0.0  ;;  %v6628_v54 = vadd.f32 %v14000_v17, %v6589_v5  ;;  %v14054_v7 = vpop.permute.xlu0 %6715 }
 0x75f   : > { %v6660_v24 = vmax.f32 %v6628_v54, 0.0  ;;  %6819 = vrot.lane.b32.xlu0 %v6659_v11, %s9696_s28  ;;  %v14043_v46 = vpop.permute.xlu1 %6709 }
 0x761   : > { %6821 = vrot.lane.b32.xlu1 %v6660_v24, %s9696_s28  ;;  %v14060_v21 = vpop.permute.xlu0 %6719 }
 0x763   : > { %v14049_v25 = vpop.permute.xlu1 %6713 }
 0x765   : > { %v14065_v54 = vpop.permute.xlu0 %6723 }
 0x767   : > { %v14057_v29 = vpop.permute.xlu1 %6717 }
 0x768   : > { %v6462_v49 = vpop.f32.mrb[68].mxu0 }
 0x769   : > { %v6590_v0 = vmul.f32 %v13998_v34, %v6462_v49  ;;  %v6464_v59 = vpop.f32.mrb[69].mxu0 }
 0x76a   : > { %v6465_v3 = vpop.f32.mrb[70].mxu0 }
 0x76b   : > { %v6629_v26 = vadd.f32 %v14000_v17, %v6590_v0  ;;  %v6591_v6 = vmul.f32 %v13998_v34, %v6465_v3  ;;  %v6467_v43 = vpop.f32.mrb[71].mxu0  ;;  %v14062_v40 = vpop.permute.xlu1 %6721 }
 0x76c   : > { %v14073_v43 = vpop.permute.xlu0 %6727 }
 0x76d   : > { %v6661_v27 = vmax.f32 %v6629_v26, 0.0  ;;  %v6630_v53 = vadd.f32 %v14000_v17, %v6591_v6 }
 0x76f   : > { %v6662_v1 = vmax.f32 %v6630_v53, 0.0  ;;  %6823 = vrot.lane.b32.xlu0 %v6661_v27, %s9696_s28  ;;  %v14069_v59 = vpop.permute.xlu1 %6725 }
 0x770   : > { %v14078_v53 = vpop.permute.xlu0 %6731 }
 0x771   : > { %6825 = vrot.lane.b32.xlu1 %v6662_v1, %s9696_s28 }
 0x773   : > { %v14076_v27 = vpop.permute.xlu1 %6729 }
 0x774   : > { %v6470_v4 = vpop.f32.mrb[72].mxu0 }
 0x775   : > { %v6592_v36 = vmul.f32 %v13998_v34, %v6470_v4  ;;  %v6472_v58 = vpop.f32.mrb[73].mxu0 }
 0x776   : > { %v6473_v8 = vpop.f32.mrb[74].mxu0 }
 0x777   : > { %v6631_v44 = vadd.f32 %v14000_v17, %v6592_v36  ;;  %v6593_v48 = vmul.f32 %v13998_v34, %v6473_v8  ;;  %v6475_v41 = vpop.f32.mrb[75].mxu0  ;;  %v14080_v1 = vpop.permute.xlu1 %6733 }
 0x779   : > { %v6663_v15 = vmax.f32 %v6631_v44, 0.0  ;;  %v6632_v60 = vadd.f32 %v14000_v17, %v6593_v48  ;;  %v14083_v44 = vpop.permute.xlu0 %6735 }
 0x77b   : > { %v6664_v22 = vmax.f32 %v6632_v60, 0.0  ;;  %6827 = vrot.lane.b32.xlu0 %v6663_v15, %s9696_s28  ;;  %v14087_v60 = vpop.permute.xlu1 %6737 }
 0x77d   : > { %6829 = vrot.lane.b32.xlu1 %v6664_v22, %s9696_s28 }
 0x784   : > { %v6478_v28 = vpop.f32.mrb[76].mxu0 }
 0x785   : > { %v6594_v51 = vmul.f32 %v13998_v34, %v6478_v28  ;;  %v6480_v42 = vpop.f32.mrb[77].mxu0 }
 0x786   : > { %v6481_v18 = vpop.f32.mrb[78].mxu0  ;;  %v14091_v42 = vpop.permute.xlu0 %6739 }
 0x787   : > { %v6633_v12 = vadd.f32 %v14000_v17, %v6594_v51  ;;  %v6595_v39 = vmul.f32 %v13998_v34, %v6481_v18  ;;  %v6483_v23 = vpop.f32.mrb[79].mxu0  ;;  %v14094_v18 = vpop.permute.xlu1 %6741 }
 0x789   : > { %v6665_v32 = vmax.f32 %v6633_v12, 0.0  ;;  %v6634_v35 = vadd.f32 %v14000_v17, %v6595_v39 }
 0x78a   : > { %v14096_v12 = vpop.permute.xlu0 %6743 }
 0x78b   : > { %v6666_v31 = vmax.f32 %v6634_v35, 0.0  ;;  %6831 = vrot.lane.b32.xlu0 %v6665_v32, %s9696_s28  ;;  %v14098_v39 = vpop.permute.xlu1 %6745 }
 0x78d   : > { %6833 = vrot.lane.b32.xlu1 %v6666_v31, %s9696_s28 }
 0x78e   : > { %v14100_v32 = vpop.permute.xlu0 %6747 }
 0x790   : > { %v6486_v30 = vpop.f32.mrb[80].mxu0 }
 0x791   : > { %v6596_v33 = vmul.f32 %v13998_v34, %v6486_v30  ;;  %v6488_v45 = vpop.f32.mrb[81].mxu0 }
 0x792   : > { %v6489_v57 = vpop.f32.mrb[82].mxu0 }
 0x793   : > { %v6635_v19 = vadd.f32 %v14000_v17, %v6596_v33  ;;  %v6597_v16 = vmul.f32 %v13998_v34, %v6489_v57  ;;  %v6491_v20 = vpop.f32.mrb[83].mxu0  ;;  %v14103_v33 = vpop.permute.xlu1 %6749 }
 0x795   : > { %v6667_v52 = vmax.f32 %v6635_v19, 0.0  ;;  %v6636_v14 = vadd.f32 %v14000_v17, %v6597_v16 }
 0x797   : > { %v6668_v47 = vmax.f32 %v6636_v14, 0.0  ;;  %6835 = vrot.lane.b32.xlu0 %v6667_v52, %s9696_s28  ;;  %v14110_v14 = vpop.permute.xlu0 %6751 }
 0x799   : > { %6837 = vrot.lane.b32.xlu1 %v6668_v47, %s9696_s28 }
 0x7a0   : > { %v6494_v62 = vpop.f32.mrb[84].mxu0 }
 0x7a1   : > { %v6598_v5 = vmul.f32 %v13998_v34, %v6494_v62  ;;  %v6496_v13 = vpop.f32.mrb[85].mxu0 }
 0x7a2   : > { %v6497_v11 = vpop.f32.mrb[86].mxu0  ;;  %v14115_v13 = vpop.permute.xlu1 %6753 }
 0x7a3   : > { %v6637_v24 = vadd.f32 %v14000_v17, %v6598_v5  ;;  %v6599_v49 = vmul.f32 %v13998_v34, %v6497_v11  ;;  %v6499_v0 = vpop.f32.mrb[87].mxu0 }
 0x7a5   : > { %v6669_v3 = vmax.f32 %v6637_v24, 0.0  ;;  %v6638_v26 = vadd.f32 %v14000_v17, %v6599_v49  ;;  %v15004_v24 = vld [vmem:[#allocation30_spill] sm:$0xff] }
 0x7a6   : > { %v15005_v49 = vmax.f32 %v15004_v24, 0.0 }
 0x7a7   : > { %v6670_v6 = vmax.f32 %v6638_v26, 0.0  ;;  %6839 = vrot.lane.b32.xlu0 %v6669_v3, %s9696_s28 }
 0x7a8   : > { %v6915_v0 = vsel %vm530_vm0, %v15005_v49, %v14014_v50 }
 0x7a9   : > { %6841 = vrot.lane.b32.xlu1 %v6670_v6, %s9696_s28  ;;  %v15006_v6 = vld [vmem:[#allocation33_spill] sm:$0xff] }
 0x7b2   : > { %v6502_v4 = vpop.f32.mrb[88].mxu0 }
 0x7b3   : > { %v6600_v36 = vmul.f32 %v13998_v34, %v6502_v4  ;;  %v6504_v58 = vpop.f32.mrb[89].mxu0  ;;  %v15007_v4 = vmax.f32 %v15006_v6, 0.0 }
 0x7b4   : > { %v6505_v8 = vpop.f32.mrb[90].mxu0 }
 0x7b5   : > { %v6639_v48 = vadd.f32 %v14000_v17, %v6600_v36  ;;  %v6601_v41 = vmul.f32 %v13998_v34, %v6505_v8  ;;  %v6507_v15 = vpop.f32.mrb[91].mxu0  ;;  %v6916_v36 = vsel %vm530_vm0, %v15007_v4, %v14016_v10  ;;  %v15008_v8 = vld [vmem:[#allocation43_spill] sm:$0xff] }
 0x7b7   : > { %v6671_v22 = vmax.f32 %v6639_v48, 0.0  ;;  %v6640_v28 = vadd.f32 %v14000_v17, %v6601_v41  ;;  %v15009_v48 = vmax.f32 %v15008_v8, 0.0 }
 0x7b9   : > { %v6672_v51 = vmax.f32 %v6640_v28, 0.0  ;;  %6843 = vrot.lane.b32.xlu0 %v6671_v22, %s9696_s28  ;;  %v6917_v41 = vsel %vm530_vm0, %v15009_v48, %v14021_v61  ;;  %v15010_v28 = vld [vmem:[#allocation53_spill] sm:$0xff] }
 0x7bb   : > { %6845 = vrot.lane.b32.xlu1 %v6672_v51, %s9696_s28  ;;  %v15011_v51 = vmax.f32 %v15010_v28, 0.0 }
 0x7c6   : > { %v6510_v23 = vpop.f32.mrb[92].mxu0 }
 0x7c7   : > { %v6602_v35 = vmul.f32 %v13998_v34, %v6510_v23  ;;  %v6512_v31 = vpop.f32.mrb[93].mxu0  ;;  %v6918_v23 = vsel %vm530_vm0, %v15011_v51, %v14024_v2 }
 0x7c8   : > { %v6513_v30 = vpop.f32.mrb[94].mxu0 }
 0x7c9   : > { %v6641_v45 = vadd.f32 %v14000_v17, %v6602_v35  ;;  %v6603_v57 = vmul.f32 %v13998_v34, %v6513_v30  ;;  %v6515_v19 = vpop.f32.mrb[95].mxu0 }
 0x7cb   : > { %v6673_v16 = vmax.f32 %v6641_v45, 0.0  ;;  %v6642_v20 = vadd.f32 %v14000_v17, %v6603_v57 }
 0x7cc   : > { %v14108_v52 = vpop.f32.mrb[96].mxu1 }
 0x7cd   : > { %v6674_v47 = vmax.f32 %v6642_v20, 0.0  ;;  %6847 = vrot.lane.b32.xlu0 %v6673_v16, %s9696_s28  ;;  %v6544_v62 = vpop.f32.mrb[97].mxu1 }
 0x7ce   : > { %v14113_v5 = vpop.f32.mrb[98].mxu1  ;;  %v15012_v62 = vld [vmem:[#allocation63_spill] sm:$0xff] }
 0x7cf   : > { %6849 = vrot.lane.b32.xlu1 %v6674_v47, %s9696_s28  ;;  %v6547_v11 = vpop.f32.mrb[99].mxu1 }
 0x7d0   : > { %v15013_v11 = vmax.f32 %v15012_v62, 0.0  ;;  %v15020_v62 = vld [vmem:[#allocation34_spill] sm:$0xff] }
 0x7d1   : > { %v6820_v3 = vpop.permute.xlu0 %6819 }
 0x7d2   : > { %v6947_v26 = vsel %vm4042_vm4, %v6915_v0, %v6820_v3  ;;  %v6919_v24 = vsel %vm530_vm0, %v15013_v11, %v14028_v56  ;;  %v15014_v3 = vld [vmem:[#allocation72_spill] sm:$0xff]  ;;  %v15021_v11 = vmax.f32 %v15020_v62, 0.0 }
 0x7d3   : > { %6979 = vst.msk [vmem:[%s14129_s18] sm:$0xff] %vm1725_vm1, %v6947_v26  ;;  %v6822_v58 = vpop.permute.xlu1 %6821  ;;  %v15015_v26 = vmax.f32 %v15014_v3, 0.0 }
 0x7d4   : > { %v6948_v50 = vsel %vm4042_vm4, %v6916_v36, %v6822_v58  ;;  %v15016_v58 = vld [vmem:[#allocation32_spill] sm:$0xff] }
 0x7d5   : > { %6980 = vst.msk [vmem:[%s14129_s18 + $0x8] sm:$0xff] %vm1725_vm1, %v6948_v50  ;;  %v6920_v6 = vsel %vm530_vm0, %v15015_v26, %v14030_v9  ;;  %v15017_v50 = vmax.f32 %v15016_v58, 0.0 }
 0x7d7   : > { %v6921_v56 = vsel %vm530_vm0, %v15017_v50, %v14032_v55 }
 0x7e1   : > { %v6824_v10 = vpop.permute.xlu0 %6823 }
 0x7e2   : > { %v6949_v15 = vsel %vm4042_vm4, %v6917_v41, %v6824_v10  ;;  %v6518_v22 = vpop.f32.mrb[96].mxu0  ;;  %v15018_v41 = vld [vmem:[#allocation31_spill] sm:$0xff] }
 0x7e3   : > { %6981 = vst.msk [vmem:[%s14129_s18 + $0x10] sm:$0xff] %vm1725_vm1, %v6949_v15  ;;  %v6604_v35 = vmul.f32 %v13998_v34, %v6518_v22  ;;  %v6826_v31 = vpop.permute.xlu1 %6825  ;;  %v6520_v30 = vpop.f32.mrb[97].mxu0  ;;  %v15019_v10 = vmax.f32 %v15018_v41, 0.0  ;;  %v15024_v41 = vld [vmem:[#allocation54_spill] sm:$0xff] }
 0x7e4   : > { %v6950_v45 = vsel %vm4042_vm4, %v6918_v23, %v6826_v31  ;;  %v6521_v57 = vpop.f32.mrb[98].mxu0 }
 0x7e5   : > { %v6643_v61 = vadd.f32 %v14000_v17, %v6604_v35  ;;  %6982 = vst.msk [vmem:[%s14129_s18 + $0x18] sm:$0xff] %vm1725_vm1, %v6950_v45  ;;  %v6605_v19 = vmul.f32 %v13998_v34, %v6521_v57  ;;  %v6523_v16 = vpop.f32.mrb[99].mxu0  ;;  %v6922_v9 = vsel %vm530_vm0, %v15019_v10, %v14035_v63  ;;  %v15025_v10 = vmax.f32 %v15024_v41, 0.0 }
 0x7e7   : > { %v6675_v20 = vmax.f32 %v6643_v61, 0.0  ;;  %v6644_v2 = vadd.f32 %v14000_v17, %v6605_v19 }
 0x7e9   : > { %v6676_v47 = vmax.f32 %v6644_v2, 0.0  ;;  %6851 = vrot.lane.b32.xlu0 %v6675_v20, %s9696_s28 }
 0x7eb   : > { %6853 = vrot.lane.b32.xlu1 %v6676_v47, %s9696_s28 }
 0x7ed   : > { %v6828_v49 = vpop.permute.xlu0 %6827 }
 0x7ee   : > { %v6951_v0 = vsel %vm4042_vm4, %v6919_v24, %v6828_v49  ;;  %v6923_v24 = vsel %vm530_vm0, %v15021_v11, %v14040_v37 }
 0x7ef   : > { %6983 = vst.msk [vmem:[%s14129_s18 + $0x20] sm:$0xff] %vm1725_vm1, %v6951_v0  ;;  %v6830_v4 = vpop.permute.xlu1 %6829 }
 0x7f0   : > { %v6952_v36 = vsel %vm4042_vm4, %v6920_v6, %v6830_v4  ;;  %v15022_v6 = vld [vmem:[#allocation44_spill] sm:$0xff] }
 0x7f1   : > { %6984 = vst.msk [vmem:[%s14129_s18 + $0x28] sm:$0xff] %vm1725_vm1, %v6952_v36  ;;  %v15023_v4 = vmax.f32 %v15022_v6, 0.0 }
 0x7f3   : > { %v6924_v36 = vsel %vm530_vm0, %v15023_v4, %v14043_v46 }
 0x7fd   : > { %v6832_v8 = vpop.permute.xlu0 %6831 }
 0x7fe   : > { %v6953_v48 = vsel %vm4042_vm4, %v6921_v56, %v6832_v8  ;;  %v6526_v15 = vpop.f32.mrb[100].mxu0 }
 0x7ff   : > { %6985 = vst.msk [vmem:[%s14129_s18 + $0x30] sm:$0xff] %vm1725_vm1, %v6953_v48  ;;  %v6834_v22 = vpop.permute.xlu1 %6833  ;;  %v6606_v28 = vmul.f32 %v13998_v34, %v6526_v15  ;;  %v6528_v23 = vpop.f32.mrb[101].mxu0 }
 0x800   : > { %v6954_v51 = vsel %vm4042_vm4, %v6922_v9, %v6834_v22  ;;  %v6550_v35 = vpop.f32.mrb[100].mxu1  ;;  %v6529_v55 = vpop.f32.mrb[102].mxu0  ;;  %v6925_v9 = vsel %vm530_vm0, %v15025_v10, %v14046_v38 }
 0x801   : > { %6986 = vst.msk [vmem:[%s14129_s18 + $0x38] sm:$0xff] %vm1725_vm1, %v6954_v51  ;;  %v6552_v31 = vpop.f32.mrb[101].mxu1  ;;  %v6645_v30 = vadd.f32 %v14000_v17, %v6606_v28  ;;  %v6607_v45 = vmul.f32 %v13998_v34, %v6529_v55  ;;  %v6531_v57 = vpop.f32.mrb[103].mxu0  ;;  %v15026_v28 = vld [vmem:[#allocation64_spill] sm:$0xff]  ;;  %v6610_v55 = vmul.f32 %v13998_v34, %v14108_v52 }
 0x802   : > { %v6553_v63 = vpop.f32.mrb[102].mxu1  ;;  %v15027_v51 = vmax.f32 %v15026_v28, 0.0 }
 0x803   : > { %v6555_v61 = vpop.f32.mrb[103].mxu1  ;;  %v6677_v19 = vmax.f32 %v6645_v30, 0.0  ;;  %v6646_v16 = vadd.f32 %v14000_v17, %v6607_v45  ;;  %v6649_v52 = vadd.f32 %v14000_v17, %v6610_v55 }
 0x804   : > { %v6926_v23 = vsel %vm530_vm0, %v15027_v51, %v14049_v25  ;;  %v6611_v61 = vmul.f32 %v13998_v34, %v14113_v5 }
 0x805   : > { %v6678_v20 = vmax.f32 %v6646_v16, 0.0  ;;  %6855 = vrot.lane.b32.xlu0 %v6677_v19, %s9696_s28  ;;  %v6681_v5 = vmax.f32 %v6649_v52, 0.0  ;;  %v15032_v52 = vld [vmem:[#allocation45_spill] sm:$0xff] }
 0x806   : > { %v6650_v11 = vadd.f32 %v14000_v17, %v6611_v61 }
 0x807   : > { %v6558_v2 = vpop.f32.mrb[104].mxu1  ;;  %6857 = vrot.lane.b32.xlu1 %v6678_v20, %s9696_s28  ;;  %v6612_v20 = vmul.f32 %v13998_v34, %v6550_v35 }
 0x808   : > { %v6560_v47 = vpop.f32.mrb[105].mxu1  ;;  %v6682_v4 = vmax.f32 %v6650_v11, 0.0  ;;  %v15034_v11 = vld [vmem:[#allocation55_spill] sm:$0xff] }
 0x809   : > { %v6836_v49 = vpop.permute.xlu0 %6835  ;;  %v6561_v0 = vpop.f32.mrb[106].mxu1 }
 0x80a   : > { %v6955_v3 = vsel %vm4042_vm4, %v6923_v24, %v6836_v49  ;;  %v6563_v26 = vpop.f32.mrb[107].mxu1  ;;  %v6613_v24 = vmul.f32 %v13998_v34, %v6553_v63 }
 0x80b   : > { %6987 = vst.msk [vmem:[%s14129_s18 + $0x40] sm:$0xff] %vm1725_vm1, %v6955_v3  ;;  %v6838_v58 = vpop.permute.xlu1 %6837  ;;  %v6651_v3 = vadd.f32 %v14000_v17, %v6612_v20  ;;  %v6614_v26 = vmul.f32 %v13998_v34, %v6558_v2  ;;  %v15033_v20 = vmax.f32 %v15032_v52, 0.0  ;;  %v15054_v52 = vld [vmem:[#allocation57_spill] sm:$0xff] }
 0x80c   : > { %v6956_v50 = vsel %vm4042_vm4, %v6924_v36, %v6838_v58  ;;  %v6652_v35 = vadd.f32 %v14000_v17, %v6613_v24  ;;  %v6615_v36 = vmul.f32 %v13998_v34, %v6561_v0  ;;  %v15028_v0 = vld [vmem:[#allocation73_spill] sm:$0xff]  ;;  %v15035_v24 = vmax.f32 %v15034_v11, 0.0 }
 0x80d   : > { %6988 = vst.msk [vmem:[%s14129_s18 + $0x48] sm:$0xff] %vm1725_vm1, %v6956_v50  ;;  %v6683_v50 = vmax.f32 %v6651_v3, 0.0 }
 0x80e   : > { %v6684_v41 = vmax.f32 %v6652_v35, 0.0  ;;  %v6654_v10 = vadd.f32 %v14000_v17, %v6615_v36  ;;  %v15038_v36 = vld [vmem:[#allocation74_spill] sm:$0xff] }
 0x814   : > { %v6566_v56 = vpop.f32.mrb[108].mxu1 }
 0x815   : > { %v6568_v37 = vpop.f32.mrb[109].mxu1 }
 0x816   : > { %v6569_v8 = vpop.f32.mrb[110].mxu1  ;;  %v6653_v37 = vadd.f32 %v14000_v17, %v6614_v26  ;;  %v15036_v26 = vld [vmem:[#allocation65_spill] sm:$0xff] }
 0x817   : > { %v6571_v48 = vpop.f32.mrb[111].mxu1 }
 0x818   : > { %v6616_v48 = vmul.f32 %v13998_v34, %v6566_v56 }
 0x819   : > { %v6840_v15 = vpop.permute.xlu0 %6839 }
 0x81a   : > { %v6957_v46 = vsel %vm4042_vm4, %v6925_v9, %v6840_v15  ;;  %v6534_v22 = vpop.f32.mrb[104].mxu0  ;;  %v6617_v9 = vmul.f32 %v13998_v34, %v6569_v8  ;;  %v15029_v15 = vmax.f32 %v15028_v0, 0.0  ;;  %v6655_v56 = vadd.f32 %v14000_v17, %v6616_v48  ;;  %v15030_v8 = vld [vmem:[#allocation35_spill] sm:$0xff] }
 0x81b   : > { %6989 = vst.msk [vmem:[%s14129_s18 + $0x50] sm:$0xff] %vm1725_vm1, %v6957_v46  ;;  %v6608_v31 = vmul.f32 %v13998_v34, %v6534_v22  ;;  %v6842_v30 = vpop.permute.xlu1 %6841  ;;  %v6536_v45 = vpop.f32.mrb[105].mxu0  ;;  %v6685_v22 = vmax.f32 %v6653_v37, 0.0  ;;  %v15031_v55 = vmax.f32 %v15030_v8, 0.0  ;;  %v15040_v37 = vld [vmem:[#allocation36_spill] sm:$0xff] }
 0x81c   : > { %v6958_v38 = vsel %vm4042_vm4, %v6926_v23, %v6842_v30  ;;  %v6537_v57 = vpop.f32.mrb[106].mxu0  ;;  %v6927_v46 = vsel %vm530_vm0, %v15029_v15, %v14054_v7  ;;  %v6686_v30 = vmax.f32 %v6654_v10, 0.0  ;;  %v6656_v45 = vadd.f32 %v14000_v17, %v6617_v9  ;;  %v15042_v10 = vld [vmem:[#allocation46_spill] sm:$0xff] }
 0x81d   : > { %v6647_v19 = vadd.f32 %v14000_v17, %v6608_v31  ;;  %6990 = vst.msk [vmem:[%s14129_s18 + $0x58] sm:$0xff] %vm1725_vm1, %v6958_v38  ;;  %v6609_v25 = vmul.f32 %v13998_v34, %v6537_v57  ;;  %v6539_v16 = vpop.f32.mrb[107].mxu0  ;;  %v6928_v31 = vsel %vm530_vm0, %v15031_v55, %v14057_v29  ;;  %v6687_v61 = vmax.f32 %v6655_v56, 0.0 }
 0x81e   : > { %v6688_v29 = vmax.f32 %v6656_v45, 0.0  ;;  %v15041_v48 = vmax.f32 %v15040_v37, 0.0 }
 0x81f   : > { %v6679_v47 = vmax.f32 %v6647_v19, 0.0  ;;  %v6648_v62 = vadd.f32 %v14000_v17, %v6609_v25 }
 0x821   : > { %v6680_v49 = vmax.f32 %v6648_v62, 0.0  ;;  %6859 = vrot.lane.b32.xlu0 %v6679_v47, %s9696_s28  ;;  %v6929_v47 = vsel %vm530_vm0, %v15033_v20, %v14060_v21 }
 0x823   : > { %6861 = vrot.lane.b32.xlu1 %v6680_v49, %s9696_s28  ;;  %v6930_v49 = vsel %vm530_vm0, %v15035_v24, %v14062_v40  ;;  %v15039_v40 = vmax.f32 %v15038_v36, 0.0 }
 0x824   : > { %v6574_v6 = vpop.f32.mrb[112].mxu1 }
 0x825   : > { %6863 = vrot.lane.b32.xlu0 %v6681_v5, %s9696_s28  ;;  %v6576_v58 = vpop.f32.mrb[113].mxu1  ;;  %v6618_v28 = vmul.f32 %v13998_v34, %v6574_v6  ;;  %v15037_v6 = vmax.f32 %v15036_v26, 0.0 }
 0x826   : > { %v6577_v63 = vpop.f32.mrb[114].mxu1  ;;  %v6932_v58 = vsel %vm530_vm0, %v15039_v40, %v14069_v59  ;;  %v15043_v59 = vmax.f32 %v15042_v10, 0.0  ;;  %v15062_v40 = vld [vmem:[#allocation48_spill] sm:$0xff] }
 0x827   : > { %6865 = vrot.lane.b32.xlu1 %v6682_v4, %s9696_s28  ;;  %v6579_v2 = vpop.f32.mrb[115].mxu1  ;;  %v6619_v7 = vmul.f32 %v13998_v34, %v6577_v63  ;;  %v6657_v19 = vadd.f32 %v14000_v17, %v6618_v28  ;;  %v6931_v21 = vsel %vm530_vm0, %v15037_v6, %v14065_v54  ;;  %v6933_v54 = vsel %vm530_vm0, %v15041_v48, %v14073_v43 }
 0x828   : > { %v6934_v9 = vsel %vm530_vm0, %v15043_v59, %v14076_v27 }
 0x829   : > { %6867 = vrot.lane.b32.xlu0 %v6683_v50, %s9696_s28  ;;  %v6658_v25 = vadd.f32 %v14000_v17, %v6619_v7  ;;  %v6689_v34 = vmax.f32 %v6657_v19, 0.0 }
 0x82b   : > { %v6844_v51 = vpop.permute.xlu0 %6843  ;;  %6869 = vrot.lane.b32.xlu1 %v6684_v41, %s9696_s28  ;;  %v6690_v16 = vmax.f32 %v6658_v25, 0.0 }
 0x82c   : > { %v6959_v23 = vsel %vm4042_vm4, %v6927_v46, %v6844_v51  ;;  %v15044_v46 = vld [vmem:[#allocation56_spill] sm:$0xff]  ;;  %v15046_v51 = vld [vmem:[#allocation66_spill] sm:$0xff] }
 0x82d   : > { %6991 = vst.msk [vmem:[%s14129_s18 + $0x60] sm:$0xff] %vm1725_vm1, %v6959_v23  ;;  %v6846_v38 = vpop.permute.xlu1 %6845  ;;  %6871 = vrot.lane.b32.xlu0 %v6685_v22, %s9696_s28  ;;  %v15045_v43 = vmax.f32 %v15044_v46, 0.0  ;;  %v15047_v27 = vmax.f32 %v15046_v51, 0.0 }
 0x82e   : > { %v6960_v57 = vsel %vm4042_vm4, %v6928_v31, %v6846_v38  ;;  %v15048_v31 = vld [vmem:[#allocation75_spill] sm:$0xff]  ;;  %v15050_v38 = vld [vmem:[#allocation37_spill] sm:$0xff] }
 0x82f   : > { %6992 = vst.msk [vmem:[%s14129_s18 + $0x68] sm:$0xff] %vm1725_vm1, %v6960_v57  ;;  %6873 = vrot.lane.b32.xlu1 %v6686_v30, %s9696_s28  ;;  %v6935_v22 = vsel %vm530_vm0, %v15045_v43, %v14078_v53  ;;  %v6936_v23 = vsel %vm530_vm0, %v15047_v27, %v14080_v1  ;;  %v15049_v30 = vmax.f32 %v15048_v31, 0.0  ;;  %v15051_v1 = vmax.f32 %v15050_v38, 0.0 }
 0x831   : > { %6875 = vrot.lane.b32.xlu0 %v6687_v61, %s9696_s28  ;;  %v6937_v53 = vsel %vm530_vm0, %v15049_v30, %v14083_v44  ;;  %v6938_v57 = vsel %vm530_vm0, %v15051_v1, %v14087_v60  ;;  %v15055_v60 = vmax.f32 %v15054_v52, 0.0 }
 0x833   : > { %6877 = vrot.lane.b32.xlu1 %v6688_v29, %s9696_s28  ;;  %v15052_v29 = vld [vmem:[#allocation47_spill] sm:$0xff]  ;;  %v6940_v20 = vsel %vm530_vm0, %v15055_v60, %v14094_v18  ;;  %v15058_v18 = vld [vmem:[#allocation76_spill] sm:$0xff] }
 0x834   : > { %v15053_v44 = vmax.f32 %v15052_v29, 0.0 }
 0x835   : > { %6879 = vrot.lane.b32.xlu0 %v6689_v34, %s9696_s28 }
 0x836   : > { %v6939_v25 = vsel %vm530_vm0, %v15053_v44, %v14091_v42 }
 0x837   : > { %6881 = vrot.lane.b32.xlu1 %v6690_v16, %s9696_s28  ;;  %s9699_s28 = smov [#allocation21]  }
 0x838   : > { %s9592_s26 = sshll.u32 %s9699_s28, 4  ;;  %s9593_s26 = int_to_ptr.vmem [resolvable:$false] %s9592_s26 }
 0x839   : > { %s9594_s12 = scalar_lea.vmem %s9593_s26, 8192  ;;  %p9595_p6 = scmp.lt.s32.totalorder %s14394_s24, %s9593_s26 }
 0x83a   : > { %p9596_p10 = scmp.lt.s32.totalorder %s9594_s12, %s9588_s11 }
 0x83c   : > { %p9597_p11 = por %p9596_p10, %p9595_p6 }
 0x83e   : > { %p9598_p3 = pnand %p9597_p11, %p9591_p8 }
 0x83f   : > { %v6848_v62 = vpop.permute.xlu0 %6847 }
 0x840   : > { %v6961_v17 = vsel %vm4042_vm4, %v6929_v47, %v6848_v62 }
 0x841   : > { %6993 = vst.msk [vmem:[%s14129_s18 + $0x70] sm:$0xff] %vm1725_vm1, %v6961_v17  ;;  %v6850_v5 = vpop.permute.xlu1 %6849  ;;  %v15056_v17 = vld [vmem:[#allocation67_spill] sm:$0xff] }
 0x842   : > { %v6962_v3 = vsel %vm4042_vm4, %v6930_v49, %v6850_v5  ;;  %v15057_v42 = vmax.f32 %v15056_v17, 0.0  ;;  %v15059_v5 = vmax.f32 %v15058_v18, 0.0 }
 0x843   : > { %6994 = vst.msk [vmem:[%s14129_s18 + $0x78] sm:$0xff] %vm1725_vm1, %v6962_v3 }
 0x844   : > { %v6941_v11 = vsel %vm530_vm0, %v15057_v42, %v14096_v12  ;;  %v6942_v3 = vsel %vm530_vm0, %v15059_v5, %v14098_v39 }
 0x85b   : > { %v6852_v4 = vpop.permute.xlu0 %6851 }
 0x85c   : > { %v6963_v35 = vsel %vm4042_vm4, %v6931_v21, %v6852_v4  ;;  %v15060_v21 = vld [vmem:[#allocation38_spill] sm:$0xff] }
 0x85d   : > { %6995 = vst.msk [vmem:[%s14129_s18 + $0x80] sm:$0xff] %vm1725_vm1, %v6963_v35  ;;  %v6854_v63 = vpop.permute.xlu1 %6853  ;;  %v15061_v12 = vmax.f32 %v15060_v21, 0.0 }
 0x85e   : > { %v6964_v50 = vsel %vm4042_vm4, %v6932_v58, %v6854_v63  ;;  %v15063_v58 = vmax.f32 %v15062_v40, 0.0 }
 0x85f   : > { %6996 = vst.msk [vmem:[%s14129_s18 + $0x88] sm:$0xff] %vm1725_vm1, %v6964_v50  ;;  %v6943_v4 = vsel %vm530_vm0, %v15061_v12, %v14100_v32  ;;  %v15064_v50 = vld [vmem:[#allocation58_spill] sm:$0xff] }
 0x860   : > { %v6944_v39 = vsel %vm530_vm0, %v15063_v58, %v14103_v33  ;;  %v15065_v37 = vmax.f32 %v15064_v50, 0.0 }
 0x862   : > { %v6945_v48 = vsel %vm530_vm0, %v15065_v37, %v14110_v14 }
 0x877   : > { %v6856_v2 = vpop.permute.xlu0 %6855 }
 0x878   : > { %v6965_v41 = vsel %vm4042_vm4, %v6933_v54, %v6856_v2  ;;  %v15067_v2 = vld [vmem:[#allocation68_spill] sm:$0xff] }
 0x879   : > { %6997 = vst.msk [vmem:[%s14129_s18 + $0x90] sm:$0xff] %vm1725_vm1, %v6965_v41  ;;  %v6858_v0 = vpop.permute.xlu1 %6857  ;;  %v15068_v41 = vmax.f32 %v15067_v2, 0.0 }
 0x87a   : > { %v6966_v15 = vsel %vm4042_vm4, %v6934_v9, %v6858_v0 }
 0x87b   : > { %6998 = vst.msk [vmem:[%s14129_s18 + $0x98] sm:$0xff] %vm1725_vm1, %v6966_v15  ;;  %v6946_v14 = vsel %vm530_vm0, %v15068_v41, %v14115_v13 }
 0x893   : > { %v6860_v56 = vpop.permute.xlu0 %6859 }
 0x894   : > { %v6967_v28 = vsel %vm4042_vm4, %v6935_v22, %v6860_v56 }
 0x895   : > { %6999 = vst.msk [vmem:[%s14129_s18 + $0xa0] sm:$0xff] %vm1725_vm1, %v6967_v28  ;;  %v6862_v8 = vpop.permute.xlu1 %6861 }
 0x896   : > { %v6968_v55 = vsel %vm4042_vm4, %v6936_v23, %v6862_v8 }
 0x897   : > { %7000 = vst.msk [vmem:[%s14129_s18 + $0xa8] sm:$0xff] %vm1725_vm1, %v6968_v55  ;;  %v6864_v45 = vpop.permute.xlu0 %6863 }
 0x898   : > { %v6969_v7 = vsel %vm4042_vm4, %v6937_v53, %v6864_v45 }
 0x899   : > { %7001 = vst.msk [vmem:[%s14129_s18 + $0xb0] sm:$0xff] %vm1725_vm1, %v6969_v7  ;;  %v6866_v61 = vpop.permute.xlu1 %6865 }
 0x89a   : > { %v6970_v19 = vsel %vm4042_vm4, %v6938_v57, %v6866_v61 }
 0x89b   : > { %7002 = vst.msk [vmem:[%s14129_s18 + $0xb8] sm:$0xff] %vm1725_vm1, %v6970_v19  ;;  %v6868_v34 = vpop.permute.xlu0 %6867 }
 0x89c   : > { %v6971_v16 = vsel %vm4042_vm4, %v6939_v25, %v6868_v34 }
 0x89d   : > { %7003 = vst.msk [vmem:[%s14129_s18 + $0xc0] sm:$0xff] %vm1725_vm1, %v6971_v16  ;;  %v6870_v47 = vpop.permute.xlu1 %6869 }
 0x89e   : > { %v6972_v62 = vsel %vm4042_vm4, %v6940_v20, %v6870_v47 }
 0x89f   : > { %7004 = vst.msk [vmem:[%s14129_s18 + $0xc8] sm:$0xff] %vm1725_vm1, %v6972_v62  ;;  %v6872_v24 = vpop.permute.xlu0 %6871 }
 0x8a0   : > { %v6973_v49 = vsel %vm4042_vm4, %v6941_v11, %v6872_v24 }
 0x8a1   : > { %7005 = vst.msk [vmem:[%s14129_s18 + $0xd0] sm:$0xff] %vm1725_vm1, %v6973_v49  ;;  %v6874_v26 = vpop.permute.xlu1 %6873 }
 0x8a2   : > { %v6974_v6 = vsel %vm4042_vm4, %v6942_v3, %v6874_v26 }
 0x8a3   : > { %7006 = vst.msk [vmem:[%s14129_s18 + $0xd8] sm:$0xff] %vm1725_vm1, %v6974_v6  ;;  %v6876_v35 = vpop.permute.xlu0 %6875 }
 0x8a4   : > { %v6975_v36 = vsel %vm4042_vm4, %v6943_v4, %v6876_v35 }
 0x8a5   : > { %7007 = vst.msk [vmem:[%s14129_s18 + $0xe0] sm:$0xff] %vm1725_vm1, %v6975_v36  ;;  %v6878_v63 = vpop.permute.xlu1 %6877 }
 0x8a6   : > { %v6976_v32 = vsel %vm4042_vm4, %v6944_v39, %v6878_v63 }
 0x8a7   : > { %7008 = vst.msk [vmem:[%s14129_s18 + $0xe8] sm:$0xff] %vm1725_vm1, %v6976_v32  ;;  %v6880_v54 = vpop.permute.xlu0 %6879 }
 0x8a8   : > { %v6977_v33 = vsel %vm4042_vm4, %v6945_v48, %v6880_v54 }
 0x8a9   : > { %7009 = vst.msk [vmem:[%s14129_s18 + $0xf0] sm:$0xff] %vm1725_vm1, %v6977_v33  ;;  %v6882_v10 = vpop.permute.xlu1 %6881 }
 0x8aa   : > { %v6978_v59 = vsel %vm4042_vm4, %v6946_v14, %v6882_v10 }
 0x8ab   : > { %7010 = vst.msk [vmem:[%s14129_s18 + $0xf8] sm:$0xff] %vm1725_vm1, %v6978_v59 }
 0x8ac   : > { %9601 = shalt.err (!%p9598_p3)
}
 0x8ad   : > { %s9602_s18 = scalar_lea.hbm %s14392_s17, 4096  ;;  %s9606_s27 = scalar_lea.hbm %s15066_s30, 8192 }
 0x8ae   : > { %p9603_p5 = scmp.ne.s32.totalorder %s14392_s17, %s9602_s18  ;;  %p9607_p4 = scmp.lt.u32.totalorder %s14392_s17, %s15066_s30 }
 0x8af   : > { %p9608_p12 = scmp.lt.u32.totalorder %s9606_s27, %s9602_s18  ;;  %p9610_p13 = scmp.lt.u32.totalorder %s9602_s18, %s14392_s17 }
 0x8b0   : > { %p9604_p9 = pnand %p9603_p5, %p15069_p0 }
 0x8b1   : > { %p9609_p1 = por %p9608_p12, %p9607_p4 }
 0x8b2   : > { %p9605_p7 = pneg %p9604_p9 }
 0x8b3   : > { %p9611_p2 = por %p9610_p13, %p9609_p1 }
 0x8b5   : > { %p9612_p8 = pnand %p9611_p2, %p9605_p7 }
 0x8b7   : > { %9615 = shalt.err (!%p9612_p8)
}
 0x8b8   : > { %s9700_s11 = smov 128   ;;  %s9701_s12 = smov 8  }
 0x8b9   : > { %7530 = dma.vmem_to_hbm [thread:$0]  (%p15069_p0), %s14394_s24, 4096, %s14392_s17, %s7012_s19, %s9700_s11, %s9700_s11, %s9701_s12  }
 0x8ba PF: > { %s7040_s10 = sand.u32 1, %s9662_s13   ;;  %p15070_p6 = scmp.ne.s32.totalorder %s14672_s25, 0 }
 0x8bb   : > { %p15071_p10 = scmp.ge.s32.totalorder %s9674_s16, 2  ;;  %s7041_s18 = scalar_lea.sflag [#allocation6], %s7040_s10 }
 0x8bd   : > { %p7565_p11 = pnand %p15071_p10, %p15070_p6 }
 0x8bf   : > { %9657 = dma.done.wait (!%p7565_p11), %s7041_s18, 4096  }
 0x8c0   : > { %9659 = vsyncadd (!%p7565_p11), %s7041_s18, 4294963200  ;;  %p28_p3 = scmp.ge.s32.totalorder %s9998_s23, 4   ;;  %s15072_s13 = smov %s9666_s14 }
 0x8c1   : > { %s15073_s14 = smov %s9670_s15  ;;  %s15074_s15 = smov %s10010_s21 }
 0x8c2   : > { %s15075_s16 = smov %s9998_s23  ;;  %30 = sbr.rel (!%p28_p3) target bundleno = 12 (0xc), region = 145 }
 0x8c9   :  { %7046 = vsyncpa [#allocation5], 1 }
 0x8ca   :  { %7048 = vsyncpa [#allocation5 + $0x1], 1 }
 0x8cb   :  { %7049 = vsyncpa [#allocation8], 1 }
 0x8cc   :  { %7050 = vsyncpa [#allocation11], 1 }
 0x8cd   :  { %7051 = vsyncpa [#allocation14], 1 }
 0x8ce   :  { %7052 = vsyncpa [#allocation17], 1 }
 0x8cf   :  { %7053 = vsyncpa [#allocation20], 1 }
 0x8d0   :  { %7054 = vsyncpa [#allocation6], 1 }
 0x8d1   :  { %7056 = vsyncpa [#allocation6 + $0x1], 1 }

</bundles_post_ra>
